<compile_context>
chip_gen: v5e
topology: v5e:2x2
jax: 0.10.0
libtpu: 0.0.40
codegen_flags: <defaults>
</compile_context>

<pallas_src>
import functools

import jax
import jax.numpy as jnp
from jax import lax
from jax.experimental import pallas as pl
from jax.experimental.pallas import tpu as pltpu


_VMEM_SPEC = pl.BlockSpec(memory_space=pltpu.MemorySpace.VMEM)


# ----------------------------------------------------------------------------
# Pallas kernel: fused input projection + bidirectional LSTM recurrence
# ----------------------------------------------------------------------------
def _bilstm_fused_kernel(x_ref, wif_ref, wib_ref, b_ref, whh_ref, y_ref):
    """One whole bidirectional LSTM layer in a single invocation.

    Direction-minor column layout (gate g in {i,f,g,o}, direction d in {f,b}):
      columns [g*2H + d*H : g*2H + (d+1)*H]   -> each gate block is 2H = 128.

    x_ref:   (T, B, Ein) bf16  time-major inputs
    wif_ref: (Ein, 8H)  bf16   W_ih_fwd^T scattered into fwd columns (zeros elsewhere)
    wib_ref: (Ein, 8H)  bf16   W_ih_bwd^T scattered into bwd columns (zeros elsewhere)
    b_ref:   (1, 8H)    f32    (b_ih+b_hh), direction-minor
    whh_ref: (2H, 8H)   bf16   block-diagonal per gate: rows[:H] fwd, rows[H:] bwd
    y_ref:   (T, B, 2H) bf16   y[t,:, :H]=fwd hidden at t, y[t,:,H:]=bwd hidden at t
                               (natural time order for BOTH directions)
    """
    T, B, _ = x_ref.shape
    H8 = whh_ref.shape[1]
    H2 = H8 // 4          # one gate block = 2H (both directions)
    H = H2 // 2

    # Hoist weight / bias loads (and the bias broadcast) out of the loop.
    wif = wif_ref[...]
    wib = wib_ref[...]
    whh = whh_ref[...]
    bias = jnp.broadcast_to(b_ref[...], (B, H8))

    def step(s, carry):
        h, c = carry                                           # (B, 2H) f32
        # Recurrent matmul for both directions (critical path), K = 2H.
        rec = jnp.dot(h.astype(whh.dtype), whh,
                      preferred_element_type=jnp.float32)      # (B, 8H)
        # Input projections (off the h-dependency chain; MXU is otherwise idle).
        xin = (jnp.dot(x_ref[s], wif, preferred_element_type=jnp.float32)
               + jnp.dot(x_ref[T - 1 - s], wib,
                         preferred_element_type=jnp.float32)
               + bias)                                         # (B, 8H)
        gates = xin + rec                                      # direction-minor

        # Full 128-lane vregs per gate; PyTorch gate order (i, f, g, o).
        i = jax.nn.sigmoid(gates[:, 0 * H2:1 * H2])
        f = jax.nn.sigmoid(gates[:, 1 * H2:2 * H2])
        g = jnp.tanh(gates[:, 2 * H2:3 * H2])
        o = jax.nn.sigmoid(gates[:, 3 * H2:4 * H2])

        c_new = f * c + i * g                                  # (B, 2H), no concat
        h_new = o * jnp.tanh(c_new)

        # Store each direction at its natural time index (masked 64-lane vst),
        # so no wrapper-side reverse/concat pass is needed.
        y_ref[s, :, 0:H] = h_new[:, 0:H].astype(y_ref.dtype)
        y_ref[T - 1 - s, :, H:H2] = h_new[:, H:H2].astype(y_ref.dtype)
        return h_new, c_new

    h0 = jnp.zeros((B, H2), jnp.float32)
    c0 = jnp.zeros((B, H2), jnp.float32)
    lax.fori_loop(0, T, step, (h0, c0), unroll=min(T, 8))


# ----------------------------------------------------------------------------
# Pallas wrapper (one call per layer) + pure-JAX reference
# ----------------------------------------------------------------------------
def bilstm_layer(x_bf16, p):
    """x: (T, B, Ein) bf16 -> (T, B, 2H) bf16, natural time order."""
    T, B, _ = x_bf16.shape
    H = p["whh"].shape[0] // 2
    return pl.pallas_call(
        _bilstm_fused_kernel,
        out_shape=jax.ShapeDtypeStruct((T, B, 2 * H), jnp.bfloat16),
        in_specs=[_VMEM_SPEC] * 5,
        out_specs=_VMEM_SPEC,
        compiler_params=pltpu.CompilerParams(
            vmem_limit_bytes=64 * 1024 * 1024),
    )(x_bf16, p["wif"], p["wib"], p["b"], p["whh"])


def bilstm_layer_ref(x_bf16, p):
    """Pure-JAX (lax.scan) reference from the unpacked per-direction weights,
    with identical dtype choices (bf16 operands, f32 gate math, bf16 output)."""
    T, B, Ein = x_bf16.shape
    H = p["ref_w_hh_f"].shape[0]
    x2d = x_bf16.reshape(T * B, Ein)
    xg_f = (jnp.dot(x2d, p["ref_w_ih_f"], preferred_element_type=jnp.float32)
            .reshape(T, B, 4 * H) + p["ref_b_f"])
    xg_b = (jnp.dot(x2d, p["ref_w_ih_b"], preferred_element_type=jnp.float32)
            .reshape(T, B, 4 * H) + p["ref_b_b"])

    def cell(w_hh_t, carry, g_pre):
        h, c = carry
        gates = g_pre + jnp.dot(h.astype(jnp.bfloat16), w_hh_t,
                                preferred_element_type=jnp.float32)
        i = jax.nn.sigmoid(gates[:, 0 * H:1 * H])
        f = jax.nn.sigmoid(gates[:, 1 * H:2 * H])
        g = jnp.tanh(gates[:, 2 * H:3 * H])
        o = jax.nn.sigmoid(gates[:, 3 * H:4 * H])
        c = f * c + i * g
        h = o * jnp.tanh(c)
        return (h, c), h

    init = (jnp.zeros((B, H), jnp.float32), jnp.zeros((B, H), jnp.float32))
    _, h_fwd = lax.scan(functools.partial(cell, p["ref_w_hh_f"]), init, xg_f)
    _, h_bwd = lax.scan(functools.partial(cell, p["ref_w_hh_b"]), init, xg_b,
                        reverse=True)
    return jnp.concatenate([h_fwd, h_bwd], axis=-1).astype(jnp.bfloat16)


# ----------------------------------------------------------------------------
# Parameters (synthetic, matching the PyTorch module's shapes)
# ----------------------------------------------------------------------------
def init_params(key, vocab_size, embedding_length, hidden_size, output_size,
                num_layers, attention):
    H = hidden_size
    scale = float(1.0 / (H ** 0.5))
    params = {}

    key, k = jax.random.split(key)
    params["embedding"] = jax.random.normal(
        k, (vocab_size, embedding_length), jnp.float32)

    lstm = []
    for layer in range(num_layers):
        in_dim = embedding_length if layer == 0 else 2 * H
        dirs = []
        for _ in ("fwd", "bwd"):
            key, k1, k2, k3, k4 = jax.random.split(key, 5)
            w_ih = jax.random.uniform(k1, (4 * H, in_dim), jnp.float32,
                                      -scale, scale)
            w_hh = jax.random.uniform(k2, (4 * H, H), jnp.float32,
                                      -scale, scale)
            b_ih = jax.random.uniform(k3, (4 * H,), jnp.float32, -scale, scale)
            b_hh = jax.random.uniform(k4, (4 * H,), jnp.float32, -scale, scale)
            dirs.append((w_ih, w_hh, b_ih + b_hh))
        (w_ih_f, w_hh_f, b_f), (w_ih_b, w_hh_b, b_b) = dirs

        # Direction-minor packing: gate g, direction d lives in columns
        # [g*2H + d*H : g*2H + (d+1)*H]  (each gate block = 2H = 128 lanes).
        wif = jnp.zeros((in_dim, 8 * H), jnp.float32)
        wib = jnp.zeros((in_dim, 8 * H), jnp.float32)
        whh = jnp.zeros((2 * H, 8 * H), jnp.float32)
        b_dm = jnp.zeros((8 * H,), jnp.float32)
        for g in range(4):
            c0 = g * 2 * H
            rows = slice(g * H, (g + 1) * H)
            wif = wif.at[:, c0:c0 + H].set(w_ih_f[rows, :].T)
            wib = wib.at[:, c0 + H:c0 + 2 * H].set(w_ih_b[rows, :].T)
            whh = whh.at[:H, c0:c0 + H].set(w_hh_f[rows, :].T)
            whh = whh.at[H:, c0 + H:c0 + 2 * H].set(w_hh_b[rows, :].T)
            b_dm = b_dm.at[c0:c0 + H].set(b_f[rows])
            b_dm = b_dm.at[c0 + H:c0 + 2 * H].set(b_b[rows])

        lstm.append({
            # packed kernel operands
            "wif": wif.astype(jnp.bfloat16),
            "wib": wib.astype(jnp.bfloat16),
            "whh": whh.astype(jnp.bfloat16),
            "b": b_dm[None, :],                              # (1, 8H) f32
            # unpacked copies for the pure-JAX reference
            "ref_w_ih_f": w_ih_f.T.astype(jnp.bfloat16),     # (in_dim, 4H)
            "ref_w_ih_b": w_ih_b.T.astype(jnp.bfloat16),
            "ref_w_hh_f": w_hh_f.T.astype(jnp.bfloat16),     # (H, 4H)
            "ref_w_hh_b": w_hh_b.T.astype(jnp.bfloat16),
            "ref_b_f": b_f[None, :],                         # (1, 4H) f32
            "ref_b_b": b_b[None, :],
        })
    params["lstm"] = lstm

    key, k1, k2 = jax.random.split(key, 3)
    out_w = jax.random.uniform(k1, (output_size, 2 * H), jnp.float32,
                               -scale, scale)
    out_b = jax.random.uniform(k2, (output_size,), jnp.float32, -scale, scale)
    params["out_w_t"] = out_w.T                  # (2H, O)
    params["out_b"] = out_b[None, :]             # (1, O)

    if attention:
        key, k1, k2 = jax.random.split(key, 3)
        attn_w = jax.random.uniform(k1, (2 * H, 4 * H), jnp.float32,
                                    -scale, scale)
        attn_b = jax.random.uniform(k2, (2 * H,), jnp.float32, -scale, scale)
        params["attn_w_t"] = attn_w.T            # (4H, 2H)
        params["attn_b"] = attn_b[None, :]       # (1, 2H)
    return params


# ----------------------------------------------------------------------------
# Model forward (glue in plain JAX, hot path in Pallas)
# ----------------------------------------------------------------------------
def attention_forward(params, lstm_output, state, seq_lens):
    """lstm_output:(B,T,2H), state:(B,2H) -> (B,2H). Eval-mode dropout = id."""
    T = lstm_output.shape[1]
    attn_weights = jnp.einsum("btd,bd->bt", lstm_output, state)
    mask = jnp.arange(T)[None, :] < seq_lens[:, None]
    neg = jnp.finfo(attn_weights.dtype).min     # finite: no NaN even if all-masked
    soft = jax.nn.softmax(jnp.where(mask, attn_weights, neg), axis=1)
    new_hidden = jnp.einsum("bt,btd->bd", soft, lstm_output)
    concat_hidden = jnp.concatenate([new_hidden, state], axis=1)   # (B, 4H)
    # tiny projection: plain XLA per perf review
    return concat_hidden @ params["attn_w_t"] + params["attn_b"]


def model_forward(params, input_seq, seq_lens, num_layers, attention=False,
                  layer_fn=bilstm_layer):
    """input_seq:(B,T) int32 token ids, seq_lens:(B,) int32 -> (B, O) logits."""
    B0, T = input_seq.shape
    # Pad batch to a multiple of 16 so bf16 per-step tiles are sublane-full.
    Bp = ((B0 + 15) // 16) * 16
    if Bp != B0:
        input_seq = jnp.pad(input_seq, ((0, Bp - B0), (0, 0)))
        seq_lens = jnp.concatenate(
            [seq_lens, jnp.ones((Bp - B0,), seq_lens.dtype)])

    # embedding lookup + embedding dropout (identity in eval mode)
    emb = params["embedding"][input_seq]                     # (Bp, T, E) f32
    x = jnp.transpose(emb, (1, 0, 2)).astype(jnp.bfloat16)   # (T, Bp, E)

    out = x
    for layer in range(num_layers):
        out = layer_fn(out, params["lstm"][layer])           # (T, Bp, 2H) bf16
        # inter-layer lstm dropout: identity (eval mode)

    output = jnp.transpose(out, (1, 0, 2)).astype(jnp.float32)   # (Bp, T, 2H)

    # state = output[i, seq_len - 1, :]
    idx = (seq_lens - 1)[:, None, None]
    state = jnp.take_along_axis(output, idx, axis=1)[:, 0, :]    # (Bp, 2H)
    # lstm dropout: identity (eval mode)

    if attention:
        hidden = attention_forward(params, output, state, seq_lens)
    else:
        hidden = state

    # output layer: tiny matmul, plain XLA per perf review
    logits = hidden @ params["out_w_t"] + params["out_b"]
    return logits[:B0]


# ----------------------------------------------------------------------------
if __name__ == "__main__":
    # small, deterministic config
    vocab_size = 50
    embedding_length = 64
    hidden_size = 64       # 2H = 128 -> full-vreg gate blocks and lane-dense rows
    output_size = 5
    num_layers = 2
    batch = 4              # padded to 16 inside model_forward
    seq = 8
    attention = True

    key = jax.random.PRNGKey(0)
    key, kp, ks, kl = jax.random.split(key, 4)

    params = init_params(kp, vocab_size, embedding_length, hidden_size,
                         output_size, num_layers, attention)

    input_seq = jax.random.randint(ks, (batch, seq), 0, vocab_size, jnp.int32)
    seq_lens = jax.random.randint(kl, (batch,), 3, seq + 1, jnp.int32)

    fwd = jax.jit(functools.partial(model_forward, layer_fn=bilstm_layer),
                  static_argnums=(3, 4))
    ref = jax.jit(functools.partial(model_forward, layer_fn=bilstm_layer_ref),
                  static_argnums=(3, 4))

    # run once without attention (module default) and once with attention
    logits_plain = fwd(params, input_seq, seq_lens, num_layers, False)
    logits_attn = fwd(params, input_seq, seq_lens, num_layers, True)
    jax.block_until_ready(logits_plain)
    jax.block_until_ready(logits_attn)

    # pure-JAX reference check (same dtypes, per-direction lax.scan recurrence)
    ref_plain = ref(params, input_seq, seq_lens, num_layers, False)
    ref_attn = ref(params, input_seq, seq_lens, num_layers, True)

    assert logits_plain.shape == (batch, output_size)
    assert logits_attn.shape == (batch, output_size)
    assert bool(jnp.all(jnp.isfinite(logits_plain)))
    assert bool(jnp.all(jnp.isfinite(logits_attn)))
    assert bool(jnp.allclose(logits_plain, ref_plain, rtol=1e-2, atol=1e-2))
    assert bool(jnp.allclose(logits_attn, ref_attn, rtol=1e-2, atol=1e-2))

    print("KERNEL_OK")
</pallas_src>

<mosaic_0001>
module attributes {stable_mosaic.version = 11 : i64} {
  func.func @_bilstm_fused_kernel(%arg0: memref<8x16x64xbf16, #tpu.memory_space<vmem>>, %arg1: memref<64x512xbf16, #tpu.memory_space<vmem>>, %arg2: memref<64x512xbf16, #tpu.memory_space<vmem>>, %arg3: memref<1x512xf32, #tpu.memory_space<vmem>>, %arg4: memref<128x512xbf16, #tpu.memory_space<vmem>>, %arg5: memref<8x16x128xbf16, #tpu.memory_space<vmem>>) attributes {dimension_semantics = [], scalar_prefetch = 0 : i64, scratch_operands = 0 : i64, tpu.core_type = #tpu.core_type<tc>} {
    %c0 = arith.constant 0 : index
    %c0_0 = arith.constant 0 : index
    %0 = vector.load %arg1[%c0, %c0_0] : memref<64x512xbf16, #tpu.memory_space<vmem>>, vector<64x512xbf16>
    %c0_1 = arith.constant 0 : index
    %c0_2 = arith.constant 0 : index
    %1 = vector.load %arg2[%c0_1, %c0_2] : memref<64x512xbf16, #tpu.memory_space<vmem>>, vector<64x512xbf16>
    %c0_3 = arith.constant 0 : index
    %c0_4 = arith.constant 0 : index
    %2 = vector.load %arg4[%c0_3, %c0_4] : memref<128x512xbf16, #tpu.memory_space<vmem>>, vector<128x512xbf16>
    %c0_5 = arith.constant 0 : index
    %c0_6 = arith.constant 0 : index
    %3 = vector.load %arg3[%c0_5, %c0_6] : memref<1x512xf32, #tpu.memory_space<vmem>>, vector<1x512xf32>
    %4 = vector.shape_cast %3 : vector<1x512xf32> to vector<1x512xf32>
    %5 = vector.broadcast %4 : vector<1x512xf32> to vector<16x512xf32>
    %cst = arith.constant 0.000000e+00 : f32
    %6 = vector.broadcast %cst : f32 to vector<16x128xf32>
    %cst_7 = arith.constant 0.000000e+00 : f32
    %7 = vector.broadcast %cst_7 : f32 to vector<16x128xf32>
    %c0_i32 = arith.constant 0 : i32
    %8 = arith.truncf %6 : vector<16x128xf32> to vector<16x128xbf16>
    %cst_8 = arith.constant dense<0.000000e+00> : vector<16x512xf32>
    %9 = tpu.matmul %8, %2, %cst_8 {dimension_numbers = #tpu.dot_dimension_numbers<[1], [0], [0], [1], [0, 0, 1, 1], [], []>} : vector<16x128xbf16>, vector<128x512xbf16>, vector<16x512xf32> -> vector<16x512xf32>
    %10 = arith.index_cast %c0_i32 : i32 to index
    %c0_9 = arith.constant 0 : index
    %c0_10 = arith.constant 0 : index
    %11 = vector.load %arg0[%10, %c0_9, %c0_10] : memref<8x16x64xbf16, #tpu.memory_space<vmem>>, vector<1x16x64xbf16>
    %12 = vector.shape_cast %11 : vector<1x16x64xbf16> to vector<16x64xbf16>
    %cst_11 = arith.constant dense<0.000000e+00> : vector<16x512xf32>
    %13 = tpu.matmul %12, %0, %cst_11 {dimension_numbers = #tpu.dot_dimension_numbers<[1], [0], [0], [1], [0, 0, 1, 1], [], []>} : vector<16x64xbf16>, vector<64x512xbf16>, vector<16x512xf32> -> vector<16x512xf32>
    %c7_i32 = arith.constant 7 : i32
    %14 = arith.subi %c7_i32, %c0_i32 : i32
    %15 = arith.index_cast %14 : i32 to index
    %c0_12 = arith.constant 0 : index
    %c0_13 = arith.constant 0 : index
    %16 = vector.load %arg0[%15, %c0_12, %c0_13] : memref<8x16x64xbf16, #tpu.memory_space<vmem>>, vector<1x16x64xbf16>
    %17 = vector.shape_cast %16 : vector<1x16x64xbf16> to vector<16x64xbf16>
    %cst_14 = arith.constant dense<0.000000e+00> : vector<16x512xf32>
    %18 = tpu.matmul %17, %1, %cst_14 {dimension_numbers = #tpu.dot_dimension_numbers<[1], [0], [0], [1], [0, 0, 1, 1], [], []>} : vector<16x64xbf16>, vector<64x512xbf16>, vector<16x512xf32> -> vector<16x512xf32>
    %19 = arith.addf %13, %18 : vector<16x512xf32>
    %20 = arith.addf %19, %5 : vector<16x512xf32>
    %21 = arith.addf %20, %9 : vector<16x512xf32>
    %22 = vector.extract_strided_slice %21 {offsets = [0, 0], sizes = [16, 128], strides = [1, 1]} : vector<16x512xf32> to vector<16x128xf32>
    %23 = arith.negf %22 : vector<16x128xf32>
    %24 = math.exp %23 : vector<16x128xf32>
    %cst_15 = arith.constant 1.000000e+00 : f32
    %25 = vector.broadcast %cst_15 : f32 to vector<16x128xf32>
    %26 = arith.addf %25, %24 : vector<16x128xf32>
    %27 = arith.divf %25, %26 : vector<16x128xf32>
    %28 = vector.extract_strided_slice %21 {offsets = [0, 128], sizes = [16, 128], strides = [1, 1]} : vector<16x512xf32> to vector<16x128xf32>
    %29 = arith.negf %28 : vector<16x128xf32>
    %30 = math.exp %29 : vector<16x128xf32>
    %cst_16 = arith.constant 1.000000e+00 : f32
    %31 = vector.broadcast %cst_16 : f32 to vector<16x128xf32>
    %32 = arith.addf %31, %30 : vector<16x128xf32>
    %33 = arith.divf %31, %32 : vector<16x128xf32>
    %34 = vector.extract_strided_slice %21 {offsets = [0, 256], sizes = [16, 128], strides = [1, 1]} : vector<16x512xf32> to vector<16x128xf32>
    %35 = math.tanh %34 : vector<16x128xf32>
    %36 = vector.extract_strided_slice %21 {offsets = [0, 384], sizes = [16, 128], strides = [1, 1]} : vector<16x512xf32> to vector<16x128xf32>
    %37 = arith.negf %36 : vector<16x128xf32>
    %38 = math.exp %37 : vector<16x128xf32>
    %cst_17 = arith.constant 1.000000e+00 : f32
    %39 = vector.broadcast %cst_17 : f32 to vector<16x128xf32>
    %40 = arith.addf %39, %38 : vector<16x128xf32>
    %41 = arith.divf %39, %40 : vector<16x128xf32>
    %42 = arith.mulf %33, %7 : vector<16x128xf32>
    %43 = arith.mulf %27, %35 : vector<16x128xf32>
    %44 = arith.addf %42, %43 : vector<16x128xf32>
    %45 = math.tanh %44 : vector<16x128xf32>
    %46 = arith.mulf %41, %45 : vector<16x128xf32>
    %47 = vector.extract_strided_slice %46 {offsets = [0, 0], sizes = [16, 64], strides = [1, 1]} : vector<16x128xf32> to vector<16x64xf32>
    %48 = arith.truncf %47 : vector<16x64xf32> to vector<16x64xbf16>
    %49 = arith.index_cast %c0_i32 : i32 to index
    %c0_18 = arith.constant 0 : index
    %c0_19 = arith.constant 0 : index
    %50 = vector.load %arg5[%49, %c0_18, %c0_19] : memref<8x16x128xbf16, #tpu.memory_space<vmem>>, vector<1x16x64xbf16>
    %51 = vector.shape_cast %50 : vector<1x16x64xbf16> to vector<16x64xbf16>
    %52 = vector.shape_cast %48 : vector<16x64xbf16> to vector<1x16x64xbf16>
    tpu.vector_store %arg5[%49, %c0_18, %c0_19], %52 {strides = array<i32>} : memref<8x16x128xbf16, #tpu.memory_space<vmem>>, vector<1x16x64xbf16>,
    %53 = vector.extract_strided_slice %46 {offsets = [0, 64], sizes = [16, 64], strides = [1, 1]} : vector<16x128xf32> to vector<16x64xf32>
    %54 = arith.truncf %53 : vector<16x64xf32> to vector<16x64xbf16>
    %c7_i32_20 = arith.constant 7 : i32
    %55 = arith.subi %c7_i32_20, %c0_i32 : i32
    %56 = arith.index_cast %55 : i32 to index
    %c0_21 = arith.constant 0 : index
    %c64 = arith.constant 64 : index
    %57 = vector.load %arg5[%56, %c0_21, %c64] : memref<8x16x128xbf16, #tpu.memory_space<vmem>>, vector<1x16x64xbf16>
    %58 = vector.shape_cast %57 : vector<1x16x64xbf16> to vector<16x64xbf16>
    %59 = vector.shape_cast %54 : vector<16x64xbf16> to vector<1x16x64xbf16>
    tpu.vector_store %arg5[%56, %c0_21, %c64], %59 {strides = array<i32>} : memref<8x16x128xbf16, #tpu.memory_space<vmem>>, vector<1x16x64xbf16>,
    %c1_i32 = arith.constant 1 : i32
    %60 = arith.truncf %46 : vector<16x128xf32> to vector<16x128xbf16>
    %cst_22 = arith.constant dense<0.000000e+00> : vector<16x512xf32>
    %61 = tpu.matmul %60, %2, %cst_22 {dimension_numbers = #tpu.dot_dimension_numbers<[1], [0], [0], [1], [0, 0, 1, 1], [], []>} : vector<16x128xbf16>, vector<128x512xbf16>, vector<16x512xf32> -> vector<16x512xf32>
    %62 = arith.index_cast %c1_i32 : i32 to index
    %c0_23 = arith.constant 0 : index
    %c0_24 = arith.constant 0 : index
    %63 = vector.load %arg0[%62, %c0_23, %c0_24] : memref<8x16x64xbf16, #tpu.memory_space<vmem>>, vector<1x16x64xbf16>
    %64 = vector.shape_cast %63 : vector<1x16x64xbf16> to vector<16x64xbf16>
    %cst_25 = arith.constant dense<0.000000e+00> : vector<16x512xf32>
    %65 = tpu.matmul %64, %0, %cst_25 {dimension_numbers = #tpu.dot_dimension_numbers<[1], [0], [0], [1], [0, 0, 1, 1], [], []>} : vector<16x64xbf16>, vector<64x512xbf16>, vector<16x512xf32> -> vector<16x512xf32>
    %c7_i32_26 = arith.constant 7 : i32
    %66 = arith.subi %c7_i32_26, %c1_i32 : i32
    %67 = arith.index_cast %66 : i32 to index
    %c0_27 = arith.constant 0 : index
    %c0_28 = arith.constant 0 : index
    %68 = vector.load %arg0[%67, %c0_27, %c0_28] : memref<8x16x64xbf16, #tpu.memory_space<vmem>>, vector<1x16x64xbf16>
    %69 = vector.shape_cast %68 : vector<1x16x64xbf16> to vector<16x64xbf16>
    %cst_29 = arith.constant dense<0.000000e+00> : vector<16x512xf32>
    %70 = tpu.matmul %69, %1, %cst_29 {dimension_numbers = #tpu.dot_dimension_numbers<[1], [0], [0], [1], [0, 0, 1, 1], [], []>} : vector<16x64xbf16>, vector<64x512xbf16>, vector<16x512xf32> -> vector<16x512xf32>
    %71 = arith.addf %65, %70 : vector<16x512xf32>
    %72 = arith.addf %71, %5 : vector<16x512xf32>
    %73 = arith.addf %72, %61 : vector<16x512xf32>
    %74 = vector.extract_strided_slice %73 {offsets = [0, 0], sizes = [16, 128], strides = [1, 1]} : vector<16x512xf32> to vector<16x128xf32>
    %75 = arith.negf %74 : vector<16x128xf32>
    %76 = math.exp %75 : vector<16x128xf32>
    %cst_30 = arith.constant 1.000000e+00 : f32
    %77 = vector.broadcast %cst_30 : f32 to vector<16x128xf32>
    %78 = arith.addf %77, %76 : vector<16x128xf32>
    %79 = arith.divf %77, %78 : vector<16x128xf32>
    %80 = vector.extract_strided_slice %73 {offsets = [0, 128], sizes = [16, 128], strides = [1, 1]} : vector<16x512xf32> to vector<16x128xf32>
    %81 = arith.negf %80 : vector<16x128xf32>
    %82 = math.exp %81 : vector<16x128xf32>
    %cst_31 = arith.constant 1.000000e+00 : f32
    %83 = vector.broadcast %cst_31 : f32 to vector<16x128xf32>
    %84 = arith.addf %83, %82 : vector<16x128xf32>
    %85 = arith.divf %83, %84 : vector<16x128xf32>
    %86 = vector.extract_strided_slice %73 {offsets = [0, 256], sizes = [16, 128], strides = [1, 1]} : vector<16x512xf32> to vector<16x128xf32>
    %87 = math.tanh %86 : vector<16x128xf32>
    %88 = vector.extract_strided_slice %73 {offsets = [0, 384], sizes = [16, 128], strides = [1, 1]} : vector<16x512xf32> to vector<16x128xf32>
    %89 = arith.negf %88 : vector<16x128xf32>
    %90 = math.exp %89 : vector<16x128xf32>
    %cst_32 = arith.constant 1.000000e+00 : f32
    %91 = vector.broadcast %cst_32 : f32 to vector<16x128xf32>
    %92 = arith.addf %91, %90 : vector<16x128xf32>
    %93 = arith.divf %91, %92 : vector<16x128xf32>
    %94 = arith.mulf %85, %44 : vector<16x128xf32>
    %95 = arith.mulf %79, %87 : vector<16x128xf32>
    %96 = arith.addf %94, %95 : vector<16x128xf32>
    %97 = math.tanh %96 : vector<16x128xf32>
    %98 = arith.mulf %93, %97 : vector<16x128xf32>
    %99 = vector.extract_strided_slice %98 {offsets = [0, 0], sizes = [16, 64], strides = [1, 1]} : vector<16x128xf32> to vector<16x64xf32>
    %100 = arith.truncf %99 : vector<16x64xf32> to vector<16x64xbf16>
    %101 = arith.index_cast %c1_i32 : i32 to index
    %c0_33 = arith.constant 0 : index
    %c0_34 = arith.constant 0 : index
    %102 = vector.load %arg5[%101, %c0_33, %c0_34] : memref<8x16x128xbf16, #tpu.memory_space<vmem>>, vector<1x16x64xbf16>
    %103 = vector.shape_cast %102 : vector<1x16x64xbf16> to vector<16x64xbf16>
    %104 = vector.shape_cast %100 : vector<16x64xbf16> to vector<1x16x64xbf16>
    tpu.vector_store %arg5[%101, %c0_33, %c0_34], %104 {strides = array<i32>} : memref<8x16x128xbf16, #tpu.memory_space<vmem>>, vector<1x16x64xbf16>,
    %105 = vector.extract_strided_slice %98 {offsets = [0, 64], sizes = [16, 64], strides = [1, 1]} : vector<16x128xf32> to vector<16x64xf32>
    %106 = arith.truncf %105 : vector<16x64xf32> to vector<16x64xbf16>
    %c7_i32_35 = arith.constant 7 : i32
    %107 = arith.subi %c7_i32_35, %c1_i32 : i32
    %108 = arith.index_cast %107 : i32 to index
    %c0_36 = arith.constant 0 : index
    %c64_37 = arith.constant 64 : index
    %109 = vector.load %arg5[%108, %c0_36, %c64_37] : memref<8x16x128xbf16, #tpu.memory_space<vmem>>, vector<1x16x64xbf16>
    %110 = vector.shape_cast %109 : vector<1x16x64xbf16> to vector<16x64xbf16>
    %111 = vector.shape_cast %106 : vector<16x64xbf16> to vector<1x16x64xbf16>
    tpu.vector_store %arg5[%108, %c0_36, %c64_37], %111 {strides = array<i32>} : memref<8x16x128xbf16, #tpu.memory_space<vmem>>, vector<1x16x64xbf16>,
    %c2_i32 = arith.constant 2 : i32
    %112 = arith.truncf %98 : vector<16x128xf32> to vector<16x128xbf16>
    %cst_38 = arith.constant dense<0.000000e+00> : vector<16x512xf32>
    %113 = tpu.matmul %112, %2, %cst_38 {dimension_numbers = #tpu.dot_dimension_numbers<[1], [0], [0], [1], [0, 0, 1, 1], [], []>} : vector<16x128xbf16>, vector<128x512xbf16>, vector<16x512xf32> -> vector<16x512xf32>
    %114 = arith.index_cast %c2_i32 : i32 to index
    %c0_39 = arith.constant 0 : index
    %c0_40 = arith.constant 0 : index
    %115 = vector.load %arg0[%114, %c0_39, %c0_40] : memref<8x16x64xbf16, #tpu.memory_space<vmem>>, vector<1x16x64xbf16>
    %116 = vector.shape_cast %115 : vector<1x16x64xbf16> to vector<16x64xbf16>
    %cst_41 = arith.constant dense<0.000000e+00> : vector<16x512xf32>
    %117 = tpu.matmul %116, %0, %cst_41 {dimension_numbers = #tpu.dot_dimension_numbers<[1], [0], [0], [1], [0, 0, 1, 1], [], []>} : vector<16x64xbf16>, vector<64x512xbf16>, vector<16x512xf32> -> vector<16x512xf32>
    %c7_i32_42 = arith.constant 7 : i32
    %118 = arith.subi %c7_i32_42, %c2_i32 : i32
    %119 = arith.index_cast %118 : i32 to index
    %c0_43 = arith.constant 0 : index
    %c0_44 = arith.constant 0 : index
    %120 = vector.load %arg0[%119, %c0_43, %c0_44] : memref<8x16x64xbf16, #tpu.memory_space<vmem>>, vector<1x16x64xbf16>
    %121 = vector.shape_cast %120 : vector<1x16x64xbf16> to vector<16x64xbf16>
    %cst_45 = arith.constant dense<0.000000e+00> : vector<16x512xf32>
    %122 = tpu.matmul %121, %1, %cst_45 {dimension_numbers = #tpu.dot_dimension_numbers<[1], [0], [0], [1], [0, 0, 1, 1], [], []>} : vector<16x64xbf16>, vector<64x512xbf16>, vector<16x512xf32> -> vector<16x512xf32>
    %123 = arith.addf %117, %122 : vector<16x512xf32>
    %124 = arith.addf %123, %5 : vector<16x512xf32>
    %125 = arith.addf %124, %113 : vector<16x512xf32>
    %126 = vector.extract_strided_slice %125 {offsets = [0, 0], sizes = [16, 128], strides = [1, 1]} : vector<16x512xf32> to vector<16x128xf32>
    %127 = arith.negf %126 : vector<16x128xf32>
    %128 = math.exp %127 : vector<16x128xf32>
    %cst_46 = arith.constant 1.000000e+00 : f32
    %129 = vector.broadcast %cst_46 : f32 to vector<16x128xf32>
    %130 = arith.addf %129, %128 : vector<16x128xf32>
    %131 = arith.divf %129, %130 : vector<16x128xf32>
    %132 = vector.extract_strided_slice %125 {offsets = [0, 128], sizes = [16, 128], strides = [1, 1]} : vector<16x512xf32> to vector<16x128xf32>
    %133 = arith.negf %132 : vector<16x128xf32>
    %134 = math.exp %133 : vector<16x128xf32>
    %cst_47 = arith.constant 1.000000e+00 : f32
    %135 = vector.broadcast %cst_47 : f32 to vector<16x128xf32>
    %136 = arith.addf %135, %134 : vector<16x128xf32>
    %137 = arith.divf %135, %136 : vector<16x128xf32>
    %138 = vector.extract_strided_slice %125 {offsets = [0, 256], sizes = [16, 128], strides = [1, 1]} : vector<16x512xf32> to vector<16x128xf32>
    %139 = math.tanh %138 : vector<16x128xf32>
    %140 = vector.extract_strided_slice %125 {offsets = [0, 384], sizes = [16, 128], strides = [1, 1]} : vector<16x512xf32> to vector<16x128xf32>
    %141 = arith.negf %140 : vector<16x128xf32>
    %142 = math.exp %141 : vector<16x128xf32>
    %cst_48 = arith.constant 1.000000e+00 : f32
    %143 = vector.broadcast %cst_48 : f32 to vector<16x128xf32>
    %144 = arith.addf %143, %142 : vector<16x128xf32>
    %145 = arith.divf %143, %144 : vector<16x128xf32>
    %146 = arith.mulf %137, %96 : vector<16x128xf32>
    %147 = arith.mulf %131, %139 : vector<16x128xf32>
    %148 = arith.addf %146, %147 : vector<16x128xf32>
    %149 = math.tanh %148 : vector<16x128xf32>
    %150 = arith.mulf %145, %149 : vector<16x128xf32>
    %151 = vector.extract_strided_slice %150 {offsets = [0, 0], sizes = [16, 64], strides = [1, 1]} : vector<16x128xf32> to vector<16x64xf32>
    %152 = arith.truncf %151 : vector<16x64xf32> to vector<16x64xbf16>
    %153 = arith.index_cast %c2_i32 : i32 to index
    %c0_49 = arith.constant 0 : index
    %c0_50 = arith.constant 0 : index
    %154 = vector.load %arg5[%153, %c0_49, %c0_50] : memref<8x16x128xbf16, #tpu.memory_space<vmem>>, vector<1x16x64xbf16>
    %155 = vector.shape_cast %154 : vector<1x16x64xbf16> to vector<16x64xbf16>
    %156 = vector.shape_cast %152 : vector<16x64xbf16> to vector<1x16x64xbf16>
    tpu.vector_store %arg5[%153, %c0_49, %c0_50], %156 {strides = array<i32>} : memref<8x16x128xbf16, #tpu.memory_space<vmem>>, vector<1x16x64xbf16>,
    %157 = vector.extract_strided_slice %150 {offsets = [0, 64], sizes = [16, 64], strides = [1, 1]} : vector<16x128xf32> to vector<16x64xf32>
    %158 = arith.truncf %157 : vector<16x64xf32> to vector<16x64xbf16>
    %c7_i32_51 = arith.constant 7 : i32
    %159 = arith.subi %c7_i32_51, %c2_i32 : i32
    %160 = arith.index_cast %159 : i32 to index
    %c0_52 = arith.constant 0 : index
    %c64_53 = arith.constant 64 : index
    %161 = vector.load %arg5[%160, %c0_52, %c64_53] : memref<8x16x128xbf16, #tpu.memory_space<vmem>>, vector<1x16x64xbf16>
    %162 = vector.shape_cast %161 : vector<1x16x64xbf16> to vector<16x64xbf16>
    %163 = vector.shape_cast %158 : vector<16x64xbf16> to vector<1x16x64xbf16>
    tpu.vector_store %arg5[%160, %c0_52, %c64_53], %163 {strides = array<i32>} : memref<8x16x128xbf16, #tpu.memory_space<vmem>>, vector<1x16x64xbf16>,
    %c3_i32 = arith.constant 3 : i32
    %164 = arith.truncf %150 : vector<16x128xf32> to vector<16x128xbf16>
    %cst_54 = arith.constant dense<0.000000e+00> : vector<16x512xf32>
    %165 = tpu.matmul %164, %2, %cst_54 {dimension_numbers = #tpu.dot_dimension_numbers<[1], [0], [0], [1], [0, 0, 1, 1], [], []>} : vector<16x128xbf16>, vector<128x512xbf16>, vector<16x512xf32> -> vector<16x512xf32>
    %166 = arith.index_cast %c3_i32 : i32 to index
    %c0_55 = arith.constant 0 : index
    %c0_56 = arith.constant 0 : index
    %167 = vector.load %arg0[%166, %c0_55, %c0_56] : memref<8x16x64xbf16, #tpu.memory_space<vmem>>, vector<1x16x64xbf16>
    %168 = vector.shape_cast %167 : vector<1x16x64xbf16> to vector<16x64xbf16>
    %cst_57 = arith.constant dense<0.000000e+00> : vector<16x512xf32>
    %169 = tpu.matmul %168, %0, %cst_57 {dimension_numbers = #tpu.dot_dimension_numbers<[1], [0], [0], [1], [0, 0, 1, 1], [], []>} : vector<16x64xbf16>, vector<64x512xbf16>, vector<16x512xf32> -> vector<16x512xf32>
    %c7_i32_58 = arith.constant 7 : i32
    %170 = arith.subi %c7_i32_58, %c3_i32 : i32
    %171 = arith.index_cast %170 : i32 to index
    %c0_59 = arith.constant 0 : index
    %c0_60 = arith.constant 0 : index
    %172 = vector.load %arg0[%171, %c0_59, %c0_60] : memref<8x16x64xbf16, #tpu.memory_space<vmem>>, vector<1x16x64xbf16>
    %173 = vector.shape_cast %172 : vector<1x16x64xbf16> to vector<16x64xbf16>
    %cst_61 = arith.constant dense<0.000000e+00> : vector<16x512xf32>
    %174 = tpu.matmul %173, %1, %cst_61 {dimension_numbers = #tpu.dot_dimension_numbers<[1], [0], [0], [1], [0, 0, 1, 1], [], []>} : vector<16x64xbf16>, vector<64x512xbf16>, vector<16x512xf32> -> vector<16x512xf32>
    %175 = arith.addf %169, %174 : vector<16x512xf32>
    %176 = arith.addf %175, %5 : vector<16x512xf32>
    %177 = arith.addf %176, %165 : vector<16x512xf32>
    %178 = vector.extract_strided_slice %177 {offsets = [0, 0], sizes = [16, 128], strides = [1, 1]} : vector<16x512xf32> to vector<16x128xf32>
    %179 = arith.negf %178 : vector<16x128xf32>
    %180 = math.exp %179 : vector<16x128xf32>
    %cst_62 = arith.constant 1.000000e+00 : f32
    %181 = vector.broadcast %cst_62 : f32 to vector<16x128xf32>
    %182 = arith.addf %181, %180 : vector<16x128xf32>
    %183 = arith.divf %181, %182 : vector<16x128xf32>
    %184 = vector.extract_strided_slice %177 {offsets = [0, 128], sizes = [16, 128], strides = [1, 1]} : vector<16x512xf32> to vector<16x128xf32>
    %185 = arith.negf %184 : vector<16x128xf32>
    %186 = math.exp %185 : vector<16x128xf32>
    %cst_63 = arith.constant 1.000000e+00 : f32
    %187 = vector.broadcast %cst_63 : f32 to vector<16x128xf32>
    %188 = arith.addf %187, %186 : vector<16x128xf32>
    %189 = arith.divf %187, %188 : vector<16x128xf32>
    %190 = vector.extract_strided_slice %177 {offsets = [0, 256], sizes = [16, 128], strides = [1, 1]} : vector<16x512xf32> to vector<16x128xf32>
    %191 = math.tanh %190 : vector<16x128xf32>
    %192 = vector.extract_strided_slice %177 {offsets = [0, 384], sizes = [16, 128], strides = [1, 1]} : vector<16x512xf32> to vector<16x128xf32>
    %193 = arith.negf %192 : vector<16x128xf32>
    %194 = math.exp %193 : vector<16x128xf32>
    %cst_64 = arith.constant 1.000000e+00 : f32
    %195 = vector.broadcast %cst_64 : f32 to vector<16x128xf32>
    %196 = arith.addf %195, %194 : vector<16x128xf32>
    %197 = arith.divf %195, %196 : vector<16x128xf32>
    %198 = arith.mulf %189, %148 : vector<16x128xf32>
    %199 = arith.mulf %183, %191 : vector<16x128xf32>
    %200 = arith.addf %198, %199 : vector<16x128xf32>
    %201 = math.tanh %200 : vector<16x128xf32>
    %202 = arith.mulf %197, %201 : vector<16x128xf32>
    %203 = vector.extract_strided_slice %202 {offsets = [0, 0], sizes = [16, 64], strides = [1, 1]} : vector<16x128xf32> to vector<16x64xf32>
    %204 = arith.truncf %203 : vector<16x64xf32> to vector<16x64xbf16>
    %205 = arith.index_cast %c3_i32 : i32 to index
    %c0_65 = arith.constant 0 : index
    %c0_66 = arith.constant 0 : index
    %206 = vector.load %arg5[%205, %c0_65, %c0_66] : memref<8x16x128xbf16, #tpu.memory_space<vmem>>, vector<1x16x64xbf16>
    %207 = vector.shape_cast %206 : vector<1x16x64xbf16> to vector<16x64xbf16>
    %208 = vector.shape_cast %204 : vector<16x64xbf16> to vector<1x16x64xbf16>
    tpu.vector_store %arg5[%205, %c0_65, %c0_66], %208 {strides = array<i32>} : memref<8x16x128xbf16, #tpu.memory_space<vmem>>, vector<1x16x64xbf16>,
    %209 = vector.extract_strided_slice %202 {offsets = [0, 64], sizes = [16, 64], strides = [1, 1]} : vector<16x128xf32> to vector<16x64xf32>
    %210 = arith.truncf %209 : vector<16x64xf32> to vector<16x64xbf16>
    %c7_i32_67 = arith.constant 7 : i32
    %211 = arith.subi %c7_i32_67, %c3_i32 : i32
    %212 = arith.index_cast %211 : i32 to index
    %c0_68 = arith.constant 0 : index
    %c64_69 = arith.constant 64 : index
    %213 = vector.load %arg5[%212, %c0_68, %c64_69] : memref<8x16x128xbf16, #tpu.memory_space<vmem>>, vector<1x16x64xbf16>
    %214 = vector.shape_cast %213 : vector<1x16x64xbf16> to vector<16x64xbf16>
    %215 = vector.shape_cast %210 : vector<16x64xbf16> to vector<1x16x64xbf16>
    tpu.vector_store %arg5[%212, %c0_68, %c64_69], %215 {strides = array<i32>} : memref<8x16x128xbf16, #tpu.memory_space<vmem>>, vector<1x16x64xbf16>,
    %c4_i32 = arith.constant 4 : i32
    %216 = arith.truncf %202 : vector<16x128xf32> to vector<16x128xbf16>
    %cst_70 = arith.constant dense<0.000000e+00> : vector<16x512xf32>
    %217 = tpu.matmul %216, %2, %cst_70 {dimension_numbers = #tpu.dot_dimension_numbers<[1], [0], [0], [1], [0, 0, 1, 1], [], []>} : vector<16x128xbf16>, vector<128x512xbf16>, vector<16x512xf32> -> vector<16x512xf32>
    %218 = arith.index_cast %c4_i32 : i32 to index
    %c0_71 = arith.constant 0 : index
    %c0_72 = arith.constant 0 : index
    %219 = vector.load %arg0[%218, %c0_71, %c0_72] : memref<8x16x64xbf16, #tpu.memory_space<vmem>>, vector<1x16x64xbf16>
    %220 = vector.shape_cast %219 : vector<1x16x64xbf16> to vector<16x64xbf16>
    %cst_73 = arith.constant dense<0.000000e+00> : vector<16x512xf32>
    %221 = tpu.matmul %220, %0, %cst_73 {dimension_numbers = #tpu.dot_dimension_numbers<[1], [0], [0], [1], [0, 0, 1, 1], [], []>} : vector<16x64xbf16>, vector<64x512xbf16>, vector<16x512xf32> -> vector<16x512xf32>
    %c7_i32_74 = arith.constant 7 : i32
    %222 = arith.subi %c7_i32_74, %c4_i32 : i32
    %223 = arith.index_cast %222 : i32 to index
    %c0_75 = arith.constant 0 : index
    %c0_76 = arith.constant 0 : index
    %224 = vector.load %arg0[%223, %c0_75, %c0_76] : memref<8x16x64xbf16, #tpu.memory_space<vmem>>, vector<1x16x64xbf16>
    %225 = vector.shape_cast %224 : vector<1x16x64xbf16> to vector<16x64xbf16>
    %cst_77 = arith.constant dense<0.000000e+00> : vector<16x512xf32>
    %226 = tpu.matmul %225, %1, %cst_77 {dimension_numbers = #tpu.dot_dimension_numbers<[1], [0], [0], [1], [0, 0, 1, 1], [], []>} : vector<16x64xbf16>, vector<64x512xbf16>, vector<16x512xf32> -> vector<16x512xf32>
    %227 = arith.addf %221, %226 : vector<16x512xf32>
    %228 = arith.addf %227, %5 : vector<16x512xf32>
    %229 = arith.addf %228, %217 : vector<16x512xf32>
    %230 = vector.extract_strided_slice %229 {offsets = [0, 0], sizes = [16, 128], strides = [1, 1]} : vector<16x512xf32> to vector<16x128xf32>
    %231 = arith.negf %230 : vector<16x128xf32>
    %232 = math.exp %231 : vector<16x128xf32>
    %cst_78 = arith.constant 1.000000e+00 : f32
    %233 = vector.broadcast %cst_78 : f32 to vector<16x128xf32>
    %234 = arith.addf %233, %232 : vector<16x128xf32>
    %235 = arith.divf %233, %234 : vector<16x128xf32>
    %236 = vector.extract_strided_slice %229 {offsets = [0, 128], sizes = [16, 128], strides = [1, 1]} : vector<16x512xf32> to vector<16x128xf32>
    %237 = arith.negf %236 : vector<16x128xf32>
    %238 = math.exp %237 : vector<16x128xf32>
    %cst_79 = arith.constant 1.000000e+00 : f32
    %239 = vector.broadcast %cst_79 : f32 to vector<16x128xf32>
    %240 = arith.addf %239, %238 : vector<16x128xf32>
    %241 = arith.divf %239, %240 : vector<16x128xf32>
    %242 = vector.extract_strided_slice %229 {offsets = [0, 256], sizes = [16, 128], strides = [1, 1]} : vector<16x512xf32> to vector<16x128xf32>
    %243 = math.tanh %242 : vector<16x128xf32>
    %244 = vector.extract_strided_slice %229 {offsets = [0, 384], sizes = [16, 128], strides = [1, 1]} : vector<16x512xf32> to vector<16x128xf32>
    %245 = arith.negf %244 : vector<16x128xf32>
    %246 = math.exp %245 : vector<16x128xf32>
    %cst_80 = arith.constant 1.000000e+00 : f32
    %247 = vector.broadcast %cst_80 : f32 to vector<16x128xf32>
    %248 = arith.addf %247, %246 : vector<16x128xf32>
    %249 = arith.divf %247, %248 : vector<16x128xf32>
    %250 = arith.mulf %241, %200 : vector<16x128xf32>
    %251 = arith.mulf %235, %243 : vector<16x128xf32>
    %252 = arith.addf %250, %251 : vector<16x128xf32>
    %253 = math.tanh %252 : vector<16x128xf32>
    %254 = arith.mulf %249, %253 : vector<16x128xf32>
    %255 = vector.extract_strided_slice %254 {offsets = [0, 0], sizes = [16, 64], strides = [1, 1]} : vector<16x128xf32> to vector<16x64xf32>
    %256 = arith.truncf %255 : vector<16x64xf32> to vector<16x64xbf16>
    %257 = arith.index_cast %c4_i32 : i32 to index
    %c0_81 = arith.constant 0 : index
    %c0_82 = arith.constant 0 : index
    %258 = vector.load %arg5[%257, %c0_81, %c0_82] : memref<8x16x128xbf16, #tpu.memory_space<vmem>>, vector<1x16x64xbf16>
    %259 = vector.shape_cast %258 : vector<1x16x64xbf16> to vector<16x64xbf16>
    %260 = vector.shape_cast %256 : vector<16x64xbf16> to vector<1x16x64xbf16>
    tpu.vector_store %arg5[%257, %c0_81, %c0_82], %260 {strides = array<i32>} : memref<8x16x128xbf16, #tpu.memory_space<vmem>>, vector<1x16x64xbf16>,
    %261 = vector.extract_strided_slice %254 {offsets = [0, 64], sizes = [16, 64], strides = [1, 1]} : vector<16x128xf32> to vector<16x64xf32>
    %262 = arith.truncf %261 : vector<16x64xf32> to vector<16x64xbf16>
    %c7_i32_83 = arith.constant 7 : i32
    %263 = arith.subi %c7_i32_83, %c4_i32 : i32
    %264 = arith.index_cast %263 : i32 to index
    %c0_84 = arith.constant 0 : index
    %c64_85 = arith.constant 64 : index
    %265 = vector.load %arg5[%264, %c0_84, %c64_85] : memref<8x16x128xbf16, #tpu.memory_space<vmem>>, vector<1x16x64xbf16>
    %266 = vector.shape_cast %265 : vector<1x16x64xbf16> to vector<16x64xbf16>
    %267 = vector.shape_cast %262 : vector<16x64xbf16> to vector<1x16x64xbf16>
    tpu.vector_store %arg5[%264, %c0_84, %c64_85], %267 {strides = array<i32>} : memref<8x16x128xbf16, #tpu.memory_space<vmem>>, vector<1x16x64xbf16>,
    %c5_i32 = arith.constant 5 : i32
    %268 = arith.truncf %254 : vector<16x128xf32> to vector<16x128xbf16>
    %cst_86 = arith.constant dense<0.000000e+00> : vector<16x512xf32>
    %269 = tpu.matmul %268, %2, %cst_86 {dimension_numbers = #tpu.dot_dimension_numbers<[1], [0], [0], [1], [0, 0, 1, 1], [], []>} : vector<16x128xbf16>, vector<128x512xbf16>, vector<16x512xf32> -> vector<16x512xf32>
    %270 = arith.index_cast %c5_i32 : i32 to index
    %c0_87 = arith.constant 0 : index
    %c0_88 = arith.constant 0 : index
    %271 = vector.load %arg0[%270, %c0_87, %c0_88] : memref<8x16x64xbf16, #tpu.memory_space<vmem>>, vector<1x16x64xbf16>
    %272 = vector.shape_cast %271 : vector<1x16x64xbf16> to vector<16x64xbf16>
    %cst_89 = arith.constant dense<0.000000e+00> : vector<16x512xf32>
    %273 = tpu.matmul %272, %0, %cst_89 {dimension_numbers = #tpu.dot_dimension_numbers<[1], [0], [0], [1], [0, 0, 1, 1], [], []>} : vector<16x64xbf16>, vector<64x512xbf16>, vector<16x512xf32> -> vector<16x512xf32>
    %c7_i32_90 = arith.constant 7 : i32
    %274 = arith.subi %c7_i32_90, %c5_i32 : i32
    %275 = arith.index_cast %274 : i32 to index
    %c0_91 = arith.constant 0 : index
    %c0_92 = arith.constant 0 : index
    %276 = vector.load %arg0[%275, %c0_91, %c0_92] : memref<8x16x64xbf16, #tpu.memory_space<vmem>>, vector<1x16x64xbf16>
    %277 = vector.shape_cast %276 : vector<1x16x64xbf16> to vector<16x64xbf16>
    %cst_93 = arith.constant dense<0.000000e+00> : vector<16x512xf32>
    %278 = tpu.matmul %277, %1, %cst_93 {dimension_numbers = #tpu.dot_dimension_numbers<[1], [0], [0], [1], [0, 0, 1, 1], [], []>} : vector<16x64xbf16>, vector<64x512xbf16>, vector<16x512xf32> -> vector<16x512xf32>
    %279 = arith.addf %273, %278 : vector<16x512xf32>
    %280 = arith.addf %279, %5 : vector<16x512xf32>
    %281 = arith.addf %280, %269 : vector<16x512xf32>
    %282 = vector.extract_strided_slice %281 {offsets = [0, 0], sizes = [16, 128], strides = [1, 1]} : vector<16x512xf32> to vector<16x128xf32>
    %283 = arith.negf %282 : vector<16x128xf32>
    %284 = math.exp %283 : vector<16x128xf32>
    %cst_94 = arith.constant 1.000000e+00 : f32
    %285 = vector.broadcast %cst_94 : f32 to vector<16x128xf32>
    %286 = arith.addf %285, %284 : vector<16x128xf32>
    %287 = arith.divf %285, %286 : vector<16x128xf32>
    %288 = vector.extract_strided_slice %281 {offsets = [0, 128], sizes = [16, 128], strides = [1, 1]} : vector<16x512xf32> to vector<16x128xf32>
    %289 = arith.negf %288 : vector<16x128xf32>
    %290 = math.exp %289 : vector<16x128xf32>
    %cst_95 = arith.constant 1.000000e+00 : f32
    %291 = vector.broadcast %cst_95 : f32 to vector<16x128xf32>
    %292 = arith.addf %291, %290 : vector<16x128xf32>
    %293 = arith.divf %291, %292 : vector<16x128xf32>
    %294 = vector.extract_strided_slice %281 {offsets = [0, 256], sizes = [16, 128], strides = [1, 1]} : vector<16x512xf32> to vector<16x128xf32>
    %295 = math.tanh %294 : vector<16x128xf32>
    %296 = vector.extract_strided_slice %281 {offsets = [0, 384], sizes = [16, 128], strides = [1, 1]} : vector<16x512xf32> to vector<16x128xf32>
    %297 = arith.negf %296 : vector<16x128xf32>
    %298 = math.exp %297 : vector<16x128xf32>
    %cst_96 = arith.constant 1.000000e+00 : f32
    %299 = vector.broadcast %cst_96 : f32 to vector<16x128xf32>
    %300 = arith.addf %299, %298 : vector<16x128xf32>
    %301 = arith.divf %299, %300 : vector<16x128xf32>
    %302 = arith.mulf %293, %252 : vector<16x128xf32>
    %303 = arith.mulf %287, %295 : vector<16x128xf32>
    %304 = arith.addf %302, %303 : vector<16x128xf32>
    %305 = math.tanh %304 : vector<16x128xf32>
    %306 = arith.mulf %301, %305 : vector<16x128xf32>
    %307 = vector.extract_strided_slice %306 {offsets = [0, 0], sizes = [16, 64], strides = [1, 1]} : vector<16x128xf32> to vector<16x64xf32>
    %308 = arith.truncf %307 : vector<16x64xf32> to vector<16x64xbf16>
    %309 = arith.index_cast %c5_i32 : i32 to index
    %c0_97 = arith.constant 0 : index
    %c0_98 = arith.constant 0 : index
    %310 = vector.load %arg5[%309, %c0_97, %c0_98] : memref<8x16x128xbf16, #tpu.memory_space<vmem>>, vector<1x16x64xbf16>
    %311 = vector.shape_cast %310 : vector<1x16x64xbf16> to vector<16x64xbf16>
    %312 = vector.shape_cast %308 : vector<16x64xbf16> to vector<1x16x64xbf16>
    tpu.vector_store %arg5[%309, %c0_97, %c0_98], %312 {strides = array<i32>} : memref<8x16x128xbf16, #tpu.memory_space<vmem>>, vector<1x16x64xbf16>,
    %313 = vector.extract_strided_slice %306 {offsets = [0, 64], sizes = [16, 64], strides = [1, 1]} : vector<16x128xf32> to vector<16x64xf32>
    %314 = arith.truncf %313 : vector<16x64xf32> to vector<16x64xbf16>
    %c7_i32_99 = arith.constant 7 : i32
    %315 = arith.subi %c7_i32_99, %c5_i32 : i32
    %316 = arith.index_cast %315 : i32 to index
    %c0_100 = arith.constant 0 : index
    %c64_101 = arith.constant 64 : index
    %317 = vector.load %arg5[%316, %c0_100, %c64_101] : memref<8x16x128xbf16, #tpu.memory_space<vmem>>, vector<1x16x64xbf16>
    %318 = vector.shape_cast %317 : vector<1x16x64xbf16> to vector<16x64xbf16>
    %319 = vector.shape_cast %314 : vector<16x64xbf16> to vector<1x16x64xbf16>
    tpu.vector_store %arg5[%316, %c0_100, %c64_101], %319 {strides = array<i32>} : memref<8x16x128xbf16, #tpu.memory_space<vmem>>, vector<1x16x64xbf16>,
    %c6_i32 = arith.constant 6 : i32
    %320 = arith.truncf %306 : vector<16x128xf32> to vector<16x128xbf16>
    %cst_102 = arith.constant dense<0.000000e+00> : vector<16x512xf32>
    %321 = tpu.matmul %320, %2, %cst_102 {dimension_numbers = #tpu.dot_dimension_numbers<[1], [0], [0], [1], [0, 0, 1, 1], [], []>} : vector<16x128xbf16>, vector<128x512xbf16>, vector<16x512xf32> -> vector<16x512xf32>
    %322 = arith.index_cast %c6_i32 : i32 to index
    %c0_103 = arith.constant 0 : index
    %c0_104 = arith.constant 0 : index
    %323 = vector.load %arg0[%322, %c0_103, %c0_104] : memref<8x16x64xbf16, #tpu.memory_space<vmem>>, vector<1x16x64xbf16>
    %324 = vector.shape_cast %323 : vector<1x16x64xbf16> to vector<16x64xbf16>
    %cst_105 = arith.constant dense<0.000000e+00> : vector<16x512xf32>
    %325 = tpu.matmul %324, %0, %cst_105 {dimension_numbers = #tpu.dot_dimension_numbers<[1], [0], [0], [1], [0, 0, 1, 1], [], []>} : vector<16x64xbf16>, vector<64x512xbf16>, vector<16x512xf32> -> vector<16x512xf32>
    %c7_i32_106 = arith.constant 7 : i32
    %326 = arith.subi %c7_i32_106, %c6_i32 : i32
    %327 = arith.index_cast %326 : i32 to index
    %c0_107 = arith.constant 0 : index
    %c0_108 = arith.constant 0 : index
    %328 = vector.load %arg0[%327, %c0_107, %c0_108] : memref<8x16x64xbf16, #tpu.memory_space<vmem>>, vector<1x16x64xbf16>
    %329 = vector.shape_cast %328 : vector<1x16x64xbf16> to vector<16x64xbf16>
    %cst_109 = arith.constant dense<0.000000e+00> : vector<16x512xf32>
    %330 = tpu.matmul %329, %1, %cst_109 {dimension_numbers = #tpu.dot_dimension_numbers<[1], [0], [0], [1], [0, 0, 1, 1], [], []>} : vector<16x64xbf16>, vector<64x512xbf16>, vector<16x512xf32> -> vector<16x512xf32>
    %331 = arith.addf %325, %330 : vector<16x512xf32>
    %332 = arith.addf %331, %5 : vector<16x512xf32>
    %333 = arith.addf %332, %321 : vector<16x512xf32>
    %334 = vector.extract_strided_slice %333 {offsets = [0, 0], sizes = [16, 128], strides = [1, 1]} : vector<16x512xf32> to vector<16x128xf32>
    %335 = arith.negf %334 : vector<16x128xf32>
    %336 = math.exp %335 : vector<16x128xf32>
    %cst_110 = arith.constant 1.000000e+00 : f32
    %337 = vector.broadcast %cst_110 : f32 to vector<16x128xf32>
    %338 = arith.addf %337, %336 : vector<16x128xf32>
    %339 = arith.divf %337, %338 : vector<16x128xf32>
    %340 = vector.extract_strided_slice %333 {offsets = [0, 128], sizes = [16, 128], strides = [1, 1]} : vector<16x512xf32> to vector<16x128xf32>
    %341 = arith.negf %340 : vector<16x128xf32>
    %342 = math.exp %341 : vector<16x128xf32>
    %cst_111 = arith.constant 1.000000e+00 : f32
    %343 = vector.broadcast %cst_111 : f32 to vector<16x128xf32>
    %344 = arith.addf %343, %342 : vector<16x128xf32>
    %345 = arith.divf %343, %344 : vector<16x128xf32>
    %346 = vector.extract_strided_slice %333 {offsets = [0, 256], sizes = [16, 128], strides = [1, 1]} : vector<16x512xf32> to vector<16x128xf32>
    %347 = math.tanh %346 : vector<16x128xf32>
    %348 = vector.extract_strided_slice %333 {offsets = [0, 384], sizes = [16, 128], strides = [1, 1]} : vector<16x512xf32> to vector<16x128xf32>
    %349 = arith.negf %348 : vector<16x128xf32>
    %350 = math.exp %349 : vector<16x128xf32>
    %cst_112 = arith.constant 1.000000e+00 : f32
    %351 = vector.broadcast %cst_112 : f32 to vector<16x128xf32>
    %352 = arith.addf %351, %350 : vector<16x128xf32>
    %353 = arith.divf %351, %352 : vector<16x128xf32>
    %354 = arith.mulf %345, %304 : vector<16x128xf32>
    %355 = arith.mulf %339, %347 : vector<16x128xf32>
    %356 = arith.addf %354, %355 : vector<16x128xf32>
    %357 = math.tanh %356 : vector<16x128xf32>
    %358 = arith.mulf %353, %357 : vector<16x128xf32>
    %359 = vector.extract_strided_slice %358 {offsets = [0, 0], sizes = [16, 64], strides = [1, 1]} : vector<16x128xf32> to vector<16x64xf32>
    %360 = arith.truncf %359 : vector<16x64xf32> to vector<16x64xbf16>
    %361 = arith.index_cast %c6_i32 : i32 to index
    %c0_113 = arith.constant 0 : index
    %c0_114 = arith.constant 0 : index
    %362 = vector.load %arg5[%361, %c0_113, %c0_114] : memref<8x16x128xbf16, #tpu.memory_space<vmem>>, vector<1x16x64xbf16>
    %363 = vector.shape_cast %362 : vector<1x16x64xbf16> to vector<16x64xbf16>
    %364 = vector.shape_cast %360 : vector<16x64xbf16> to vector<1x16x64xbf16>
    tpu.vector_store %arg5[%361, %c0_113, %c0_114], %364 {strides = array<i32>} : memref<8x16x128xbf16, #tpu.memory_space<vmem>>, vector<1x16x64xbf16>,
    %365 = vector.extract_strided_slice %358 {offsets = [0, 64], sizes = [16, 64], strides = [1, 1]} : vector<16x128xf32> to vector<16x64xf32>
    %366 = arith.truncf %365 : vector<16x64xf32> to vector<16x64xbf16>
    %c7_i32_115 = arith.constant 7 : i32
    %367 = arith.subi %c7_i32_115, %c6_i32 : i32
    %368 = arith.index_cast %367 : i32 to index
    %c0_116 = arith.constant 0 : index
    %c64_117 = arith.constant 64 : index
    %369 = vector.load %arg5[%368, %c0_116, %c64_117] : memref<8x16x128xbf16, #tpu.memory_space<vmem>>, vector<1x16x64xbf16>
    %370 = vector.shape_cast %369 : vector<1x16x64xbf16> to vector<16x64xbf16>
    %371 = vector.shape_cast %366 : vector<16x64xbf16> to vector<1x16x64xbf16>
    tpu.vector_store %arg5[%368, %c0_116, %c64_117], %371 {strides = array<i32>} : memref<8x16x128xbf16, #tpu.memory_space<vmem>>, vector<1x16x64xbf16>,
    %c7_i32_118 = arith.constant 7 : i32
    %372 = arith.truncf %358 : vector<16x128xf32> to vector<16x128xbf16>
    %cst_119 = arith.constant dense<0.000000e+00> : vector<16x512xf32>
    %373 = tpu.matmul %372, %2, %cst_119 {dimension_numbers = #tpu.dot_dimension_numbers<[1], [0], [0], [1], [0, 0, 1, 1], [], []>} : vector<16x128xbf16>, vector<128x512xbf16>, vector<16x512xf32> -> vector<16x512xf32>
    %374 = arith.index_cast %c7_i32_118 : i32 to index
    %c0_120 = arith.constant 0 : index
    %c0_121 = arith.constant 0 : index
    %375 = vector.load %arg0[%374, %c0_120, %c0_121] : memref<8x16x64xbf16, #tpu.memory_space<vmem>>, vector<1x16x64xbf16>
    %376 = vector.shape_cast %375 : vector<1x16x64xbf16> to vector<16x64xbf16>
    %cst_122 = arith.constant dense<0.000000e+00> : vector<16x512xf32>
    %377 = tpu.matmul %376, %0, %cst_122 {dimension_numbers = #tpu.dot_dimension_numbers<[1], [0], [0], [1], [0, 0, 1, 1], [], []>} : vector<16x64xbf16>, vector<64x512xbf16>, vector<16x512xf32> -> vector<16x512xf32>
    %c7_i32_123 = arith.constant 7 : i32
    %378 = arith.subi %c7_i32_123, %c7_i32_118 : i32
    %379 = arith.index_cast %378 : i32 to index
    %c0_124 = arith.constant 0 : index
    %c0_125 = arith.constant 0 : index
    %380 = vector.load %arg0[%379, %c0_124, %c0_125] : memref<8x16x64xbf16, #tpu.memory_space<vmem>>, vector<1x16x64xbf16>
    %381 = vector.shape_cast %380 : vector<1x16x64xbf16> to vector<16x64xbf16>
    %cst_126 = arith.constant dense<0.000000e+00> : vector<16x512xf32>
    %382 = tpu.matmul %381, %1, %cst_126 {dimension_numbers = #tpu.dot_dimension_numbers<[1], [0], [0], [1], [0, 0, 1, 1], [], []>} : vector<16x64xbf16>, vector<64x512xbf16>, vector<16x512xf32> -> vector<16x512xf32>
    %383 = arith.addf %377, %382 : vector<16x512xf32>
    %384 = arith.addf %383, %5 : vector<16x512xf32>
    %385 = arith.addf %384, %373 : vector<16x512xf32>
    %386 = vector.extract_strided_slice %385 {offsets = [0, 0], sizes = [16, 128], strides = [1, 1]} : vector<16x512xf32> to vector<16x128xf32>
    %387 = arith.negf %386 : vector<16x128xf32>
    %388 = math.exp %387 : vector<16x128xf32>
    %cst_127 = arith.constant 1.000000e+00 : f32
    %389 = vector.broadcast %cst_127 : f32 to vector<16x128xf32>
    %390 = arith.addf %389, %388 : vector<16x128xf32>
    %391 = arith.divf %389, %390 : vector<16x128xf32>
    %392 = vector.extract_strided_slice %385 {offsets = [0, 128], sizes = [16, 128], strides = [1, 1]} : vector<16x512xf32> to vector<16x128xf32>
    %393 = arith.negf %392 : vector<16x128xf32>
    %394 = math.exp %393 : vector<16x128xf32>
    %cst_128 = arith.constant 1.000000e+00 : f32
    %395 = vector.broadcast %cst_128 : f32 to vector<16x128xf32>
    %396 = arith.addf %395, %394 : vector<16x128xf32>
    %397 = arith.divf %395, %396 : vector<16x128xf32>
    %398 = vector.extract_strided_slice %385 {offsets = [0, 256], sizes = [16, 128], strides = [1, 1]} : vector<16x512xf32> to vector<16x128xf32>
    %399 = math.tanh %398 : vector<16x128xf32>
    %400 = vector.extract_strided_slice %385 {offsets = [0, 384], sizes = [16, 128], strides = [1, 1]} : vector<16x512xf32> to vector<16x128xf32>
    %401 = arith.negf %400 : vector<16x128xf32>
    %402 = math.exp %401 : vector<16x128xf32>
    %cst_129 = arith.constant 1.000000e+00 : f32
    %403 = vector.broadcast %cst_129 : f32 to vector<16x128xf32>
    %404 = arith.addf %403, %402 : vector<16x128xf32>
    %405 = arith.divf %403, %404 : vector<16x128xf32>
    %406 = arith.mulf %397, %356 : vector<16x128xf32>
    %407 = arith.mulf %391, %399 : vector<16x128xf32>
    %408 = arith.addf %406, %407 : vector<16x128xf32>
    %409 = math.tanh %408 : vector<16x128xf32>
    %410 = arith.mulf %405, %409 : vector<16x128xf32>
    %411 = vector.extract_strided_slice %410 {offsets = [0, 0], sizes = [16, 64], strides = [1, 1]} : vector<16x128xf32> to vector<16x64xf32>
    %412 = arith.truncf %411 : vector<16x64xf32> to vector<16x64xbf16>
    %413 = arith.index_cast %c7_i32_118 : i32 to index
    %c0_130 = arith.constant 0 : index
    %c0_131 = arith.constant 0 : index
    %414 = vector.load %arg5[%413, %c0_130, %c0_131] : memref<8x16x128xbf16, #tpu.memory_space<vmem>>, vector<1x16x64xbf16>
    %415 = vector.shape_cast %414 : vector<1x16x64xbf16> to vector<16x64xbf16>
    %416 = vector.shape_cast %412 : vector<16x64xbf16> to vector<1x16x64xbf16>
    tpu.vector_store %arg5[%413, %c0_130, %c0_131], %416 {strides = array<i32>} : memref<8x16x128xbf16, #tpu.memory_space<vmem>>, vector<1x16x64xbf16>,
    %417 = vector.extract_strided_slice %410 {offsets = [0, 64], sizes = [16, 64], strides = [1, 1]} : vector<16x128xf32> to vector<16x64xf32>
    %418 = arith.truncf %417 : vector<16x64xf32> to vector<16x64xbf16>
    %c7_i32_132 = arith.constant 7 : i32
    %419 = arith.subi %c7_i32_132, %c7_i32_118 : i32
    %420 = arith.index_cast %419 : i32 to index
    %c0_133 = arith.constant 0 : index
    %c64_134 = arith.constant 64 : index
    %421 = vector.load %arg5[%420, %c0_133, %c64_134] : memref<8x16x128xbf16, #tpu.memory_space<vmem>>, vector<1x16x64xbf16>
    %422 = vector.shape_cast %421 : vector<1x16x64xbf16> to vector<16x64xbf16>
    %423 = vector.shape_cast %418 : vector<16x64xbf16> to vector<1x16x64xbf16>
    tpu.vector_store %arg5[%420, %c0_133, %c64_134], %423 {strides = array<i32>} : memref<8x16x128xbf16, #tpu.memory_space<vmem>>, vector<1x16x64xbf16>,
    %c8_i32 = arith.constant 8 : i32
    return
  }
}

module attributes {stable_mosaic.version = 11 : i64} {
  func.func @_bilstm_fused_kernel(%arg0: memref<8x16x128xbf16, #tpu.memory_space<vmem>>, %arg1: memref<128x512xbf16, #tpu.memory_space<vmem>>, %arg2: memref<128x512xbf16, #tpu.memory_space<vmem>>, %arg3: memref<1x512xf32, #tpu.memory_space<vmem>>, %arg4: memref<128x512xbf16, #tpu.memory_space<vmem>>, %arg5: memref<8x16x128xbf16, #tpu.memory_space<vmem>>) attributes {dimension_semantics = [], scalar_prefetch = 0 : i64, scratch_operands = 0 : i64, tpu.core_type = #tpu.core_type<tc>} {
    %c0 = arith.constant 0 : index
    %c0_0 = arith.constant 0 : index
    %0 = vector.load %arg1[%c0, %c0_0] : memref<128x512xbf16, #tpu.memory_space<vmem>>, vector<128x512xbf16>
    %c0_1 = arith.constant 0 : index
    %c0_2 = arith.constant 0 : index
    %1 = vector.load %arg2[%c0_1, %c0_2] : memref<128x512xbf16, #tpu.memory_space<vmem>>, vector<128x512xbf16>
    %c0_3 = arith.constant 0 : index
    %c0_4 = arith.constant 0 : index
    %2 = vector.load %arg4[%c0_3, %c0_4] : memref<128x512xbf16, #tpu.memory_space<vmem>>, vector<128x512xbf16>
    %c0_5 = arith.constant 0 : index
    %c0_6 = arith.constant 0 : index
    %3 = vector.load %arg3[%c0_5, %c0_6] : memref<1x512xf32, #tpu.memory_space<vmem>>, vector<1x512xf32>
    %4 = vector.shape_cast %3 : vector<1x512xf32> to vector<1x512xf32>
    %5 = vector.broadcast %4 : vector<1x512xf32> to vector<16x512xf32>
    %cst = arith.constant 0.000000e+00 : f32
    %6 = vector.broadcast %cst : f32 to vector<16x128xf32>
    %cst_7 = arith.constant 0.000000e+00 : f32
    %7 = vector.broadcast %cst_7 : f32 to vector<16x128xf32>
    %c0_i32 = arith.constant 0 : i32
    %8 = arith.truncf %6 : vector<16x128xf32> to vector<16x128xbf16>
    %cst_8 = arith.constant dense<0.000000e+00> : vector<16x512xf32>
    %9 = tpu.matmul %8, %2, %cst_8 {dimension_numbers = #tpu.dot_dimension_numbers<[1], [0], [0], [1], [0, 0, 1, 1], [], []>} : vector<16x128xbf16>, vector<128x512xbf16>, vector<16x512xf32> -> vector<16x512xf32>
    %10 = arith.index_cast %c0_i32 : i32 to index
    %c0_9 = arith.constant 0 : index
    %c0_10 = arith.constant 0 : index
    %11 = vector.load %arg0[%10, %c0_9, %c0_10] : memref<8x16x128xbf16, #tpu.memory_space<vmem>>, vector<1x16x128xbf16>
    %12 = vector.shape_cast %11 : vector<1x16x128xbf16> to vector<16x128xbf16>
    %cst_11 = arith.constant dense<0.000000e+00> : vector<16x512xf32>
    %13 = tpu.matmul %12, %0, %cst_11 {dimension_numbers = #tpu.dot_dimension_numbers<[1], [0], [0], [1], [0, 0, 1, 1], [], []>} : vector<16x128xbf16>, vector<128x512xbf16>, vector<16x512xf32> -> vector<16x512xf32>
    %c7_i32 = arith.constant 7 : i32
    %14 = arith.subi %c7_i32, %c0_i32 : i32
    %15 = arith.index_cast %14 : i32 to index
    %c0_12 = arith.constant 0 : index
    %c0_13 = arith.constant 0 : index
    %16 = vector.load %arg0[%15, %c0_12, %c0_13] : memref<8x16x128xbf16, #tpu.memory_space<vmem>>, vector<1x16x128xbf16>
    %17 = vector.shape_cast %16 : vector<1x16x128xbf16> to vector<16x128xbf16>
    %cst_14 = arith.constant dense<0.000000e+00> : vector<16x512xf32>
    %18 = tpu.matmul %17, %1, %cst_14 {dimension_numbers = #tpu.dot_dimension_numbers<[1], [0], [0], [1], [0, 0, 1, 1], [], []>} : vector<16x128xbf16>, vector<128x512xbf16>, vector<16x512xf32> -> vector<16x512xf32>
    %19 = arith.addf %13, %18 : vector<16x512xf32>
    %20 = arith.addf %19, %5 : vector<16x512xf32>
    %21 = arith.addf %20, %9 : vector<16x512xf32>
    %22 = vector.extract_strided_slice %21 {offsets = [0, 0], sizes = [16, 128], strides = [1, 1]} : vector<16x512xf32> to vector<16x128xf32>
    %23 = arith.negf %22 : vector<16x128xf32>
    %24 = math.exp %23 : vector<16x128xf32>
    %cst_15 = arith.constant 1.000000e+00 : f32
    %25 = vector.broadcast %cst_15 : f32 to vector<16x128xf32>
    %26 = arith.addf %25, %24 : vector<16x128xf32>
    %27 = arith.divf %25, %26 : vector<16x128xf32>
    %28 = vector.extract_strided_slice %21 {offsets = [0, 128], sizes = [16, 128], strides = [1, 1]} : vector<16x512xf32> to vector<16x128xf32>
    %29 = arith.negf %28 : vector<16x128xf32>
    %30 = math.exp %29 : vector<16x128xf32>
    %cst_16 = arith.constant 1.000000e+00 : f32
    %31 = vector.broadcast %cst_16 : f32 to vector<16x128xf32>
    %32 = arith.addf %31, %30 : vector<16x128xf32>
    %33 = arith.divf %31, %32 : vector<16x128xf32>
    %34 = vector.extract_strided_slice %21 {offsets = [0, 256], sizes = [16, 128], strides = [1, 1]} : vector<16x512xf32> to vector<16x128xf32>
    %35 = math.tanh %34 : vector<16x128xf32>
    %36 = vector.extract_strided_slice %21 {offsets = [0, 384], sizes = [16, 128], strides = [1, 1]} : vector<16x512xf32> to vector<16x128xf32>
    %37 = arith.negf %36 : vector<16x128xf32>
    %38 = math.exp %37 : vector<16x128xf32>
    %cst_17 = arith.constant 1.000000e+00 : f32
    %39 = vector.broadcast %cst_17 : f32 to vector<16x128xf32>
    %40 = arith.addf %39, %38 : vector<16x128xf32>
    %41 = arith.divf %39, %40 : vector<16x128xf32>
    %42 = arith.mulf %33, %7 : vector<16x128xf32>
    %43 = arith.mulf %27, %35 : vector<16x128xf32>
    %44 = arith.addf %42, %43 : vector<16x128xf32>
    %45 = math.tanh %44 : vector<16x128xf32>
    %46 = arith.mulf %41, %45 : vector<16x128xf32>
    %47 = vector.extract_strided_slice %46 {offsets = [0, 0], sizes = [16, 64], strides = [1, 1]} : vector<16x128xf32> to vector<16x64xf32>
    %48 = arith.truncf %47 : vector<16x64xf32> to vector<16x64xbf16>
    %49 = arith.index_cast %c0_i32 : i32 to index
    %c0_18 = arith.constant 0 : index
    %c0_19 = arith.constant 0 : index
    %50 = vector.load %arg5[%49, %c0_18, %c0_19] : memref<8x16x128xbf16, #tpu.memory_space<vmem>>, vector<1x16x64xbf16>
    %51 = vector.shape_cast %50 : vector<1x16x64xbf16> to vector<16x64xbf16>
    %52 = vector.shape_cast %48 : vector<16x64xbf16> to vector<1x16x64xbf16>
    tpu.vector_store %arg5[%49, %c0_18, %c0_19], %52 {strides = array<i32>} : memref<8x16x128xbf16, #tpu.memory_space<vmem>>, vector<1x16x64xbf16>,
    %53 = vector.extract_strided_slice %46 {offsets = [0, 64], sizes = [16, 64], strides = [1, 1]} : vector<16x128xf32> to vector<16x64xf32>
    %54 = arith.truncf %53 : vector<16x64xf32> to vector<16x64xbf16>
    %c7_i32_20 = arith.constant 7 : i32
    %55 = arith.subi %c7_i32_20, %c0_i32 : i32
    %56 = arith.index_cast %55 : i32 to index
    %c0_21 = arith.constant 0 : index
    %c64 = arith.constant 64 : index
    %57 = vector.load %arg5[%56, %c0_21, %c64] : memref<8x16x128xbf16, #tpu.memory_space<vmem>>, vector<1x16x64xbf16>
    %58 = vector.shape_cast %57 : vector<1x16x64xbf16> to vector<16x64xbf16>
    %59 = vector.shape_cast %54 : vector<16x64xbf16> to vector<1x16x64xbf16>
    tpu.vector_store %arg5[%56, %c0_21, %c64], %59 {strides = array<i32>} : memref<8x16x128xbf16, #tpu.memory_space<vmem>>, vector<1x16x64xbf16>,
    %c1_i32 = arith.constant 1 : i32
    %60 = arith.truncf %46 : vector<16x128xf32> to vector<16x128xbf16>
    %cst_22 = arith.constant dense<0.000000e+00> : vector<16x512xf32>
    %61 = tpu.matmul %60, %2, %cst_22 {dimension_numbers = #tpu.dot_dimension_numbers<[1], [0], [0], [1], [0, 0, 1, 1], [], []>} : vector<16x128xbf16>, vector<128x512xbf16>, vector<16x512xf32> -> vector<16x512xf32>
    %62 = arith.index_cast %c1_i32 : i32 to index
    %c0_23 = arith.constant 0 : index
    %c0_24 = arith.constant 0 : index
    %63 = vector.load %arg0[%62, %c0_23, %c0_24] : memref<8x16x128xbf16, #tpu.memory_space<vmem>>, vector<1x16x128xbf16>
    %64 = vector.shape_cast %63 : vector<1x16x128xbf16> to vector<16x128xbf16>
    %cst_25 = arith.constant dense<0.000000e+00> : vector<16x512xf32>
    %65 = tpu.matmul %64, %0, %cst_25 {dimension_numbers = #tpu.dot_dimension_numbers<[1], [0], [0], [1], [0, 0, 1, 1], [], []>} : vector<16x128xbf16>, vector<128x512xbf16>, vector<16x512xf32> -> vector<16x512xf32>
    %c7_i32_26 = arith.constant 7 : i32
    %66 = arith.subi %c7_i32_26, %c1_i32 : i32
    %67 = arith.index_cast %66 : i32 to index
    %c0_27 = arith.constant 0 : index
    %c0_28 = arith.constant 0 : index
    %68 = vector.load %arg0[%67, %c0_27, %c0_28] : memref<8x16x128xbf16, #tpu.memory_space<vmem>>, vector<1x16x128xbf16>
    %69 = vector.shape_cast %68 : vector<1x16x128xbf16> to vector<16x128xbf16>
    %cst_29 = arith.constant dense<0.000000e+00> : vector<16x512xf32>
    %70 = tpu.matmul %69, %1, %cst_29 {dimension_numbers = #tpu.dot_dimension_numbers<[1], [0], [0], [1], [0, 0, 1, 1], [], []>} : vector<16x128xbf16>, vector<128x512xbf16>, vector<16x512xf32> -> vector<16x512xf32>
    %71 = arith.addf %65, %70 : vector<16x512xf32>
    %72 = arith.addf %71, %5 : vector<16x512xf32>
    %73 = arith.addf %72, %61 : vector<16x512xf32>
    %74 = vector.extract_strided_slice %73 {offsets = [0, 0], sizes = [16, 128], strides = [1, 1]} : vector<16x512xf32> to vector<16x128xf32>
    %75 = arith.negf %74 : vector<16x128xf32>
    %76 = math.exp %75 : vector<16x128xf32>
    %cst_30 = arith.constant 1.000000e+00 : f32
    %77 = vector.broadcast %cst_30 : f32 to vector<16x128xf32>
    %78 = arith.addf %77, %76 : vector<16x128xf32>
    %79 = arith.divf %77, %78 : vector<16x128xf32>
    %80 = vector.extract_strided_slice %73 {offsets = [0, 128], sizes = [16, 128], strides = [1, 1]} : vector<16x512xf32> to vector<16x128xf32>
    %81 = arith.negf %80 : vector<16x128xf32>
    %82 = math.exp %81 : vector<16x128xf32>
    %cst_31 = arith.constant 1.000000e+00 : f32
    %83 = vector.broadcast %cst_31 : f32 to vector<16x128xf32>
    %84 = arith.addf %83, %82 : vector<16x128xf32>
    %85 = arith.divf %83, %84 : vector<16x128xf32>
    %86 = vector.extract_strided_slice %73 {offsets = [0, 256], sizes = [16, 128], strides = [1, 1]} : vector<16x512xf32> to vector<16x128xf32>
    %87 = math.tanh %86 : vector<16x128xf32>
    %88 = vector.extract_strided_slice %73 {offsets = [0, 384], sizes = [16, 128], strides = [1, 1]} : vector<16x512xf32> to vector<16x128xf32>
    %89 = arith.negf %88 : vector<16x128xf32>
    %90 = math.exp %89 : vector<16x128xf32>
    %cst_32 = arith.constant 1.000000e+00 : f32
    %91 = vector.broadcast %cst_32 : f32 to vector<16x128xf32>
    %92 = arith.addf %91, %90 : vector<16x128xf32>
    %93 = arith.divf %91, %92 : vector<16x128xf32>
    %94 = arith.mulf %85, %44 : vector<16x128xf32>
    %95 = arith.mulf %79, %87 : vector<16x128xf32>
    %96 = arith.addf %94, %95 : vector<16x128xf32>
    %97 = math.tanh %96 : vector<16x128xf32>
    %98 = arith.mulf %93, %97 : vector<16x128xf32>
    %99 = vector.extract_strided_slice %98 {offsets = [0, 0], sizes = [16, 64], strides = [1, 1]} : vector<16x128xf32> to vector<16x64xf32>
    %100 = arith.truncf %99 : vector<16x64xf32> to vector<16x64xbf16>
    %101 = arith.index_cast %c1_i32 : i32 to index
    %c0_33 = arith.constant 0 : index
    %c0_34 = arith.constant 0 : index
    %102 = vector.load %arg5[%101, %c0_33, %c0_34] : memref<8x16x128xbf16, #tpu.memory_space<vmem>>, vector<1x16x64xbf16>
    %103 = vector.shape_cast %102 : vector<1x16x64xbf16> to vector<16x64xbf16>
    %104 = vector.shape_cast %100 : vector<16x64xbf16> to vector<1x16x64xbf16>
    tpu.vector_store %arg5[%101, %c0_33, %c0_34], %104 {strides = array<i32>} : memref<8x16x128xbf16, #tpu.memory_space<vmem>>, vector<1x16x64xbf16>,
    %105 = vector.extract_strided_slice %98 {offsets = [0, 64], sizes = [16, 64], strides = [1, 1]} : vector<16x128xf32> to vector<16x64xf32>
    %106 = arith.truncf %105 : vector<16x64xf32> to vector<16x64xbf16>
    %c7_i32_35 = arith.constant 7 : i32
    %107 = arith.subi %c7_i32_35, %c1_i32 : i32
    %108 = arith.index_cast %107 : i32 to index
    %c0_36 = arith.constant 0 : index
    %c64_37 = arith.constant 64 : index
    %109 = vector.load %arg5[%108, %c0_36, %c64_37] : memref<8x16x128xbf16, #tpu.memory_space<vmem>>, vector<1x16x64xbf16>
    %110 = vector.shape_cast %109 : vector<1x16x64xbf16> to vector<16x64xbf16>
    %111 = vector.shape_cast %106 : vector<16x64xbf16> to vector<1x16x64xbf16>
    tpu.vector_store %arg5[%108, %c0_36, %c64_37], %111 {strides = array<i32>} : memref<8x16x128xbf16, #tpu.memory_space<vmem>>, vector<1x16x64xbf16>,
    %c2_i32 = arith.constant 2 : i32
    %112 = arith.truncf %98 : vector<16x128xf32> to vector<16x128xbf16>
    %cst_38 = arith.constant dense<0.000000e+00> : vector<16x512xf32>
    %113 = tpu.matmul %112, %2, %cst_38 {dimension_numbers = #tpu.dot_dimension_numbers<[1], [0], [0], [1], [0, 0, 1, 1], [], []>} : vector<16x128xbf16>, vector<128x512xbf16>, vector<16x512xf32> -> vector<16x512xf32>
    %114 = arith.index_cast %c2_i32 : i32 to index
    %c0_39 = arith.constant 0 : index
    %c0_40 = arith.constant 0 : index
    %115 = vector.load %arg0[%114, %c0_39, %c0_40] : memref<8x16x128xbf16, #tpu.memory_space<vmem>>, vector<1x16x128xbf16>
    %116 = vector.shape_cast %115 : vector<1x16x128xbf16> to vector<16x128xbf16>
    %cst_41 = arith.constant dense<0.000000e+00> : vector<16x512xf32>
    %117 = tpu.matmul %116, %0, %cst_41 {dimension_numbers = #tpu.dot_dimension_numbers<[1], [0], [0], [1], [0, 0, 1, 1], [], []>} : vector<16x128xbf16>, vector<128x512xbf16>, vector<16x512xf32> -> vector<16x512xf32>
    %c7_i32_42 = arith.constant 7 : i32
    %118 = arith.subi %c7_i32_42, %c2_i32 : i32
    %119 = arith.index_cast %118 : i32 to index
    %c0_43 = arith.constant 0 : index
    %c0_44 = arith.constant 0 : index
    %120 = vector.load %arg0[%119, %c0_43, %c0_44] : memref<8x16x128xbf16, #tpu.memory_space<vmem>>, vector<1x16x128xbf16>
    %121 = vector.shape_cast %120 : vector<1x16x128xbf16> to vector<16x128xbf16>
    %cst_45 = arith.constant dense<0.000000e+00> : vector<16x512xf32>
    %122 = tpu.matmul %121, %1, %cst_45 {dimension_numbers = #tpu.dot_dimension_numbers<[1], [0], [0], [1], [0, 0, 1, 1], [], []>} : vector<16x128xbf16>, vector<128x512xbf16>, vector<16x512xf32> -> vector<16x512xf32>
    %123 = arith.addf %117, %122 : vector<16x512xf32>
    %124 = arith.addf %123, %5 : vector<16x512xf32>
    %125 = arith.addf %124, %113 : vector<16x512xf32>
    %126 = vector.extract_strided_slice %125 {offsets = [0, 0], sizes = [16, 128], strides = [1, 1]} : vector<16x512xf32> to vector<16x128xf32>
    %127 = arith.negf %126 : vector<16x128xf32>
    %128 = math.exp %127 : vector<16x128xf32>
    %cst_46 = arith.constant 1.000000e+00 : f32
    %129 = vector.broadcast %cst_46 : f32 to vector<16x128xf32>
    %130 = arith.addf %129, %128 : vector<16x128xf32>
    %131 = arith.divf %129, %130 : vector<16x128xf32>
    %132 = vector.extract_strided_slice %125 {offsets = [0, 128], sizes = [16, 128], strides = [1, 1]} : vector<16x512xf32> to vector<16x128xf32>
    %133 = arith.negf %132 : vector<16x128xf32>
    %134 = math.exp %133 : vector<16x128xf32>
    %cst_47 = arith.constant 1.000000e+00 : f32
    %135 = vector.broadcast %cst_47 : f32 to vector<16x128xf32>
    %136 = arith.addf %135, %134 : vector<16x128xf32>
    %137 = arith.divf %135, %136 : vector<16x128xf32>
    %138 = vector.extract_strided_slice %125 {offsets = [0, 256], sizes = [16, 128], strides = [1, 1]} : vector<16x512xf32> to vector<16x128xf32>
    %139 = math.tanh %138 : vector<16x128xf32>
    %140 = vector.extract_strided_slice %125 {offsets = [0, 384], sizes = [16, 128], strides = [1, 1]} : vector<16x512xf32> to vector<16x128xf32>
    %141 = arith.negf %140 : vector<16x128xf32>
    %142 = math.exp %141 : vector<16x128xf32>
    %cst_48 = arith.constant 1.000000e+00 : f32
    %143 = vector.broadcast %cst_48 : f32 to vector<16x128xf32>
    %144 = arith.addf %143, %142 : vector<16x128xf32>
    %145 = arith.divf %143, %144 : vector<16x128xf32>
    %146 = arith.mulf %137, %96 : vector<16x128xf32>
    %147 = arith.mulf %131, %139 : vector<16x128xf32>
    %148 = arith.addf %146, %147 : vector<16x128xf32>
    %149 = math.tanh %148 : vector<16x128xf32>
    %150 = arith.mulf %145, %149 : vector<16x128xf32>
    %151 = vector.extract_strided_slice %150 {offsets = [0, 0], sizes = [16, 64], strides = [1, 1]} : vector<16x128xf32> to vector<16x64xf32>
    %152 = arith.truncf %151 : vector<16x64xf32> to vector<16x64xbf16>
    %153 = arith.index_cast %c2_i32 : i32 to index
    %c0_49 = arith.constant 0 : index
    %c0_50 = arith.constant 0 : index
    %154 = vector.load %arg5[%153, %c0_49, %c0_50] : memref<8x16x128xbf16, #tpu.memory_space<vmem>>, vector<1x16x64xbf16>
    %155 = vector.shape_cast %154 : vector<1x16x64xbf16> to vector<16x64xbf16>
    %156 = vector.shape_cast %152 : vector<16x64xbf16> to vector<1x16x64xbf16>
    tpu.vector_store %arg5[%153, %c0_49, %c0_50], %156 {strides = array<i32>} : memref<8x16x128xbf16, #tpu.memory_space<vmem>>, vector<1x16x64xbf16>,
    %157 = vector.extract_strided_slice %150 {offsets = [0, 64], sizes = [16, 64], strides = [1, 1]} : vector<16x128xf32> to vector<16x64xf32>
    %158 = arith.truncf %157 : vector<16x64xf32> to vector<16x64xbf16>
    %c7_i32_51 = arith.constant 7 : i32
    %159 = arith.subi %c7_i32_51, %c2_i32 : i32
    %160 = arith.index_cast %159 : i32 to index
    %c0_52 = arith.constant 0 : index
    %c64_53 = arith.constant 64 : index
    %161 = vector.load %arg5[%160, %c0_52, %c64_53] : memref<8x16x128xbf16, #tpu.memory_space<vmem>>, vector<1x16x64xbf16>
    %162 = vector.shape_cast %161 : vector<1x16x64xbf16> to vector<16x64xbf16>
    %163 = vector.shape_cast %158 : vector<16x64xbf16> to vector<1x16x64xbf16>
    tpu.vector_store %arg5[%160, %c0_52, %c64_53], %163 {strides = array<i32>} : memref<8x16x128xbf16, #tpu.memory_space<vmem>>, vector<1x16x64xbf16>,
    %c3_i32 = arith.constant 3 : i32
    %164 = arith.truncf %150 : vector<16x128xf32> to vector<16x128xbf16>
    %cst_54 = arith.constant dense<0.000000e+00> : vector<16x512xf32>
    %165 = tpu.matmul %164, %2, %cst_54 {dimension_numbers = #tpu.dot_dimension_numbers<[1], [0], [0], [1], [0, 0, 1, 1], [], []>} : vector<16x128xbf16>, vector<128x512xbf16>, vector<16x512xf32> -> vector<16x512xf32>
    %166 = arith.index_cast %c3_i32 : i32 to index
    %c0_55 = arith.constant 0 : index
    %c0_56 = arith.constant 0 : index
    %167 = vector.load %arg0[%166, %c0_55, %c0_56] : memref<8x16x128xbf16, #tpu.memory_space<vmem>>, vector<1x16x128xbf16>
    %168 = vector.shape_cast %167 : vector<1x16x128xbf16> to vector<16x128xbf16>
    %cst_57 = arith.constant dense<0.000000e+00> : vector<16x512xf32>
    %169 = tpu.matmul %168, %0, %cst_57 {dimension_numbers = #tpu.dot_dimension_numbers<[1], [0], [0], [1], [0, 0, 1, 1], [], []>} : vector<16x128xbf16>, vector<128x512xbf16>, vector<16x512xf32> -> vector<16x512xf32>
    %c7_i32_58 = arith.constant 7 : i32
    %170 = arith.subi %c7_i32_58, %c3_i32 : i32
    %171 = arith.index_cast %170 : i32 to index
    %c0_59 = arith.constant 0 : index
    %c0_60 = arith.constant 0 : index
    %172 = vector.load %arg0[%171, %c0_59, %c0_60] : memref<8x16x128xbf16, #tpu.memory_space<vmem>>, vector<1x16x128xbf16>
    %173 = vector.shape_cast %172 : vector<1x16x128xbf16> to vector<16x128xbf16>
    %cst_61 = arith.constant dense<0.000000e+00> : vector<16x512xf32>
    %174 = tpu.matmul %173, %1, %cst_61 {dimension_numbers = #tpu.dot_dimension_numbers<[1], [0], [0], [1], [0, 0, 1, 1], [], []>} : vector<16x128xbf16>, vector<128x512xbf16>, vector<16x512xf32> -> vector<16x512xf32>
    %175 = arith.addf %169, %174 : vector<16x512xf32>
    %176 = arith.addf %175, %5 : vector<16x512xf32>
    %177 = arith.addf %176, %165 : vector<16x512xf32>
    %178 = vector.extract_strided_slice %177 {offsets = [0, 0], sizes = [16, 128], strides = [1, 1]} : vector<16x512xf32> to vector<16x128xf32>
    %179 = arith.negf %178 : vector<16x128xf32>
    %180 = math.exp %179 : vector<16x128xf32>
    %cst_62 = arith.constant 1.000000e+00 : f32
    %181 = vector.broadcast %cst_62 : f32 to vector<16x128xf32>
    %182 = arith.addf %181, %180 : vector<16x128xf32>
    %183 = arith.divf %181, %182 : vector<16x128xf32>
    %184 = vector.extract_strided_slice %177 {offsets = [0, 128], sizes = [16, 128], strides = [1, 1]} : vector<16x512xf32> to vector<16x128xf32>
    %185 = arith.negf %184 : vector<16x128xf32>
    %186 = math.exp %185 : vector<16x128xf32>
    %cst_63 = arith.constant 1.000000e+00 : f32
    %187 = vector.broadcast %cst_63 : f32 to vector<16x128xf32>
    %188 = arith.addf %187, %186 : vector<16x128xf32>
    %189 = arith.divf %187, %188 : vector<16x128xf32>
    %190 = vector.extract_strided_slice %177 {offsets = [0, 256], sizes = [16, 128], strides = [1, 1]} : vector<16x512xf32> to vector<16x128xf32>
    %191 = math.tanh %190 : vector<16x128xf32>
    %192 = vector.extract_strided_slice %177 {offsets = [0, 384], sizes = [16, 128], strides = [1, 1]} : vector<16x512xf32> to vector<16x128xf32>
    %193 = arith.negf %192 : vector<16x128xf32>
    %194 = math.exp %193 : vector<16x128xf32>
    %cst_64 = arith.constant 1.000000e+00 : f32
    %195 = vector.broadcast %cst_64 : f32 to vector<16x128xf32>
    %196 = arith.addf %195, %194 : vector<16x128xf32>
    %197 = arith.divf %195, %196 : vector<16x128xf32>
    %198 = arith.mulf %189, %148 : vector<16x128xf32>
    %199 = arith.mulf %183, %191 : vector<16x128xf32>
    %200 = arith.addf %198, %199 : vector<16x128xf32>
    %201 = math.tanh %200 : vector<16x128xf32>
    %202 = arith.mulf %197, %201 : vector<16x128xf32>
    %203 = vector.extract_strided_slice %202 {offsets = [0, 0], sizes = [16, 64], strides = [1, 1]} : vector<16x128xf32> to vector<16x64xf32>
    %204 = arith.truncf %203 : vector<16x64xf32> to vector<16x64xbf16>
    %205 = arith.index_cast %c3_i32 : i32 to index
    %c0_65 = arith.constant 0 : index
    %c0_66 = arith.constant 0 : index
    %206 = vector.load %arg5[%205, %c0_65, %c0_66] : memref<8x16x128xbf16, #tpu.memory_space<vmem>>, vector<1x16x64xbf16>
    %207 = vector.shape_cast %206 : vector<1x16x64xbf16> to vector<16x64xbf16>
    %208 = vector.shape_cast %204 : vector<16x64xbf16> to vector<1x16x64xbf16>
    tpu.vector_store %arg5[%205, %c0_65, %c0_66], %208 {strides = array<i32>} : memref<8x16x128xbf16, #tpu.memory_space<vmem>>, vector<1x16x64xbf16>,
    %209 = vector.extract_strided_slice %202 {offsets = [0, 64], sizes = [16, 64], strides = [1, 1]} : vector<16x128xf32> to vector<16x64xf32>
    %210 = arith.truncf %209 : vector<16x64xf32> to vector<16x64xbf16>
    %c7_i32_67 = arith.constant 7 : i32
    %211 = arith.subi %c7_i32_67, %c3_i32 : i32
    %212 = arith.index_cast %211 : i32 to index
    %c0_68 = arith.constant 0 : index
    %c64_69 = arith.constant 64 : index
    %213 = vector.load %arg5[%212, %c0_68, %c64_69] : memref<8x16x128xbf16, #tpu.memory_space<vmem>>, vector<1x16x64xbf16>
    %214 = vector.shape_cast %213 : vector<1x16x64xbf16> to vector<16x64xbf16>
    %215 = vector.shape_cast %210 : vector<16x64xbf16> to vector<1x16x64xbf16>
    tpu.vector_store %arg5[%212, %c0_68, %c64_69], %215 {strides = array<i32>} : memref<8x16x128xbf16, #tpu.memory_space<vmem>>, vector<1x16x64xbf16>,
    %c4_i32 = arith.constant 4 : i32
    %216 = arith.truncf %202 : vector<16x128xf32> to vector<16x128xbf16>
    %cst_70 = arith.constant dense<0.000000e+00> : vector<16x512xf32>
    %217 = tpu.matmul %216, %2, %cst_70 {dimension_numbers = #tpu.dot_dimension_numbers<[1], [0], [0], [1], [0, 0, 1, 1], [], []>} : vector<16x128xbf16>, vector<128x512xbf16>, vector<16x512xf32> -> vector<16x512xf32>
    %218 = arith.index_cast %c4_i32 : i32 to index
    %c0_71 = arith.constant 0 : index
    %c0_72 = arith.constant 0 : index
    %219 = vector.load %arg0[%218, %c0_71, %c0_72] : memref<8x16x128xbf16, #tpu.memory_space<vmem>>, vector<1x16x128xbf16>
    %220 = vector.shape_cast %219 : vector<1x16x128xbf16> to vector<16x128xbf16>
    %cst_73 = arith.constant dense<0.000000e+00> : vector<16x512xf32>
    %221 = tpu.matmul %220, %0, %cst_73 {dimension_numbers = #tpu.dot_dimension_numbers<[1], [0], [0], [1], [0, 0, 1, 1], [], []>} : vector<16x128xbf16>, vector<128x512xbf16>, vector<16x512xf32> -> vector<16x512xf32>
    %c7_i32_74 = arith.constant 7 : i32
    %222 = arith.subi %c7_i32_74, %c4_i32 : i32
    %223 = arith.index_cast %222 : i32 to index
    %c0_75 = arith.constant 0 : index
    %c0_76 = arith.constant 0 : index
    %224 = vector.load %arg0[%223, %c0_75, %c0_76] : memref<8x16x128xbf16, #tpu.memory_space<vmem>>, vector<1x16x128xbf16>
    %225 = vector.shape_cast %224 : vector<1x16x128xbf16> to vector<16x128xbf16>
    %cst_77 = arith.constant dense<0.000000e+00> : vector<16x512xf32>
    %226 = tpu.matmul %225, %1, %cst_77 {dimension_numbers = #tpu.dot_dimension_numbers<[1], [0], [0], [1], [0, 0, 1, 1], [], []>} : vector<16x128xbf16>, vector<128x512xbf16>, vector<16x512xf32> -> vector<16x512xf32>
    %227 = arith.addf %221, %226 : vector<16x512xf32>
    %228 = arith.addf %227, %5 : vector<16x512xf32>
    %229 = arith.addf %228, %217 : vector<16x512xf32>
    %230 = vector.extract_strided_slice %229 {offsets = [0, 0], sizes = [16, 128], strides = [1, 1]} : vector<16x512xf32> to vector<16x128xf32>
    %231 = arith.negf %230 : vector<16x128xf32>
    %232 = math.exp %231 : vector<16x128xf32>
    %cst_78 = arith.constant 1.000000e+00 : f32
    %233 = vector.broadcast %cst_78 : f32 to vector<16x128xf32>
    %234 = arith.addf %233, %232 : vector<16x128xf32>
    %235 = arith.divf %233, %234 : vector<16x128xf32>
    %236 = vector.extract_strided_slice %229 {offsets = [0, 128], sizes = [16, 128], strides = [1, 1]} : vector<16x512xf32> to vector<16x128xf32>
    %237 = arith.negf %236 : vector<16x128xf32>
    %238 = math.exp %237 : vector<16x128xf32>
    %cst_79 = arith.constant 1.000000e+00 : f32
    %239 = vector.broadcast %cst_79 : f32 to vector<16x128xf32>
    %240 = arith.addf %239, %238 : vector<16x128xf32>
    %241 = arith.divf %239, %240 : vector<16x128xf32>
    %242 = vector.extract_strided_slice %229 {offsets = [0, 256], sizes = [16, 128], strides = [1, 1]} : vector<16x512xf32> to vector<16x128xf32>
    %243 = math.tanh %242 : vector<16x128xf32>
    %244 = vector.extract_strided_slice %229 {offsets = [0, 384], sizes = [16, 128], strides = [1, 1]} : vector<16x512xf32> to vector<16x128xf32>
    %245 = arith.negf %244 : vector<16x128xf32>
    %246 = math.exp %245 : vector<16x128xf32>
    %cst_80 = arith.constant 1.000000e+00 : f32
    %247 = vector.broadcast %cst_80 : f32 to vector<16x128xf32>
    %248 = arith.addf %247, %246 : vector<16x128xf32>
    %249 = arith.divf %247, %248 : vector<16x128xf32>
    %250 = arith.mulf %241, %200 : vector<16x128xf32>
    %251 = arith.mulf %235, %243 : vector<16x128xf32>
    %252 = arith.addf %250, %251 : vector<16x128xf32>
    %253 = math.tanh %252 : vector<16x128xf32>
    %254 = arith.mulf %249, %253 : vector<16x128xf32>
    %255 = vector.extract_strided_slice %254 {offsets = [0, 0], sizes = [16, 64], strides = [1, 1]} : vector<16x128xf32> to vector<16x64xf32>
    %256 = arith.truncf %255 : vector<16x64xf32> to vector<16x64xbf16>
    %257 = arith.index_cast %c4_i32 : i32 to index
    %c0_81 = arith.constant 0 : index
    %c0_82 = arith.constant 0 : index
    %258 = vector.load %arg5[%257, %c0_81, %c0_82] : memref<8x16x128xbf16, #tpu.memory_space<vmem>>, vector<1x16x64xbf16>
    %259 = vector.shape_cast %258 : vector<1x16x64xbf16> to vector<16x64xbf16>
    %260 = vector.shape_cast %256 : vector<16x64xbf16> to vector<1x16x64xbf16>
    tpu.vector_store %arg5[%257, %c0_81, %c0_82], %260 {strides = array<i32>} : memref<8x16x128xbf16, #tpu.memory_space<vmem>>, vector<1x16x64xbf16>,
    %261 = vector.extract_strided_slice %254 {offsets = [0, 64], sizes = [16, 64], strides = [1, 1]} : vector<16x128xf32> to vector<16x64xf32>
    %262 = arith.truncf %261 : vector<16x64xf32> to vector<16x64xbf16>
    %c7_i32_83 = arith.constant 7 : i32
    %263 = arith.subi %c7_i32_83, %c4_i32 : i32
    %264 = arith.index_cast %263 : i32 to index
    %c0_84 = arith.constant 0 : index
    %c64_85 = arith.constant 64 : index
    %265 = vector.load %arg5[%264, %c0_84, %c64_85] : memref<8x16x128xbf16, #tpu.memory_space<vmem>>, vector<1x16x64xbf16>
    %266 = vector.shape_cast %265 : vector<1x16x64xbf16> to vector<16x64xbf16>
    %267 = vector.shape_cast %262 : vector<16x64xbf16> to vector<1x16x64xbf16>
    tpu.vector_store %arg5[%264, %c0_84, %c64_85], %267 {strides = array<i32>} : memref<8x16x128xbf16, #tpu.memory_space<vmem>>, vector<1x16x64xbf16>,
    %c5_i32 = arith.constant 5 : i32
    %268 = arith.truncf %254 : vector<16x128xf32> to vector<16x128xbf16>
    %cst_86 = arith.constant dense<0.000000e+00> : vector<16x512xf32>
    %269 = tpu.matmul %268, %2, %cst_86 {dimension_numbers = #tpu.dot_dimension_numbers<[1], [0], [0], [1], [0, 0, 1, 1], [], []>} : vector<16x128xbf16>, vector<128x512xbf16>, vector<16x512xf32> -> vector<16x512xf32>
    %270 = arith.index_cast %c5_i32 : i32 to index
    %c0_87 = arith.constant 0 : index
    %c0_88 = arith.constant 0 : index
    %271 = vector.load %arg0[%270, %c0_87, %c0_88] : memref<8x16x128xbf16, #tpu.memory_space<vmem>>, vector<1x16x128xbf16>
    %272 = vector.shape_cast %271 : vector<1x16x128xbf16> to vector<16x128xbf16>
    %cst_89 = arith.constant dense<0.000000e+00> : vector<16x512xf32>
    %273 = tpu.matmul %272, %0, %cst_89 {dimension_numbers = #tpu.dot_dimension_numbers<[1], [0], [0], [1], [0, 0, 1, 1], [], []>} : vector<16x128xbf16>, vector<128x512xbf16>, vector<16x512xf32> -> vector<16x512xf32>
    %c7_i32_90 = arith.constant 7 : i32
    %274 = arith.subi %c7_i32_90, %c5_i32 : i32
    %275 = arith.index_cast %274 : i32 to index
    %c0_91 = arith.constant 0 : index
    %c0_92 = arith.constant 0 : index
    %276 = vector.load %arg0[%275, %c0_91, %c0_92] : memref<8x16x128xbf16, #tpu.memory_space<vmem>>, vector<1x16x128xbf16>
    %277 = vector.shape_cast %276 : vector<1x16x128xbf16> to vector<16x128xbf16>
    %cst_93 = arith.constant dense<0.000000e+00> : vector<16x512xf32>
    %278 = tpu.matmul %277, %1, %cst_93 {dimension_numbers = #tpu.dot_dimension_numbers<[1], [0], [0], [1], [0, 0, 1, 1], [], []>} : vector<16x128xbf16>, vector<128x512xbf16>, vector<16x512xf32> -> vector<16x512xf32>
    %279 = arith.addf %273, %278 : vector<16x512xf32>
    %280 = arith.addf %279, %5 : vector<16x512xf32>
    %281 = arith.addf %280, %269 : vector<16x512xf32>
    %282 = vector.extract_strided_slice %281 {offsets = [0, 0], sizes = [16, 128], strides = [1, 1]} : vector<16x512xf32> to vector<16x128xf32>
    %283 = arith.negf %282 : vector<16x128xf32>
    %284 = math.exp %283 : vector<16x128xf32>
    %cst_94 = arith.constant 1.000000e+00 : f32
    %285 = vector.broadcast %cst_94 : f32 to vector<16x128xf32>
    %286 = arith.addf %285, %284 : vector<16x128xf32>
    %287 = arith.divf %285, %286 : vector<16x128xf32>
    %288 = vector.extract_strided_slice %281 {offsets = [0, 128], sizes = [16, 128], strides = [1, 1]} : vector<16x512xf32> to vector<16x128xf32>
    %289 = arith.negf %288 : vector<16x128xf32>
    %290 = math.exp %289 : vector<16x128xf32>
    %cst_95 = arith.constant 1.000000e+00 : f32
    %291 = vector.broadcast %cst_95 : f32 to vector<16x128xf32>
    %292 = arith.addf %291, %290 : vector<16x128xf32>
    %293 = arith.divf %291, %292 : vector<16x128xf32>
    %294 = vector.extract_strided_slice %281 {offsets = [0, 256], sizes = [16, 128], strides = [1, 1]} : vector<16x512xf32> to vector<16x128xf32>
    %295 = math.tanh %294 : vector<16x128xf32>
    %296 = vector.extract_strided_slice %281 {offsets = [0, 384], sizes = [16, 128], strides = [1, 1]} : vector<16x512xf32> to vector<16x128xf32>
    %297 = arith.negf %296 : vector<16x128xf32>
    %298 = math.exp %297 : vector<16x128xf32>
    %cst_96 = arith.constant 1.000000e+00 : f32
    %299 = vector.broadcast %cst_96 : f32 to vector<16x128xf32>
    %300 = arith.addf %299, %298 : vector<16x128xf32>
    %301 = arith.divf %299, %300 : vector<16x128xf32>
    %302 = arith.mulf %293, %252 : vector<16x128xf32>
    %303 = arith.mulf %287, %295 : vector<16x128xf32>
    %304 = arith.addf %302, %303 : vector<16x128xf32>
    %305 = math.tanh %304 : vector<16x128xf32>
    %306 = arith.mulf %301, %305 : vector<16x128xf32>
    %307 = vector.extract_strided_slice %306 {offsets = [0, 0], sizes = [16, 64], strides = [1, 1]} : vector<16x128xf32> to vector<16x64xf32>
    %308 = arith.truncf %307 : vector<16x64xf32> to vector<16x64xbf16>
    %309 = arith.index_cast %c5_i32 : i32 to index
    %c0_97 = arith.constant 0 : index
    %c0_98 = arith.constant 0 : index
    %310 = vector.load %arg5[%309, %c0_97, %c0_98] : memref<8x16x128xbf16, #tpu.memory_space<vmem>>, vector<1x16x64xbf16>
    %311 = vector.shape_cast %310 : vector<1x16x64xbf16> to vector<16x64xbf16>
    %312 = vector.shape_cast %308 : vector<16x64xbf16> to vector<1x16x64xbf16>
    tpu.vector_store %arg5[%309, %c0_97, %c0_98], %312 {strides = array<i32>} : memref<8x16x128xbf16, #tpu.memory_space<vmem>>, vector<1x16x64xbf16>,
    %313 = vector.extract_strided_slice %306 {offsets = [0, 64], sizes = [16, 64], strides = [1, 1]} : vector<16x128xf32> to vector<16x64xf32>
    %314 = arith.truncf %313 : vector<16x64xf32> to vector<16x64xbf16>
    %c7_i32_99 = arith.constant 7 : i32
    %315 = arith.subi %c7_i32_99, %c5_i32 : i32
    %316 = arith.index_cast %315 : i32 to index
    %c0_100 = arith.constant 0 : index
    %c64_101 = arith.constant 64 : index
    %317 = vector.load %arg5[%316, %c0_100, %c64_101] : memref<8x16x128xbf16, #tpu.memory_space<vmem>>, vector<1x16x64xbf16>
    %318 = vector.shape_cast %317 : vector<1x16x64xbf16> to vector<16x64xbf16>
    %319 = vector.shape_cast %314 : vector<16x64xbf16> to vector<1x16x64xbf16>
    tpu.vector_store %arg5[%316, %c0_100, %c64_101], %319 {strides = array<i32>} : memref<8x16x128xbf16, #tpu.memory_space<vmem>>, vector<1x16x64xbf16>,
    %c6_i32 = arith.constant 6 : i32
    %320 = arith.truncf %306 : vector<16x128xf32> to vector<16x128xbf16>
    %cst_102 = arith.constant dense<0.000000e+00> : vector<16x512xf32>
    %321 = tpu.matmul %320, %2, %cst_102 {dimension_numbers = #tpu.dot_dimension_numbers<[1], [0], [0], [1], [0, 0, 1, 1], [], []>} : vector<16x128xbf16>, vector<128x512xbf16>, vector<16x512xf32> -> vector<16x512xf32>
    %322 = arith.index_cast %c6_i32 : i32 to index
    %c0_103 = arith.constant 0 : index
    %c0_104 = arith.constant 0 : index
    %323 = vector.load %arg0[%322, %c0_103, %c0_104] : memref<8x16x128xbf16, #tpu.memory_space<vmem>>, vector<1x16x128xbf16>
    %324 = vector.shape_cast %323 : vector<1x16x128xbf16> to vector<16x128xbf16>
    %cst_105 = arith.constant dense<0.000000e+00> : vector<16x512xf32>
    %325 = tpu.matmul %324, %0, %cst_105 {dimension_numbers = #tpu.dot_dimension_numbers<[1], [0], [0], [1], [0, 0, 1, 1], [], []>} : vector<16x128xbf16>, vector<128x512xbf16>, vector<16x512xf32> -> vector<16x512xf32>
    %c7_i32_106 = arith.constant 7 : i32
    %326 = arith.subi %c7_i32_106, %c6_i32 : i32
    %327 = arith.index_cast %326 : i32 to index
    %c0_107 = arith.constant 0 : index
    %c0_108 = arith.constant 0 : index
    %328 = vector.load %arg0[%327, %c0_107, %c0_108] : memref<8x16x128xbf16, #tpu.memory_space<vmem>>, vector<1x16x128xbf16>
    %329 = vector.shape_cast %328 : vector<1x16x128xbf16> to vector<16x128xbf16>
    %cst_109 = arith.constant dense<0.000000e+00> : vector<16x512xf32>
    %330 = tpu.matmul %329, %1, %cst_109 {dimension_numbers = #tpu.dot_dimension_numbers<[1], [0], [0], [1], [0, 0, 1, 1], [], []>} : vector<16x128xbf16>, vector<128x512xbf16>, vector<16x512xf32> -> vector<16x512xf32>
    %331 = arith.addf %325, %330 : vector<16x512xf32>
    %332 = arith.addf %331, %5 : vector<16x512xf32>
    %333 = arith.addf %332, %321 : vector<16x512xf32>
    %334 = vector.extract_strided_slice %333 {offsets = [0, 0], sizes = [16, 128], strides = [1, 1]} : vector<16x512xf32> to vector<16x128xf32>
    %335 = arith.negf %334 : vector<16x128xf32>
    %336 = math.exp %335 : vector<16x128xf32>
    %cst_110 = arith.constant 1.000000e+00 : f32
    %337 = vector.broadcast %cst_110 : f32 to vector<16x128xf32>
    %338 = arith.addf %337, %336 : vector<16x128xf32>
    %339 = arith.divf %337, %338 : vector<16x128xf32>
    %340 = vector.extract_strided_slice %333 {offsets = [0, 128], sizes = [16, 128], strides = [1, 1]} : vector<16x512xf32> to vector<16x128xf32>
    %341 = arith.negf %340 : vector<16x128xf32>
    %342 = math.exp %341 : vector<16x128xf32>
    %cst_111 = arith.constant 1.000000e+00 : f32
    %343 = vector.broadcast %cst_111 : f32 to vector<16x128xf32>
    %344 = arith.addf %343, %342 : vector<16x128xf32>
    %345 = arith.divf %343, %344 : vector<16x128xf32>
    %346 = vector.extract_strided_slice %333 {offsets = [0, 256], sizes = [16, 128], strides = [1, 1]} : vector<16x512xf32> to vector<16x128xf32>
    %347 = math.tanh %346 : vector<16x128xf32>
    %348 = vector.extract_strided_slice %333 {offsets = [0, 384], sizes = [16, 128], strides = [1, 1]} : vector<16x512xf32> to vector<16x128xf32>
    %349 = arith.negf %348 : vector<16x128xf32>
    %350 = math.exp %349 : vector<16x128xf32>
    %cst_112 = arith.constant 1.000000e+00 : f32
    %351 = vector.broadcast %cst_112 : f32 to vector<16x128xf32>
    %352 = arith.addf %351, %350 : vector<16x128xf32>
    %353 = arith.divf %351, %352 : vector<16x128xf32>
    %354 = arith.mulf %345, %304 : vector<16x128xf32>
    %355 = arith.mulf %339, %347 : vector<16x128xf32>
    %356 = arith.addf %354, %355 : vector<16x128xf32>
    %357 = math.tanh %356 : vector<16x128xf32>
    %358 = arith.mulf %353, %357 : vector<16x128xf32>
    %359 = vector.extract_strided_slice %358 {offsets = [0, 0], sizes = [16, 64], strides = [1, 1]} : vector<16x128xf32> to vector<16x64xf32>
    %360 = arith.truncf %359 : vector<16x64xf32> to vector<16x64xbf16>
    %361 = arith.index_cast %c6_i32 : i32 to index
    %c0_113 = arith.constant 0 : index
    %c0_114 = arith.constant 0 : index
    %362 = vector.load %arg5[%361, %c0_113, %c0_114] : memref<8x16x128xbf16, #tpu.memory_space<vmem>>, vector<1x16x64xbf16>
    %363 = vector.shape_cast %362 : vector<1x16x64xbf16> to vector<16x64xbf16>
    %364 = vector.shape_cast %360 : vector<16x64xbf16> to vector<1x16x64xbf16>
    tpu.vector_store %arg5[%361, %c0_113, %c0_114], %364 {strides = array<i32>} : memref<8x16x128xbf16, #tpu.memory_space<vmem>>, vector<1x16x64xbf16>,
    %365 = vector.extract_strided_slice %358 {offsets = [0, 64], sizes = [16, 64], strides = [1, 1]} : vector<16x128xf32> to vector<16x64xf32>
    %366 = arith.truncf %365 : vector<16x64xf32> to vector<16x64xbf16>
    %c7_i32_115 = arith.constant 7 : i32
    %367 = arith.subi %c7_i32_115, %c6_i32 : i32
    %368 = arith.index_cast %367 : i32 to index
    %c0_116 = arith.constant 0 : index
    %c64_117 = arith.constant 64 : index
    %369 = vector.load %arg5[%368, %c0_116, %c64_117] : memref<8x16x128xbf16, #tpu.memory_space<vmem>>, vector<1x16x64xbf16>
    %370 = vector.shape_cast %369 : vector<1x16x64xbf16> to vector<16x64xbf16>
    %371 = vector.shape_cast %366 : vector<16x64xbf16> to vector<1x16x64xbf16>
    tpu.vector_store %arg5[%368, %c0_116, %c64_117], %371 {strides = array<i32>} : memref<8x16x128xbf16, #tpu.memory_space<vmem>>, vector<1x16x64xbf16>,
    %c7_i32_118 = arith.constant 7 : i32
    %372 = arith.truncf %358 : vector<16x128xf32> to vector<16x128xbf16>
    %cst_119 = arith.constant dense<0.000000e+00> : vector<16x512xf32>
    %373 = tpu.matmul %372, %2, %cst_119 {dimension_numbers = #tpu.dot_dimension_numbers<[1], [0], [0], [1], [0, 0, 1, 1], [], []>} : vector<16x128xbf16>, vector<128x512xbf16>, vector<16x512xf32> -> vector<16x512xf32>
    %374 = arith.index_cast %c7_i32_118 : i32 to index
    %c0_120 = arith.constant 0 : index
    %c0_121 = arith.constant 0 : index
    %375 = vector.load %arg0[%374, %c0_120, %c0_121] : memref<8x16x128xbf16, #tpu.memory_space<vmem>>, vector<1x16x128xbf16>
    %376 = vector.shape_cast %375 : vector<1x16x128xbf16> to vector<16x128xbf16>
    %cst_122 = arith.constant dense<0.000000e+00> : vector<16x512xf32>
    %377 = tpu.matmul %376, %0, %cst_122 {dimension_numbers = #tpu.dot_dimension_numbers<[1], [0], [0], [1], [0, 0, 1, 1], [], []>} : vector<16x128xbf16>, vector<128x512xbf16>, vector<16x512xf32> -> vector<16x512xf32>
    %c7_i32_123 = arith.constant 7 : i32
    %378 = arith.subi %c7_i32_123, %c7_i32_118 : i32
    %379 = arith.index_cast %378 : i32 to index
    %c0_124 = arith.constant 0 : index
    %c0_125 = arith.constant 0 : index
    %380 = vector.load %arg0[%379, %c0_124, %c0_125] : memref<8x16x128xbf16, #tpu.memory_space<vmem>>, vector<1x16x128xbf16>
    %381 = vector.shape_cast %380 : vector<1x16x128xbf16> to vector<16x128xbf16>
    %cst_126 = arith.constant dense<0.000000e+00> : vector<16x512xf32>
    %382 = tpu.matmul %381, %1, %cst_126 {dimension_numbers = #tpu.dot_dimension_numbers<[1], [0], [0], [1], [0, 0, 1, 1], [], []>} : vector<16x128xbf16>, vector<128x512xbf16>, vector<16x512xf32> -> vector<16x512xf32>
    %383 = arith.addf %377, %382 : vector<16x512xf32>
    %384 = arith.addf %383, %5 : vector<16x512xf32>
    %385 = arith.addf %384, %373 : vector<16x512xf32>
    %386 = vector.extract_strided_slice %385 {offsets = [0, 0], sizes = [16, 128], strides = [1, 1]} : vector<16x512xf32> to vector<16x128xf32>
    %387 = arith.negf %386 : vector<16x128xf32>
    %388 = math.exp %387 : vector<16x128xf32>
    %cst_127 = arith.constant 1.000000e+00 : f32
    %389 = vector.broadcast %cst_127 : f32 to vector<16x128xf32>
    %390 = arith.addf %389, %388 : vector<16x128xf32>
    %391 = arith.divf %389, %390 : vector<16x128xf32>
    %392 = vector.extract_strided_slice %385 {offsets = [0, 128], sizes = [16, 128], strides = [1, 1]} : vector<16x512xf32> to vector<16x128xf32>
    %393 = arith.negf %392 : vector<16x128xf32>
    %394 = math.exp %393 : vector<16x128xf32>
    %cst_128 = arith.constant 1.000000e+00 : f32
    %395 = vector.broadcast %cst_128 : f32 to vector<16x128xf32>
    %396 = arith.addf %395, %394 : vector<16x128xf32>
    %397 = arith.divf %395, %396 : vector<16x128xf32>
    %398 = vector.extract_strided_slice %385 {offsets = [0, 256], sizes = [16, 128], strides = [1, 1]} : vector<16x512xf32> to vector<16x128xf32>
    %399 = math.tanh %398 : vector<16x128xf32>
    %400 = vector.extract_strided_slice %385 {offsets = [0, 384], sizes = [16, 128], strides = [1, 1]} : vector<16x512xf32> to vector<16x128xf32>
    %401 = arith.negf %400 : vector<16x128xf32>
    %402 = math.exp %401 : vector<16x128xf32>
    %cst_129 = arith.constant 1.000000e+00 : f32
    %403 = vector.broadcast %cst_129 : f32 to vector<16x128xf32>
    %404 = arith.addf %403, %402 : vector<16x128xf32>
    %405 = arith.divf %403, %404 : vector<16x128xf32>
    %406 = arith.mulf %397, %356 : vector<16x128xf32>
    %407 = arith.mulf %391, %399 : vector<16x128xf32>
    %408 = arith.addf %406, %407 : vector<16x128xf32>
    %409 = math.tanh %408 : vector<16x128xf32>
    %410 = arith.mulf %405, %409 : vector<16x128xf32>
    %411 = vector.extract_strided_slice %410 {offsets = [0, 0], sizes = [16, 64], strides = [1, 1]} : vector<16x128xf32> to vector<16x64xf32>
    %412 = arith.truncf %411 : vector<16x64xf32> to vector<16x64xbf16>
    %413 = arith.index_cast %c7_i32_118 : i32 to index
    %c0_130 = arith.constant 0 : index
    %c0_131 = arith.constant 0 : index
    %414 = vector.load %arg5[%413, %c0_130, %c0_131] : memref<8x16x128xbf16, #tpu.memory_space<vmem>>, vector<1x16x64xbf16>
    %415 = vector.shape_cast %414 : vector<1x16x64xbf16> to vector<16x64xbf16>
    %416 = vector.shape_cast %412 : vector<16x64xbf16> to vector<1x16x64xbf16>
    tpu.vector_store %arg5[%413, %c0_130, %c0_131], %416 {strides = array<i32>} : memref<8x16x128xbf16, #tpu.memory_space<vmem>>, vector<1x16x64xbf16>,
    %417 = vector.extract_strided_slice %410 {offsets = [0, 64], sizes = [16, 64], strides = [1, 1]} : vector<16x128xf32> to vector<16x64xf32>
    %418 = arith.truncf %417 : vector<16x64xf32> to vector<16x64xbf16>
    %c7_i32_132 = arith.constant 7 : i32
    %419 = arith.subi %c7_i32_132, %c7_i32_118 : i32
    %420 = arith.index_cast %419 : i32 to index
    %c0_133 = arith.constant 0 : index
    %c64_134 = arith.constant 64 : index
    %421 = vector.load %arg5[%420, %c0_133, %c64_134] : memref<8x16x128xbf16, #tpu.memory_space<vmem>>, vector<1x16x64xbf16>
    %422 = vector.shape_cast %421 : vector<1x16x64xbf16> to vector<16x64xbf16>
    %423 = vector.shape_cast %418 : vector<16x64xbf16> to vector<1x16x64xbf16>
    tpu.vector_store %arg5[%420, %c0_133, %c64_134], %423 {strides = array<i32>} : memref<8x16x128xbf16, #tpu.memory_space<vmem>>, vector<1x16x64xbf16>,
    %c8_i32 = arith.constant 8 : i32
    return
  }
}

</mosaic_0001>

<bundles_post_ra>
// kernel: model_forward.2
= control target key start
LH: loop header
LB: loop body
LE: loop exit
PB: predicated region body
PF: predicated region fallthrough
CT: control target
= control target key end

     0   :  { %10 = vsyncpa [#allocation3], 0  ;;  %s4002_s21 = smov [#allocation2]   ;;  %s4003_s23 = smov 256   ;;  %s5634_s0 = inlined_call_operand.vmem [shape: bf16[8,16,64], index: 0, kind: input, shape index: {}]   ;;  %s5635_s1 = inlined_call_operand.vmem [shape: bf16[64,512], index: 1, kind: input, shape index: {}]   ;;  %s5636_s2 = inlined_call_operand.hbm [shape: bf16[64,512], index: 2, kind: input, shape index: {}]   ;;  %s5637_s3 = inlined_call_operand.vmem [shape: f32[1,512], index: 3, kind: input, shape index: {}]   ;;  %s5638_s4 = inlined_call_operand.vmem [shape: bf16[128,512], index: 4, kind: input, shape index: {}]   ;;  %s5639_s5 = inlined_call_operand.vmem [shape: bf16[8,16,128], index: 5, kind: output, shape index: {}]  }
   0x1   :  { %s19_s20 = sshll.u32 %s5636_s2, 4  ;;  %s21_s22 = sshll.u32 %s4002_s21, 4  ;;  %s20_s20 = int_to_ptr.hbm [resolvable:$true] %s19_s20  ;;  %s22_s22 = int_to_ptr.vmem [resolvable:$true] %s21_s22 }
   0x2   :  { %s4004_s24 = smov 16  }
   0x3   :  { %27 = dma.hbm_to_vmem [thread:$0]  %s20_s20, 2048, %s22_s22, [#allocation3], %s4003_s23, %s4003_s23, %s4004_s24  }
   0x4   :  { %4000 = dma.done.wait [#allocation3], 2048  }
   0x5   :  { %4001 = vsyncadd [#allocation3], 4294965248  ;;  %v3262_v0 = vld [vmem:[%s5638_s4 + $0xe0] sm:$0xf]  ;;  %v3698_v1 = vld [vmem:[%s5638_s4 + $0xec] sm:$0xf0] }
   0x6   :  { %v3696_v2 = vld [vmem:[%s5638_s4 + $0xe4] sm:$0xf]  ;;  %v4048_v3 = vor.u32 %v3698_v1, %v3262_v0  ;;  %v3264_v4 = vld [vmem:[%s5638_s4 + $0xf0] sm:$0xf0]  ;;  %v3270_v5 = vld [vmem:[%s5638_s4 + $0xe8] sm:$0xf] }
   0x7   :  { %v3699_v6 = vld [vmem:[%s5638_s4 + $0xf4] sm:$0xf0]  ;;  %v4059_v7 = vor.u32 %v3696_v2, %v3264_v4  ;;  %v3697_v9 = vld [vmem:[%s5638_s4 + $0xec] sm:$0xf]  ;;  %v3272_v10 = vld [vmem:[%s5638_s4 + $0xf8] sm:$0xf0] }
   0x8   :  { %v4061_v8 = vor.u32 %v3699_v6, %v3270_v5  ;;  %v3246_v11 = vld [vmem:[%s5638_s4 + $0xc0] sm:$0xf]  ;;  %271 = vmatpush.bf16.msra.mxu0 %v4048_v3  ;;  %v4073_v12 = vor.u32 %v3697_v9, %v3272_v10  ;;  %v3694_v13 = vld [vmem:[%s5638_s4 + $0xcc] sm:$0xf0]  ;;  %v3692_v14 = vld [vmem:[%s5638_s4 + $0xc4] sm:$0xf] }
   0x9   :  { %v3248_v15 = vld [vmem:[%s5638_s4 + $0xd0] sm:$0xf0]  ;;  %285 = vmatpush.bf16.msra.mxu1 %v4059_v7  ;;  %v4086_v16 = vor.u32 %v3694_v13, %v3246_v11  ;;  %v3254_v18 = vld [vmem:[%s5638_s4 + $0xc8] sm:$0xf]  ;;  %v3695_v19 = vld [vmem:[%s5638_s4 + $0xd4] sm:$0xf0] }
   0xa   :  { %299 = vmatpush.bf16.msra.mxu2 %v4061_v8  ;;  %v4088_v17 = vor.u32 %v3692_v14, %v3248_v15  ;;  %v3693_v20 = vld [vmem:[%s5638_s4 + $0xcc] sm:$0xf]  ;;  %313 = vmatpush.bf16.msra.mxu3 %v4073_v12  ;;  %v4100_v21 = vor.u32 %v3695_v19, %v3254_v18  ;;  %v3256_v22 = vld [vmem:[%s5638_s4 + $0xd8] sm:$0xf0]  ;;  %v3230_v23 = vld [vmem:[%s5638_s4 + $0xa0] sm:$0xf] }
   0xb   :  { %v3690_v24 = vld [vmem:[%s5638_s4 + $0xac] sm:$0xf0]  ;;  %v4111_v25 = vor.u32 %v3693_v20, %v3256_v22  ;;  %v3688_v26 = vld [vmem:[%s5638_s4 + $0xa4] sm:$0xf]  ;;  %v3232_v27 = vld [vmem:[%s5638_s4 + $0xb0] sm:$0xf0] }
   0xc   :  { %v3238_v28 = vld [vmem:[%s5638_s4 + $0xa8] sm:$0xf]  ;;  %272 = vmatpush.bf16.msra.mxu0 %v4086_v16  ;;  %v4123_v29 = vor.u32 %v3690_v24, %v3230_v23  ;;  %v3691_v30 = vld [vmem:[%s5638_s4 + $0xb4] sm:$0xf0]  ;;  %v3689_v31 = vld [vmem:[%s5638_s4 + $0xac] sm:$0xf]  ;;  %v4136_v33 = vor.u32 %v3688_v26, %v3232_v27 }
   0xd   :  { %v3240_v32 = vld [vmem:[%s5638_s4 + $0xb8] sm:$0xf0]  ;;  %286 = vmatpush.bf16.msra.mxu1 %v4088_v17  ;;  %v4138_v34 = vor.u32 %v3691_v30, %v3238_v28  ;;  %v3214_v35 = vld [vmem:[%s5638_s4 + $0x80] sm:$0xf]  ;;  %v3686_v36 = vld [vmem:[%s5638_s4 + $0x8c] sm:$0xf0] }
   0xe   :  { %300 = vmatpush.bf16.msra.mxu2 %v4100_v21  ;;  %5732 = vst [vmem:[#allocation5_spill] sm:$0xff] %v4136_v33  ;;  %v3684_v37 = vld [vmem:[%s5638_s4 + $0x84] sm:$0xf]  ;;  %314 = vmatpush.bf16.msra.mxu3 %v4111_v25  ;;  %v4150_v38 = vor.u32 %v3689_v31, %v3240_v32  ;;  %v3216_v39 = vld [vmem:[%s5638_s4 + $0x90] sm:$0xf0]  ;;  %v4168_v44 = vor.u32 %v3686_v36, %v3214_v35  ;;  %vm417_vm0 = vcmask 523264  }
   0xf   :  { %5733 = vst [vmem:[#allocation6_spill] sm:$0xff] %v4138_v34  ;;  %v3222_v40 = vld [vmem:[%s5638_s4 + $0x88] sm:$0xf]  ;;  %v3687_v41 = vld [vmem:[%s5638_s4 + $0x94] sm:$0xf0]  ;;  %v4172_v45 = vor.u32 %v3684_v37, %v3216_v39 }
  0x10   :  { %5734 = vst [vmem:[#allocation7_spill] sm:$0xff] %v4150_v38  ;;  %v3685_v42 = vld [vmem:[%s5638_s4 + $0x8c] sm:$0xf]  ;;  %v3224_v43 = vld [vmem:[%s5638_s4 + $0x98] sm:$0xf0]  ;;  %273 = vmatpush.bf16.msra.mxu0 %v4123_v29  ;;  %v4174_v46 = vor.u32 %v3687_v41, %v3222_v40 }
  0x11   :  { %5735 = vst [vmem:[#allocation8_spill] sm:$0xff] %v4168_v44  ;;  %287 = vmatpush.bf16.msra.mxu1 %v4136_v33  ;;  %v3198_v47 = vld [vmem:[%s5638_s4 + $0x60] sm:$0xf]  ;;  %v3682_v48 = vld [vmem:[%s5638_s4 + $0x6c] sm:$0xf0]  ;;  %v4186_v50 = vor.u32 %v3685_v42, %v3224_v43 }
  0x12   :  { %301 = vmatpush.bf16.msra.mxu2 %v4138_v34  ;;  %5736 = vst [vmem:[#allocation9_spill] sm:$0xff] %v4172_v45  ;;  %v3680_v49 = vld [vmem:[%s5638_s4 + $0x64] sm:$0xf]  ;;  %315 = vmatpush.bf16.msra.mxu3 %v4150_v38  ;;  %v3200_v51 = vld [vmem:[%s5638_s4 + $0x70] sm:$0xf0]  ;;  %v4204_v56 = vor.u32 %v3682_v48, %v3198_v47 }
  0x13   :  { %5737 = vst [vmem:[#allocation10_spill] sm:$0xff] %v4174_v46  ;;  %v3206_v52 = vld [vmem:[%s5638_s4 + $0x68] sm:$0xf]  ;;  %v3683_v53 = vld [vmem:[%s5638_s4 + $0x74] sm:$0xf0]  ;;  %v4208_v57 = vor.u32 %v3680_v49, %v3200_v51 }
  0x14   :  { %5738 = vst [vmem:[#allocation11_spill] sm:$0xff] %v4186_v50  ;;  %v3681_v54 = vld [vmem:[%s5638_s4 + $0x6c] sm:$0xf]  ;;  %v3208_v55 = vld [vmem:[%s5638_s4 + $0x78] sm:$0xf0]  ;;  %274 = vmatpush.bf16.msra.mxu0 %v4168_v44  ;;  %v4210_v58 = vor.u32 %v3683_v53, %v3206_v52 }
  0x15   :  { %5739 = vst [vmem:[#allocation12_spill] sm:$0xff] %v4204_v56  ;;  %288 = vmatpush.bf16.msra.mxu1 %v4172_v45  ;;  %v3182_v59 = vld [vmem:[%s5638_s4 + $0x40] sm:$0xf]  ;;  %v3678_v60 = vld [vmem:[%s5638_s4 + $0x4c] sm:$0xf0]  ;;  %v4222_v62 = vor.u32 %v3681_v54, %v3208_v55 }
  0x16   :  { %302 = vmatpush.bf16.msra.mxu2 %v4174_v46  ;;  %5740 = vst [vmem:[#allocation13_spill] sm:$0xff] %v4208_v57  ;;  %v3676_v61 = vld [vmem:[%s5638_s4 + $0x44] sm:$0xf]  ;;  %316 = vmatpush.bf16.msra.mxu3 %v4186_v50  ;;  %v3184_v63 = vld [vmem:[%s5638_s4 + $0x50] sm:$0xf0]  ;;  %v4240_v5 = vor.u32 %v3678_v60, %v3182_v59 }
  0x17   :  { %5741 = vst [vmem:[#allocation14_spill] sm:$0xff] %v4210_v58  ;;  %v3190_v0 = vld [vmem:[%s5638_s4 + $0x48] sm:$0xf]  ;;  %v3679_v1 = vld [vmem:[%s5638_s4 + $0x54] sm:$0xf0]  ;;  %v4244_v6 = vor.u32 %v3676_v61, %v3184_v63 }
  0x18   :  { %5742 = vst [vmem:[#allocation15_spill] sm:$0xff] %v4222_v62  ;;  %v3677_v2 = vld [vmem:[%s5638_s4 + $0x4c] sm:$0xf]  ;;  %v3192_v4 = vld [vmem:[%s5638_s4 + $0x58] sm:$0xf0]  ;;  %275 = vmatpush.bf16.msra.mxu0 %v4204_v56  ;;  %v4246_v9 = vor.u32 %v3679_v1, %v3190_v0 }
  0x19   :  { %5743 = vst [vmem:[#allocation16_spill] sm:$0xff] %v4240_v5  ;;  %289 = vmatpush.bf16.msra.mxu1 %v4208_v57  ;;  %v3166_v10 = vld [vmem:[%s5638_s4 + $0x20] sm:$0xf]  ;;  %v3674_v11 = vld [vmem:[%s5638_s4 + $0x2c] sm:$0xf0]  ;;  %v4258_v14 = vor.u32 %v3677_v2, %v3192_v4 }
  0x1a   :  { %303 = vmatpush.bf16.msra.mxu2 %v4210_v58  ;;  %5744 = vst [vmem:[#allocation17_spill] sm:$0xff] %v4244_v6  ;;  %v3672_v13 = vld [vmem:[%s5638_s4 + $0x24] sm:$0xf]  ;;  %317 = vmatpush.bf16.msra.mxu3 %v4222_v62  ;;  %v3168_v15 = vld [vmem:[%s5638_s4 + $0x30] sm:$0xf0]  ;;  %v4276_v23 = vor.u32 %v3674_v11, %v3166_v10 }
  0x1b   :  { %5745 = vst [vmem:[#allocation18_spill] sm:$0xff] %v4246_v9  ;;  %v3174_v18 = vld [vmem:[%s5638_s4 + $0x28] sm:$0xf]  ;;  %v3675_v19 = vld [vmem:[%s5638_s4 + $0x34] sm:$0xf0]  ;;  %v4283_v26 = vor.u32 %v3672_v13, %v3168_v15 }
  0x1c   :  { %5746 = vst [vmem:[#allocation19_spill] sm:$0xff] %v4258_v14  ;;  %v3673_v20 = vld [vmem:[%s5638_s4 + $0x2c] sm:$0xf]  ;;  %v3176_v22 = vld [vmem:[%s5638_s4 + $0x38] sm:$0xf0]  ;;  %276 = vmatpush.bf16.msra.mxu0 %v4240_v5  ;;  %v4285_v27 = vor.u32 %v3675_v19, %v3174_v18  ;;  %v4005_v18 = vmov 0  }
  0x1d   :  { %5747 = vst [vmem:[#allocation20_spill] sm:$0xff] %v4276_v23  ;;  %v3150_v24 = vld [vmem:[%s5638_s4] sm:$0xf]  ;;  %290 = vmatpush.bf16.msra.mxu1 %v4244_v6  ;;  %v3670_v28 = vld [vmem:[%s5638_s4 + $0xc] sm:$0xf0]  ;;  %v4297_v32 = vor.u32 %v3673_v20, %v3176_v22 }
  0x1e   :  { %304 = vmatpush.bf16.msra.mxu2 %v4246_v9  ;;  %5748 = vst [vmem:[#allocation21_spill] sm:$0xff] %v4283_v26  ;;  %v3668_v30 = vld [vmem:[%s5638_s4 + $0x4] sm:$0xf]  ;;  %v3152_v31 = vld [vmem:[%s5638_s4 + $0x10] sm:$0xf0]  ;;  %318 = vmatpush.bf16.msra.mxu3 %v4258_v14  ;;  %v4312_v42 = vor.u32 %v3670_v28, %v3150_v24 }
  0x1f   :  { %5749 = vst [vmem:[#allocation22_spill] sm:$0xff] %v4285_v27  ;;  %v3158_v35 = vld [vmem:[%s5638_s4 + $0x8] sm:$0xf]  ;;  %v3671_v36 = vld [vmem:[%s5638_s4 + $0x14] sm:$0xf0]  ;;  %v4316_v48 = vor.u32 %v3668_v30, %v3152_v31 }
  0x20   :  { %5750 = vst [vmem:[#allocation23_spill] sm:$0xff] %v4297_v32  ;;  %v3669_v37 = vld [vmem:[%s5638_s4 + $0xc] sm:$0xf]  ;;  %v3160_v39 = vld [vmem:[%s5638_s4 + $0x18] sm:$0xf0]  ;;  %277 = vmatpush.bf16.msra.mxu0 %v4276_v23  ;;  %v4318_v49 = vor.u32 %v3671_v36, %v3158_v35 }
  0x21   :  { %v3332_v40 = vld [vmem:[#allocation2 + $0x60] sm:$0xf]  ;;  %v3666_v41 = vld [vmem:[#allocation2 + $0x6c] sm:$0xf0]  ;;  %5751 = vst [vmem:[#allocation24_spill] sm:$0xff] %v4312_v42  ;;  %291 = vmatpush.bf16.msra.mxu1 %v4283_v26  ;;  %v4321_v51 = vor.u32 %v3669_v37, %v3160_v39 }
  0x22   :  { %v3664_v43 = vld [vmem:[#allocation2 + $0x64] sm:$0xf]  ;;  %v3334_v47 = vld [vmem:[#allocation2 + $0x70] sm:$0xf0]  ;;  %305 = vmatpush.bf16.msra.mxu2 %v4285_v27  ;;  %5752 = vst [vmem:[#allocation25_spill] sm:$0xff] %v4316_v48  ;;  %319 = vmatpush.bf16.msra.mxu3 %v4297_v32  ;;  %v4323_v52 = vor.u32 %v3666_v41, %v3332_v40 }
  0x23   :  { %5753 = vst [vmem:[#allocation26_spill] sm:$0xff] %v4318_v49  ;;  %v3340_v53 = vld [vmem:[#allocation2 + $0x68] sm:$0xf]  ;;  %v3667_v54 = vld [vmem:[#allocation2 + $0x74] sm:$0xf0]  ;;  %v4325_v59 = vor.u32 %v3664_v43, %v3334_v47 }
  0x24   :  { %5754 = vst [vmem:[#allocation27_spill] sm:$0xff] %v4321_v51  ;;  %v3665_v55 = vld [vmem:[#allocation2 + $0x6c] sm:$0xf]  ;;  %v3342_v60 = vld [vmem:[#allocation2 + $0x78] sm:$0xf0]  ;;  %278 = vmatpush.bf16.msra.mxu0 %v4312_v42  ;;  %v4330_v2 = vor.u32 %v3667_v54, %v3340_v53 }
  0x25   :  { %5755 = vst [vmem:[#allocation28_spill] sm:$0xff] %v4323_v52  ;;  %v3316_v61 = vld [vmem:[#allocation2 + $0x40] sm:$0xf]  ;;  %v3662_v63 = vld [vmem:[#allocation2 + $0x4c] sm:$0xf0]  ;;  %292 = vmatpush.bf16.msra.mxu1 %v4316_v48  ;;  %v4334_v4 = vor.u32 %v3665_v55, %v3342_v60 }
  0x26   :  { %5756 = vst [vmem:[#allocation29_spill] sm:$0xff] %v4325_v59  ;;  %v3660_v0 = vld [vmem:[#allocation2 + $0x44] sm:$0xf]  ;;  %v3318_v1 = vld [vmem:[#allocation2 + $0x50] sm:$0xf0]  ;;  %306 = vmatpush.bf16.msra.mxu2 %v4318_v49  ;;  %320 = vmatpush.bf16.msra.mxu3 %v4321_v51  ;;  %v4336_v10 = vor.u32 %v3662_v63, %v3316_v61 }
  0x27   :  { %5757 = vst [vmem:[#allocation30_spill] sm:$0xff] %v4330_v2  ;;  %v3324_v11 = vld [vmem:[#allocation2 + $0x48] sm:$0xf]  ;;  %v3663_v13 = vld [vmem:[#allocation2 + $0x54] sm:$0xf0]  ;;  %279 = vmatmul.bf16.vlgmr.msra.gmra.mxu0 %v4005_v18  ;;  %v4339_v19 = vor.u32 %v3660_v0, %v3318_v1 }
  0x28   :  { %425 = vmatpush.bf16.msrb.mxu0 %v4323_v52  ;;  %5758 = vst [vmem:[#allocation31_spill] sm:$0xff] %v4334_v4  ;;  %v3661_v15 = vld [vmem:[#allocation2 + $0x4c] sm:$0xf]  ;;  %v3326_v20 = vld [vmem:[#allocation2 + $0x58] sm:$0xf0]  ;;  %293 = vmatmul.bf16.vlgmr.msra.gmra.mxu1 %v4005_v18  ;;  %v4342_v31 = vor.u32 %v3663_v13, %v3324_v11 }
  0x29   :  { %5759 = vst [vmem:[#allocation32_spill] sm:$0xff] %v4336_v10  ;;  %439 = vmatpush.bf16.msrb.mxu1 %v4325_v59  ;;  %v3300_v22 = vld [vmem:[#allocation2 + $0x20] sm:$0xf]  ;;  %v3658_v24 = vld [vmem:[#allocation2 + $0x2c] sm:$0xf0]  ;;  %307 = vmatmul.bf16.vlgmr.msra.gmra.mxu2 %v4005_v18  ;;  %v4346_v36 = vor.u32 %v3661_v15, %v3326_v20 }
  0x2a   :  { %5760 = vst [vmem:[#allocation33_spill] sm:$0xff] %v4339_v19  ;;  %v3656_v28 = vld [vmem:[#allocation2 + $0x24] sm:$0xf]  ;;  %v3302_v30 = vld [vmem:[#allocation2 + $0x30] sm:$0xf0]  ;;  %321 = vmatmul.bf16.vlgmr.msra.gmra.mxu3 %v4005_v18  ;;  %453 = vmatpush.bf16.msrb.mxu2 %v4330_v2  ;;  %v4348_v37 = vor.u32 %v3658_v24, %v3300_v22 }
  0x2b   :  { %5761 = vst [vmem:[#allocation34_spill] sm:$0xff] %v4342_v31  ;;  %v3308_v35 = vld [vmem:[#allocation2 + $0x28] sm:$0xf]  ;;  %467 = vmatpush.bf16.msrb.mxu3 %v4334_v4  ;;  %v3659_v39 = vld [vmem:[#allocation2 + $0x34] sm:$0xf0]  ;;  %v4351_v43 = vor.u32 %v3656_v28, %v3302_v30 }
  0x2c   :  { %426 = vmatpush.bf16.msrb.mxu0 %v4336_v10  ;;  %5762 = vst [vmem:[#allocation35_spill] sm:$0xff] %v4346_v36  ;;  %v3657_v40 = vld [vmem:[#allocation2 + $0x2c] sm:$0xf]  ;;  %v3310_v41 = vld [vmem:[#allocation2 + $0x38] sm:$0xf0]  ;;  %v4360_v63 = vor.u32 %v3659_v39, %v3308_v35 }
  0x2d   :  { %5763 = vst [vmem:[#allocation36_spill] sm:$0xff] %v4348_v37  ;;  %440 = vmatpush.bf16.msrb.mxu1 %v4339_v19  ;;  %v3284_v47 = vld [vmem:[#allocation2] sm:$0xf]  ;;  %v3654_v53 = vld [vmem:[#allocation2 + $0xc] sm:$0xf0]  ;;  %v4370_v11 = vor.u32 %v3657_v40, %v3310_v41 }
  0x2e   :  { %5764 = vst [vmem:[#allocation37_spill] sm:$0xff] %v4351_v43  ;;  %v3652_v54 = vld [vmem:[#allocation2 + $0x4] sm:$0xf]  ;;  %v3286_v55 = vld [vmem:[#allocation2 + $0x10] sm:$0xf0]  ;;  %454 = vmatpush.bf16.msrb.mxu2 %v4342_v31  ;;  %v4372_v13 = vor.u32 %v3654_v53, %v3284_v47  ;;  %v3701_v53 = vld [vmem:[%s5634_s0 + $0x38] sm:$0xff] }
  0x2f   :  { %v3404_v60 = vld [vmem:[%s5635_s1 + $0x60] sm:$0xf]  ;;  %v3650_v61 = vld [vmem:[%s5635_s1 + $0x6c] sm:$0xf0]  ;;  %5765 = vst [vmem:[#allocation38_spill] sm:$0xff] %v4360_v63  ;;  %468 = vmatpush.bf16.msrb.mxu3 %v4346_v36  ;;  %v4375_v22 = vor.u32 %v3652_v54, %v3286_v55 }
  0x30   :  { %v3648_v0 = vld [vmem:[%s5635_s1 + $0x64] sm:$0xf]  ;;  %v3406_v1 = vld [vmem:[%s5635_s1 + $0x70] sm:$0xf0]  ;;  %427 = vmatpush.bf16.msrb.mxu0 %v4348_v37  ;;  %5766 = vst [vmem:[#allocation39_spill] sm:$0xff] %v4370_v11  ;;  %v4377_v28 = vor.u32 %v3650_v61, %v3404_v60 }
  0x31   :  { %5767 = vst [vmem:[#allocation40_spill] sm:$0xff] %v4372_v13  ;;  %v3292_v15 = vld [vmem:[#allocation2 + $0x8] sm:$0xf]  ;;  %v3655_v18 = vld [vmem:[#allocation2 + $0x14] sm:$0xf0]  ;;  %441 = vmatpush.bf16.msrb.mxu1 %v4351_v43  ;;  %v4385_v39 = vor.u32 %v3648_v0, %v3406_v1 }
  0x32   :  { %v3653_v20 = vld [vmem:[#allocation2 + $0xc] sm:$0xf]  ;;  %5768 = vst [vmem:[#allocation41_spill] sm:$0xff] %v4375_v22  ;;  %v3294_v24 = vld [vmem:[#allocation2 + $0x18] sm:$0xf0]  ;;  %455 = vmatpush.bf16.msrb.mxu2 %v4360_v63  ;;  %v4394_v47 = vor.u32 %v3655_v18, %v3292_v15 }
  0x33   :  { %5769 = vst [vmem:[#allocation42_spill] sm:$0xff] %v4377_v28  ;;  %v3412_v30 = vld [vmem:[%s5635_s1 + $0x68] sm:$0xf]  ;;  %v3651_v35 = vld [vmem:[%s5635_s1 + $0x74] sm:$0xf0]  ;;  %469 = vmatpush.bf16.msrb.mxu3 %v4370_v11  ;;  %v4401_v54 = vor.u32 %v3653_v20, %v3294_v24 }
  0x34   :  { %5770 = vst [vmem:[#allocation43_spill] sm:$0xff] %v4385_v39  ;;  %v3649_v40 = vld [vmem:[%s5635_s1 + $0x6c] sm:$0xf]  ;;  %v3414_v41 = vld [vmem:[%s5635_s1 + $0x78] sm:$0xf0]  ;;  %428 = vmatpush.bf16.msrb.mxu0 %v4372_v13  ;;  %v4403_v55 = vor.u32 %v3651_v35, %v3412_v30 }
  0x35   :  { %5771 = vst [vmem:[#allocation44_spill] sm:$0xff] %v4394_v47  ;;  %v3388_v60 = vld [vmem:[%s5635_s1 + $0x40] sm:$0xf]  ;;  %v3646_v61 = vld [vmem:[%s5635_s1 + $0x4c] sm:$0xf0]  ;;  %442 = vmatpush.bf16.msrb.mxu1 %v4375_v22  ;;  %v4416_v1 = vor.u32 %v3649_v40, %v3414_v41 }
  0x36   :  { %5772 = vst [vmem:[#allocation45_spill] sm:$0xff] %v4401_v54  ;;  %v3644_v0 = vld [vmem:[%s5635_s1 + $0x44] sm:$0xf]  ;;  %v3390_v15 = vld [vmem:[%s5635_s1 + $0x50] sm:$0xf0]  ;;  %456 = vmatpush.bf16.msrb.mxu2 %v4394_v47  ;;  %v4435_v35 = vor.u32 %v3646_v61, %v3388_v60 }
  0x37   :  { %5773 = vst [vmem:[#allocation46_spill] sm:$0xff] %v4403_v55  ;;  %v3396_v18 = vld [vmem:[%s5635_s1 + $0x48] sm:$0xf]  ;;  %v3647_v20 = vld [vmem:[%s5635_s1 + $0x54] sm:$0xf0]  ;;  %470 = vmatpush.bf16.msrb.mxu3 %v4401_v54  ;;  %v4439_v40 = vor.u32 %v3644_v0, %v3390_v15  ;;  %3346 = vmatmul.msk.bf16.vlgmr.msrb.gmra.mxu0 %vm417_vm0, %v3701_v53 }
  0x38   :  { %569 = vmatpush.bf16.msra.mxu0 %v4377_v28  ;;  %5774 = vst [vmem:[#allocation47_spill] sm:$0xff] %v4416_v1  ;;  %v3645_v24 = vld [vmem:[%s5635_s1 + $0x4c] sm:$0xf]  ;;  %v3398_v30 = vld [vmem:[%s5635_s1 + $0x58] sm:$0xf0]  ;;  %v4441_v41 = vor.u32 %v3647_v20, %v3396_v18  ;;  %3347 = vmatmul.msk.bf16.vlgmr.msrb.gmra.mxu1 %vm417_vm0, %v3701_v53 }
  0x39   :  { %583 = vmatpush.bf16.msra.mxu1 %v4385_v39  ;;  %5775 = vst [vmem:[#allocation48_spill] sm:$0xff] %v4439_v40  ;;  %v3372_v39 = vld [vmem:[%s5635_s1 + $0x20] sm:$0xf]  ;;  %v3642_v28 = vld [vmem:[%s5635_s1 + $0x2c] sm:$0xf0]  ;;  %v4454_v61 = vor.u32 %v3645_v24, %v3398_v30  ;;  %3348 = vmatmul.msk.bf16.vlgmr.msrb.gmra.mxu2 %vm417_vm0, %v3701_v53 }
  0x3a   :  { %597 = vmatpush.bf16.msra.mxu2 %v4403_v55  ;;  %5776 = vst [vmem:[#allocation49_spill] sm:$0xff] %v4441_v41  ;;  %v3640_v60 = vld [vmem:[%s5635_s1 + $0x24] sm:$0xf]  ;;  %v3374_v0 = vld [vmem:[%s5635_s1 + $0x30] sm:$0xf0]  ;;  %3349 = vmatmul.msk.bf16.vlgmr.msrb.gmra.mxu3 %vm417_vm0, %v3701_v53  ;;  %v4475_v30 = vor.u32 %v3642_v28, %v3372_v39 }
  0x3b   :  { %611 = vmatpush.bf16.msra.mxu3 %v4416_v1  ;;  %5777 = vst [vmem:[#allocation50_spill] sm:$0xff] %v4454_v61  ;;  %v3380_v15 = vld [vmem:[%s5635_s1 + $0x28] sm:$0xf]  ;;  %v3643_v18 = vld [vmem:[%s5635_s1 + $0x34] sm:$0xf0]  ;;  %v4479_v1 = vor.u32 %v3640_v60, %v3374_v0 }
  0x3c   :  { %v3641_v20 = vld [vmem:[%s5635_s1 + $0x2c] sm:$0xf]  ;;  %v3382_v24 = vld [vmem:[%s5635_s1 + $0x38] sm:$0xf0]  ;;  %570 = vmatpush.bf16.msra.mxu0 %v4435_v35  ;;  %v4481_v55 = vor.u32 %v3643_v18, %v3380_v15  ;;  %v3356_v54 = vld [vmem:[%s5635_s1] sm:$0xf] }
  0x3d   :  { %584 = vmatpush.bf16.msra.mxu1 %v4439_v40  ;;  %v3638_v53 = vld [vmem:[%s5635_s1 + $0xc] sm:$0xf0]  ;;  %v3636_v28 = vld [vmem:[%s5635_s1 + $0x4] sm:$0xf]  ;;  %v4493_v39 = vor.u32 %v3641_v20, %v3382_v24  ;;  %v3358_v60 = vld [vmem:[%s5635_s1 + $0x10] sm:$0xf0] }
  0x3e   :  { %598 = vmatpush.bf16.msra.mxu2 %v4441_v41  ;;  %v3364_v0 = vld [vmem:[%s5635_s1 + $0x8] sm:$0xf]  ;;  %v3639_v15 = vld [vmem:[%s5635_s1 + $0x14] sm:$0xf0]  ;;  %v3637_v18 = vld [vmem:[%s5635_s1 + $0xc] sm:$0xf]  ;;  %v4511_v24 = vor.u32 %v3638_v53, %v3356_v54 }
  0x3f   :  { %612 = vmatpush.bf16.msra.mxu3 %v4454_v61  ;;  %v3366_v20 = vld [vmem:[%s5635_s1 + $0x18] sm:$0xf0]  ;;  %v4515_v61 = vor.u32 %v3636_v28, %v3358_v60  ;;  %v4517_v41 = vor.u32 %v3639_v15, %v3364_v0  ;;  %v3700_v54 = vld [vmem:[%s5634_s0] sm:$0xff] }
  0x40   :  { %571 = vmatpush.bf16.msra.mxu0 %v4475_v30  ;;  %v4520_v40 = vor.u32 %v3637_v18, %v3366_v20  ;;  %v5778_v53 = vld [vmem:[#allocation45_spill] sm:$0xff] }
  0x41   :  { %585 = vmatpush.bf16.msra.mxu1 %v4479_v1 }
  0x42   :  { %599 = vmatpush.bf16.msra.mxu2 %v4481_v55 }
  0x43   :  { %613 = vmatpush.bf16.msra.mxu3 %v4493_v39 }
  0x44   :  { %572 = vmatpush.bf16.msra.mxu0 %v4511_v24 }
  0x45   :  { %586 = vmatpush.bf16.msra.mxu1 %v4515_v61 }
  0x46   :  { %600 = vmatpush.bf16.msra.mxu2 %v4517_v41 }
  0x47   :  { %614 = vmatpush.bf16.msra.mxu3 %v4520_v40  ;;  %3418 = vmatmul.msk.bf16.vlgmr.msra.gmra.mxu0 %vm417_vm0, %v3700_v54 }
  0x48   :  { %773 = vmatpush.bf16.msrb.mxu0 %v4048_v3  ;;  %3419 = vmatmul.msk.bf16.vlgmr.msra.gmra.mxu1 %vm417_vm0, %v3700_v54 }
  0x49   :  { %787 = vmatpush.bf16.msrb.mxu1 %v4059_v7  ;;  %3420 = vmatmul.msk.bf16.vlgmr.msra.gmra.mxu2 %vm417_vm0, %v3700_v54 }
  0x4a   :  { %801 = vmatpush.bf16.msrb.mxu2 %v4061_v8  ;;  %3421 = vmatmul.msk.bf16.vlgmr.msra.gmra.mxu3 %vm417_vm0, %v3700_v54 }
  0x4b   :  { %815 = vmatpush.bf16.msrb.mxu3 %v4073_v12 }
  0x4c   :  { %774 = vmatpush.bf16.msrb.mxu0 %v4086_v16 }
  0x4d   :  { %788 = vmatpush.bf16.msrb.mxu1 %v4088_v17 }
  0x4e   :  { %802 = vmatpush.bf16.msrb.mxu2 %v4100_v21 }
  0x4f   :  { %816 = vmatpush.bf16.msrb.mxu3 %v4111_v25 }
  0x50   :  { %775 = vmatpush.bf16.msrb.mxu0 %v4123_v29 }
  0x51   :  { %789 = vmatpush.bf16.msrb.mxu1 %v4136_v33 }
  0x52   :  { %803 = vmatpush.bf16.msrb.mxu2 %v4138_v34 }
  0x53   :  { %817 = vmatpush.bf16.msrb.mxu3 %v4150_v38 }
  0x54   :  { %776 = vmatpush.bf16.msrb.mxu0 %v4168_v44 }
  0x55   :  { %790 = vmatpush.bf16.msrb.mxu1 %v4172_v45 }
  0x56   :  { %804 = vmatpush.bf16.msrb.mxu2 %v4174_v46 }
  0x57   :  { %818 = vmatpush.bf16.msrb.mxu3 %v4186_v50 }
  0x58   :  { %777 = vmatpush.bf16.msrb.mxu0 %v4204_v56 }
  0x59   :  { %791 = vmatpush.bf16.msrb.mxu1 %v4208_v57 }
  0x5a   :  { %805 = vmatpush.bf16.msrb.mxu2 %v4210_v58 }
  0x5b   :  { %819 = vmatpush.bf16.msrb.mxu3 %v4222_v62 }
  0x5c   :  { %778 = vmatpush.bf16.msrb.mxu0 %v4240_v5 }
  0x5d   :  { %792 = vmatpush.bf16.msrb.mxu1 %v4244_v6 }
  0x5e   :  { %806 = vmatpush.bf16.msrb.mxu2 %v4246_v9 }
  0x5f   :  { %820 = vmatpush.bf16.msrb.mxu3 %v4258_v14 }
  0x60   :  { %779 = vmatpush.bf16.msrb.mxu0 %v4276_v23 }
  0x61   :  { %793 = vmatpush.bf16.msrb.mxu1 %v4283_v26 }
  0x62   :  { %807 = vmatpush.bf16.msrb.mxu2 %v4285_v27 }
  0x63   :  { %821 = vmatpush.bf16.msrb.mxu3 %v4297_v32 }
  0x64   :  { %780 = vmatpush.bf16.msrb.mxu0 %v4312_v42 }
  0x65   :  { %794 = vmatpush.bf16.msrb.mxu1 %v4316_v48 }
  0x66   :  { %808 = vmatpush.bf16.msrb.mxu2 %v4318_v49 }
  0x67   :  { %822 = vmatpush.bf16.msrb.mxu3 %v4321_v51 }
  0x68   :  { %847 = vmatpush.bf16.msra.mxu0 %v4323_v52 }
  0x69   :  { %861 = vmatpush.bf16.msra.mxu1 %v4325_v59 }
  0x6a   :  { %875 = vmatpush.bf16.msra.mxu2 %v4330_v2 }
  0x6b   :  { %889 = vmatpush.bf16.msra.mxu3 %v4334_v4 }
  0x6c   :  { %848 = vmatpush.bf16.msra.mxu0 %v4336_v10 }
  0x6d   :  { %862 = vmatpush.bf16.msra.mxu1 %v4339_v19 }
  0x6e   :  { %876 = vmatpush.bf16.msra.mxu2 %v4342_v31 }
  0x6f   :  { %890 = vmatpush.bf16.msra.mxu3 %v4346_v36 }
  0x70   :  { %849 = vmatpush.bf16.msra.mxu0 %v4348_v37 }
  0x71   :  { %863 = vmatpush.bf16.msra.mxu1 %v4351_v43 }
  0x72   :  { %877 = vmatpush.bf16.msra.mxu2 %v4360_v63 }
  0x73   :  { %891 = vmatpush.bf16.msra.mxu3 %v4370_v11 }
  0x74   :  { %850 = vmatpush.bf16.msra.mxu0 %v4372_v13 }
  0x75   :  { %864 = vmatpush.bf16.msra.mxu1 %v4375_v22 }
  0x76   :  { %878 = vmatpush.bf16.msra.mxu2 %v4394_v47  ;;  %v101_v47 = vld [vmem:[%s5637_s3] sm:$0xf] }
  0x77   :  { %892 = vmatpush.bf16.msra.mxu3 %v5778_v53  ;;  %v4586_v22 = vperm.slane %v101_v47, 0  ;;  %v4588_v4 = vperm.slane %v101_v47, 1  ;;  %v4592_v27 = vperm.slane %v101_v47, 3 }
  0xa4   :  { %v280_v28 = vpop.f32.mrf.mxu0 }
  0xa5   :  { %v294_v60 = vpop.f32.mrf.mxu1 }
  0xac   :  { %v308_v0 = vpop.f32.mrf.mxu2  ;;  %v282_v18 = vpop.f32.mrf.mxu0 }
  0xad   :  { %v322_v15 = vpop.f32.mrf.mxu3  ;;  %v296_v20 = vpop.f32.mrf.mxu1 }
  0xb4   :  { %v4581_v54 = vpop.f32.mrf.mxu2  ;;  %v430_v63 = vpop.f32.mrf.mxu0 }
  0xb5   :  { %v324_v43 = vpop.f32.mrf.mxu3  ;;  %v444_v37 = vpop.f32.mrf.mxu1 }
  0xbc   :  { %v458_v11 = vpop.f32.mrf.mxu2  ;;  %v432_v13 = vpop.f32.mrf.mxu0 }
  0xbd   :  { %v472_v36 = vpop.f32.mrf.mxu3  ;;  %v446_v31 = vpop.f32.mrf.mxu1 }
  0xc4   :  { %v460_v53 = vpop.f32.mrf.mxu2  ;;  %v574_v10 = vpop.f32.mrf.mxu0 }
  0xc5   :  { %v474_v19 = vpop.f32.mrf.mxu3  ;;  %v575_v2 = vadd.f32 %v574_v10, %v430_v63  ;;  %v588_v59 = vpop.f32.mrf.mxu1 }
  0xc6   :  { %v589_v52 = vadd.f32 %v588_v59, %v444_v37 }
  0xc7   :  { %v621_v51 = vadd.f32 %v575_v2, %v4586_v22 }
  0xc8   :  { %v622_v49 = vadd.f32 %v589_v52, %v4588_v4  ;;  %v4596_v52 = vperm.slane %v101_v47, 2 }
  0xc9   :  { %v629_v48 = vadd.f32 %v621_v51, %v280_v28 }
  0xca   :  { %v630_v42 = vadd.f32 %v622_v49, %v294_v60 }
  0xcb   :  { %v3422_v32 = vmul.f32 -1.442695, %v629_v48 }
  0xcc   :  { %v3424_v26 = vmul.f32 -1.442695, %v630_v42  ;;  %v576_v14 = vpop.f32.mrf.mxu0  ;;  %v602_v9 = vpop.f32.mrf.mxu2 }
  0xcd   :  { %v616_v23 = vpop.f32.mrf.mxu3  ;;  %3720 = vpow2.f32 %v3422_v32  ;;  %v577_v5 = vadd.f32 %v576_v14, %v432_v13  ;;  %v590_v62 = vpop.f32.mrf.mxu1  ;;  %v603_v49 = vadd.f32 %v602_v9, %v458_v11 }
  0xce   :  { %v617_v6 = vadd.f32 %v616_v23, %v472_v36  ;;  %3722 = vpow2.f32 %v3424_v26  ;;  %v591_v10 = vadd.f32 %v590_v62, %v446_v31 }
  0xcf   :  { %v625_v2 = vadd.f32 %v577_v5, %v4586_v22  ;;  %v623_v14 = vadd.f32 %v603_v49, %v4596_v52 }
  0xd0   :  { %v624_v59 = vadd.f32 %v617_v6, %v4592_v27  ;;  %v626_v48 = vadd.f32 %v591_v10, %v4588_v4 }
  0xd1   :  { %v633_v42 = vadd.f32 %v625_v2, %v282_v18  ;;  %v631_v9 = vadd.f32 %v623_v14, %v308_v0 }
  0xd2   :  { %v632_v51 = vadd.f32 %v624_v59, %v322_v15  ;;  %v634_v37 = vadd.f32 %v626_v48, %v296_v20 }
  0xd3   :  { %v3721_v63 = vpop.eup %3720  ;;  %v3423_v26 = vmul.f32 -1.442695, %v633_v42 }
  0xd4   :  { %v3426_v32 = vmul.f32 -1.442695, %v632_v51  ;;  %v3723_v28 = vpop.eup %3722  ;;  %v643_v23 = vadd.f32 1.0, %v3721_v63  ;;  %v3425_v6 = vmul.f32 -1.442695, %v634_v37  ;;  %v604_v11 = vpop.f32.mrf.mxu2 }
  0xd5   :  { %v618_v62 = vpop.f32.mrf.mxu3  ;;  %v681_v31 = vadd.f32 1.0, %v3723_v28  ;;  %v605_v10 = vadd.f32 %v604_v11, %v460_v53 }
  0xd6   :  { %3724 = vpow2.f32 %v3426_v32  ;;  %v619_v5 = vadd.f32 %v618_v62, %v474_v19  ;;  %v654_v48 = vand.u32 2147483647, %v643_v23  ;;  %v656_v37 = vand.u32 2147483648, %v643_v23 }
  0xd7   :  { %3726 = vrcp.f32 %v643_v23  ;;  %v627_v53 = vadd.f32 %v605_v10, %v4596_v52  ;;  %v692_v14 = vand.u32 2147483647, %v681_v31  ;;  %vm650_vm3 = vweird.f32 %v643_v23 }
  0xd8   :  { %3728 = vrcp.f32 %v681_v31  ;;  %v628_v36 = vadd.f32 %v619_v5, %v4592_v27  ;;  %vm688_vm4 = vweird.f32 %v681_v31  ;;  %vm655_vm6 = vcmp.eq.f32.partialorder %v654_v48, 8.507059e+37 }
  0xd9   :  { %3730 = vpow2.f32 %v3423_v26  ;;  %v657_v5 = vor.u32 1.1754944e-38, %v656_v37  ;;  %vm693_vm8 = vcmp.eq.f32.partialorder %v692_v14, 8.507059e+37 }
  0xda   :  { %3732 = vpow2.f32 %v3425_v6  ;;  %v636_v47 = vadd.f32 %v628_v36, %v324_v43  ;;  %v694_v43 = vand.u32 2147483648, %v681_v31 }
  0xdb   :  { %3734 = vtanh.f32 %v631_v9 }
  0xdc   :  { %v3725_v13 = vpop.eup %3724  ;;  %v3427_v59 = vmul.f32 -1.442695, %v636_v47  ;;  %v695_v11 = vor.u32 1.1754944e-38, %v694_v43 }
  0xdd   :  { %v3727_v60 = vpop.eup %3726  ;;  %v4601_v15 = vadd.f32 1.0, %v3725_v13 }
  0xde   :  { %v3729_v18 = vpop.eup %3728  ;;  %v646_v20 = vmul.f32 %v3727_v60, %v643_v23  ;;  %vm651_vm1 = vweird.f32 %v3727_v60 }
  0xdf   :  { %v3731_v2 = vpop.eup %3730  ;;  %v684_v19 = vmul.f32 %v3729_v18, %v681_v31  ;;  %3736 = vrcp.f32 %v4601_v15  ;;  %vm689_vm2 = vweird.f32 %v3729_v18  ;;  %vm652_vm5 = vmor %vm650_vm3, %vm651_vm1  ;;  %vm728_vm12 = vweird.f32 %v4601_v15 }
  0xe0   :  { %v3733_v49 = vpop.eup %3732  ;;  %v647_v0 = vsub.f32 1.0, %v646_v20  ;;  %v4604_v51 = vadd.f32 1.0, %v3731_v2  ;;  %3738 = vpow2.f32 %v3427_v59  ;;  %vm690_vm7 = vmor %vm688_vm4, %vm689_vm2  ;;  %v635_v20 = vadd.f32 %v627_v53, %v4581_v54 }
  0xe1   :  { %v685_v42 = vsub.f32 1.0, %v684_v19  ;;  %v4606_v63 = vadd.f32 1.0, %v3733_v49  ;;  %v3735_v26 = vpop.eup %3734  ;;  %v734_v53 = vand.u32 2147483648, %v4601_v15 }
  0xe2   :  { %v648_v32 = vmul.f32 %v3727_v60, %v647_v0  ;;  %3740 = vrcp.f32 %v4604_v51  ;;  %v671_v14 = vand.u32 2147483648, %v4604_v51  ;;  %vm665_vm14 = vweird.f32 %v4604_v51 }
  0xe3   :  { %v686_v28 = vmul.f32 %v3729_v18, %v685_v42  ;;  %3742 = vrcp.f32 %v4606_v63  ;;  %vm703_vm13 = vweird.f32 %v4606_v63 }
  0xe4   :  { %v649_v62 = vadd.f32 %v3727_v60, %v648_v32  ;;  %v669_v32 = vand.u32 2147483647, %v4604_v51 }
  0xe5   :  { %v4611_v6 = vpop.eup %3736  ;;  %v687_v9 = vadd.f32 %v3729_v18, %v686_v28 }
  0xe6   :  { %v3739_v36 = vpop.eup %3738  ;;  %v653_v13 = vsel %vm652_vm5, %v3727_v60, %v649_v62  ;;  %v724_v47 = vmul.f32 %v4611_v6, %v4601_v15  ;;  %vm729_vm9 = vweird.f32 %v4611_v6  ;;  %v709_v62 = vand.u32 2147483648, %v4606_v63 }
  0xe7   :  { %v658_v10 = vsel %vm655_vm6, %v657_v5, %v653_v13  ;;  %v691_v59 = vsel %vm690_vm7, %v3729_v18, %v687_v9  ;;  %v4617_v23 = vadd.f32 1.0, %v3739_v36  ;;  %v732_v18 = vand.u32 2147483647, %v4601_v15  ;;  %vm4637_vm1 = vmor %vm728_vm12, %vm729_vm9 }
  0xe8   :  { %v3741_v31 = vpop.eup %3740  ;;  %v696_v2 = vsel %vm693_vm8, %v695_v11, %v691_v59  ;;  %v755_v19 = vmul.f32 %v3735_v26, %v658_v10  ;;  %v725_v49 = vsub.f32 1.0, %v724_v47  ;;  %v707_v36 = vand.u32 2147483647, %v4606_v63 }
  0xe9   :  { %v3743_v0 = vpop.eup %3742  ;;  %v753_v48 = vmul.f32 0.0, %v696_v2  ;;  %v661_v60 = vmul.f32 %v3741_v31, %v4604_v51  ;;  %3744 = vrcp.f32 %v4617_v23  ;;  %vm666_vm10 = vweird.f32 %v3741_v31 }
  0xea   :  { %v699_v42 = vmul.f32 %v3743_v0, %v4606_v63  ;;  %3746 = vtanh.f32 %v635_v20  ;;  %v726_v54 = vmul.f32 %v4611_v6, %v725_v49  ;;  %vm704_vm11 = vweird.f32 %v3743_v0  ;;  %vm667_vm2 = vmor %vm665_vm14, %vm666_vm10 }
  0xeb   :  { %v4624_v43 = vadd.f32 %v755_v19, %v753_v48  ;;  %v662_v37 = vsub.f32 1.0, %v661_v60  ;;  %vm670_vm15 = vcmp.eq.f32.partialorder %v669_v32, 8.507059e+37  ;;  %v672_v10 = vor.u32 1.1754944e-38, %v671_v14  ;;  %vm705_vm3 = vmor %vm703_vm13, %vm704_vm11 }
  0xec   :  { %v700_v28 = vsub.f32 1.0, %v699_v42  ;;  %v727_v26 = vadd.f32 %v4611_v6, %v726_v54  ;;  %v710_v19 = vor.u32 1.1754944e-38, %v709_v62  ;;  %vm733_vm4 = vcmp.eq.f32.partialorder %v732_v18, 8.507059e+37 }
  0xed   :  { %3748 = vtanh.f32 %v4624_v43  ;;  %v663_v5 = vmul.f32 %v3741_v31, %v662_v37  ;;  %v735_v51 = vor.u32 1.1754944e-38, %v734_v53  ;;  %vm708_vm5 = vcmp.eq.f32.partialorder %v707_v36, 8.507059e+37 }
  0xee   :  { %v701_v9 = vmul.f32 %v3743_v0, %v700_v28  ;;  %v731_v15 = vsel %vm4637_vm1, %v4611_v6, %v727_v26  ;;  %vm765_vm6 = vcmask 519168   ;;  %vm769_vm7 = vcmask 1043968  }
  0xef   :  { %v3745_v11 = vpop.eup %3744  ;;  %v664_v13 = vadd.f32 %v3741_v31, %v663_v5  ;;  %v736_v32 = vsel %vm733_vm4, %v735_v51, %v731_v15  ;;  %v749_v18 = vand.u32 2147483648, %v4617_v23  ;;  %vm743_vm9 = vweird.f32 %v4617_v23  ;;  %v5786_v15 = vld [vmem:[#allocation49_spill] sm:$0xff]  ;;  %v3702_v51 = vld [vmem:[%s5634_s0 + $0x8] sm:$0xff] }
  0xf0   :  { %v3747_v20 = vpop.eup %3746  ;;  %v702_v59 = vadd.f32 %v3743_v0, %v701_v9  ;;  %v739_v2 = vmul.f32 %v3745_v11, %v4617_v23  ;;  %vm744_vm8 = vweird.f32 %v3745_v11 }
  0xf1   :  { %v668_v63 = vsel %vm667_vm2, %v3741_v31, %v664_v13  ;;  %vm745_vm10 = vmor %vm743_vm9, %vm744_vm8  ;;  %v750_v26 = vor.u32 1.1754944e-38, %v749_v18  ;;  %v5800_v18 = vld [vmem:[#allocation27_spill] sm:$0xff] }
  0xf2   :  { %v673_v49 = vsel %vm670_vm15, %v672_v10, %v668_v63  ;;  %v706_v48 = vsel %vm705_vm3, %v3743_v0, %v702_v59  ;;  %v740_v60 = vsub.f32 1.0, %v739_v2  ;;  %v747_v0 = vand.u32 2147483647, %v4617_v23  ;;  %v5781_v23 = vld [vmem:[#allocation42_spill] sm:$0xff]  ;;  %v5784_v59 = vld [vmem:[#allocation47_spill] sm:$0xff]  ;;  %v5785_v2 = vld [vmem:[#allocation48_spill] sm:$0xff] }
  0xf3   :  { %v3749_v42 = vpop.eup %3748  ;;  %v711_v54 = vsel %vm708_vm5, %v710_v19, %v706_v48  ;;  %v756_v37 = vmul.f32 %v3747_v20, %v673_v49  ;;  %v5783_v10 = vld [vmem:[#allocation46_spill] sm:$0xff]  ;;  %v3703_v63 = vld [vmem:[%s5634_s0 + $0x30] sm:$0xff]  ;;  %v5789_v48 = vld [vmem:[#allocation16_spill] sm:$0xff] }
  0xf4   :  { %v754_v28 = vmul.f32 0.0, %v711_v54  ;;  %v741_v14 = vmul.f32 %v3745_v11, %v740_v60  ;;  %v761_v5 = vmul.f32 %v3749_v42, %v736_v32  ;;  %vm748_vm11 = vcmp.eq.f32.partialorder %v747_v0, 8.507059e+37  ;;  %v5787_v19 = vld [vmem:[#allocation50_spill] sm:$0xff]  ;;  %v5788_v49 = vld [vmem:[#allocation15_spill] sm:$0xff]  ;;  %v5790_v60 = vld [vmem:[#allocation17_spill] sm:$0xff] }
  0xf5   :  { %v5791_v42 = vld [vmem:[#allocation18_spill] sm:$0xff]  ;;  %v5792_v54 = vld [vmem:[#allocation19_spill] sm:$0xff]  ;;  %v5794_v32 = vld [vmem:[#allocation21_spill] sm:$0xff] }
  0xf6   :  { %v4646_v9 = vadd.f32 %v756_v37, %v754_v28  ;;  %v763_v6 = vpack.c.bf16 %v761_v5, %v761_v5  ;;  %v742_v31 = vadd.f32 %v3745_v11, %v741_v14  ;;  %v5793_v37 = vld [vmem:[#allocation20_spill] sm:$0xff]  ;;  %v5795_v28 = vld [vmem:[#allocation22_spill] sm:$0xff]  ;;  %v5796_v14 = vld [vmem:[#allocation23_spill] sm:$0xff] }
  0xf7   :  { %v5801_v0 = vld [vmem:[#allocation28_spill] sm:$0xff] }
  0xf8   :  { %3750 = vtanh.f32 %v4646_v9  ;;  %766 = vst.msk [vmem:[%s5639_s5] sm:$0xf] %vm765_vm6, %v763_v6  ;;  %v746_v53 = vsel %vm745_vm10, %v3745_v11, %v742_v31  ;;  %v5782_v11 = vld [vmem:[#allocation43_spill] sm:$0xff]  ;;  %v5799_v31 = vld [vmem:[#allocation26_spill] sm:$0xff] }
  0xf9   :  { %3428 = vst.msk [vmem:[%s5639_s5 + $0x38] sm:$0xf] %vm769_vm7, %v763_v6  ;;  %v751_v36 = vsel %vm748_vm11, %v750_v26, %v746_v53  ;;  %v5798_v6 = vld [vmem:[#allocation25_spill] sm:$0xff]  ;;  %v5803_v26 = vld [vmem:[#allocation30_spill] sm:$0xff] }
  0xfa   :  { %v5802_v53 = vld [vmem:[#allocation29_spill] sm:$0xff] }
  0xfe   :  { %v3751_v62 = vpop.eup %3750 }
  0xff   :  { %v762_v13 = vmul.f32 %v3751_v62, %v751_v36  ;;  %v5804_v62 = vld [vmem:[#allocation31_spill] sm:$0xff]  ;;  %v5805_v36 = vld [vmem:[#allocation32_spill] sm:$0xff] }
 0x101   :  { %v764_v47 = vpack.c.bf16 %v762_v13, %v762_v13  ;;  %v772_v20 = vpack.c.bf16 %v762_v13, %v761_v5  ;;  %v5797_v5 = vld [vmem:[#allocation24_spill] sm:$0xff]  ;;  %v5806_v13 = vld [vmem:[#allocation33_spill] sm:$0xff] }
 0x103   :  { %767 = vst.msk [vmem:[%s5639_s5 + $0x4] sm:$0xf] %vm765_vm6, %v764_v47  ;;  %781 = vmatmul.bf16.vlgmr.msrb.gmra.mxu0 %v772_v20  ;;  %795 = vmatmul.bf16.vlgmr.msrb.gmra.mxu1 %v772_v20 }
 0x104   :  { %3429 = vst.msk [vmem:[%s5639_s5 + $0x3c] sm:$0xf] %vm769_vm7, %v764_v47  ;;  %809 = vmatmul.bf16.vlgmr.msrb.gmra.mxu2 %v772_v20  ;;  %823 = vmatmul.bf16.vlgmr.msrb.gmra.mxu3 %v772_v20  ;;  %v5807_v47 = vld [vmem:[#allocation34_spill] sm:$0xff]  ;;  %v5808_v20 = vld [vmem:[#allocation35_spill] sm:$0xff] }
 0x105   :  { %911 = vmatpush.bf16.msrb.mxu0 %v5781_v23  ;;  %925 = vmatpush.bf16.msrb.mxu1 %v5782_v11 }
 0x106   :  { %939 = vmatpush.bf16.msrb.mxu2 %v5783_v10  ;;  %953 = vmatpush.bf16.msrb.mxu3 %v5784_v59 }
 0x109   :  { %912 = vmatpush.bf16.msrb.mxu0 %v4435_v35  ;;  %926 = vmatpush.bf16.msrb.mxu1 %v5785_v2 }
 0x10a   :  { %940 = vmatpush.bf16.msrb.mxu2 %v5786_v15  ;;  %954 = vmatpush.bf16.msrb.mxu3 %v5787_v19 }
 0x10d   :  { %913 = vmatpush.bf16.msrb.mxu0 %v4475_v30  ;;  %927 = vmatpush.bf16.msrb.mxu1 %v4479_v1 }
 0x10e   :  { %941 = vmatpush.bf16.msrb.mxu2 %v4481_v55  ;;  %955 = vmatpush.bf16.msrb.mxu3 %v4493_v39 }
 0x111   :  { %914 = vmatpush.bf16.msrb.mxu0 %v4511_v24  ;;  %928 = vmatpush.bf16.msrb.mxu1 %v4515_v61 }
 0x112   :  { %942 = vmatpush.bf16.msrb.mxu2 %v4517_v41  ;;  %956 = vmatpush.bf16.msrb.mxu3 %v4520_v40 }
 0x113   :  { %3438 = vmatmul.msk.bf16.vlgmr.msra.gmra.mxu0 %vm417_vm0, %v3703_v63  ;;  %3439 = vmatmul.msk.bf16.vlgmr.msra.gmra.mxu1 %vm417_vm0, %v3703_v63 }
 0x114   :  { %3440 = vmatmul.msk.bf16.vlgmr.msra.gmra.mxu2 %vm417_vm0, %v3703_v63  ;;  %3441 = vmatmul.msk.bf16.vlgmr.msra.gmra.mxu3 %vm417_vm0, %v3703_v63  ;;  %v5809_v63 = vld [vmem:[#allocation36_spill] sm:$0xff] }
 0x115   :  { %1114 = vmatpush.bf16.msra.mxu0 %v4048_v3  ;;  %1128 = vmatpush.bf16.msra.mxu1 %v4059_v7 }
 0x116   :  { %1142 = vmatpush.bf16.msra.mxu2 %v4061_v8  ;;  %1156 = vmatpush.bf16.msra.mxu3 %v4073_v12 }
 0x119   :  { %1115 = vmatpush.bf16.msra.mxu0 %v4086_v16  ;;  %1129 = vmatpush.bf16.msra.mxu1 %v4088_v17 }
 0x11a   :  { %1143 = vmatpush.bf16.msra.mxu2 %v4100_v21  ;;  %1157 = vmatpush.bf16.msra.mxu3 %v4111_v25 }
 0x11d   :  { %1116 = vmatpush.bf16.msra.mxu0 %v4123_v29  ;;  %1130 = vmatpush.bf16.msra.mxu1 %v4136_v33 }
 0x11e   :  { %1144 = vmatpush.bf16.msra.mxu2 %v4138_v34  ;;  %1158 = vmatpush.bf16.msra.mxu3 %v4150_v38 }
 0x121   :  { %1117 = vmatpush.bf16.msra.mxu0 %v4168_v44  ;;  %1131 = vmatpush.bf16.msra.mxu1 %v4172_v45 }
 0x122   :  { %1145 = vmatpush.bf16.msra.mxu2 %v4174_v46  ;;  %1159 = vmatpush.bf16.msra.mxu3 %v4186_v50 }
 0x123   :  { %3446 = vmatmul.msk.bf16.vlgmr.msrb.gmra.mxu0 %vm417_vm0, %v3702_v51  ;;  %3447 = vmatmul.msk.bf16.vlgmr.msrb.gmra.mxu1 %vm417_vm0, %v3702_v51 }
 0x124   :  { %3448 = vmatmul.msk.bf16.vlgmr.msrb.gmra.mxu2 %vm417_vm0, %v3702_v51  ;;  %3449 = vmatmul.msk.bf16.vlgmr.msrb.gmra.mxu3 %vm417_vm0, %v3702_v51  ;;  %v5810_v51 = vld [vmem:[#allocation37_spill] sm:$0xff] }
 0x125   :  { %1118 = vmatpush.bf16.msra.mxu0 %v4204_v56  ;;  %1132 = vmatpush.bf16.msra.mxu1 %v4208_v57 }
 0x126   :  { %1146 = vmatpush.bf16.msra.mxu2 %v4210_v58  ;;  %1160 = vmatpush.bf16.msra.mxu3 %v5788_v49 }
 0x129   :  { %1119 = vmatpush.bf16.msra.mxu0 %v5789_v48  ;;  %1133 = vmatpush.bf16.msra.mxu1 %v5790_v60 }
 0x12a   :  { %1147 = vmatpush.bf16.msra.mxu2 %v5791_v42  ;;  %1161 = vmatpush.bf16.msra.mxu3 %v5792_v54 }
 0x12d   :  { %1120 = vmatpush.bf16.msra.mxu0 %v5793_v37  ;;  %1134 = vmatpush.bf16.msra.mxu1 %v5794_v32 }
 0x12e   :  { %1148 = vmatpush.bf16.msra.mxu2 %v5795_v28  ;;  %1162 = vmatpush.bf16.msra.mxu3 %v5796_v14 }
 0x131   :  { %1121 = vmatpush.bf16.msra.mxu0 %v5797_v5  ;;  %1135 = vmatpush.bf16.msra.mxu1 %v5798_v6 }
 0x132   :  { %1149 = vmatpush.bf16.msra.mxu2 %v5799_v31  ;;  %1163 = vmatpush.bf16.msra.mxu3 %v5800_v18  ;;  %v5811_v18 = vld [vmem:[#allocation38_spill] sm:$0xff] }
 0x135   :  { %1188 = vmatpush.bf16.msrb.mxu0 %v5801_v0  ;;  %1202 = vmatpush.bf16.msrb.mxu1 %v5802_v53  ;;  %v5812_v0 = vld [vmem:[#allocation39_spill] sm:$0xff]  ;;  %v5813_v53 = vld [vmem:[#allocation40_spill] sm:$0xff] }
 0x136   :  { %1216 = vmatpush.bf16.msrb.mxu2 %v5803_v26  ;;  %1230 = vmatpush.bf16.msrb.mxu3 %v5804_v62  ;;  %v5814_v26 = vld [vmem:[#allocation41_spill] sm:$0xff]  ;;  %v5815_v62 = vld [vmem:[#allocation44_spill] sm:$0xff] }
 0x139   :  { %1189 = vmatpush.bf16.msrb.mxu0 %v5805_v36  ;;  %1203 = vmatpush.bf16.msrb.mxu1 %v5806_v13  ;;  %v5816_v36 = vld [vmem:[#allocation45_spill] sm:$0xff] }
 0x13a   :  { %1217 = vmatpush.bf16.msrb.mxu2 %v5807_v47  ;;  %1231 = vmatpush.bf16.msrb.mxu3 %v5808_v20 }
 0x13d   :  { %1190 = vmatpush.bf16.msrb.mxu0 %v5809_v63  ;;  %1204 = vmatpush.bf16.msrb.mxu1 %v5810_v51 }
 0x13e   :  { %1218 = vmatpush.bf16.msrb.mxu2 %v5811_v18  ;;  %1232 = vmatpush.bf16.msrb.mxu3 %v5812_v0 }
 0x141   :  { %1191 = vmatpush.bf16.msrb.mxu0 %v5813_v53  ;;  %1205 = vmatpush.bf16.msrb.mxu1 %v5814_v26 }
 0x142   :  { %1219 = vmatpush.bf16.msrb.mxu2 %v5815_v62  ;;  %1233 = vmatpush.bf16.msrb.mxu3 %v5816_v36 }
 0x180   :  { %v782_v13 = vpop.f32.mrf.mxu0  ;;  %v796_v47 = vpop.f32.mrf.mxu1 }
 0x187   :  { %v810_v31 = vpop.f32.mrf.mxu2  ;;  %v824_v20 = vpop.f32.mrf.mxu3 }
 0x188   :  { %v784_v6 = vpop.f32.mrf.mxu0  ;;  %v798_v63 = vpop.f32.mrf.mxu1 }
 0x18f   :  { %v4746_v5 = vpop.f32.mrf.mxu2  ;;  %v826_v51 = vpop.f32.mrf.mxu3 }
 0x190   :  { %v852_v18 = vpop.f32.mrf.mxu0  ;;  %v866_v14 = vpop.f32.mrf.mxu1 }
 0x197   :  { %v880_v0 = vpop.f32.mrf.mxu2  ;;  %v894_v28 = vpop.f32.mrf.mxu3 }
 0x198   :  { %v854_v53 = vpop.f32.mrf.mxu0  ;;  %v868_v32 = vpop.f32.mrf.mxu1 }
 0x19f   :  { %v882_v26 = vpop.f32.mrf.mxu2  ;;  %v896_v37 = vpop.f32.mrf.mxu3 }
 0x1a0   :  { %v916_v62 = vpop.f32.mrf.mxu0  ;;  %v930_v54 = vpop.f32.mrf.mxu1 }
 0x1a1   :  { %v917_v36 = vadd.f32 %v916_v62, %v852_v18  ;;  %v931_v42 = vadd.f32 %v930_v54, %v866_v14 }
 0x1a3   :  { %v963_v60 = vadd.f32 %v917_v36, %v4586_v22  ;;  %v964_v48 = vadd.f32 %v931_v42, %v4588_v4 }
 0x1a5   :  { %v971_v49 = vadd.f32 %v963_v60, %v782_v13  ;;  %v972_v58 = vadd.f32 %v964_v48, %v796_v47 }
 0x1a7   :  { %v3450_v57 = vmul.f32 -1.442695, %v971_v49  ;;  %v3452_v56 = vmul.f32 -1.442695, %v972_v58  ;;  %v944_v50 = vpop.f32.mrf.mxu2  ;;  %v958_v46 = vpop.f32.mrf.mxu3 }
 0x1a8   :  { %v959_v45 = vadd.f32 %v958_v46, %v894_v28  ;;  %v918_v44 = vpop.f32.mrf.mxu0  ;;  %v932_v38 = vpop.f32.mrf.mxu1  ;;  %v945_v42 = vadd.f32 %v944_v50, %v880_v0 }
 0x1a9   :  { %3752 = vpow2.f32 %v3450_v57  ;;  %v919_v34 = vadd.f32 %v918_v44, %v854_v53  ;;  %v933_v33 = vadd.f32 %v932_v38, %v868_v32 }
 0x1aa   :  { %3754 = vpow2.f32 %v3452_v56  ;;  %v966_v18 = vadd.f32 %v959_v45, %v4592_v27  ;;  %v965_v44 = vadd.f32 %v945_v42, %v4596_v52 }
 0x1ab   :  { %v967_v54 = vadd.f32 %v919_v34, %v4586_v22  ;;  %v968_v14 = vadd.f32 %v933_v33, %v4588_v4 }
 0x1ac   :  { %v974_v60 = vadd.f32 %v966_v18, %v824_v20  ;;  %v973_v33 = vadd.f32 %v965_v44, %v810_v31 }
 0x1ad   :  { %v975_v48 = vadd.f32 %v967_v54, %v784_v6  ;;  %v976_v49 = vadd.f32 %v968_v14, %v798_v63 }
 0x1ae   :  { %v3454_v58 = vmul.f32 -1.442695, %v974_v60 }
 0x1af   :  { %v3753_v62 = vpop.eup %3752  ;;  %v3451_v36 = vmul.f32 -1.442695, %v975_v48  ;;  %v960_v46 = vpop.f32.mrf.mxu3  ;;  %v3453_v38 = vmul.f32 -1.442695, %v976_v49 }
 0x1b0   :  { %v3755_v28 = vpop.eup %3754  ;;  %v985_v13 = vadd.f32 1.0, %v3753_v62  ;;  %3756 = vpow2.f32 %v3454_v58  ;;  %v961_v45 = vadd.f32 %v960_v46, %v896_v37  ;;  %v946_v34 = vpop.f32.mrf.mxu2 }
 0x1b1   :  { %v1023_v56 = vadd.f32 1.0, %v3755_v28  ;;  %3758 = vpow2.f32 %v3451_v36  ;;  %v947_v50 = vadd.f32 %v946_v34, %v882_v26 }
 0x1b2   :  { %3760 = vrcp.f32 %v985_v13  ;;  %v970_v57 = vadd.f32 %v961_v45, %v4592_v27  ;;  %v996_v42 = vand.u32 2147483647, %v985_v13  ;;  %v998_v60 = vand.u32 2147483648, %v985_v13 }
 0x1b3   :  { %3762 = vrcp.f32 %v1023_v56  ;;  %v969_v37 = vadd.f32 %v947_v50, %v4596_v52  ;;  %v1036_v49 = vand.u32 2147483648, %v1023_v56  ;;  %v1034_v58 = vand.u32 2147483647, %v1023_v56 }
 0x1b4   :  { %3764 = vpow2.f32 %v3453_v38  ;;  %v978_v53 = vadd.f32 %v970_v57, %v826_v51  ;;  %vm1030_vm14 = vweird.f32 %v1023_v56  ;;  %vm992_vm15 = vweird.f32 %v985_v13 }
 0x1b5   :  { %3766 = vtanh.f32 %v973_v33  ;;  %v977_v36 = vadd.f32 %v969_v37, %v4746_v5  ;;  %vm997_vm1 = vcmp.eq.f32.partialorder %v996_v42, 8.507059e+37  ;;  %v1037_v34 = vor.u32 1.1754944e-38, %v1036_v49 }
 0x1b6   :  { %v3757_v32 = vpop.eup %3756  ;;  %v3455_v31 = vmul.f32 -1.442695, %v978_v53  ;;  %v999_v33 = vor.u32 1.1754944e-38, %v998_v60  ;;  %vm1035_vm4 = vcmp.eq.f32.partialorder %v1034_v58, 8.507059e+37 }
 0x1b7   :  { %v3759_v6 = vpop.eup %3758  ;;  %v4755_v0 = vadd.f32 1.0, %v3757_v32 }
 0x1b8   :  { %v3761_v47 = vpop.eup %3760  ;;  %v4757_v20 = vadd.f32 1.0, %v3759_v6 }
 0x1b9   :  { %v3763_v63 = vpop.eup %3762  ;;  %v988_v18 = vmul.f32 %v3761_v47, %v985_v13  ;;  %3768 = vrcp.f32 %v4755_v0  ;;  %vm993_vm12 = vweird.f32 %v3761_v47 }
 0x1ba   :  { %v3765_v54 = vpop.eup %3764  ;;  %v1026_v26 = vmul.f32 %v3763_v63, %v1023_v56  ;;  %3770 = vrcp.f32 %v4757_v20  ;;  %vm1031_vm13 = vweird.f32 %v3763_v63  ;;  %vm994_vm2 = vmor %vm992_vm15, %vm993_vm12  ;;  %v1013_v13 = vand.u32 2147483648, %v4757_v20 }
 0x1bb   :  { %v989_v14 = vsub.f32 1.0, %v988_v18  ;;  %v4762_v48 = vadd.f32 1.0, %v3765_v54  ;;  %3772 = vpow2.f32 %v3455_v31  ;;  %v3767_v46 = vpop.eup %3766  ;;  %vm1032_vm3 = vmor %vm1030_vm14, %vm1031_vm13  ;;  %vm1007_vm5 = vweird.f32 %v4757_v20 }
 0x1bc   :  { %v1027_v51 = vsub.f32 1.0, %v1026_v26  ;;  %vm1070_vm13 = vweird.f32 %v4755_v0 }
 0x1bd   :  { %v990_v62 = vmul.f32 %v3761_v47, %v989_v14  ;;  %3774 = vrcp.f32 %v4762_v48  ;;  %vm1045_vm14 = vweird.f32 %v4762_v48 }
 0x1be   :  { %v1028_v28 = vmul.f32 %v3763_v63, %v1027_v51  ;;  %3776 = vtanh.f32 %v977_v36  ;;  %v1014_v36 = vor.u32 1.1754944e-38, %v1013_v13 }
 0x1bf   :  { %v4766_v44 = vpop.eup %3768  ;;  %v991_v38 = vadd.f32 %v3761_v47, %v990_v62  ;;  %v1051_v62 = vand.u32 2147483648, %v4762_v48 }
 0x1c0   :  { %v3771_v45 = vpop.eup %3770  ;;  %v1029_v50 = vadd.f32 %v3763_v63, %v1028_v28  ;;  %v1066_v57 = vmul.f32 %v4766_v44, %v4755_v0  ;;  %vm1071_vm9 = vweird.f32 %v4766_v44 }
 0x1c1   :  { %v995_v32 = vsel %vm994_vm2, %v3761_v47, %v991_v38  ;;  %v1003_v5 = vmul.f32 %v3771_v45, %v4757_v20  ;;  %v3773_v6 = vpop.eup %3772  ;;  %vm1008_vm8 = vweird.f32 %v3771_v45  ;;  %vm1072_vm15 = vmor %vm1070_vm13, %vm1071_vm9 }
 0x1c2   :  { %v1000_v53 = vsel %vm997_vm1, %v999_v33, %v995_v32  ;;  %v1033_v56 = vsel %vm1032_vm3, %v3763_v63, %v1029_v50  ;;  %v1067_v18 = vsub.f32 1.0, %v1066_v57  ;;  %v1064_v14 = vadd.f32 1.0, %v3773_v6  ;;  %vm1009_vm11 = vmor %vm1007_vm5, %vm1008_vm8 }
 0x1c3   :  { %v3775_v37 = vpop.eup %3774  ;;  %v1038_v31 = vsel %vm1035_vm4, %v1037_v34, %v1033_v56  ;;  %v1097_v54 = vmul.f32 %v3767_v46, %v1000_v53  ;;  %v1004_v26 = vsub.f32 1.0, %v1003_v5  ;;  %v1011_v63 = vand.u32 2147483647, %v4757_v20 }
 0x1c4   :  { %v1095_v42 = vmul.f32 %v1038_v31, %v4624_v43  ;;  %v1041_v60 = vmul.f32 %v3775_v37, %v4762_v48  ;;  %v1068_v47 = vmul.f32 %v4766_v44, %v1067_v18  ;;  %3778 = vrcp.f32 %v1064_v14  ;;  %v3777_v46 = vpop.eup %3776 }
 0x1c5   :  { %v1005_v51 = vmul.f32 %v3771_v45, %v1004_v26  ;;  %v1049_v43 = vand.u32 2147483647, %v4762_v48  ;;  %vm1046_vm10 = vweird.f32 %v3775_v37  ;;  %v1076_v33 = vand.u32 2147483648, %v4755_v0 }
 0x1c6   :  { %v4777_v49 = vadd.f32 %v1097_v54, %v1095_v42  ;;  %v1042_v58 = vsub.f32 1.0, %v1041_v60  ;;  %v1069_v38 = vadd.f32 %v4766_v44, %v1068_v47  ;;  %vm1012_vm12 = vcmp.eq.f32.partialorder %v1011_v63, 8.507059e+37  ;;  %vm1047_vm1 = vmor %vm1045_vm14, %vm1046_vm10 }
 0x1c7   :  { %v1006_v28 = vadd.f32 %v3771_v45, %v1005_v51  ;;  %v1074_v57 = vand.u32 2147483647, %v4755_v0  ;;  %v1052_v53 = vor.u32 1.1754944e-38, %v1051_v62  ;;  %vm1050_vm2 = vcmp.eq.f32.partialorder %v1049_v43, 8.507059e+37 }
 0x1c8   :  { %3780 = vtanh.f32 %v4777_v49  ;;  %v1043_v34 = vmul.f32 %v3775_v37, %v1042_v58  ;;  %v1073_v20 = vsel %vm1072_vm15, %v4766_v44, %v1069_v38  ;;  %v1091_v58 = vand.u32 2147483648, %v1064_v14  ;;  %v5817_v38 = vld [vmem:[#allocation5_spill] sm:$0xff] }
 0x1c9   :  { %v1010_v50 = vsel %vm1009_vm11, %v3771_v45, %v1006_v28  ;;  %v1077_v45 = vor.u32 1.1754944e-38, %v1076_v33  ;;  %vm1075_vm3 = vcmp.eq.f32.partialorder %v1074_v57, 8.507059e+37  ;;  %vm1085_vm5 = vweird.f32 %v1064_v14  ;;  %v5819_v33 = vld [vmem:[#allocation7_spill] sm:$0xff]  ;;  %v5820_v57 = vld [vmem:[#allocation8_spill] sm:$0xff] }
 0x1ca   :  { %v1015_v32 = vsel %vm1012_vm12, %v1014_v36, %v1010_v50  ;;  %v1044_v5 = vadd.f32 %v3775_v37, %v1043_v34  ;;  %v3779_v6 = vpop.eup %3778  ;;  %v1089_v44 = vand.u32 2147483647, %v1064_v14  ;;  %v5818_v34 = vld [vmem:[#allocation6_spill] sm:$0xff]  ;;  %v3704_v50 = vld [vmem:[%s5634_s0 + $0x10] sm:$0xff] }
 0x1cb   :  { %v1098_v18 = vmul.f32 %v3777_v46, %v1015_v32  ;;  %v1081_v13 = vmul.f32 %v3779_v6, %v1064_v14  ;;  %v1078_v26 = vsel %vm1075_vm3, %v1077_v45, %v1073_v20  ;;  %vm1086_vm4 = vweird.f32 %v3779_v6  ;;  %v3705_v14 = vld [vmem:[%s5634_s0 + $0x28] sm:$0xff]  ;;  %v5821_v32 = vld [vmem:[#allocation9_spill] sm:$0xff] }
 0x1cc   :  { %v1048_v56 = vsel %vm1047_vm1, %v3775_v37, %v1044_v5  ;;  %vm1087_vm8 = vmor %vm1085_vm5, %vm1086_vm4  ;;  %v1092_v37 = vor.u32 1.1754944e-38, %v1091_v58  ;;  %vm1090_vm9 = vcmp.eq.f32.partialorder %v1089_v44, 8.507059e+37  ;;  %v5822_v5 = vld [vmem:[#allocation10_spill] sm:$0xff]  ;;  %v5825_v20 = vld [vmem:[#allocation13_spill] sm:$0xff] }
 0x1cd   :  { %v1053_v31 = vsel %vm1050_vm2, %v1052_v53, %v1048_v56  ;;  %v1082_v48 = vsub.f32 1.0, %v1081_v13  ;;  %v5824_v53 = vld [vmem:[#allocation12_spill] sm:$0xff]  ;;  %v5826_v56 = vld [vmem:[#allocation14_spill] sm:$0xff]  ;;  %v5829_v45 = vld [vmem:[#allocation17_spill] sm:$0xff] }
 0x1ce   :  { %v3781_v54 = vpop.eup %3780  ;;  %v1096_v0 = vmul.f32 %v1053_v31, %v4646_v9  ;;  %v5828_v13 = vld [vmem:[#allocation16_spill] sm:$0xff]  ;;  %v5830_v31 = vld [vmem:[#allocation18_spill] sm:$0xff]  ;;  %v5839_v58 = vld [vmem:[#allocation27_spill] sm:$0xff] }
 0x1cf   :  { %v1103_v42 = vmul.f32 %v3781_v54, %v1078_v26  ;;  %v1083_v47 = vmul.f32 %v3779_v6, %v1082_v48  ;;  %v5831_v54 = vld [vmem:[#allocation19_spill] sm:$0xff]  ;;  %v5833_v26 = vld [vmem:[#allocation21_spill] sm:$0xff]  ;;  %v5834_v48 = vld [vmem:[#allocation22_spill] sm:$0xff] }
 0x1d0   :  { %v4793_v60 = vadd.f32 %v1098_v18, %v1096_v0  ;;  %v5827_v18 = vld [vmem:[#allocation15_spill] sm:$0xff]  ;;  %v5832_v0 = vld [vmem:[#allocation20_spill] sm:$0xff] }
 0x1d1   :  { %v1105_v51 = vpack.c.bf16 %v1103_v42, %v1103_v42  ;;  %v1084_v63 = vadd.f32 %v3779_v6, %v1083_v47  ;;  %v5836_v47 = vld [vmem:[#allocation24_spill] sm:$0xff] }
 0x1d2   :  { %3782 = vtanh.f32 %v4793_v60  ;;  %v5840_v44 = vld [vmem:[#allocation28_spill] sm:$0xff] }
 0x1d3   :  { %3456 = vst.msk [vmem:[%s5639_s5 + $0x8] sm:$0xf] %vm765_vm6, %v1105_v51  ;;  %v1088_v9 = vsel %vm1087_vm8, %v3779_v6, %v1084_v63  ;;  %v5823_v6 = vld [vmem:[#allocation11_spill] sm:$0xff]  ;;  %v5838_v63 = vld [vmem:[#allocation26_spill] sm:$0xff] }
 0x1d4   :  { %3458 = vst.msk [vmem:[%s5639_s5 + $0x30] sm:$0xf] %vm769_vm7, %v1105_v51  ;;  %v1093_v36 = vsel %vm1090_vm9, %v1092_v37, %v1088_v9  ;;  %v5837_v51 = vld [vmem:[#allocation25_spill] sm:$0xff]  ;;  %v5842_v37 = vld [vmem:[#allocation30_spill] sm:$0xff] }
 0x1d5   :  { %v5841_v9 = vld [vmem:[#allocation29_spill] sm:$0xff] }
 0x1d8   :  { %v3783_v62 = vpop.eup %3782 }
 0x1d9   :  { %v1104_v46 = vmul.f32 %v3783_v62, %v1093_v36  ;;  %v5843_v62 = vld [vmem:[#allocation31_spill] sm:$0xff]  ;;  %v5844_v36 = vld [vmem:[#allocation32_spill] sm:$0xff] }
 0x1db   :  { %v1106_v28 = vpack.c.bf16 %v1104_v46, %v1104_v46  ;;  %v1113_v43 = vpack.c.bf16 %v1104_v46, %v1103_v42  ;;  %v5835_v42 = vld [vmem:[#allocation23_spill] sm:$0xff]  ;;  %v5845_v46 = vld [vmem:[#allocation33_spill] sm:$0xff] }
 0x1dd   :  { %3457 = vst.msk [vmem:[%s5639_s5 + $0xc] sm:$0xf] %vm765_vm6, %v1106_v28  ;;  %1122 = vmatmul.bf16.vlgmr.msra.gmra.mxu0 %v1113_v43  ;;  %1136 = vmatmul.bf16.vlgmr.msra.gmra.mxu1 %v1113_v43 }
 0x1de   :  { %3459 = vst.msk [vmem:[%s5639_s5 + $0x34] sm:$0xf] %vm769_vm7, %v1106_v28  ;;  %1150 = vmatmul.bf16.vlgmr.msra.gmra.mxu2 %v1113_v43  ;;  %1164 = vmatmul.bf16.vlgmr.msra.gmra.mxu3 %v1113_v43  ;;  %v5846_v28 = vld [vmem:[#allocation34_spill] sm:$0xff]  ;;  %v5847_v43 = vld [vmem:[#allocation35_spill] sm:$0xff] }
 0x1df   :  { %1252 = vmatpush.bf16.msra.mxu0 %v5781_v23  ;;  %1266 = vmatpush.bf16.msra.mxu1 %v5782_v11 }
 0x1e0   :  { %1280 = vmatpush.bf16.msra.mxu2 %v5783_v10  ;;  %1294 = vmatpush.bf16.msra.mxu3 %v5784_v59 }
 0x1e3   :  { %1253 = vmatpush.bf16.msra.mxu0 %v4435_v35  ;;  %1267 = vmatpush.bf16.msra.mxu1 %v5785_v2 }
 0x1e4   :  { %1281 = vmatpush.bf16.msra.mxu2 %v5786_v15  ;;  %1295 = vmatpush.bf16.msra.mxu3 %v5787_v19 }
 0x1e7   :  { %1254 = vmatpush.bf16.msra.mxu0 %v4475_v30  ;;  %1268 = vmatpush.bf16.msra.mxu1 %v4479_v1 }
 0x1e8   :  { %1282 = vmatpush.bf16.msra.mxu2 %v4481_v55  ;;  %1296 = vmatpush.bf16.msra.mxu3 %v4493_v39 }
 0x1eb   :  { %1255 = vmatpush.bf16.msra.mxu0 %v4511_v24  ;;  %1269 = vmatpush.bf16.msra.mxu1 %v4515_v61 }
 0x1ec   :  { %1283 = vmatpush.bf16.msra.mxu2 %v4517_v41  ;;  %1297 = vmatpush.bf16.msra.mxu3 %v4520_v40 }
 0x1ed   :  { %3468 = vmatmul.msk.bf16.vlgmr.msrb.gmra.mxu0 %vm417_vm0, %v3705_v14  ;;  %3469 = vmatmul.msk.bf16.vlgmr.msrb.gmra.mxu1 %vm417_vm0, %v3705_v14 }
 0x1ee   :  { %3470 = vmatmul.msk.bf16.vlgmr.msrb.gmra.mxu2 %vm417_vm0, %v3705_v14  ;;  %3471 = vmatmul.msk.bf16.vlgmr.msrb.gmra.mxu3 %vm417_vm0, %v3705_v14  ;;  %v5848_v14 = vld [vmem:[#allocation36_spill] sm:$0xff] }
 0x1ef   :  { %1455 = vmatpush.bf16.msrb.mxu0 %v4048_v3  ;;  %1469 = vmatpush.bf16.msrb.mxu1 %v4059_v7 }
 0x1f0   :  { %1483 = vmatpush.bf16.msrb.mxu2 %v4061_v8  ;;  %1497 = vmatpush.bf16.msrb.mxu3 %v4073_v12 }
 0x1f3   :  { %1456 = vmatpush.bf16.msrb.mxu0 %v4086_v16  ;;  %1470 = vmatpush.bf16.msrb.mxu1 %v4088_v17 }
 0x1f4   :  { %1484 = vmatpush.bf16.msrb.mxu2 %v4100_v21  ;;  %1498 = vmatpush.bf16.msrb.mxu3 %v4111_v25 }
 0x1f7   :  { %1457 = vmatpush.bf16.msrb.mxu0 %v4123_v29  ;;  %1471 = vmatpush.bf16.msrb.mxu1 %v5817_v38 }
 0x1f8   :  { %1485 = vmatpush.bf16.msrb.mxu2 %v5818_v34  ;;  %1499 = vmatpush.bf16.msrb.mxu3 %v5819_v33 }
 0x1fb   :  { %1458 = vmatpush.bf16.msrb.mxu0 %v5820_v57  ;;  %1472 = vmatpush.bf16.msrb.mxu1 %v5821_v32 }
 0x1fc   :  { %1486 = vmatpush.bf16.msrb.mxu2 %v5822_v5  ;;  %1500 = vmatpush.bf16.msrb.mxu3 %v5823_v6 }
 0x1fd   :  { %3476 = vmatmul.msk.bf16.vlgmr.msra.gmra.mxu0 %vm417_vm0, %v3704_v50  ;;  %3477 = vmatmul.msk.bf16.vlgmr.msra.gmra.mxu1 %vm417_vm0, %v3704_v50 }
 0x1fe   :  { %3478 = vmatmul.msk.bf16.vlgmr.msra.gmra.mxu2 %vm417_vm0, %v3704_v50  ;;  %3479 = vmatmul.msk.bf16.vlgmr.msra.gmra.mxu3 %vm417_vm0, %v3704_v50  ;;  %v5849_v50 = vld [vmem:[#allocation37_spill] sm:$0xff] }
 0x1ff   :  { %1459 = vmatpush.bf16.msrb.mxu0 %v5824_v53  ;;  %1473 = vmatpush.bf16.msrb.mxu1 %v5825_v20 }
 0x200   :  { %1487 = vmatpush.bf16.msrb.mxu2 %v5826_v56  ;;  %1501 = vmatpush.bf16.msrb.mxu3 %v5827_v18 }
 0x203   :  { %1460 = vmatpush.bf16.msrb.mxu0 %v5828_v13  ;;  %1474 = vmatpush.bf16.msrb.mxu1 %v5829_v45 }
 0x204   :  { %1488 = vmatpush.bf16.msrb.mxu2 %v5830_v31  ;;  %1502 = vmatpush.bf16.msrb.mxu3 %v5831_v54 }
 0x207   :  { %1461 = vmatpush.bf16.msrb.mxu0 %v5832_v0  ;;  %1475 = vmatpush.bf16.msrb.mxu1 %v5833_v26 }
 0x208   :  { %1489 = vmatpush.bf16.msrb.mxu2 %v5834_v48  ;;  %1503 = vmatpush.bf16.msrb.mxu3 %v5835_v42 }
 0x20b   :  { %1462 = vmatpush.bf16.msrb.mxu0 %v5836_v47  ;;  %1476 = vmatpush.bf16.msrb.mxu1 %v5837_v51 }
 0x20c   :  { %1490 = vmatpush.bf16.msrb.mxu2 %v5838_v63  ;;  %1504 = vmatpush.bf16.msrb.mxu3 %v5839_v58  ;;  %v5850_v58 = vld [vmem:[#allocation38_spill] sm:$0xff] }
 0x20f   :  { %1529 = vmatpush.bf16.msra.mxu0 %v5840_v44  ;;  %1543 = vmatpush.bf16.msra.mxu1 %v5841_v9  ;;  %v5851_v44 = vld [vmem:[#allocation39_spill] sm:$0xff]  ;;  %v5852_v9 = vld [vmem:[#allocation40_spill] sm:$0xff] }
 0x210   :  { %1557 = vmatpush.bf16.msra.mxu2 %v5842_v37  ;;  %1571 = vmatpush.bf16.msra.mxu3 %v5843_v62  ;;  %v5853_v37 = vld [vmem:[#allocation41_spill] sm:$0xff]  ;;  %v5854_v62 = vld [vmem:[#allocation44_spill] sm:$0xff] }
 0x213   :  { %1530 = vmatpush.bf16.msra.mxu0 %v5844_v36  ;;  %1544 = vmatpush.bf16.msra.mxu1 %v5845_v46  ;;  %v5855_v36 = vld [vmem:[#allocation45_spill] sm:$0xff] }
 0x214   :  { %1558 = vmatpush.bf16.msra.mxu2 %v5846_v28  ;;  %1572 = vmatpush.bf16.msra.mxu3 %v5847_v43 }
 0x217   :  { %1531 = vmatpush.bf16.msra.mxu0 %v5848_v14  ;;  %1545 = vmatpush.bf16.msra.mxu1 %v5849_v50 }
 0x218   :  { %1559 = vmatpush.bf16.msra.mxu2 %v5850_v58  ;;  %1573 = vmatpush.bf16.msra.mxu3 %v5851_v44 }
 0x21b   :  { %1532 = vmatpush.bf16.msra.mxu0 %v5852_v9  ;;  %1546 = vmatpush.bf16.msra.mxu1 %v5853_v37 }
 0x21c   :  { %1560 = vmatpush.bf16.msra.mxu2 %v5854_v62  ;;  %1574 = vmatpush.bf16.msra.mxu3 %v5855_v36 }
 0x25a   :  { %v1123_v46 = vpop.f32.mrf.mxu0  ;;  %v1137_v28 = vpop.f32.mrf.mxu1 }
 0x261   :  { %v1151_v63 = vpop.f32.mrf.mxu2  ;;  %v1165_v43 = vpop.f32.mrf.mxu3 }
 0x262   :  { %v1125_v51 = vpop.f32.mrf.mxu0  ;;  %v1139_v14 = vpop.f32.mrf.mxu1 }
 0x269   :  { %v4890_v47 = vpop.f32.mrf.mxu2  ;;  %v1167_v50 = vpop.f32.mrf.mxu3 }
 0x26a   :  { %v1193_v58 = vpop.f32.mrf.mxu0  ;;  %v1207_v42 = vpop.f32.mrf.mxu1 }
 0x271   :  { %v1221_v44 = vpop.f32.mrf.mxu2  ;;  %v1235_v48 = vpop.f32.mrf.mxu3 }
 0x272   :  { %v1195_v9 = vpop.f32.mrf.mxu0  ;;  %v1209_v26 = vpop.f32.mrf.mxu1 }
 0x279   :  { %v1223_v37 = vpop.f32.mrf.mxu2  ;;  %v1237_v0 = vpop.f32.mrf.mxu3 }
 0x27a   :  { %v1257_v62 = vpop.f32.mrf.mxu0  ;;  %v1271_v54 = vpop.f32.mrf.mxu1 }
 0x27b   :  { %v1258_v36 = vadd.f32 %v1257_v62, %v1193_v58  ;;  %v1272_v31 = vadd.f32 %v1271_v54, %v1207_v42 }
 0x27d   :  { %v1304_v45 = vadd.f32 %v1258_v36, %v4586_v22  ;;  %v1305_v13 = vadd.f32 %v1272_v31, %v4588_v4 }
 0x27f   :  { %v1312_v18 = vadd.f32 %v1304_v45, %v1123_v46  ;;  %v1313_v56 = vadd.f32 %v1305_v13, %v1137_v28 }
 0x281   :  { %v3480_v20 = vmul.f32 -1.442695, %v1312_v18  ;;  %v3482_v53 = vmul.f32 -1.442695, %v1313_v56  ;;  %v1285_v6 = vpop.f32.mrf.mxu2  ;;  %v1299_v5 = vpop.f32.mrf.mxu3 }
 0x282   :  { %v1300_v32 = vadd.f32 %v1299_v5, %v1235_v48  ;;  %v1259_v57 = vpop.f32.mrf.mxu0  ;;  %v1273_v33 = vpop.f32.mrf.mxu1  ;;  %v1286_v31 = vadd.f32 %v1285_v6, %v1221_v44 }
 0x283   :  { %3784 = vpow2.f32 %v3480_v20  ;;  %v1260_v34 = vadd.f32 %v1259_v57, %v1195_v9  ;;  %v1274_v38 = vadd.f32 %v1273_v33, %v1209_v26 }
 0x284   :  { %3786 = vpow2.f32 %v3482_v53  ;;  %v1307_v58 = vadd.f32 %v1300_v32, %v4592_v27  ;;  %v1306_v57 = vadd.f32 %v1286_v31, %v4596_v52 }
 0x285   :  { %v1308_v54 = vadd.f32 %v1260_v34, %v4586_v22  ;;  %v1309_v42 = vadd.f32 %v1274_v38, %v4588_v4 }
 0x286   :  { %v1315_v45 = vadd.f32 %v1307_v58, %v1165_v43  ;;  %v1314_v38 = vadd.f32 %v1306_v57, %v1151_v63 }
 0x287   :  { %v1316_v13 = vadd.f32 %v1308_v54, %v1125_v51  ;;  %v1317_v18 = vadd.f32 %v1309_v42, %v1139_v14 }
 0x288   :  { %v3484_v56 = vmul.f32 -1.442695, %v1315_v45 }
 0x289   :  { %v3785_v62 = vpop.eup %3784  ;;  %v3481_v36 = vmul.f32 -1.442695, %v1316_v13  ;;  %v1301_v5 = vpop.f32.mrf.mxu3  ;;  %v3483_v33 = vmul.f32 -1.442695, %v1317_v18 }
 0x28a   :  { %v3787_v48 = vpop.eup %3786  ;;  %v1326_v46 = vadd.f32 1.0, %v3785_v62  ;;  %3788 = vpow2.f32 %v3484_v56  ;;  %v1302_v32 = vadd.f32 %v1301_v5, %v1237_v0  ;;  %v1287_v34 = vpop.f32.mrf.mxu2 }
 0x28b   :  { %v1364_v53 = vadd.f32 1.0, %v3787_v48  ;;  %3790 = vpow2.f32 %v3481_v36  ;;  %v1288_v6 = vadd.f32 %v1287_v34, %v1223_v37 }
 0x28c   :  { %3792 = vrcp.f32 %v1326_v46  ;;  %v1311_v20 = vadd.f32 %v1302_v32, %v4592_v27  ;;  %v1337_v31 = vand.u32 2147483647, %v1326_v46  ;;  %v1339_v45 = vand.u32 2147483648, %v1326_v46 }
 0x28d   :  { %3794 = vrcp.f32 %v1364_v53  ;;  %v1310_v0 = vadd.f32 %v1288_v6, %v4596_v52  ;;  %v1377_v18 = vand.u32 2147483648, %v1364_v53  ;;  %v1375_v56 = vand.u32 2147483647, %v1364_v53 }
 0x28e   :  { %3796 = vpow2.f32 %v3483_v33  ;;  %v1319_v9 = vadd.f32 %v1311_v20, %v1167_v50  ;;  %vm1371_vm12 = vweird.f32 %v1364_v53  ;;  %vm1333_vm13 = vweird.f32 %v1326_v46 }
 0x28f   :  { %3798 = vtanh.f32 %v1314_v38  ;;  %v1318_v36 = vadd.f32 %v1310_v0, %v4890_v47  ;;  %vm1338_vm14 = vcmp.eq.f32.partialorder %v1337_v31, 8.507059e+37  ;;  %v1378_v34 = vor.u32 1.1754944e-38, %v1377_v18 }
 0x290   :  { %v3789_v26 = vpop.eup %3788  ;;  %v3485_v63 = vmul.f32 -1.442695, %v1319_v9  ;;  %v1340_v38 = vor.u32 1.1754944e-38, %v1339_v45  ;;  %vm1376_vm2 = vcmp.eq.f32.partialorder %v1375_v56, 8.507059e+37 }
 0x291   :  { %v3791_v51 = vpop.eup %3790  ;;  %v4899_v44 = vadd.f32 1.0, %v3789_v26 }
 0x292   :  { %v3793_v28 = vpop.eup %3792  ;;  %v4901_v43 = vadd.f32 1.0, %v3791_v51 }
 0x293   :  { %v3795_v14 = vpop.eup %3794  ;;  %v1329_v58 = vmul.f32 %v3793_v28, %v1326_v46  ;;  %3800 = vrcp.f32 %v4899_v44  ;;  %vm1334_vm10 = vweird.f32 %v3793_v28 }
 0x294   :  { %v3797_v54 = vpop.eup %3796  ;;  %v1367_v37 = vmul.f32 %v3795_v14, %v1364_v53  ;;  %3802 = vrcp.f32 %v4901_v43  ;;  %vm1372_vm11 = vweird.f32 %v3795_v14  ;;  %vm1335_vm15 = vmor %vm1333_vm13, %vm1334_vm10  ;;  %v1354_v46 = vand.u32 2147483648, %v4901_v43 }
 0x295   :  { %v1330_v42 = vsub.f32 1.0, %v1329_v58  ;;  %v4906_v13 = vadd.f32 1.0, %v3797_v54  ;;  %3804 = vpow2.f32 %v3485_v63  ;;  %v3799_v5 = vpop.eup %3798  ;;  %vm1373_vm1 = vmor %vm1371_vm12, %vm1372_vm11  ;;  %vm1348_vm3 = vweird.f32 %v4901_v43 }
 0x296   :  { %v1368_v50 = vsub.f32 1.0, %v1367_v37  ;;  %vm1411_vm11 = vweird.f32 %v4899_v44 }
 0x297   :  { %v1331_v62 = vmul.f32 %v3793_v28, %v1330_v42  ;;  %3806 = vrcp.f32 %v4906_v13  ;;  %vm1386_vm12 = vweird.f32 %v4906_v13 }
 0x298   :  { %v1369_v48 = vmul.f32 %v3795_v14, %v1368_v50  ;;  %3808 = vtanh.f32 %v1318_v36  ;;  %v1355_v36 = vor.u32 1.1754944e-38, %v1354_v46 }
 0x299   :  { %v4910_v57 = vpop.eup %3800  ;;  %v1332_v33 = vadd.f32 %v3793_v28, %v1331_v62  ;;  %v1392_v62 = vand.u32 2147483648, %v4906_v13 }
 0x29a   :  { %v3803_v32 = vpop.eup %3802  ;;  %v1370_v6 = vadd.f32 %v3795_v14, %v1369_v48  ;;  %v1407_v20 = vmul.f32 %v4910_v57, %v4899_v44  ;;  %vm1412_vm5 = vweird.f32 %v4910_v57 }
 0x29b   :  { %v1336_v26 = vsel %vm1335_vm15, %v3793_v28, %v1332_v33  ;;  %v1344_v47 = vmul.f32 %v3803_v32, %v4901_v43  ;;  %v3805_v51 = vpop.eup %3804  ;;  %vm1349_vm4 = vweird.f32 %v3803_v32  ;;  %vm1413_vm13 = vmor %vm1411_vm11, %vm1412_vm5 }
 0x29c   :  { %v1341_v9 = vsel %vm1338_vm14, %v1340_v38, %v1336_v26  ;;  %v1374_v53 = vsel %vm1373_vm1, %v3795_v14, %v1370_v6  ;;  %v1408_v58 = vsub.f32 1.0, %v1407_v20  ;;  %v1405_v42 = vadd.f32 1.0, %v3805_v51  ;;  %vm1350_vm9 = vmor %vm1348_vm3, %vm1349_vm4 }
 0x29d   :  { %v3807_v0 = vpop.eup %3806  ;;  %v1379_v63 = vsel %vm1376_vm2, %v1378_v34, %v1374_v53  ;;  %v1438_v54 = vmul.f32 %v3799_v5, %v1341_v9  ;;  %v1345_v37 = vsub.f32 1.0, %v1344_v47  ;;  %v1352_v14 = vand.u32 2147483647, %v4901_v43 }
 0x29e   :  { %v1436_v31 = vmul.f32 %v1379_v63, %v4777_v49  ;;  %v1382_v45 = vmul.f32 %v3807_v0, %v4906_v13  ;;  %v1409_v28 = vmul.f32 %v4910_v57, %v1408_v58  ;;  %3810 = vrcp.f32 %v1405_v42  ;;  %v3809_v5 = vpop.eup %3808 }
 0x29f   :  { %v1346_v50 = vmul.f32 %v3803_v32, %v1345_v37  ;;  %v1390_v49 = vand.u32 2147483647, %v4906_v13  ;;  %vm1387_vm8 = vweird.f32 %v3807_v0  ;;  %v1417_v38 = vand.u32 2147483648, %v4899_v44 }
 0x2a0   :  { %v4921_v18 = vadd.f32 %v1438_v54, %v1436_v31  ;;  %v1383_v56 = vsub.f32 1.0, %v1382_v45  ;;  %v1410_v33 = vadd.f32 %v4910_v57, %v1409_v28  ;;  %vm1353_vm10 = vcmp.eq.f32.partialorder %v1352_v14, 8.507059e+37  ;;  %vm1388_vm14 = vmor %vm1386_vm12, %vm1387_vm8 }
 0x2a1   :  { %v1347_v48 = vadd.f32 %v3803_v32, %v1346_v50  ;;  %v1415_v20 = vand.u32 2147483647, %v4899_v44  ;;  %v1393_v9 = vor.u32 1.1754944e-38, %v1392_v62  ;;  %vm1391_vm15 = vcmp.eq.f32.partialorder %v1390_v49, 8.507059e+37 }
 0x2a2   :  { %3812 = vtanh.f32 %v4921_v18  ;;  %v1384_v34 = vmul.f32 %v3807_v0, %v1383_v56  ;;  %v1414_v43 = vsel %vm1413_vm13, %v4910_v57, %v1410_v33  ;;  %v1432_v56 = vand.u32 2147483648, %v1405_v42  ;;  %v5856_v33 = vld [vmem:[#allocation5_spill] sm:$0xff] }
 0x2a3   :  { %v1351_v6 = vsel %vm1350_vm9, %v3803_v32, %v1347_v48  ;;  %v1418_v32 = vor.u32 1.1754944e-38, %v1417_v38  ;;  %vm1416_vm1 = vcmp.eq.f32.partialorder %v1415_v20, 8.507059e+37  ;;  %vm1426_vm3 = vweird.f32 %v1405_v42  ;;  %v5858_v38 = vld [vmem:[#allocation7_spill] sm:$0xff]  ;;  %v5859_v20 = vld [vmem:[#allocation8_spill] sm:$0xff] }
 0x2a4   :  { %v1356_v26 = vsel %vm1353_vm10, %v1355_v36, %v1351_v6  ;;  %v1385_v47 = vadd.f32 %v3807_v0, %v1384_v34  ;;  %v3811_v51 = vpop.eup %3810  ;;  %v1430_v57 = vand.u32 2147483647, %v1405_v42  ;;  %v5857_v34 = vld [vmem:[#allocation6_spill] sm:$0xff]  ;;  %v3706_v6 = vld [vmem:[%s5634_s0 + $0x18] sm:$0xff] }
 0x2a5   :  { %v1439_v58 = vmul.f32 %v3809_v5, %v1356_v26  ;;  %v1422_v46 = vmul.f32 %v3811_v51, %v1405_v42  ;;  %v1419_v37 = vsel %vm1416_vm1, %v1418_v32, %v1414_v43  ;;  %vm1427_vm2 = vweird.f32 %v3811_v51  ;;  %v3707_v42 = vld [vmem:[%s5634_s0 + $0x20] sm:$0xff] }
 0x2a6   :  { %v1389_v53 = vsel %vm1388_vm14, %v3807_v0, %v1385_v47  ;;  %vm1428_vm4 = vmor %vm1426_vm3, %vm1427_vm2  ;;  %v1433_v0 = vor.u32 1.1754944e-38, %v1432_v56  ;;  %vm1431_vm5 = vcmp.eq.f32.partialorder %v1430_v57, 8.507059e+37  ;;  %v5860_v26 = vld [vmem:[#allocation9_spill] sm:$0xff]  ;;  %v5861_v47 = vld [vmem:[#allocation10_spill] sm:$0xff] }
 0x2a7   :  { %v1394_v63 = vsel %vm1391_vm15, %v1393_v9, %v1389_v53  ;;  %v1423_v13 = vsub.f32 1.0, %v1422_v46  ;;  %v5863_v9 = vld [vmem:[#allocation12_spill] sm:$0xff]  ;;  %v5864_v43 = vld [vmem:[#allocation13_spill] sm:$0xff]  ;;  %v5865_v53 = vld [vmem:[#allocation14_spill] sm:$0xff] }
 0x2a8   :  { %v3813_v54 = vpop.eup %3812  ;;  %v1437_v44 = vmul.f32 %v1394_v63, %v4793_v60  ;;  %v5867_v46 = vld [vmem:[#allocation16_spill] sm:$0xff]  ;;  %v5868_v32 = vld [vmem:[#allocation17_spill] sm:$0xff]  ;;  %v5869_v63 = vld [vmem:[#allocation18_spill] sm:$0xff] }
 0x2a9   :  { %v1444_v31 = vmul.f32 %v3813_v54, %v1419_v37  ;;  %v1424_v28 = vmul.f32 %v3811_v51, %v1423_v13  ;;  %v5870_v54 = vld [vmem:[#allocation19_spill] sm:$0xff]  ;;  %v5872_v37 = vld [vmem:[#allocation21_spill] sm:$0xff]  ;;  %v5873_v13 = vld [vmem:[#allocation22_spill] sm:$0xff] }
 0x2aa   :  { %v4937_v45 = vadd.f32 %v1439_v58, %v1437_v44  ;;  %v5866_v58 = vld [vmem:[#allocation15_spill] sm:$0xff]  ;;  %v5871_v44 = vld [vmem:[#allocation20_spill] sm:$0xff] }
 0x2ab   :  { %v1446_v50 = vpack.c.bf16 %v1444_v31, %v1444_v31  ;;  %v1425_v14 = vadd.f32 %v3811_v51, %v1424_v28  ;;  %v5875_v28 = vld [vmem:[#allocation24_spill] sm:$0xff]  ;;  %v5878_v56 = vld [vmem:[#allocation27_spill] sm:$0xff] }
 0x2ac   :  { %3814 = vtanh.f32 %v4937_v45  ;;  %v5879_v57 = vld [vmem:[#allocation28_spill] sm:$0xff] }
 0x2ad   :  { %3486 = vst.msk [vmem:[%s5639_s5 + $0x10] sm:$0xf] %vm765_vm6, %v1446_v50  ;;  %v1429_v60 = vsel %vm1428_vm4, %v3811_v51, %v1425_v14  ;;  %v5862_v51 = vld [vmem:[#allocation11_spill] sm:$0xff]  ;;  %v5877_v14 = vld [vmem:[#allocation26_spill] sm:$0xff] }
 0x2ae   :  { %3488 = vst.msk [vmem:[%s5639_s5 + $0x28] sm:$0xf] %vm769_vm7, %v1446_v50  ;;  %v1434_v36 = vsel %vm1431_vm5, %v1433_v0, %v1429_v60  ;;  %v5876_v50 = vld [vmem:[#allocation25_spill] sm:$0xff]  ;;  %v5881_v0 = vld [vmem:[#allocation30_spill] sm:$0xff] }
 0x2af   :  { %v5880_v60 = vld [vmem:[#allocation29_spill] sm:$0xff] }
 0x2b2   :  { %v3815_v62 = vpop.eup %3814 }
 0x2b3   :  { %v1445_v5 = vmul.f32 %v3815_v62, %v1434_v36  ;;  %v5882_v62 = vld [vmem:[#allocation31_spill] sm:$0xff]  ;;  %v5883_v36 = vld [vmem:[#allocation32_spill] sm:$0xff] }
 0x2b5   :  { %v1447_v48 = vpack.c.bf16 %v1445_v5, %v1445_v5  ;;  %v1454_v49 = vpack.c.bf16 %v1445_v5, %v1444_v31  ;;  %v5874_v31 = vld [vmem:[#allocation23_spill] sm:$0xff]  ;;  %v5884_v5 = vld [vmem:[#allocation33_spill] sm:$0xff] }
 0x2b7   :  { %3487 = vst.msk [vmem:[%s5639_s5 + $0x14] sm:$0xf] %vm765_vm6, %v1447_v48  ;;  %1463 = vmatmul.bf16.vlgmr.msrb.gmra.mxu0 %v1454_v49  ;;  %1477 = vmatmul.bf16.vlgmr.msrb.gmra.mxu1 %v1454_v49 }
 0x2b8   :  { %3489 = vst.msk [vmem:[%s5639_s5 + $0x2c] sm:$0xf] %vm769_vm7, %v1447_v48  ;;  %1491 = vmatmul.bf16.vlgmr.msrb.gmra.mxu2 %v1454_v49  ;;  %1505 = vmatmul.bf16.vlgmr.msrb.gmra.mxu3 %v1454_v49  ;;  %v5885_v48 = vld [vmem:[#allocation34_spill] sm:$0xff]  ;;  %v5886_v49 = vld [vmem:[#allocation35_spill] sm:$0xff] }
 0x2b9   :  { %1593 = vmatpush.bf16.msrb.mxu0 %v5781_v23  ;;  %1607 = vmatpush.bf16.msrb.mxu1 %v5782_v11 }
 0x2ba   :  { %1621 = vmatpush.bf16.msrb.mxu2 %v5783_v10  ;;  %1635 = vmatpush.bf16.msrb.mxu3 %v5784_v59 }
 0x2bd   :  { %1594 = vmatpush.bf16.msrb.mxu0 %v4435_v35  ;;  %1608 = vmatpush.bf16.msrb.mxu1 %v5785_v2 }
 0x2be   :  { %1622 = vmatpush.bf16.msrb.mxu2 %v5786_v15  ;;  %1636 = vmatpush.bf16.msrb.mxu3 %v5787_v19 }
 0x2c1   :  { %1595 = vmatpush.bf16.msrb.mxu0 %v4475_v30  ;;  %1609 = vmatpush.bf16.msrb.mxu1 %v4479_v1 }
 0x2c2   :  { %1623 = vmatpush.bf16.msrb.mxu2 %v4481_v55  ;;  %1637 = vmatpush.bf16.msrb.mxu3 %v4493_v39 }
 0x2c5   :  { %1596 = vmatpush.bf16.msrb.mxu0 %v4511_v24  ;;  %1610 = vmatpush.bf16.msrb.mxu1 %v4515_v61 }
 0x2c6   :  { %1624 = vmatpush.bf16.msrb.mxu2 %v4517_v41  ;;  %1638 = vmatpush.bf16.msrb.mxu3 %v4520_v40 }
 0x2c7   :  { %3498 = vmatmul.msk.bf16.vlgmr.msra.gmra.mxu0 %vm417_vm0, %v3707_v42  ;;  %3499 = vmatmul.msk.bf16.vlgmr.msra.gmra.mxu1 %vm417_vm0, %v3707_v42 }
 0x2c8   :  { %3500 = vmatmul.msk.bf16.vlgmr.msra.gmra.mxu2 %vm417_vm0, %v3707_v42  ;;  %3501 = vmatmul.msk.bf16.vlgmr.msra.gmra.mxu3 %vm417_vm0, %v3707_v42  ;;  %v5887_v42 = vld [vmem:[#allocation36_spill] sm:$0xff] }
 0x2c9   :  { %1796 = vmatpush.bf16.msra.mxu0 %v4048_v3  ;;  %1810 = vmatpush.bf16.msra.mxu1 %v4059_v7 }
 0x2ca   :  { %1824 = vmatpush.bf16.msra.mxu2 %v4061_v8  ;;  %1838 = vmatpush.bf16.msra.mxu3 %v4073_v12 }
 0x2cd   :  { %1797 = vmatpush.bf16.msra.mxu0 %v4086_v16  ;;  %1811 = vmatpush.bf16.msra.mxu1 %v4088_v17 }
 0x2ce   :  { %1825 = vmatpush.bf16.msra.mxu2 %v4100_v21  ;;  %1839 = vmatpush.bf16.msra.mxu3 %v4111_v25 }
 0x2d1   :  { %1798 = vmatpush.bf16.msra.mxu0 %v4123_v29  ;;  %1812 = vmatpush.bf16.msra.mxu1 %v5856_v33 }
 0x2d2   :  { %1826 = vmatpush.bf16.msra.mxu2 %v5857_v34  ;;  %1840 = vmatpush.bf16.msra.mxu3 %v5858_v38 }
 0x2d5   :  { %1799 = vmatpush.bf16.msra.mxu0 %v5859_v20  ;;  %1813 = vmatpush.bf16.msra.mxu1 %v5860_v26 }
 0x2d6   :  { %1827 = vmatpush.bf16.msra.mxu2 %v5861_v47  ;;  %1841 = vmatpush.bf16.msra.mxu3 %v5862_v51 }
 0x2d7   :  { %3506 = vmatmul.msk.bf16.vlgmr.msrb.gmra.mxu0 %vm417_vm0, %v3706_v6  ;;  %3507 = vmatmul.msk.bf16.vlgmr.msrb.gmra.mxu1 %vm417_vm0, %v3706_v6 }
 0x2d8   :  { %3508 = vmatmul.msk.bf16.vlgmr.msrb.gmra.mxu2 %vm417_vm0, %v3706_v6  ;;  %3509 = vmatmul.msk.bf16.vlgmr.msrb.gmra.mxu3 %vm417_vm0, %v3706_v6  ;;  %v5888_v6 = vld [vmem:[#allocation37_spill] sm:$0xff] }
 0x2d9   :  { %1800 = vmatpush.bf16.msra.mxu0 %v5863_v9  ;;  %1814 = vmatpush.bf16.msra.mxu1 %v5864_v43 }
 0x2da   :  { %1828 = vmatpush.bf16.msra.mxu2 %v5865_v53  ;;  %1842 = vmatpush.bf16.msra.mxu3 %v5866_v58 }
 0x2dd   :  { %1801 = vmatpush.bf16.msra.mxu0 %v5867_v46  ;;  %1815 = vmatpush.bf16.msra.mxu1 %v5868_v32 }
 0x2de   :  { %1829 = vmatpush.bf16.msra.mxu2 %v5869_v63  ;;  %1843 = vmatpush.bf16.msra.mxu3 %v5870_v54 }
 0x2e1   :  { %1802 = vmatpush.bf16.msra.mxu0 %v5871_v44  ;;  %1816 = vmatpush.bf16.msra.mxu1 %v5872_v37 }
 0x2e2   :  { %1830 = vmatpush.bf16.msra.mxu2 %v5873_v13  ;;  %1844 = vmatpush.bf16.msra.mxu3 %v5874_v31 }
 0x2e5   :  { %1803 = vmatpush.bf16.msra.mxu0 %v5875_v28  ;;  %1817 = vmatpush.bf16.msra.mxu1 %v5876_v50 }
 0x2e6   :  { %1831 = vmatpush.bf16.msra.mxu2 %v5877_v14  ;;  %1845 = vmatpush.bf16.msra.mxu3 %v5878_v56  ;;  %v5889_v56 = vld [vmem:[#allocation38_spill] sm:$0xff] }
 0x2e9   :  { %1868 = vmatpush.bf16.msrb.mxu0 %v5879_v57  ;;  %1882 = vmatpush.bf16.msrb.mxu1 %v5880_v60  ;;  %v5890_v57 = vld [vmem:[#allocation39_spill] sm:$0xff]  ;;  %v5891_v60 = vld [vmem:[#allocation40_spill] sm:$0xff] }
 0x2ea   :  { %1896 = vmatpush.bf16.msrb.mxu2 %v5881_v0  ;;  %1910 = vmatpush.bf16.msrb.mxu3 %v5882_v62  ;;  %v5892_v0 = vld [vmem:[#allocation41_spill] sm:$0xff]  ;;  %v5893_v62 = vld [vmem:[#allocation44_spill] sm:$0xff] }
 0x2ed   :  { %1869 = vmatpush.bf16.msrb.mxu0 %v5883_v36  ;;  %1883 = vmatpush.bf16.msrb.mxu1 %v5884_v5  ;;  %v5894_v36 = vld [vmem:[#allocation45_spill] sm:$0xff] }
 0x2ee   :  { %1897 = vmatpush.bf16.msrb.mxu2 %v5885_v48  ;;  %1911 = vmatpush.bf16.msrb.mxu3 %v5886_v49 }
 0x2f1   :  { %1870 = vmatpush.bf16.msrb.mxu0 %v5887_v42  ;;  %1884 = vmatpush.bf16.msrb.mxu1 %v5888_v6 }
 0x2f2   :  { %1898 = vmatpush.bf16.msrb.mxu2 %v5889_v56  ;;  %1912 = vmatpush.bf16.msrb.mxu3 %v5890_v57 }
 0x2f5   :  { %1871 = vmatpush.bf16.msrb.mxu0 %v5891_v60  ;;  %1885 = vmatpush.bf16.msrb.mxu1 %v5892_v0 }
 0x2f6   :  { %1899 = vmatpush.bf16.msrb.mxu2 %v5893_v62  ;;  %1913 = vmatpush.bf16.msrb.mxu3 %v5894_v36 }
 0x334   :  { %v1464_v5 = vpop.f32.mrf.mxu0  ;;  %v1478_v48 = vpop.f32.mrf.mxu1 }
 0x33b   :  { %v1492_v14 = vpop.f32.mrf.mxu2  ;;  %v1506_v49 = vpop.f32.mrf.mxu3 }
 0x33c   :  { %v1466_v50 = vpop.f32.mrf.mxu0  ;;  %v1480_v42 = vpop.f32.mrf.mxu1 }
 0x343   :  { %v5034_v28 = vpop.f32.mrf.mxu2  ;;  %v1508_v6 = vpop.f32.mrf.mxu3 }
 0x344   :  { %v1534_v56 = vpop.f32.mrf.mxu0  ;;  %v1548_v31 = vpop.f32.mrf.mxu1 }
 0x34b   :  { %v1562_v57 = vpop.f32.mrf.mxu2  ;;  %v1576_v13 = vpop.f32.mrf.mxu3 }
 0x34c   :  { %v1536_v60 = vpop.f32.mrf.mxu0  ;;  %v1550_v37 = vpop.f32.mrf.mxu1 }
 0x353   :  { %v1564_v0 = vpop.f32.mrf.mxu2  ;;  %v1578_v44 = vpop.f32.mrf.mxu3 }
 0x354   :  { %v1598_v62 = vpop.f32.mrf.mxu0  ;;  %v1612_v54 = vpop.f32.mrf.mxu1 }
 0x355   :  { %v1599_v36 = vadd.f32 %v1598_v62, %v1534_v56  ;;  %v1613_v63 = vadd.f32 %v1612_v54, %v1548_v31 }
 0x357   :  { %v1645_v32 = vadd.f32 %v1599_v36, %v4586_v22  ;;  %v1646_v46 = vadd.f32 %v1613_v63, %v4588_v4 }
 0x359   :  { %v1653_v58 = vadd.f32 %v1645_v32, %v1464_v5  ;;  %v1654_v53 = vadd.f32 %v1646_v46, %v1478_v48 }
 0x35b   :  { %v3510_v43 = vmul.f32 -1.442695, %v1653_v58  ;;  %v3512_v9 = vmul.f32 -1.442695, %v1654_v53  ;;  %v1626_v51 = vpop.f32.mrf.mxu2  ;;  %v1640_v47 = vpop.f32.mrf.mxu3 }
 0x35c   :  { %v1641_v26 = vadd.f32 %v1640_v47, %v1576_v13  ;;  %v1600_v20 = vpop.f32.mrf.mxu0  ;;  %v1614_v38 = vpop.f32.mrf.mxu1  ;;  %v1627_v63 = vadd.f32 %v1626_v51, %v1562_v57 }
 0x35d   :  { %3816 = vpow2.f32 %v3510_v43  ;;  %v1601_v34 = vadd.f32 %v1600_v20, %v1536_v60  ;;  %v1615_v33 = vadd.f32 %v1614_v38, %v1550_v37 }
 0x35e   :  { %3818 = vpow2.f32 %v3512_v9  ;;  %v1648_v56 = vadd.f32 %v1641_v26, %v4592_v27  ;;  %v1647_v20 = vadd.f32 %v1627_v63, %v4596_v52 }
 0x35f   :  { %v1649_v54 = vadd.f32 %v1601_v34, %v4586_v22  ;;  %v1650_v31 = vadd.f32 %v1615_v33, %v4588_v4 }
 0x360   :  { %v1656_v32 = vadd.f32 %v1648_v56, %v1506_v49  ;;  %v1655_v33 = vadd.f32 %v1647_v20, %v1492_v14 }
 0x361   :  { %v1657_v46 = vadd.f32 %v1649_v54, %v1466_v50  ;;  %v1658_v58 = vadd.f32 %v1650_v31, %v1480_v42 }
 0x362   :  { %v3514_v53 = vmul.f32 -1.442695, %v1656_v32 }
 0x363   :  { %v3817_v62 = vpop.eup %3816  ;;  %v3511_v36 = vmul.f32 -1.442695, %v1657_v46  ;;  %v1642_v47 = vpop.f32.mrf.mxu3  ;;  %v3513_v38 = vmul.f32 -1.442695, %v1658_v58 }
 0x364   :  { %v3819_v13 = vpop.eup %3818  ;;  %v1667_v5 = vadd.f32 1.0, %v3817_v62  ;;  %3820 = vpow2.f32 %v3514_v53  ;;  %v1643_v26 = vadd.f32 %v1642_v47, %v1578_v44  ;;  %v1628_v34 = vpop.f32.mrf.mxu2 }
 0x365   :  { %v1705_v9 = vadd.f32 1.0, %v3819_v13  ;;  %3822 = vpow2.f32 %v3511_v36  ;;  %v1629_v51 = vadd.f32 %v1628_v34, %v1564_v0 }
 0x366   :  { %3824 = vrcp.f32 %v1667_v5  ;;  %v1652_v43 = vadd.f32 %v1643_v26, %v4592_v27  ;;  %v1678_v31 = vand.u32 2147483647, %v1667_v5  ;;  %v1680_v63 = vand.u32 2147483648, %v1667_v5 }
 0x367   :  { %3826 = vrcp.f32 %v1705_v9  ;;  %v1651_v44 = vadd.f32 %v1629_v51, %v4596_v52  ;;  %v1718_v58 = vand.u32 2147483648, %v1705_v9  ;;  %v1716_v53 = vand.u32 2147483647, %v1705_v9 }
 0x368   :  { %3828 = vpow2.f32 %v3513_v38  ;;  %v1660_v49 = vadd.f32 %v1652_v43, %v1508_v6  ;;  %vm1674_vm10 = vweird.f32 %v1667_v5  ;;  %vm1712_vm11 = vweird.f32 %v1705_v9 }
 0x369   :  { %3830 = vtanh.f32 %v1655_v33  ;;  %v1659_v36 = vadd.f32 %v1651_v44, %v5034_v28  ;;  %vm1679_vm12 = vcmp.eq.f32.partialorder %v1678_v31, 8.507059e+37  ;;  %v1719_v34 = vor.u32 1.1754944e-38, %v1718_v58 }
 0x36a   :  { %v3821_v37 = vpop.eup %3820  ;;  %v3515_v62 = vmul.f32 -1.442695, %v1660_v49  ;;  %v1681_v33 = vor.u32 1.1754944e-38, %v1680_v63  ;;  %vm1717_vm15 = vcmp.eq.f32.partialorder %v1716_v53, 8.507059e+37 }
 0x36b   :  { %v3823_v50 = vpop.eup %3822  ;;  %v5043_v57 = vadd.f32 1.0, %v3821_v37 }
 0x36c   :  { %v3825_v60 = vpop.eup %3824  ;;  %v5045_v48 = vadd.f32 1.0, %v3823_v50 }
 0x36d   :  { %v3827_v42 = vpop.eup %3826  ;;  %v1670_v56 = vmul.f32 %v3825_v60, %v1667_v5  ;;  %3832 = vrcp.f32 %v5043_v57  ;;  %vm1675_vm8 = vweird.f32 %v3825_v60  ;;  %vm1752_vm1 = vweird.f32 %v5043_v57 }
 0x36e   :  { %v3829_v14 = vpop.eup %3828  ;;  %v1708_v54 = vmul.f32 %v3827_v42, %v1705_v9  ;;  %3834 = vrcp.f32 %v5045_v48  ;;  %vm1713_vm9 = vweird.f32 %v3827_v42  ;;  %vm1676_vm13 = vmor %vm1674_vm10, %vm1675_vm8  ;;  %vm1689_vm2 = vweird.f32 %v5045_v48 }
 0x36f   :  { %v1671_v0 = vsub.f32 1.0, %v1670_v56  ;;  %v5050_v32 = vadd.f32 1.0, %v3829_v14  ;;  %v3831_v47 = vpop.eup %3830  ;;  %vm1714_vm14 = vmor %vm1712_vm11, %vm1713_vm9 }
 0x370   :  { %v1709_v46 = vsub.f32 1.0, %v1708_v54  ;;  %v1695_v54 = vand.u32 2147483648, %v5045_v48 }
 0x371   :  { %v1672_v6 = vmul.f32 %v3825_v60, %v1671_v0  ;;  %3836 = vrcp.f32 %v5050_v32  ;;  %vm1727_vm10 = vweird.f32 %v5050_v32 }
 0x372   :  { %v1710_v13 = vmul.f32 %v3827_v42, %v1709_v46  ;;  %3838 = vpow2.f32 %v3515_v62 }
 0x373   :  { %v5054_v20 = vpop.eup %3832  ;;  %v1673_v38 = vadd.f32 %v3825_v60, %v1672_v6  ;;  %3840 = vtanh.f32 %v1659_v36  ;;  %v1733_v6 = vand.u32 2147483648, %v5050_v32 }
 0x374   :  { %v3835_v26 = vpop.eup %3834  ;;  %v1711_v51 = vadd.f32 %v3827_v42, %v1710_v13  ;;  %v1748_v43 = vmul.f32 %v5054_v20, %v5043_v57  ;;  %v1696_v13 = vor.u32 1.1754944e-38, %v1695_v54  ;;  %vm1753_vm4 = vweird.f32 %v5054_v20 }
 0x375   :  { %v1677_v28 = vsel %vm1676_vm13, %v3825_v60, %v1673_v38  ;;  %v1685_v37 = vmul.f32 %v3835_v26, %v5045_v48  ;;  %v1758_v60 = vand.u32 2147483648, %v5043_v57  ;;  %vm1690_vm3 = vweird.f32 %v3835_v26  ;;  %vm1754_vm11 = vmor %vm1752_vm1, %vm1753_vm4 }
 0x376   :  { %v1682_v5 = vsel %vm1679_vm12, %v1681_v33, %v1677_v28  ;;  %v1715_v50 = vsel %vm1714_vm14, %v3827_v42, %v1711_v51  ;;  %v1749_v9 = vsub.f32 1.0, %v1748_v43  ;;  %v1693_v42 = vand.u32 2147483647, %v5045_v48  ;;  %vm1691_vm8 = vmor %vm1689_vm2, %vm1690_vm3 }
 0x377   :  { %v3837_v49 = vpop.eup %3836  ;;  %v1720_v56 = vsel %vm1717_vm15, %v1719_v34, %v1715_v50  ;;  %v1779_v44 = vmul.f32 %v3831_v47, %v1682_v5  ;;  %v1686_v14 = vsub.f32 1.0, %v1685_v37  ;;  %v1731_v33 = vand.u32 2147483647, %v5050_v32 }
 0x378   :  { %v1777_v0 = vmul.f32 %v1720_v56, %v4921_v18  ;;  %v1750_v31 = vmul.f32 %v5054_v20, %v1749_v9  ;;  %v1723_v63 = vmul.f32 %v3837_v49, %v5050_v32  ;;  %v3839_v46 = vpop.eup %3838  ;;  %vm1728_vm5 = vweird.f32 %v3837_v49 }
 0x379   :  { %v1687_v58 = vmul.f32 %v3835_v26, %v1686_v14  ;;  %v1746_v36 = vadd.f32 1.0, %v3839_v46  ;;  %v3841_v18 = vpop.eup %3840  ;;  %vm1694_vm9 = vcmp.eq.f32.partialorder %v1693_v42, 8.507059e+37  ;;  %v1756_v43 = vand.u32 2147483647, %v5043_v57  ;;  %vm1729_vm12 = vmor %vm1727_vm10, %vm1728_vm5 }
 0x37a   :  { %v5067_v53 = vadd.f32 %v1779_v44, %v1777_v0  ;;  %v1724_v62 = vsub.f32 1.0, %v1723_v63  ;;  %v1751_v38 = vadd.f32 %v5054_v20, %v1750_v31  ;;  %v1734_v5 = vor.u32 1.1754944e-38, %v1733_v6 }
 0x37b   :  { %v1688_v47 = vadd.f32 %v3835_v26, %v1687_v58  ;;  %vm1732_vm13 = vcmp.eq.f32.partialorder %v1731_v33, 8.507059e+37  ;;  %v1759_v56 = vor.u32 1.1754944e-38, %v1758_v60  ;;  %vm1757_vm14 = vcmp.eq.f32.partialorder %v1756_v43, 8.507059e+37  ;;  %v5897_v33 = vld [vmem:[#allocation7_spill] sm:$0xff]  ;;  %v5898_v43 = vld [vmem:[#allocation8_spill] sm:$0xff] }
 0x37c   :  { %3842 = vtanh.f32 %v5067_v53  ;;  %v1725_v34 = vmul.f32 %v3837_v49, %v1724_v62  ;;  %v1755_v50 = vsel %vm1754_vm11, %v5054_v20, %v1751_v38  ;;  %v1773_v20 = vand.u32 2147483648, %v1746_v36  ;;  %v5895_v38 = vld [vmem:[#allocation5_spill] sm:$0xff] }
 0x37d   :  { %v1692_v51 = vsel %vm1691_vm8, %v3835_v26, %v1688_v47  ;;  %3844 = vrcp.f32 %v1746_v36  ;;  %v1760_v54 = vsel %vm1757_vm14, %v1759_v56, %v1755_v50  ;;  %v1771_v60 = vand.u32 2147483647, %v1746_v36  ;;  %v5902_v50 = vld [vmem:[#allocation12_spill] sm:$0xff]  ;;  %v5905_v56 = vld [vmem:[#allocation15_spill] sm:$0xff] }
 0x37e   :  { %v1697_v28 = vsel %vm1694_vm9, %v1696_v13, %v1692_v51  ;;  %v1726_v37 = vadd.f32 %v3837_v49, %v1725_v34  ;;  %vm1767_vm1 = vweird.f32 %v1746_v36  ;;  %v1774_v58 = vor.u32 1.1754944e-38, %v1773_v20  ;;  %v5896_v34 = vld [vmem:[#allocation6_spill] sm:$0xff]  ;;  %v3708_v51 = vld [vmem:[%s5634_s0 + $0x20] sm:$0xff] }
 0x37f   :  { %v1780_v9 = vmul.f32 %v3841_v18, %v1697_v28  ;;  %vm1772_vm3 = vcmp.eq.f32.partialorder %v1771_v60, 8.507059e+37  ;;  %v5899_v28 = vld [vmem:[#allocation9_spill] sm:$0xff]  ;;  %v5917_v60 = vld [vmem:[#allocation27_spill] sm:$0xff] }
 0x380   :  { %v1730_v48 = vsel %vm1729_vm12, %v3837_v49, %v1726_v37  ;;  %v5900_v37 = vld [vmem:[#allocation10_spill] sm:$0xff]  ;;  %v5915_v20 = vld [vmem:[#allocation25_spill] sm:$0xff] }
 0x381   :  { %v1735_v26 = vsel %vm1732_vm13, %v1734_v5, %v1730_v48  ;;  %v5901_v5 = vld [vmem:[#allocation11_spill] sm:$0xff]  ;;  %v5903_v48 = vld [vmem:[#allocation13_spill] sm:$0xff] }
 0x382   :  { %v3843_v44 = vpop.eup %3842  ;;  %v1778_v14 = vmul.f32 %v1735_v26, %v4937_v45  ;;  %v5906_v26 = vld [vmem:[#allocation16_spill] sm:$0xff] }
 0x383   :  { %v3845_v32 = vpop.eup %3844  ;;  %v1785_v0 = vmul.f32 %v3843_v44, %v1760_v54  ;;  %v5907_v44 = vld [vmem:[#allocation17_spill] sm:$0xff]  ;;  %v5909_v54 = vld [vmem:[#allocation19_spill] sm:$0xff] }
 0x384   :  { %v5082_v31 = vadd.f32 %v1780_v9, %v1778_v14  ;;  %v1763_v57 = vmul.f32 %v3845_v32, %v1746_v36  ;;  %vm1768_vm15 = vweird.f32 %v3845_v32  ;;  %v3709_v36 = vld [vmem:[%s5634_s0 + $0x18] sm:$0xff]  ;;  %v5904_v9 = vld [vmem:[#allocation14_spill] sm:$0xff] }
 0x385   :  { %v1787_v63 = vpack.c.bf16 %v1785_v0, %v1785_v0  ;;  %vm1769_vm2 = vmor %vm1767_vm1, %vm1768_vm15  ;;  %v5908_v14 = vld [vmem:[#allocation18_spill] sm:$0xff] }
 0x386   :  { %3846 = vtanh.f32 %v5082_v31  ;;  %v1764_v46 = vsub.f32 1.0, %v1763_v57  ;;  %v5912_v57 = vld [vmem:[#allocation22_spill] sm:$0xff] }
 0x387   :  { %3516 = vst.msk [vmem:[%s5639_s5 + $0x18] sm:$0xf] %vm765_vm6, %v1787_v63 }
 0x388   :  { %v1765_v49 = vmul.f32 %v3845_v32, %v1764_v46  ;;  %3518 = vst.msk [vmem:[%s5639_s5 + $0x20] sm:$0xf] %vm769_vm7, %v1787_v63  ;;  %v5913_v63 = vld [vmem:[#allocation23_spill] sm:$0xff]  ;;  %v5914_v46 = vld [vmem:[#allocation24_spill] sm:$0xff] }
 0x38a   :  { %v1766_v45 = vadd.f32 %v3845_v32, %v1765_v49  ;;  %v5916_v49 = vld [vmem:[#allocation26_spill] sm:$0xff] }
 0x38c   :  { %v3847_v42 = vpop.eup %3846  ;;  %v1770_v62 = vsel %vm1769_vm2, %v3845_v32, %v1766_v45  ;;  %v5910_v32 = vld [vmem:[#allocation20_spill] sm:$0xff] }
 0x38d   :  { %v1775_v6 = vsel %vm1772_vm3, %v1774_v58, %v1770_v62  ;;  %v5918_v45 = vld [vmem:[#allocation28_spill] sm:$0xff]  ;;  %v5919_v58 = vld [vmem:[#allocation29_spill] sm:$0xff]  ;;  %v5921_v62 = vld [vmem:[#allocation31_spill] sm:$0xff] }
 0x38e   :  { %v1786_v18 = vmul.f32 %v3847_v42, %v1775_v6  ;;  %v5920_v42 = vld [vmem:[#allocation30_spill] sm:$0xff]  ;;  %v5922_v6 = vld [vmem:[#allocation32_spill] sm:$0xff] }
 0x390   :  { %v1788_v47 = vpack.c.bf16 %v1786_v18, %v1786_v18  ;;  %v1795_v13 = vpack.c.bf16 %v1786_v18, %v1785_v0  ;;  %v5911_v0 = vld [vmem:[#allocation21_spill] sm:$0xff] }
 0x391   :  { %v5923_v18 = vld [vmem:[#allocation33_spill] sm:$0xff] }
 0x392   :  { %3517 = vst.msk [vmem:[%s5639_s5 + $0x1c] sm:$0xf] %vm765_vm6, %v1788_v47  ;;  %1804 = vmatmul.bf16.vlgmr.msra.gmra.mxu0 %v1795_v13  ;;  %1818 = vmatmul.bf16.vlgmr.msra.gmra.mxu1 %v1795_v13 }
 0x393   :  { %3519 = vst.msk [vmem:[%s5639_s5 + $0x24] sm:$0xf] %vm769_vm7, %v1788_v47  ;;  %1832 = vmatmul.bf16.vlgmr.msra.gmra.mxu2 %v1795_v13  ;;  %1846 = vmatmul.bf16.vlgmr.msra.gmra.mxu3 %v1795_v13  ;;  %v5924_v47 = vld [vmem:[#allocation34_spill] sm:$0xff]  ;;  %v5925_v13 = vld [vmem:[#allocation35_spill] sm:$0xff] }
 0x394   :  { %1932 = vmatpush.bf16.msra.mxu0 %v5781_v23  ;;  %1946 = vmatpush.bf16.msra.mxu1 %v5782_v11 }
 0x395   :  { %1960 = vmatpush.bf16.msra.mxu2 %v5783_v10  ;;  %1974 = vmatpush.bf16.msra.mxu3 %v5784_v59 }
 0x398   :  { %1933 = vmatpush.bf16.msra.mxu0 %v4435_v35  ;;  %1947 = vmatpush.bf16.msra.mxu1 %v5785_v2 }
 0x399   :  { %1961 = vmatpush.bf16.msra.mxu2 %v5786_v15  ;;  %1975 = vmatpush.bf16.msra.mxu3 %v5787_v19 }
 0x39c   :  { %1934 = vmatpush.bf16.msra.mxu0 %v4475_v30  ;;  %1948 = vmatpush.bf16.msra.mxu1 %v4479_v1 }
 0x39d   :  { %1962 = vmatpush.bf16.msra.mxu2 %v4481_v55  ;;  %1976 = vmatpush.bf16.msra.mxu3 %v4493_v39 }
 0x3a0   :  { %1935 = vmatpush.bf16.msra.mxu0 %v4511_v24  ;;  %1949 = vmatpush.bf16.msra.mxu1 %v4515_v61 }
 0x3a1   :  { %1963 = vmatpush.bf16.msra.mxu2 %v4517_v41  ;;  %1977 = vmatpush.bf16.msra.mxu3 %v4520_v40 }
 0x3a2   :  { %3528 = vmatmul.msk.bf16.vlgmr.msrb.gmra.mxu0 %vm417_vm0, %v3709_v36  ;;  %3529 = vmatmul.msk.bf16.vlgmr.msrb.gmra.mxu1 %vm417_vm0, %v3709_v36 }
 0x3a3   :  { %3530 = vmatmul.msk.bf16.vlgmr.msrb.gmra.mxu2 %vm417_vm0, %v3709_v36  ;;  %3531 = vmatmul.msk.bf16.vlgmr.msrb.gmra.mxu3 %vm417_vm0, %v3709_v36  ;;  %v5926_v36 = vld [vmem:[#allocation36_spill] sm:$0xff] }
 0x3a4   :  { %2133 = vmatpush.bf16.msrb.mxu0 %v4048_v3  ;;  %2147 = vmatpush.bf16.msrb.mxu1 %v4059_v7 }
 0x3a5   :  { %2161 = vmatpush.bf16.msrb.mxu2 %v4061_v8  ;;  %2175 = vmatpush.bf16.msrb.mxu3 %v4073_v12 }
 0x3a8   :  { %2134 = vmatpush.bf16.msrb.mxu0 %v4086_v16  ;;  %2148 = vmatpush.bf16.msrb.mxu1 %v4088_v17 }
 0x3a9   :  { %2162 = vmatpush.bf16.msrb.mxu2 %v4100_v21  ;;  %2176 = vmatpush.bf16.msrb.mxu3 %v4111_v25 }
 0x3ac   :  { %2135 = vmatpush.bf16.msrb.mxu0 %v4123_v29  ;;  %2149 = vmatpush.bf16.msrb.mxu1 %v5895_v38 }
 0x3ad   :  { %2163 = vmatpush.bf16.msrb.mxu2 %v5896_v34  ;;  %2177 = vmatpush.bf16.msrb.mxu3 %v5897_v33 }
 0x3b0   :  { %2136 = vmatpush.bf16.msrb.mxu0 %v5898_v43  ;;  %2150 = vmatpush.bf16.msrb.mxu1 %v5899_v28 }
 0x3b1   :  { %2164 = vmatpush.bf16.msrb.mxu2 %v5900_v37  ;;  %2178 = vmatpush.bf16.msrb.mxu3 %v5901_v5 }
 0x3b2   :  { %3536 = vmatmul.msk.bf16.vlgmr.msra.gmra.mxu0 %vm417_vm0, %v3708_v51  ;;  %3537 = vmatmul.msk.bf16.vlgmr.msra.gmra.mxu1 %vm417_vm0, %v3708_v51 }
 0x3b3   :  { %3538 = vmatmul.msk.bf16.vlgmr.msra.gmra.mxu2 %vm417_vm0, %v3708_v51  ;;  %3539 = vmatmul.msk.bf16.vlgmr.msra.gmra.mxu3 %vm417_vm0, %v3708_v51  ;;  %v5927_v51 = vld [vmem:[#allocation37_spill] sm:$0xff] }
 0x3b4   :  { %2137 = vmatpush.bf16.msrb.mxu0 %v5902_v50  ;;  %2151 = vmatpush.bf16.msrb.mxu1 %v5903_v48 }
 0x3b5   :  { %2165 = vmatpush.bf16.msrb.mxu2 %v5904_v9  ;;  %2179 = vmatpush.bf16.msrb.mxu3 %v5905_v56 }
 0x3b8   :  { %2138 = vmatpush.bf16.msrb.mxu0 %v5906_v26  ;;  %2152 = vmatpush.bf16.msrb.mxu1 %v5907_v44 }
 0x3b9   :  { %2166 = vmatpush.bf16.msrb.mxu2 %v5908_v14  ;;  %2180 = vmatpush.bf16.msrb.mxu3 %v5909_v54 }
 0x3bc   :  { %2139 = vmatpush.bf16.msrb.mxu0 %v5910_v32  ;;  %2153 = vmatpush.bf16.msrb.mxu1 %v5911_v0 }
 0x3bd   :  { %2167 = vmatpush.bf16.msrb.mxu2 %v5912_v57  ;;  %2181 = vmatpush.bf16.msrb.mxu3 %v5913_v63 }
 0x3c0   :  { %2140 = vmatpush.bf16.msrb.mxu0 %v5914_v46  ;;  %2154 = vmatpush.bf16.msrb.mxu1 %v5915_v20 }
 0x3c1   :  { %2168 = vmatpush.bf16.msrb.mxu2 %v5916_v49  ;;  %2182 = vmatpush.bf16.msrb.mxu3 %v5917_v60  ;;  %v5928_v60 = vld [vmem:[#allocation38_spill] sm:$0xff] }
 0x3c4   :  { %2205 = vmatpush.bf16.msra.mxu0 %v5918_v45  ;;  %2219 = vmatpush.bf16.msra.mxu1 %v5919_v58  ;;  %v5929_v45 = vld [vmem:[#allocation39_spill] sm:$0xff]  ;;  %v5930_v58 = vld [vmem:[#allocation40_spill] sm:$0xff] }
 0x3c5   :  { %2233 = vmatpush.bf16.msra.mxu2 %v5920_v42  ;;  %2247 = vmatpush.bf16.msra.mxu3 %v5921_v62  ;;  %v5931_v42 = vld [vmem:[#allocation41_spill] sm:$0xff]  ;;  %v5932_v62 = vld [vmem:[#allocation44_spill] sm:$0xff] }
 0x3c8   :  { %2206 = vmatpush.bf16.msra.mxu0 %v5922_v6  ;;  %2220 = vmatpush.bf16.msra.mxu1 %v5923_v18  ;;  %v5933_v6 = vld [vmem:[#allocation45_spill] sm:$0xff] }
 0x3c9   :  { %2234 = vmatpush.bf16.msra.mxu2 %v5924_v47  ;;  %2248 = vmatpush.bf16.msra.mxu3 %v5925_v13 }
 0x3cc   :  { %2207 = vmatpush.bf16.msra.mxu0 %v5926_v36  ;;  %2221 = vmatpush.bf16.msra.mxu1 %v5927_v51 }
 0x3cd   :  { %2235 = vmatpush.bf16.msra.mxu2 %v5928_v60  ;;  %2249 = vmatpush.bf16.msra.mxu3 %v5929_v45 }
 0x3d0   :  { %2208 = vmatpush.bf16.msra.mxu0 %v5930_v58  ;;  %2222 = vmatpush.bf16.msra.mxu1 %v5931_v42 }
 0x3d1   :  { %2236 = vmatpush.bf16.msra.mxu2 %v5932_v62  ;;  %2250 = vmatpush.bf16.msra.mxu3 %v5933_v6 }
 0x40f   :  { %v1805_v18 = vpop.f32.mrf.mxu0  ;;  %v1819_v47 = vpop.f32.mrf.mxu1 }
 0x416   :  { %v1833_v49 = vpop.f32.mrf.mxu2  ;;  %v1847_v13 = vpop.f32.mrf.mxu3 }
 0x417   :  { %v1807_v20 = vpop.f32.mrf.mxu0  ;;  %v1821_v36 = vpop.f32.mrf.mxu1 }
 0x41e   :  { %v5179_v46 = vpop.f32.mrf.mxu2  ;;  %v1849_v51 = vpop.f32.mrf.mxu3 }
 0x41f   :  { %v1873_v60 = vpop.f32.mrf.mxu0  ;;  %v1887_v63 = vpop.f32.mrf.mxu1 }
 0x426   :  { %v1901_v45 = vpop.f32.mrf.mxu2  ;;  %v1915_v57 = vpop.f32.mrf.mxu3 }
 0x427   :  { %v1875_v58 = vpop.f32.mrf.mxu0  ;;  %v1889_v0 = vpop.f32.mrf.mxu1 }
 0x42e   :  { %v1903_v42 = vpop.f32.mrf.mxu2  ;;  %v1917_v32 = vpop.f32.mrf.mxu3 }
 0x42f   :  { %v1937_v62 = vpop.f32.mrf.mxu0  ;;  %v1951_v54 = vpop.f32.mrf.mxu1 }
 0x430   :  { %v1938_v6 = vadd.f32 %v1937_v62, %v1873_v60  ;;  %v1952_v14 = vadd.f32 %v1951_v54, %v1887_v63 }
 0x432   :  { %v1984_v44 = vadd.f32 %v1938_v6, %v4586_v22  ;;  %v1985_v26 = vadd.f32 %v1952_v14, %v4588_v4 }
 0x434   :  { %v1992_v56 = vadd.f32 %v1984_v44, %v1805_v18  ;;  %v1993_v9 = vadd.f32 %v1985_v26, %v1819_v47 }
 0x436   :  { %v3540_v48 = vmul.f32 -1.442695, %v1992_v56  ;;  %v3542_v50 = vmul.f32 -1.442695, %v1993_v9  ;;  %v1965_v5 = vpop.f32.mrf.mxu2  ;;  %v1979_v37 = vpop.f32.mrf.mxu3 }
 0x437   :  { %v1980_v28 = vadd.f32 %v1979_v37, %v1915_v57  ;;  %v1939_v43 = vpop.f32.mrf.mxu0  ;;  %v1953_v33 = vpop.f32.mrf.mxu1  ;;  %v1966_v14 = vadd.f32 %v1965_v5, %v1901_v45 }
 0x438   :  { %3848 = vpow2.f32 %v3540_v48  ;;  %v1940_v34 = vadd.f32 %v1939_v43, %v1875_v58  ;;  %v1954_v38 = vadd.f32 %v1953_v33, %v1889_v0 }
 0x439   :  { %3850 = vpow2.f32 %v3542_v50  ;;  %v1987_v60 = vadd.f32 %v1980_v28, %v4592_v27  ;;  %v1986_v43 = vadd.f32 %v1966_v14, %v4596_v52 }
 0x43a   :  { %v1988_v54 = vadd.f32 %v1940_v34, %v4586_v22  ;;  %v1989_v63 = vadd.f32 %v1954_v38, %v4588_v4 }
 0x43b   :  { %v1995_v44 = vadd.f32 %v1987_v60, %v1847_v13  ;;  %v1994_v38 = vadd.f32 %v1986_v43, %v1833_v49 }
 0x43c   :  { %v1996_v26 = vadd.f32 %v1988_v54, %v1807_v20  ;;  %v1997_v56 = vadd.f32 %v1989_v63, %v1821_v36 }
 0x43d   :  { %v3544_v9 = vmul.f32 -1.442695, %v1995_v44 }
 0x43e   :  { %v3849_v62 = vpop.eup %3848  ;;  %v3541_v6 = vmul.f32 -1.442695, %v1996_v26  ;;  %v1981_v37 = vpop.f32.mrf.mxu3  ;;  %v3543_v33 = vmul.f32 -1.442695, %v1997_v56 }
 0x43f   :  { %v3851_v57 = vpop.eup %3850  ;;  %v2006_v18 = vadd.f32 1.0, %v3849_v62  ;;  %3852 = vpow2.f32 %v3544_v9  ;;  %v1982_v28 = vadd.f32 %v1981_v37, %v1917_v32  ;;  %v1967_v34 = vpop.f32.mrf.mxu2 }
 0x440   :  { %v2044_v50 = vadd.f32 1.0, %v3851_v57  ;;  %3854 = vpow2.f32 %v3541_v6  ;;  %v1968_v5 = vadd.f32 %v1967_v34, %v1903_v42 }
 0x441   :  { %3856 = vrcp.f32 %v2006_v18  ;;  %v1991_v48 = vadd.f32 %v1982_v28, %v4592_v27  ;;  %v2017_v63 = vand.u32 2147483647, %v2006_v18  ;;  %v2019_v14 = vand.u32 2147483648, %v2006_v18 }
 0x442   :  { %3858 = vrcp.f32 %v2044_v50  ;;  %v1990_v32 = vadd.f32 %v1968_v5, %v4596_v52  ;;  %v2057_v56 = vand.u32 2147483648, %v2044_v50  ;;  %v2055_v9 = vand.u32 2147483647, %v2044_v50 }
 0x443   :  { %3860 = vpow2.f32 %v3543_v33  ;;  %v1999_v13 = vadd.f32 %v1991_v48, %v1849_v51  ;;  %vm2013_vm8 = vweird.f32 %v2006_v18  ;;  %vm2051_vm9 = vweird.f32 %v2044_v50 }
 0x444   :  { %3862 = vtanh.f32 %v1994_v38  ;;  %v1998_v6 = vadd.f32 %v1990_v32, %v5179_v46  ;;  %vm2018_vm10 = vcmp.eq.f32.partialorder %v2017_v63, 8.507059e+37  ;;  %v2058_v34 = vor.u32 1.1754944e-38, %v2057_v56 }
 0x445   :  { %v3853_v0 = vpop.eup %3852  ;;  %v3545_v62 = vmul.f32 -1.442695, %v1999_v13  ;;  %v2020_v38 = vor.u32 1.1754944e-38, %v2019_v14  ;;  %vm2056_vm13 = vcmp.eq.f32.partialorder %v2055_v9, 8.507059e+37 }
 0x446   :  { %v3855_v20 = vpop.eup %3854  ;;  %v5188_v45 = vadd.f32 1.0, %v3853_v0 }
 0x447   :  { %v3857_v58 = vpop.eup %3856  ;;  %v5190_v47 = vadd.f32 1.0, %v3855_v20 }
 0x448   :  { %v3859_v36 = vpop.eup %3858  ;;  %v2009_v60 = vmul.f32 %v3857_v58, %v2006_v18  ;;  %3864 = vrcp.f32 %v5188_v45  ;;  %vm2014_vm4 = vweird.f32 %v3857_v58  ;;  %vm2091_vm14 = vweird.f32 %v5188_v45 }
 0x449   :  { %v3861_v49 = vpop.eup %3860  ;;  %v2047_v54 = vmul.f32 %v3859_v36, %v2044_v50  ;;  %3866 = vrcp.f32 %v5190_v47  ;;  %vm2052_vm5 = vweird.f32 %v3859_v36  ;;  %vm2015_vm11 = vmor %vm2013_vm8, %vm2014_vm4  ;;  %vm2028_vm15 = vweird.f32 %v5190_v47 }
 0x44a   :  { %v2010_v42 = vsub.f32 1.0, %v2009_v60  ;;  %v5195_v44 = vadd.f32 1.0, %v3861_v49  ;;  %v3863_v37 = vpop.eup %3862  ;;  %vm2053_vm12 = vmor %vm2051_vm9, %vm2052_vm5 }
 0x44b   :  { %v2048_v26 = vsub.f32 1.0, %v2047_v54  ;;  %v2034_v54 = vand.u32 2147483648, %v5190_v47 }
 0x44c   :  { %v2011_v51 = vmul.f32 %v3857_v58, %v2010_v42  ;;  %3868 = vrcp.f32 %v5195_v44  ;;  %vm2066_vm8 = vweird.f32 %v5195_v44 }
 0x44d   :  { %v2049_v57 = vmul.f32 %v3859_v36, %v2048_v26  ;;  %3870 = vpow2.f32 %v3545_v62 }
 0x44e   :  { %v5199_v43 = vpop.eup %3864  ;;  %v2012_v33 = vadd.f32 %v3857_v58, %v2011_v51  ;;  %3872 = vtanh.f32 %v1998_v6  ;;  %v2072_v51 = vand.u32 2147483648, %v5195_v44 }
 0x44f   :  { %v3867_v28 = vpop.eup %3866  ;;  %v2050_v5 = vadd.f32 %v3859_v36, %v2049_v57  ;;  %v2087_v48 = vmul.f32 %v5199_v43, %v5188_v45  ;;  %v2035_v57 = vor.u32 1.1754944e-38, %v2034_v54  ;;  %vm2092_vm2 = vweird.f32 %v5199_v43 }
 0x450   :  { %v2016_v46 = vsel %vm2015_vm11, %v3857_v58, %v2012_v33  ;;  %v2024_v0 = vmul.f32 %v3867_v28, %v5190_v47  ;;  %v2097_v58 = vand.u32 2147483648, %v5188_v45  ;;  %vm2029_vm1 = vweird.f32 %v3867_v28  ;;  %vm2093_vm9 = vmor %vm2091_vm14, %vm2092_vm2 }
 0x451   :  { %v2021_v18 = vsel %vm2018_vm10, %v2020_v38, %v2016_v46  ;;  %v2054_v20 = vsel %vm2053_vm12, %v3859_v36, %v2050_v5  ;;  %v2088_v50 = vsub.f32 1.0, %v2087_v48  ;;  %v2032_v36 = vand.u32 2147483647, %v5190_v47  ;;  %vm2030_vm4 = vmor %vm2028_vm15, %vm2029_vm1 }
 0x452   :  { %v3869_v13 = vpop.eup %3868  ;;  %v2059_v60 = vsel %vm2056_vm13, %v2058_v34, %v2054_v20  ;;  %v2118_v32 = vmul.f32 %v3863_v37, %v2021_v18  ;;  %v2025_v49 = vsub.f32 1.0, %v2024_v0  ;;  %v2070_v38 = vand.u32 2147483647, %v5195_v44 }
 0x453   :  { %v2116_v42 = vmul.f32 %v2059_v60, %v5067_v53  ;;  %v2089_v63 = vmul.f32 %v5199_v43, %v2088_v50  ;;  %v2062_v14 = vmul.f32 %v3869_v13, %v5195_v44  ;;  %v3871_v26 = vpop.eup %3870  ;;  %vm2067_vm3 = vweird.f32 %v3869_v13 }
 0x454   :  { %v2026_v56 = vmul.f32 %v3867_v28, %v2025_v49  ;;  %v2085_v6 = vadd.f32 1.0, %v3871_v26  ;;  %v3873_v53 = vpop.eup %3872  ;;  %vm2033_vm5 = vcmp.eq.f32.partialorder %v2032_v36, 8.507059e+37  ;;  %v2095_v48 = vand.u32 2147483647, %v5188_v45  ;;  %vm2068_vm10 = vmor %vm2066_vm8, %vm2067_vm3 }
 0x455   :  { %v5212_v9 = vadd.f32 %v2118_v32, %v2116_v42  ;;  %v2063_v62 = vsub.f32 1.0, %v2062_v14  ;;  %v2090_v33 = vadd.f32 %v5199_v43, %v2089_v63  ;;  %v2073_v18 = vor.u32 1.1754944e-38, %v2072_v51 }
 0x456   :  { %v2027_v37 = vadd.f32 %v3867_v28, %v2026_v56  ;;  %vm2071_vm11 = vcmp.eq.f32.partialorder %v2070_v38, 8.507059e+37  ;;  %v2098_v60 = vor.u32 1.1754944e-38, %v2097_v58  ;;  %vm2096_vm12 = vcmp.eq.f32.partialorder %v2095_v48, 8.507059e+37  ;;  %v5936_v38 = vld [vmem:[#allocation7_spill] sm:$0xff]  ;;  %v5937_v48 = vld [vmem:[#allocation8_spill] sm:$0xff] }
 0x457   :  { %3874 = vtanh.f32 %v5212_v9  ;;  %v2064_v34 = vmul.f32 %v3869_v13, %v2063_v62  ;;  %v2094_v20 = vsel %vm2093_vm9, %v5199_v43, %v2090_v33  ;;  %v2112_v43 = vand.u32 2147483648, %v2085_v6  ;;  %v5934_v33 = vld [vmem:[#allocation5_spill] sm:$0xff] }
 0x458   :  { %v2031_v5 = vsel %vm2030_vm4, %v3867_v28, %v2027_v37  ;;  %3876 = vrcp.f32 %v2085_v6  ;;  %v2099_v54 = vsel %vm2096_vm12, %v2098_v60, %v2094_v20  ;;  %v2110_v58 = vand.u32 2147483647, %v2085_v6  ;;  %v5941_v20 = vld [vmem:[#allocation12_spill] sm:$0xff]  ;;  %v5944_v60 = vld [vmem:[#allocation15_spill] sm:$0xff] }
 0x459   :  { %v2036_v46 = vsel %vm2033_vm5, %v2035_v57, %v2031_v5  ;;  %v2065_v0 = vadd.f32 %v3869_v13, %v2064_v34  ;;  %vm2106_vm14 = vweird.f32 %v2085_v6  ;;  %v2113_v56 = vor.u32 1.1754944e-38, %v2112_v43  ;;  %v5935_v34 = vld [vmem:[#allocation6_spill] sm:$0xff]  ;;  %v5954_v43 = vld [vmem:[#allocation25_spill] sm:$0xff] }
 0x45a   :  { %v2119_v50 = vmul.f32 %v3873_v53, %v2036_v46  ;;  %vm2111_vm1 = vcmp.eq.f32.partialorder %v2110_v58, 8.507059e+37  ;;  %v3710_v5 = vld [vmem:[%s5634_s0 + $0x28] sm:$0xff]  ;;  %v5938_v46 = vld [vmem:[#allocation9_spill] sm:$0xff]  ;;  %v5956_v58 = vld [vmem:[#allocation27_spill] sm:$0xff] }
 0x45b   :  { %v2069_v47 = vsel %vm2068_vm10, %v3869_v13, %v2065_v0  ;;  %v5939_v0 = vld [vmem:[#allocation10_spill] sm:$0xff] }
 0x45c   :  { %v2074_v28 = vsel %vm2071_vm11, %v2073_v18, %v2069_v47  ;;  %v5940_v18 = vld [vmem:[#allocation11_spill] sm:$0xff]  ;;  %v5942_v47 = vld [vmem:[#allocation13_spill] sm:$0xff] }
 0x45d   :  { %v3875_v32 = vpop.eup %3874  ;;  %v2117_v49 = vmul.f32 %v2074_v28, %v5082_v31  ;;  %v5945_v28 = vld [vmem:[#allocation16_spill] sm:$0xff] }
 0x45e   :  { %v3877_v44 = vpop.eup %3876  ;;  %v2124_v42 = vmul.f32 %v3875_v32, %v2099_v54  ;;  %v5946_v32 = vld [vmem:[#allocation17_spill] sm:$0xff]  ;;  %v5948_v54 = vld [vmem:[#allocation19_spill] sm:$0xff] }
 0x45f   :  { %v5227_v63 = vadd.f32 %v2119_v50, %v2117_v49  ;;  %v2102_v45 = vmul.f32 %v3877_v44, %v2085_v6  ;;  %vm2107_vm13 = vweird.f32 %v3877_v44  ;;  %v3711_v6 = vld [vmem:[%s5634_s0 + $0x10] sm:$0xff]  ;;  %v5943_v50 = vld [vmem:[#allocation14_spill] sm:$0xff] }
 0x460   :  { %v2126_v14 = vpack.c.bf16 %v2124_v42, %v2124_v42  ;;  %vm2108_vm15 = vmor %vm2106_vm14, %vm2107_vm13  ;;  %v5947_v49 = vld [vmem:[#allocation18_spill] sm:$0xff] }
 0x461   :  { %3878 = vtanh.f32 %v5227_v63  ;;  %v2103_v26 = vsub.f32 1.0, %v2102_v45  ;;  %v5951_v45 = vld [vmem:[#allocation22_spill] sm:$0xff] }
 0x462   :  { %3546 = vst.msk [vmem:[%s5639_s5 + $0x20] sm:$0xf] %vm765_vm6, %v2126_v14 }
 0x463   :  { %v2104_v13 = vmul.f32 %v3877_v44, %v2103_v26  ;;  %3548 = vst.msk [vmem:[%s5639_s5 + $0x18] sm:$0xf] %vm769_vm7, %v2126_v14  ;;  %v5952_v14 = vld [vmem:[#allocation23_spill] sm:$0xff]  ;;  %v5953_v26 = vld [vmem:[#allocation24_spill] sm:$0xff] }
 0x465   :  { %v2105_v31 = vadd.f32 %v3877_v44, %v2104_v13  ;;  %v5955_v13 = vld [vmem:[#allocation26_spill] sm:$0xff] }
 0x467   :  { %v3879_v36 = vpop.eup %3878  ;;  %v2109_v62 = vsel %vm2108_vm15, %v3877_v44, %v2105_v31  ;;  %v5949_v44 = vld [vmem:[#allocation20_spill] sm:$0xff] }
 0x468   :  { %v2114_v51 = vsel %vm2111_vm1, %v2113_v56, %v2109_v62  ;;  %v5957_v31 = vld [vmem:[#allocation28_spill] sm:$0xff]  ;;  %v5958_v56 = vld [vmem:[#allocation29_spill] sm:$0xff]  ;;  %v5960_v62 = vld [vmem:[#allocation31_spill] sm:$0xff] }
 0x469   :  { %v2125_v53 = vmul.f32 %v3879_v36, %v2114_v51  ;;  %v5959_v36 = vld [vmem:[#allocation30_spill] sm:$0xff]  ;;  %v5961_v51 = vld [vmem:[#allocation32_spill] sm:$0xff] }
 0x46b   :  { %v2127_v37 = vpack.c.bf16 %v2125_v53, %v2125_v53  ;;  %v2132_v57 = vpack.c.bf16 %v2125_v53, %v2124_v42  ;;  %v5950_v42 = vld [vmem:[#allocation21_spill] sm:$0xff] }
 0x46c   :  { %v5962_v53 = vld [vmem:[#allocation33_spill] sm:$0xff] }
 0x46d   :  { %3547 = vst.msk [vmem:[%s5639_s5 + $0x24] sm:$0xf] %vm765_vm6, %v2127_v37  ;;  %2141 = vmatmul.bf16.vlgmr.msrb.gmra.mxu0 %v2132_v57  ;;  %2155 = vmatmul.bf16.vlgmr.msrb.gmra.mxu1 %v2132_v57 }
 0x46e   :  { %3549 = vst.msk [vmem:[%s5639_s5 + $0x1c] sm:$0xf] %vm769_vm7, %v2127_v37  ;;  %2169 = vmatmul.bf16.vlgmr.msrb.gmra.mxu2 %v2132_v57  ;;  %2183 = vmatmul.bf16.vlgmr.msrb.gmra.mxu3 %v2132_v57  ;;  %v5963_v37 = vld [vmem:[#allocation34_spill] sm:$0xff]  ;;  %v5964_v57 = vld [vmem:[#allocation35_spill] sm:$0xff] }
 0x46f   :  { %2269 = vmatpush.bf16.msrb.mxu0 %v5781_v23  ;;  %2283 = vmatpush.bf16.msrb.mxu1 %v5782_v11 }
 0x470   :  { %2297 = vmatpush.bf16.msrb.mxu2 %v5783_v10  ;;  %2311 = vmatpush.bf16.msrb.mxu3 %v5784_v59 }
 0x473   :  { %2270 = vmatpush.bf16.msrb.mxu0 %v4435_v35  ;;  %2284 = vmatpush.bf16.msrb.mxu1 %v5785_v2 }
 0x474   :  { %2298 = vmatpush.bf16.msrb.mxu2 %v5786_v15  ;;  %2312 = vmatpush.bf16.msrb.mxu3 %v5787_v19 }
 0x477   :  { %2271 = vmatpush.bf16.msrb.mxu0 %v4475_v30  ;;  %2285 = vmatpush.bf16.msrb.mxu1 %v4479_v1 }
 0x478   :  { %2299 = vmatpush.bf16.msrb.mxu2 %v4481_v55  ;;  %2313 = vmatpush.bf16.msrb.mxu3 %v4493_v39 }
 0x47b   :  { %2272 = vmatpush.bf16.msrb.mxu0 %v4511_v24  ;;  %2286 = vmatpush.bf16.msrb.mxu1 %v4515_v61 }
 0x47c   :  { %2300 = vmatpush.bf16.msrb.mxu2 %v4517_v41  ;;  %2314 = vmatpush.bf16.msrb.mxu3 %v4520_v40 }
 0x47d   :  { %3558 = vmatmul.msk.bf16.vlgmr.msra.gmra.mxu0 %vm417_vm0, %v3711_v6  ;;  %3559 = vmatmul.msk.bf16.vlgmr.msra.gmra.mxu1 %vm417_vm0, %v3711_v6 }
 0x47e   :  { %3560 = vmatmul.msk.bf16.vlgmr.msra.gmra.mxu2 %vm417_vm0, %v3711_v6  ;;  %3561 = vmatmul.msk.bf16.vlgmr.msra.gmra.mxu3 %vm417_vm0, %v3711_v6  ;;  %v5965_v6 = vld [vmem:[#allocation36_spill] sm:$0xff] }
 0x47f   :  { %2470 = vmatpush.bf16.msra.mxu0 %v4048_v3  ;;  %2484 = vmatpush.bf16.msra.mxu1 %v4059_v7 }
 0x480   :  { %2498 = vmatpush.bf16.msra.mxu2 %v4061_v8  ;;  %2512 = vmatpush.bf16.msra.mxu3 %v4073_v12 }
 0x483   :  { %2471 = vmatpush.bf16.msra.mxu0 %v4086_v16  ;;  %2485 = vmatpush.bf16.msra.mxu1 %v4088_v17 }
 0x484   :  { %2499 = vmatpush.bf16.msra.mxu2 %v4100_v21  ;;  %2513 = vmatpush.bf16.msra.mxu3 %v4111_v25 }
 0x487   :  { %2472 = vmatpush.bf16.msra.mxu0 %v4123_v29  ;;  %2486 = vmatpush.bf16.msra.mxu1 %v5934_v33 }
 0x488   :  { %2500 = vmatpush.bf16.msra.mxu2 %v5935_v34  ;;  %2514 = vmatpush.bf16.msra.mxu3 %v5936_v38 }
 0x48b   :  { %2473 = vmatpush.bf16.msra.mxu0 %v5937_v48  ;;  %2487 = vmatpush.bf16.msra.mxu1 %v5938_v46 }
 0x48c   :  { %2501 = vmatpush.bf16.msra.mxu2 %v5939_v0  ;;  %2515 = vmatpush.bf16.msra.mxu3 %v5940_v18 }
 0x48d   :  { %3566 = vmatmul.msk.bf16.vlgmr.msrb.gmra.mxu0 %vm417_vm0, %v3710_v5  ;;  %3567 = vmatmul.msk.bf16.vlgmr.msrb.gmra.mxu1 %vm417_vm0, %v3710_v5 }
 0x48e   :  { %3568 = vmatmul.msk.bf16.vlgmr.msrb.gmra.mxu2 %vm417_vm0, %v3710_v5  ;;  %3569 = vmatmul.msk.bf16.vlgmr.msrb.gmra.mxu3 %vm417_vm0, %v3710_v5  ;;  %v5966_v5 = vld [vmem:[#allocation37_spill] sm:$0xff] }
 0x48f   :  { %2474 = vmatpush.bf16.msra.mxu0 %v5941_v20  ;;  %2488 = vmatpush.bf16.msra.mxu1 %v5942_v47 }
 0x490   :  { %2502 = vmatpush.bf16.msra.mxu2 %v5943_v50  ;;  %2516 = vmatpush.bf16.msra.mxu3 %v5944_v60 }
 0x493   :  { %2475 = vmatpush.bf16.msra.mxu0 %v5945_v28  ;;  %2489 = vmatpush.bf16.msra.mxu1 %v5946_v32 }
 0x494   :  { %2503 = vmatpush.bf16.msra.mxu2 %v5947_v49  ;;  %2517 = vmatpush.bf16.msra.mxu3 %v5948_v54 }
 0x497   :  { %2476 = vmatpush.bf16.msra.mxu0 %v5949_v44  ;;  %2490 = vmatpush.bf16.msra.mxu1 %v5950_v42 }
 0x498   :  { %2504 = vmatpush.bf16.msra.mxu2 %v5951_v45  ;;  %2518 = vmatpush.bf16.msra.mxu3 %v5952_v14 }
 0x49b   :  { %2477 = vmatpush.bf16.msra.mxu0 %v5953_v26  ;;  %2491 = vmatpush.bf16.msra.mxu1 %v5954_v43 }
 0x49c   :  { %2505 = vmatpush.bf16.msra.mxu2 %v5955_v13  ;;  %2519 = vmatpush.bf16.msra.mxu3 %v5956_v58  ;;  %v5967_v58 = vld [vmem:[#allocation38_spill] sm:$0xff] }
 0x49f   :  { %2542 = vmatpush.bf16.msrb.mxu0 %v5957_v31  ;;  %2556 = vmatpush.bf16.msrb.mxu1 %v5958_v56  ;;  %v5968_v31 = vld [vmem:[#allocation39_spill] sm:$0xff]  ;;  %v5969_v56 = vld [vmem:[#allocation40_spill] sm:$0xff] }
 0x4a0   :  { %2570 = vmatpush.bf16.msrb.mxu2 %v5959_v36  ;;  %2584 = vmatpush.bf16.msrb.mxu3 %v5960_v62  ;;  %v5970_v36 = vld [vmem:[#allocation41_spill] sm:$0xff]  ;;  %v5971_v62 = vld [vmem:[#allocation44_spill] sm:$0xff] }
 0x4a3   :  { %2543 = vmatpush.bf16.msrb.mxu0 %v5961_v51  ;;  %2557 = vmatpush.bf16.msrb.mxu1 %v5962_v53  ;;  %v5972_v51 = vld [vmem:[#allocation45_spill] sm:$0xff] }
 0x4a4   :  { %2571 = vmatpush.bf16.msrb.mxu2 %v5963_v37  ;;  %2585 = vmatpush.bf16.msrb.mxu3 %v5964_v57 }
 0x4a7   :  { %2544 = vmatpush.bf16.msrb.mxu0 %v5965_v6  ;;  %2558 = vmatpush.bf16.msrb.mxu1 %v5966_v5 }
 0x4a8   :  { %2572 = vmatpush.bf16.msrb.mxu2 %v5967_v58  ;;  %2586 = vmatpush.bf16.msrb.mxu3 %v5968_v31 }
 0x4ab   :  { %2545 = vmatpush.bf16.msrb.mxu0 %v5969_v56  ;;  %2559 = vmatpush.bf16.msrb.mxu1 %v5970_v36 }
 0x4ac   :  { %2573 = vmatpush.bf16.msrb.mxu2 %v5971_v62  ;;  %2587 = vmatpush.bf16.msrb.mxu3 %v5972_v51 }
 0x4ea   :  { %v2142_v53 = vpop.f32.mrf.mxu0  ;;  %v2156_v37 = vpop.f32.mrf.mxu1 }
 0x4f1   :  { %v2170_v13 = vpop.f32.mrf.mxu2  ;;  %v2184_v57 = vpop.f32.mrf.mxu3 }
 0x4f2   :  { %v2144_v43 = vpop.f32.mrf.mxu0  ;;  %v2158_v6 = vpop.f32.mrf.mxu1 }
 0x4f9   :  { %v5324_v26 = vpop.f32.mrf.mxu2  ;;  %v2186_v5 = vpop.f32.mrf.mxu3 }
 0x4fa   :  { %v2210_v58 = vpop.f32.mrf.mxu0  ;;  %v2224_v14 = vpop.f32.mrf.mxu1 }
 0x501   :  { %v2238_v31 = vpop.f32.mrf.mxu2  ;;  %v2252_v45 = vpop.f32.mrf.mxu3 }
 0x502   :  { %v2212_v56 = vpop.f32.mrf.mxu0  ;;  %v2226_v42 = vpop.f32.mrf.mxu1 }
 0x509   :  { %v2240_v36 = vpop.f32.mrf.mxu2  ;;  %v2254_v44 = vpop.f32.mrf.mxu3 }
 0x50a   :  { %v2274_v62 = vpop.f32.mrf.mxu0  ;;  %v2288_v54 = vpop.f32.mrf.mxu1 }
 0x50b   :  { %v2275_v51 = vadd.f32 %v2274_v62, %v2210_v58  ;;  %v2289_v49 = vadd.f32 %v2288_v54, %v2224_v14 }
 0x50d   :  { %v2321_v32 = vadd.f32 %v2275_v51, %v4586_v22  ;;  %v2322_v28 = vadd.f32 %v2289_v49, %v4588_v4 }
 0x50f   :  { %v2329_v60 = vadd.f32 %v2321_v32, %v2142_v53  ;;  %v2330_v50 = vadd.f32 %v2322_v28, %v2156_v37 }
 0x511   :  { %v3570_v47 = vmul.f32 -1.442695, %v2329_v60  ;;  %v3572_v20 = vmul.f32 -1.442695, %v2330_v50  ;;  %v2302_v18 = vpop.f32.mrf.mxu2  ;;  %v2316_v0 = vpop.f32.mrf.mxu3 }
 0x512   :  { %v2317_v46 = vadd.f32 %v2316_v0, %v2252_v45  ;;  %v2276_v48 = vpop.f32.mrf.mxu0  ;;  %v2290_v38 = vpop.f32.mrf.mxu1  ;;  %v2303_v49 = vadd.f32 %v2302_v18, %v2238_v31 }
 0x513   :  { %3880 = vpow2.f32 %v3570_v47  ;;  %v2277_v34 = vadd.f32 %v2276_v48, %v2212_v56  ;;  %v2291_v33 = vadd.f32 %v2290_v38, %v2226_v42 }
 0x514   :  { %3882 = vpow2.f32 %v3572_v20  ;;  %v2324_v58 = vadd.f32 %v2317_v46, %v4592_v27  ;;  %v2323_v48 = vadd.f32 %v2303_v49, %v4596_v52 }
 0x515   :  { %v2325_v54 = vadd.f32 %v2277_v34, %v4586_v22  ;;  %v2326_v14 = vadd.f32 %v2291_v33, %v4588_v4 }
 0x516   :  { %v2332_v32 = vadd.f32 %v2324_v58, %v2184_v57  ;;  %v2331_v33 = vadd.f32 %v2323_v48, %v2170_v13 }
 0x517   :  { %v2333_v28 = vadd.f32 %v2325_v54, %v2144_v43  ;;  %v2334_v60 = vadd.f32 %v2326_v14, %v2158_v6 }
 0x518   :  { %v3574_v50 = vmul.f32 -1.442695, %v2332_v32 }
 0x519   :  { %v3881_v62 = vpop.eup %3880  ;;  %v3571_v51 = vmul.f32 -1.442695, %v2333_v28  ;;  %v2318_v0 = vpop.f32.mrf.mxu3  ;;  %v3573_v38 = vmul.f32 -1.442695, %v2334_v60 }
 0x51a   :  { %v3883_v45 = vpop.eup %3882  ;;  %v2343_v53 = vadd.f32 1.0, %v3881_v62  ;;  %3884 = vpow2.f32 %v3574_v50  ;;  %v2319_v46 = vadd.f32 %v2318_v0, %v2254_v44  ;;  %v2304_v34 = vpop.f32.mrf.mxu2 }
 0x51b   :  { %v2381_v20 = vadd.f32 1.0, %v3883_v45  ;;  %3886 = vpow2.f32 %v3571_v51  ;;  %v2305_v18 = vadd.f32 %v2304_v34, %v2240_v36 }
 0x51c   :  { %3888 = vrcp.f32 %v2343_v53  ;;  %v2328_v47 = vadd.f32 %v2319_v46, %v4592_v27  ;;  %v2354_v14 = vand.u32 2147483647, %v2343_v53  ;;  %v2356_v49 = vand.u32 2147483648, %v2343_v53 }
 0x51d   :  { %3890 = vrcp.f32 %v2381_v20  ;;  %v2327_v44 = vadd.f32 %v2305_v18, %v4596_v52  ;;  %v2394_v60 = vand.u32 2147483648, %v2381_v20  ;;  %v2392_v50 = vand.u32 2147483647, %v2381_v20 }
 0x51e   :  { %3892 = vpow2.f32 %v3573_v38  ;;  %v2336_v57 = vadd.f32 %v2328_v47, %v2186_v5  ;;  %vm2350_vm4 = vweird.f32 %v2343_v53  ;;  %vm2388_vm5 = vweird.f32 %v2381_v20 }
 0x51f   :  { %3894 = vtanh.f32 %v2331_v33  ;;  %v2335_v51 = vadd.f32 %v2327_v44, %v5324_v26  ;;  %vm2355_vm8 = vcmp.eq.f32.partialorder %v2354_v14, 8.507059e+37  ;;  %v2395_v34 = vor.u32 1.1754944e-38, %v2394_v60 }
 0x520   :  { %v3885_v42 = vpop.eup %3884  ;;  %v3575_v62 = vmul.f32 -1.442695, %v2336_v57  ;;  %v2357_v33 = vor.u32 1.1754944e-38, %v2356_v49  ;;  %vm2393_vm11 = vcmp.eq.f32.partialorder %v2392_v50, 8.507059e+37 }
 0x521   :  { %v3887_v43 = vpop.eup %3886  ;;  %v5333_v31 = vadd.f32 1.0, %v3885_v42 }
 0x522   :  { %v3889_v56 = vpop.eup %3888  ;;  %v5335_v37 = vadd.f32 1.0, %v3887_v43 }
 0x523   :  { %v3891_v6 = vpop.eup %3890  ;;  %v2346_v58 = vmul.f32 %v3889_v56, %v2343_v53  ;;  %3896 = vrcp.f32 %v5333_v31  ;;  %vm2351_vm2 = vweird.f32 %v3889_v56  ;;  %vm2428_vm12 = vweird.f32 %v5333_v31 }
 0x524   :  { %v3893_v13 = vpop.eup %3892  ;;  %v2384_v54 = vmul.f32 %v3891_v6, %v2381_v20  ;;  %3898 = vrcp.f32 %v5335_v37  ;;  %vm2389_vm3 = vweird.f32 %v3891_v6  ;;  %vm2352_vm9 = vmor %vm2350_vm4, %vm2351_vm2  ;;  %vm2365_vm13 = vweird.f32 %v5335_v37 }
 0x525   :  { %v2347_v36 = vsub.f32 1.0, %v2346_v58  ;;  %v5340_v32 = vadd.f32 1.0, %v3893_v13  ;;  %v3895_v0 = vpop.eup %3894  ;;  %vm2390_vm10 = vmor %vm2388_vm5, %vm2389_vm3 }
 0x526   :  { %v2385_v28 = vsub.f32 1.0, %v2384_v54  ;;  %v2371_v54 = vand.u32 2147483648, %v5335_v37 }
 0x527   :  { %v2348_v5 = vmul.f32 %v3889_v56, %v2347_v36  ;;  %3900 = vrcp.f32 %v5340_v32  ;;  %vm2403_vm4 = vweird.f32 %v5340_v32 }
 0x528   :  { %v2386_v45 = vmul.f32 %v3891_v6, %v2385_v28  ;;  %3902 = vpow2.f32 %v3575_v62 }
 0x529   :  { %v5344_v48 = vpop.eup %3896  ;;  %v2349_v38 = vadd.f32 %v3889_v56, %v2348_v5  ;;  %3904 = vtanh.f32 %v2335_v51  ;;  %v2409_v5 = vand.u32 2147483648, %v5340_v32 }
 0x52a   :  { %v3899_v46 = vpop.eup %3898  ;;  %v2387_v18 = vadd.f32 %v3891_v6, %v2386_v45  ;;  %v2424_v47 = vmul.f32 %v5344_v48, %v5333_v31  ;;  %v2372_v45 = vor.u32 1.1754944e-38, %v2371_v54  ;;  %vm2429_vm15 = vweird.f32 %v5344_v48 }
 0x52b   :  { %v2353_v26 = vsel %vm2352_vm9, %v3889_v56, %v2349_v38  ;;  %v2361_v42 = vmul.f32 %v3899_v46, %v5335_v37  ;;  %v2434_v56 = vand.u32 2147483648, %v5333_v31  ;;  %vm2366_vm14 = vweird.f32 %v3899_v46  ;;  %vm2430_vm5 = vmor %vm2428_vm12, %vm2429_vm15 }
 0x52c   :  { %v2358_v53 = vsel %vm2355_vm8, %v2357_v33, %v2353_v26  ;;  %v2391_v43 = vsel %vm2390_vm10, %v3891_v6, %v2387_v18  ;;  %v2425_v20 = vsub.f32 1.0, %v2424_v47  ;;  %v2369_v6 = vand.u32 2147483647, %v5335_v37  ;;  %vm2367_vm2 = vmor %vm2365_vm13, %vm2366_vm14 }
 0x52d   :  { %v3901_v57 = vpop.eup %3900  ;;  %v2396_v58 = vsel %vm2393_vm11, %v2395_v34, %v2391_v43  ;;  %v2455_v44 = vmul.f32 %v3895_v0, %v2358_v53  ;;  %v2362_v13 = vsub.f32 1.0, %v2361_v42  ;;  %v2407_v33 = vand.u32 2147483647, %v5340_v32 }
 0x52e   :  { %v2453_v36 = vmul.f32 %v2396_v58, %v5212_v9  ;;  %v2426_v14 = vmul.f32 %v5344_v48, %v2425_v20  ;;  %v2399_v49 = vmul.f32 %v3901_v57, %v5340_v32  ;;  %v3903_v28 = vpop.eup %3902  ;;  %vm2404_vm1 = vweird.f32 %v3901_v57 }
 0x52f   :  { %v2363_v60 = vmul.f32 %v3899_v46, %v2362_v13  ;;  %v2422_v51 = vadd.f32 1.0, %v3903_v28  ;;  %v3905_v9 = vpop.eup %3904  ;;  %vm2370_vm3 = vcmp.eq.f32.partialorder %v2369_v6, 8.507059e+37  ;;  %v2432_v47 = vand.u32 2147483647, %v5333_v31  ;;  %vm2405_vm8 = vmor %vm2403_vm4, %vm2404_vm1 }
 0x530   :  { %v5357_v50 = vadd.f32 %v2455_v44, %v2453_v36  ;;  %v2400_v62 = vsub.f32 1.0, %v2399_v49  ;;  %v2427_v38 = vadd.f32 %v5344_v48, %v2426_v14  ;;  %v2410_v53 = vor.u32 1.1754944e-38, %v2409_v5 }
 0x531   :  { %v2364_v0 = vadd.f32 %v3899_v46, %v2363_v60  ;;  %vm2408_vm9 = vcmp.eq.f32.partialorder %v2407_v33, 8.507059e+37  ;;  %v2435_v58 = vor.u32 1.1754944e-38, %v2434_v56  ;;  %vm2433_vm10 = vcmp.eq.f32.partialorder %v2432_v47, 8.507059e+37  ;;  %v5983_v33 = vld [vmem:[#allocation15_spill] sm:$0xff]  ;;  %v5985_v47 = vld [vmem:[#allocation17_spill] sm:$0xff] }
 0x532   :  { %3906 = vtanh.f32 %v5357_v50  ;;  %v2401_v34 = vmul.f32 %v3901_v57, %v2400_v62  ;;  %v2431_v43 = vsel %vm2430_vm5, %v5344_v48, %v2427_v38  ;;  %v2449_v48 = vand.u32 2147483648, %v2422_v51  ;;  %v5973_v38 = vld [vmem:[#allocation5_spill] sm:$0xff] }
 0x533   :  { %v2368_v18 = vsel %vm2367_vm2, %v3899_v46, %v2364_v0  ;;  %3908 = vrcp.f32 %v2422_v51  ;;  %v2436_v54 = vsel %vm2433_vm10, %v2435_v58, %v2431_v43  ;;  %v2447_v56 = vand.u32 2147483647, %v2422_v51  ;;  %v5989_v43 = vld [vmem:[#allocation21_spill] sm:$0xff]  ;;  %v5992_v58 = vld [vmem:[#allocation24_spill] sm:$0xff] }
 0x534   :  { %v2373_v26 = vsel %vm2370_vm3, %v2372_v45, %v2368_v18  ;;  %v2402_v42 = vadd.f32 %v3901_v57, %v2401_v34  ;;  %vm2443_vm12 = vweird.f32 %v2422_v51  ;;  %v2450_v60 = vor.u32 1.1754944e-38, %v2449_v48  ;;  %v5974_v34 = vld [vmem:[#allocation6_spill] sm:$0xff]  ;;  %v5984_v18 = vld [vmem:[#allocation16_spill] sm:$0xff] }
 0x535   :  { %v2456_v20 = vmul.f32 %v3905_v9, %v2373_v26  ;;  %vm2448_vm14 = vcmp.eq.f32.partialorder %v2447_v56, 8.507059e+37  ;;  %v5986_v26 = vld [vmem:[#allocation18_spill] sm:$0xff]  ;;  %v6004_v56 = vld [vmem:[#allocation36_spill] sm:$0xff] }
 0x536   :  { %v2406_v37 = vsel %vm2405_vm8, %v3901_v57, %v2402_v42  ;;  %v5987_v42 = vld [vmem:[#allocation19_spill] sm:$0xff]  ;;  %v6002_v48 = vld [vmem:[#allocation34_spill] sm:$0xff] }
 0x537   :  { %v2411_v46 = vsel %vm2408_vm9, %v2410_v53, %v2406_v37  ;;  %v5988_v53 = vld [vmem:[#allocation20_spill] sm:$0xff]  ;;  %v5990_v37 = vld [vmem:[#allocation22_spill] sm:$0xff] }
 0x538   :  { %v3907_v44 = vpop.eup %3906  ;;  %v2454_v13 = vmul.f32 %v2411_v46, %v5227_v63  ;;  %v5993_v46 = vld [vmem:[#allocation25_spill] sm:$0xff] }
 0x539   :  { %v3909_v32 = vpop.eup %3908  ;;  %v2461_v36 = vmul.f32 %v3907_v44, %v2436_v54  ;;  %v5994_v44 = vld [vmem:[#allocation26_spill] sm:$0xff]  ;;  %v5996_v54 = vld [vmem:[#allocation28_spill] sm:$0xff] }
 0x53a   :  { %v5372_v14 = vadd.f32 %v2456_v20, %v2454_v13  ;;  %v2439_v31 = vmul.f32 %v3909_v32, %v2422_v51  ;;  %vm2444_vm11 = vweird.f32 %v3909_v32  ;;  %v3713_v51 = vld [vmem:[%s5634_s0 + $0x8] sm:$0xff]  ;;  %v5991_v20 = vld [vmem:[#allocation23_spill] sm:$0xff] }
 0x53b   :  { %v2463_v49 = vpack.c.bf16 %v2461_v36, %v2461_v36  ;;  %vm2445_vm13 = vmor %vm2443_vm12, %vm2444_vm11  ;;  %v5995_v13 = vld [vmem:[#allocation27_spill] sm:$0xff] }
 0x53c   :  { %3910 = vtanh.f32 %v5372_v14  ;;  %v2440_v28 = vsub.f32 1.0, %v2439_v31  ;;  %v5999_v31 = vld [vmem:[#allocation31_spill] sm:$0xff] }
 0x53d   :  { %3576 = vst.msk [vmem:[%s5639_s5 + $0x28] sm:$0xf] %vm765_vm6, %v2463_v49 }
 0x53e   :  { %v2441_v57 = vmul.f32 %v3909_v32, %v2440_v28  ;;  %3578 = vst.msk [vmem:[%s5639_s5 + $0x10] sm:$0xf] %vm769_vm7, %v2463_v49  ;;  %v6000_v49 = vld [vmem:[#allocation32_spill] sm:$0xff]  ;;  %v6001_v28 = vld [vmem:[#allocation33_spill] sm:$0xff] }
 0x540   :  { %v2442_v63 = vadd.f32 %v3909_v32, %v2441_v57  ;;  %v6003_v57 = vld [vmem:[#allocation35_spill] sm:$0xff] }
 0x542   :  { %v3911_v6 = vpop.eup %3910  ;;  %v2446_v62 = vsel %vm2445_vm13, %v3909_v32, %v2442_v63  ;;  %v5997_v32 = vld [vmem:[#allocation29_spill] sm:$0xff] }
 0x543   :  { %v2451_v5 = vsel %vm2448_vm14, %v2450_v60, %v2446_v62  ;;  %v6005_v63 = vld [vmem:[#allocation37_spill] sm:$0xff]  ;;  %v6006_v60 = vld [vmem:[#allocation38_spill] sm:$0xff]  ;;  %v6008_v62 = vld [vmem:[#allocation40_spill] sm:$0xff] }
 0x544   :  { %v2462_v9 = vmul.f32 %v3911_v6, %v2451_v5  ;;  %v6007_v6 = vld [vmem:[#allocation39_spill] sm:$0xff]  ;;  %v6009_v5 = vld [vmem:[#allocation41_spill] sm:$0xff] }
 0x546   :  { %v2464_v0 = vpack.c.bf16 %v2462_v9, %v2462_v9  ;;  %v2469_v45 = vpack.c.bf16 %v2462_v9, %v2461_v36  ;;  %v5998_v36 = vld [vmem:[#allocation30_spill] sm:$0xff]  ;;  %v6010_v9 = vld [vmem:[#allocation44_spill] sm:$0xff] }
 0x548   :  { %3577 = vst.msk [vmem:[%s5639_s5 + $0x2c] sm:$0xf] %vm765_vm6, %v2464_v0  ;;  %2478 = vmatmul.bf16.vlgmr.msra.gmra.mxu0 %v2469_v45  ;;  %2492 = vmatmul.bf16.vlgmr.msra.gmra.mxu1 %v2469_v45 }
 0x549   :  { %3579 = vst.msk [vmem:[%s5639_s5 + $0x14] sm:$0xf] %vm769_vm7, %v2464_v0  ;;  %2506 = vmatmul.bf16.vlgmr.msra.gmra.mxu2 %v2469_v45  ;;  %2520 = vmatmul.bf16.vlgmr.msra.gmra.mxu3 %v2469_v45  ;;  %v6011_v0 = vld [vmem:[#allocation45_spill] sm:$0xff] }
 0x54a   :  { %2606 = vmatpush.bf16.msra.mxu0 %v5781_v23  ;;  %2620 = vmatpush.bf16.msra.mxu1 %v5782_v11 }
 0x54b   :  { %2634 = vmatpush.bf16.msra.mxu2 %v5783_v10  ;;  %2648 = vmatpush.bf16.msra.mxu3 %v5784_v59 }
 0x54e   :  { %2607 = vmatpush.bf16.msra.mxu0 %v4435_v35  ;;  %2621 = vmatpush.bf16.msra.mxu1 %v5785_v2 }
 0x54f   :  { %2635 = vmatpush.bf16.msra.mxu2 %v5786_v15  ;;  %2649 = vmatpush.bf16.msra.mxu3 %v5787_v19 }
 0x552   :  { %2608 = vmatpush.bf16.msra.mxu0 %v4475_v30  ;;  %2622 = vmatpush.bf16.msra.mxu1 %v4479_v1 }
 0x553   :  { %2636 = vmatpush.bf16.msra.mxu2 %v4481_v55  ;;  %2650 = vmatpush.bf16.msra.mxu3 %v4493_v39 }
 0x556   :  { %2609 = vmatpush.bf16.msra.mxu0 %v4511_v24  ;;  %2623 = vmatpush.bf16.msra.mxu1 %v4515_v61 }
 0x557   :  { %2637 = vmatpush.bf16.msra.mxu2 %v4517_v41  ;;  %2651 = vmatpush.bf16.msra.mxu3 %v4520_v40 }
 0x558   :  { %3588 = vmatmul.msk.bf16.vlgmr.msrb.gmra.mxu0 %vm417_vm0, %v3713_v51  ;;  %3589 = vmatmul.msk.bf16.vlgmr.msrb.gmra.mxu1 %vm417_vm0, %v3713_v51 }
 0x559   :  { %3590 = vmatmul.msk.bf16.vlgmr.msrb.gmra.mxu2 %vm417_vm0, %v3713_v51  ;;  %3591 = vmatmul.msk.bf16.vlgmr.msrb.gmra.mxu3 %vm417_vm0, %v3713_v51 }
 0x55a   :  { %2807 = vmatpush.bf16.msrb.mxu0 %v4048_v3  ;;  %2821 = vmatpush.bf16.msrb.mxu1 %v4059_v7  ;;  %v5975_v3 = vld [vmem:[#allocation7_spill] sm:$0xff] }
 0x55b   :  { %2835 = vmatpush.bf16.msrb.mxu2 %v4061_v8  ;;  %2849 = vmatpush.bf16.msrb.mxu3 %v4073_v12  ;;  %v3712_v7 = vld [vmem:[%s5634_s0 + $0x30] sm:$0xff]  ;;  %v5976_v8 = vld [vmem:[#allocation8_spill] sm:$0xff]  ;;  %v5977_v12 = vld [vmem:[#allocation9_spill] sm:$0xff] }
 0x55e   :  { %2808 = vmatpush.bf16.msrb.mxu0 %v4086_v16  ;;  %2822 = vmatpush.bf16.msrb.mxu1 %v4088_v17  ;;  %v5978_v16 = vld [vmem:[#allocation10_spill] sm:$0xff]  ;;  %v5979_v17 = vld [vmem:[#allocation11_spill] sm:$0xff] }
 0x55f   :  { %2836 = vmatpush.bf16.msrb.mxu2 %v4100_v21  ;;  %2850 = vmatpush.bf16.msrb.mxu3 %v4111_v25  ;;  %v5980_v21 = vld [vmem:[#allocation12_spill] sm:$0xff]  ;;  %v5981_v25 = vld [vmem:[#allocation13_spill] sm:$0xff] }
 0x562   :  { %2809 = vmatpush.bf16.msrb.mxu0 %v4123_v29  ;;  %2823 = vmatpush.bf16.msrb.mxu1 %v5973_v38  ;;  %v5982_v29 = vld [vmem:[#allocation14_spill] sm:$0xff] }
 0x563   :  { %2837 = vmatpush.bf16.msrb.mxu2 %v5974_v34  ;;  %2851 = vmatpush.bf16.msrb.mxu3 %v5975_v3 }
 0x566   :  { %2810 = vmatpush.bf16.msrb.mxu0 %v5976_v8  ;;  %2824 = vmatpush.bf16.msrb.mxu1 %v5977_v12 }
 0x567   :  { %2838 = vmatpush.bf16.msrb.mxu2 %v5978_v16  ;;  %2852 = vmatpush.bf16.msrb.mxu3 %v5979_v17 }
 0x568   :  { %3596 = vmatmul.msk.bf16.vlgmr.msra.gmra.mxu0 %vm417_vm0, %v3712_v7  ;;  %3597 = vmatmul.msk.bf16.vlgmr.msra.gmra.mxu1 %vm417_vm0, %v3712_v7 }
 0x569   :  { %3598 = vmatmul.msk.bf16.vlgmr.msra.gmra.mxu2 %vm417_vm0, %v3712_v7  ;;  %3599 = vmatmul.msk.bf16.vlgmr.msra.gmra.mxu3 %vm417_vm0, %v3712_v7 }
 0x56a   :  { %2811 = vmatpush.bf16.msrb.mxu0 %v5980_v21  ;;  %2825 = vmatpush.bf16.msrb.mxu1 %v5981_v25 }
 0x56b   :  { %2839 = vmatpush.bf16.msrb.mxu2 %v5982_v29  ;;  %2853 = vmatpush.bf16.msrb.mxu3 %v5983_v33 }
 0x56e   :  { %2812 = vmatpush.bf16.msrb.mxu0 %v5984_v18  ;;  %2826 = vmatpush.bf16.msrb.mxu1 %v5985_v47 }
 0x56f   :  { %2840 = vmatpush.bf16.msrb.mxu2 %v5986_v26  ;;  %2854 = vmatpush.bf16.msrb.mxu3 %v5987_v42 }
 0x572   :  { %2813 = vmatpush.bf16.msrb.mxu0 %v5988_v53  ;;  %2827 = vmatpush.bf16.msrb.mxu1 %v5989_v43 }
 0x573   :  { %2841 = vmatpush.bf16.msrb.mxu2 %v5990_v37  ;;  %2855 = vmatpush.bf16.msrb.mxu3 %v5991_v20 }
 0x576   :  { %2814 = vmatpush.bf16.msrb.mxu0 %v5992_v58  ;;  %2828 = vmatpush.bf16.msrb.mxu1 %v5993_v46 }
 0x577   :  { %2842 = vmatpush.bf16.msrb.mxu2 %v5994_v44  ;;  %2856 = vmatpush.bf16.msrb.mxu3 %v5995_v13 }
 0x57a   :  { %2879 = vmatpush.bf16.msra.mxu0 %v5996_v54  ;;  %2893 = vmatpush.bf16.msra.mxu1 %v5997_v32 }
 0x57b   :  { %2907 = vmatpush.bf16.msra.mxu2 %v5998_v36  ;;  %2921 = vmatpush.bf16.msra.mxu3 %v5999_v31 }
 0x57e   :  { %2880 = vmatpush.bf16.msra.mxu0 %v6000_v49  ;;  %2894 = vmatpush.bf16.msra.mxu1 %v6001_v28 }
 0x57f   :  { %2908 = vmatpush.bf16.msra.mxu2 %v6002_v48  ;;  %2922 = vmatpush.bf16.msra.mxu3 %v6003_v57 }
 0x582   :  { %2881 = vmatpush.bf16.msra.mxu0 %v6004_v56  ;;  %2895 = vmatpush.bf16.msra.mxu1 %v6005_v63 }
 0x583   :  { %2909 = vmatpush.bf16.msra.mxu2 %v6006_v60  ;;  %2923 = vmatpush.bf16.msra.mxu3 %v6007_v6 }
 0x586   :  { %2882 = vmatpush.bf16.msra.mxu0 %v6008_v62  ;;  %2896 = vmatpush.bf16.msra.mxu1 %v6009_v5 }
 0x587   :  { %2910 = vmatpush.bf16.msra.mxu2 %v6010_v9  ;;  %2924 = vmatpush.bf16.msra.mxu3 %v6011_v0 }
 0x5c5   :  { %v2479_v45 = vpop.f32.mrf.mxu0  ;;  %v2493_v51 = vpop.f32.mrf.mxu1 }
 0x5cc   :  { %v2507_v38 = vpop.f32.mrf.mxu2  ;;  %v2521_v34 = vpop.f32.mrf.mxu3 }
 0x5cd   :  { %v2481_v3 = vpop.f32.mrf.mxu0  ;;  %v2495_v7 = vpop.f32.mrf.mxu1 }
 0x5d4   :  { %v5469_v8 = vpop.f32.mrf.mxu2  ;;  %v2523_v12 = vpop.f32.mrf.mxu3 }
 0x5d5   :  { %v2547_v16 = vpop.f32.mrf.mxu0  ;;  %v2561_v17 = vpop.f32.mrf.mxu1 }
 0x5dc   :  { %v2575_v21 = vpop.f32.mrf.mxu2  ;;  %v2589_v25 = vpop.f32.mrf.mxu3 }
 0x5dd   :  { %v2549_v29 = vpop.f32.mrf.mxu0  ;;  %v2563_v33 = vpop.f32.mrf.mxu1 }
 0x5e4   :  { %v2577_v18 = vpop.f32.mrf.mxu2  ;;  %v2591_v47 = vpop.f32.mrf.mxu3 }
 0x5e5   :  { %v2611_v26 = vpop.f32.mrf.mxu0  ;;  %v2625_v42 = vpop.f32.mrf.mxu1 }
 0x5e6   :  { %v2612_v53 = vadd.f32 %v2611_v26, %v2547_v16  ;;  %v2626_v43 = vadd.f32 %v2625_v42, %v2561_v17 }
 0x5e8   :  { %v2658_v37 = vadd.f32 %v2612_v53, %v4586_v22  ;;  %v2659_v20 = vadd.f32 %v2626_v43, %v4588_v4 }
 0x5ea   :  { %v2666_v58 = vadd.f32 %v2658_v37, %v2479_v45  ;;  %v2667_v46 = vadd.f32 %v2659_v20, %v2493_v51 }
 0x5ec   :  { %v3600_v44 = vmul.f32 -1.442695, %v2666_v58  ;;  %v3602_v13 = vmul.f32 -1.442695, %v2667_v46  ;;  %v2639_v54 = vpop.f32.mrf.mxu2  ;;  %v2653_v32 = vpop.f32.mrf.mxu3 }
 0x5ed   :  { %v2654_v36 = vadd.f32 %v2653_v32, %v2589_v25  ;;  %v2613_v31 = vpop.f32.mrf.mxu0  ;;  %v2627_v49 = vpop.f32.mrf.mxu1  ;;  %v2640_v60 = vadd.f32 %v2639_v54, %v2575_v21 }
 0x5ee   :  { %3912 = vpow2.f32 %v3600_v44  ;;  %v2614_v28 = vadd.f32 %v2613_v31, %v2549_v29  ;;  %v2628_v48 = vadd.f32 %v2627_v49, %v2563_v33 }
 0x5ef   :  { %3914 = vpow2.f32 %v3602_v13  ;;  %v2661_v57 = vadd.f32 %v2654_v36, %v4592_v27  ;;  %v2660_v25 = vadd.f32 %v2640_v60, %v4596_v52 }
 0x5f0   :  { %v2662_v56 = vadd.f32 %v2614_v28, %v4586_v22  ;;  %v2663_v63 = vadd.f32 %v2628_v48, %v4588_v4 }
 0x5f1   :  { %v2669_v6 = vadd.f32 %v2661_v57, %v2521_v34  ;;  %v2668_v21 = vadd.f32 %v2660_v25, %v2507_v38 }
 0x5f2   :  { %v2670_v62 = vadd.f32 %v2662_v56, %v2481_v3  ;;  %v2671_v5 = vadd.f32 %v2663_v63, %v2495_v7 }
 0x5f3   :  { %v3604_v9 = vmul.f32 -1.442695, %v2669_v6 }
 0x5f4   :  { %v3913_v0 = vpop.eup %3912  ;;  %v3601_v45 = vmul.f32 -1.442695, %v2670_v62  ;;  %v2655_v51 = vpop.f32.mrf.mxu3  ;;  %v3603_v29 = vmul.f32 -1.442695, %v2671_v5 }
 0x5f5   :  { %v3915_v16 = vpop.eup %3914  ;;  %v2680_v17 = vadd.f32 1.0, %v3913_v0  ;;  %3916 = vpow2.f32 %v3604_v9  ;;  %v2656_v26 = vadd.f32 %v2655_v51, %v2591_v47  ;;  %v2641_v42 = vpop.f32.mrf.mxu2 }
 0x5f6   :  { %v2718_v33 = vadd.f32 1.0, %v3915_v16  ;;  %3918 = vpow2.f32 %v3601_v45  ;;  %v2642_v34 = vadd.f32 %v2641_v42, %v2577_v18 }
 0x5f7   :  { %3920 = vrcp.f32 %v2680_v17  ;;  %v2665_v3 = vadd.f32 %v2656_v26, %v4592_v27  ;;  %v2691_v54 = vand.u32 2147483647, %v2680_v17  ;;  %v2693_v32 = vand.u32 2147483648, %v2680_v17 }
 0x5f8   :  { %3922 = vrcp.f32 %v2718_v33  ;;  %v2664_v47 = vadd.f32 %v2642_v34, %v4596_v52  ;;  %v2731_v49 = vand.u32 2147483648, %v2718_v33  ;;  %v2729_v28 = vand.u32 2147483647, %v2718_v33 }
 0x5f9   :  { %3924 = vpow2.f32 %v3603_v29  ;;  %v2673_v58 = vadd.f32 %v2665_v3, %v2523_v12  ;;  %vm2687_vm2 = vweird.f32 %v2680_v17  ;;  %vm2725_vm3 = vweird.f32 %v2718_v33 }
 0x5fa   :  { %3926 = vtanh.f32 %v2668_v21  ;;  %v2672_v57 = vadd.f32 %v2664_v47, %v5469_v8  ;;  %vm2692_vm4 = vcmp.eq.f32.partialorder %v2691_v54, 8.507059e+37  ;;  %v2732_v5 = vor.u32 1.1754944e-38, %v2731_v49 }
 0x5fb   :  { %v3917_v7 = vpop.eup %3916  ;;  %v3605_v48 = vmul.f32 -1.442695, %v2673_v58  ;;  %v2694_v9 = vor.u32 1.1754944e-38, %v2693_v32  ;;  %vm2730_vm9 = vcmp.eq.f32.partialorder %v2729_v28, 8.507059e+37 }
 0x5fc   :  { %v3919_v53 = vpop.eup %3918  ;;  %v5478_v43 = vadd.f32 1.0, %v3917_v7 }
 0x5fd   :  { %v3921_v37 = vpop.eup %3920  ;;  %v5480_v20 = vadd.f32 1.0, %v3919_v53 }
 0x5fe   :  { %v3923_v46 = vpop.eup %3922  ;;  %v2683_v44 = vmul.f32 %v3921_v37, %v2680_v17  ;;  %3928 = vrcp.f32 %v5478_v43  ;;  %vm2688_vm15 = vweird.f32 %v3921_v37  ;;  %vm2765_vm10 = vweird.f32 %v5478_v43 }
 0x5ff   :  { %v3925_v38 = vpop.eup %3924  ;;  %v2721_v13 = vmul.f32 %v3923_v46, %v2718_v33  ;;  %3930 = vrcp.f32 %v5480_v20  ;;  %vm2726_vm1 = vweird.f32 %v3923_v46  ;;  %vm2689_vm5 = vmor %vm2687_vm2, %vm2688_vm15  ;;  %v2708_v21 = vand.u32 2147483648, %v5480_v20 }
 0x600   :  { %v2684_v18 = vsub.f32 1.0, %v2683_v44  ;;  %v5485_v36 = vadd.f32 1.0, %v3925_v38  ;;  %v3927_v56 = vpop.eup %3926  ;;  %vm2727_vm8 = vmor %vm2725_vm3, %vm2726_vm1  ;;  %v2771_v7 = vand.u32 2147483648, %v5478_v43  ;;  %vm2702_vm11 = vweird.f32 %v5480_v20 }
 0x601   :  { %v2722_v31 = vsub.f32 1.0, %v2721_v13  ;;  %v2709_v54 = vor.u32 1.1754944e-38, %v2708_v21 }
 0x602   :  { %v2685_v12 = vmul.f32 %v3921_v37, %v2684_v18  ;;  %3932 = vrcp.f32 %v5485_v36  ;;  %v2746_v38 = vand.u32 2147483648, %v5485_v36  ;;  %v2744_v49 = vand.u32 2147483647, %v5485_v36 }
 0x603   :  { %v2723_v63 = vmul.f32 %v3923_v46, %v2722_v31  ;;  %3934 = vpow2.f32 %v3605_v48  ;;  %v2769_v48 = vand.u32 2147483647, %v5478_v43  ;;  %vm2740_vm2 = vweird.f32 %v5485_v36 }
 0x604   :  { %v5489_v60 = vpop.eup %3928  ;;  %v2686_v6 = vadd.f32 %v3921_v37, %v2685_v12  ;;  %3936 = vtanh.f32 %v2672_v57 }
 0x605   :  { %v3931_v62 = vpop.eup %3930  ;;  %v2724_v0 = vadd.f32 %v3923_v46, %v2723_v63  ;;  %v2761_v45 = vmul.f32 %v5489_v60, %v5478_v43  ;;  %vm2766_vm13 = vweird.f32 %v5489_v60 }
 0x606   :  { %v2690_v8 = vsel %vm2689_vm5, %v3921_v37, %v2686_v6  ;;  %v2698_v51 = vmul.f32 %v3931_v62, %v5480_v20  ;;  %vm2703_vm12 = vweird.f32 %v3931_v62  ;;  %vm2767_vm3 = vmor %vm2765_vm10, %vm2766_vm13  ;;  %vm2745_vm5 = vcmp.eq.f32.partialorder %v2744_v49, 8.507059e+37 }
 0x607   :  { %v2695_v16 = vsel %vm2692_vm4, %v2694_v9, %v2690_v8  ;;  %v2728_v17 = vsel %vm2727_vm8, %v3923_v46, %v2724_v0  ;;  %v2762_v25 = vsub.f32 1.0, %v2761_v45  ;;  %v2706_v46 = vand.u32 2147483647, %v5480_v20  ;;  %vm2704_vm15 = vmor %vm2702_vm11, %vm2703_vm12 }
 0x608   :  { %v3933_v29 = vpop.eup %3932  ;;  %v2733_v33 = vsel %vm2730_vm9, %v2732_v5, %v2728_v17  ;;  %v2792_v26 = vmul.f32 %v3927_v56, %v2695_v16  ;;  %v2699_v42 = vsub.f32 1.0, %v2698_v51  ;;  %v2747_v56 = vor.u32 1.1754944e-38, %v2746_v38 }
 0x609   :  { %v2790_v34 = vmul.f32 %v2733_v33, %v5357_v50  ;;  %v2763_v3 = vmul.f32 %v5489_v60, %v2762_v25  ;;  %v2736_v53 = vmul.f32 %v3933_v29, %v5485_v36  ;;  %v3935_v37 = vpop.eup %3934  ;;  %vm2741_vm14 = vweird.f32 %v3933_v29 }
 0x60a   :  { %v2700_v58 = vmul.f32 %v3931_v62, %v2699_v42  ;;  %v2759_v13 = vadd.f32 1.0, %v3935_v37  ;;  %v3937_v50 = vpop.eup %3936  ;;  %vm2707_vm1 = vcmp.eq.f32.partialorder %v2706_v46, 8.507059e+37  ;;  %vm2742_vm4 = vmor %vm2740_vm2, %vm2741_vm14  ;;  %v2772_v5 = vor.u32 1.1754944e-38, %v2771_v7 }
 0x60b   :  { %v5502_v44 = vadd.f32 %v2792_v26, %v2790_v34  ;;  %v2737_v47 = vsub.f32 1.0, %v2736_v53  ;;  %v2764_v32 = vadd.f32 %v5489_v60, %v2763_v3  ;;  %vm2770_vm8 = vcmp.eq.f32.partialorder %v2769_v48, 8.507059e+37 }
 0x60c   :  { %v2701_v18 = vadd.f32 %v3931_v62, %v2700_v58  ;;  %vm2780_vm10 = vweird.f32 %v2759_v13 }
 0x60d   :  { %3938 = vtanh.f32 %v5502_v44  ;;  %v2738_v31 = vmul.f32 %v3933_v29, %v2737_v47  ;;  %v2768_v63 = vsel %vm2767_vm3, %v5489_v60, %v2764_v32  ;;  %v2786_v60 = vand.u32 2147483648, %v2759_v13 }
 0x60e   :  { %v2705_v28 = vsel %vm2704_vm15, %v3931_v62, %v2701_v18  ;;  %3940 = vrcp.f32 %v2759_v13  ;;  %v2773_v45 = vsel %vm2770_vm8, %v2772_v5, %v2768_v63 }
 0x60f   :  { %v2710_v12 = vsel %vm2707_vm1, %v2709_v54, %v2705_v28  ;;  %v2739_v57 = vadd.f32 %v3933_v29, %v2738_v31  ;;  %v2787_v33 = vor.u32 1.1754944e-38, %v2786_v60 }
 0x610   :  { %v2793_v6 = vmul.f32 %v3937_v50, %v2710_v12 }
 0x611   :  { %v2743_v20 = vsel %vm2742_vm4, %v3933_v29, %v2739_v57  ;;  %v2784_v29 = vand.u32 2147483647, %v2759_v13 }
 0x612   :  { %v2748_v62 = vsel %vm2745_vm5, %v2747_v56, %v2743_v20 }
 0x613   :  { %v3939_v9 = vpop.eup %3938  ;;  %v2791_v0 = vmul.f32 %v2748_v62, %v5372_v14  ;;  %vm2785_vm12 = vcmp.eq.f32.partialorder %v2784_v29, 8.507059e+37 }
 0x614   :  { %v3941_v36 = vpop.eup %3940  ;;  %v2798_v8 = vmul.f32 %v3939_v9, %v2773_v45 }
 0x615   :  { %v5517_v51 = vadd.f32 %v2793_v6, %v2791_v0  ;;  %v2776_v43 = vmul.f32 %v3941_v36, %v2759_v13  ;;  %vm2781_vm9 = vweird.f32 %v3941_v36 }
 0x616   :  { %v2800_v16 = vpack.c.bf16 %v2798_v8, %v2798_v8  ;;  %vm2782_vm11 = vmor %vm2780_vm10, %vm2781_vm9 }
 0x617   :  { %3942 = vtanh.f32 %v5517_v51  ;;  %v2777_v17 = vsub.f32 1.0, %v2776_v43 }
 0x618   :  { %3606 = vst.msk [vmem:[%s5639_s5 + $0x30] sm:$0xf] %vm765_vm6, %v2800_v16 }
 0x619   :  { %v2778_v25 = vmul.f32 %v3941_v36, %v2777_v17  ;;  %3608 = vst.msk [vmem:[%s5639_s5 + $0x8] sm:$0xf] %vm769_vm7, %v2800_v16 }
 0x61b   :  { %v2779_v14 = vadd.f32 %v3941_v36, %v2778_v25 }
 0x61d   :  { %v3943_v26 = vpop.eup %3942  ;;  %v2783_v42 = vsel %vm2782_vm11, %v3941_v36, %v2779_v14 }
 0x61e   :  { %v2788_v21 = vsel %vm2785_vm12, %v2787_v33, %v2783_v42 }
 0x61f   :  { %v2799_v34 = vmul.f32 %v3943_v26, %v2788_v21 }
 0x621   :  { %v2801_v3 = vpack.c.bf16 %v2799_v34, %v2799_v34  ;;  %v2806_v7 = vpack.c.bf16 %v2799_v34, %v2798_v8 }
 0x623   :  { %3607 = vst.msk [vmem:[%s5639_s5 + $0x34] sm:$0xf] %vm765_vm6, %v2801_v3  ;;  %2815 = vmatmul.bf16.vlgmr.msrb.gmra.mxu0 %v2806_v7  ;;  %2829 = vmatmul.bf16.vlgmr.msrb.gmra.mxu1 %v2806_v7 }
 0x624   :  { %3609 = vst.msk [vmem:[%s5639_s5 + $0xc] sm:$0xf] %vm769_vm7, %v2801_v3  ;;  %2843 = vmatmul.bf16.vlgmr.msrb.gmra.mxu2 %v2806_v7  ;;  %2857 = vmatmul.bf16.vlgmr.msrb.gmra.mxu3 %v2806_v7 }
 0x625   :  { %2943 = vmatpush.bf16.msrb.mxu0 %v5781_v23  ;;  %2957 = vmatpush.bf16.msrb.mxu1 %v5782_v11  ;;  %v3715_v23 = vld [vmem:[%s5634_s0] sm:$0xff] }
 0x626   :  { %2971 = vmatpush.bf16.msrb.mxu2 %v5783_v10  ;;  %2985 = vmatpush.bf16.msrb.mxu3 %v5784_v59 }
 0x629   :  { %2944 = vmatpush.bf16.msrb.mxu0 %v4435_v35  ;;  %2958 = vmatpush.bf16.msrb.mxu1 %v5785_v2 }
 0x62a   :  { %2972 = vmatpush.bf16.msrb.mxu2 %v5786_v15  ;;  %2986 = vmatpush.bf16.msrb.mxu3 %v5787_v19 }
 0x62d   :  { %2945 = vmatpush.bf16.msrb.mxu0 %v4475_v30  ;;  %2959 = vmatpush.bf16.msrb.mxu1 %v4479_v1 }
 0x62e   :  { %2973 = vmatpush.bf16.msrb.mxu2 %v4481_v55  ;;  %2987 = vmatpush.bf16.msrb.mxu3 %v4493_v39  ;;  %v3714_v55 = vld [vmem:[%s5634_s0 + $0x38] sm:$0xff] }
 0x631   :  { %2946 = vmatpush.bf16.msrb.mxu0 %v4511_v24  ;;  %2960 = vmatpush.bf16.msrb.mxu1 %v4515_v61 }
 0x632   :  { %2974 = vmatpush.bf16.msrb.mxu2 %v4517_v41  ;;  %2988 = vmatpush.bf16.msrb.mxu3 %v4520_v40 }
 0x633   :  { %3616 = vmatmul.msk.bf16.vlgmr.msra.gmra.mxu0 %vm417_vm0, %v3715_v23  ;;  %3617 = vmatmul.msk.bf16.vlgmr.msra.gmra.mxu1 %vm417_vm0, %v3715_v23 }
 0x634   :  { %3618 = vmatmul.msk.bf16.vlgmr.msra.gmra.mxu2 %vm417_vm0, %v3715_v23  ;;  %3619 = vmatmul.msk.bf16.vlgmr.msra.gmra.mxu3 %vm417_vm0, %v3715_v23 }
 0x643   :  { %3624 = vmatmul.msk.bf16.vlgmr.msrb.gmra.mxu0 %vm417_vm0, %v3714_v55  ;;  %3625 = vmatmul.msk.bf16.vlgmr.msrb.gmra.mxu1 %vm417_vm0, %v3714_v55 }
 0x644   :  { %3626 = vmatmul.msk.bf16.vlgmr.msrb.gmra.mxu2 %vm417_vm0, %v3714_v55  ;;  %3627 = vmatmul.msk.bf16.vlgmr.msrb.gmra.mxu3 %vm417_vm0, %v3714_v55 }
 0x6a0   :  { %v2816_v1 = vpop.f32.mrf.mxu0  ;;  %v2830_v35 = vpop.f32.mrf.mxu1 }
 0x6a7   :  { %v2844_v40 = vpop.f32.mrf.mxu2  ;;  %v2858_v41 = vpop.f32.mrf.mxu3 }
 0x6a8   :  { %v2818_v61 = vpop.f32.mrf.mxu0  ;;  %v2832_v30 = vpop.f32.mrf.mxu1 }
 0x6af   :  { %v5566_v39 = vpop.f32.mrf.mxu2  ;;  %v5568_v24 = vpop.f32.mrf.mxu3 }
 0x6b0   :  { %v2884_v11 = vpop.f32.mrf.mxu0  ;;  %v2898_v10 = vpop.f32.mrf.mxu1 }
 0x6b7   :  { %v2912_v59 = vpop.f32.mrf.mxu2  ;;  %v2926_v2 = vpop.f32.mrf.mxu3 }
 0x6b8   :  { %v2886_v15 = vpop.f32.mrf.mxu0  ;;  %v2900_v19 = vpop.f32.mrf.mxu1 }
 0x6bf   :  { %v2914_v53 = vpop.f32.mrf.mxu2  ;;  %v2928_v37 = vpop.f32.mrf.mxu3 }
 0x6c0   :  { %v2948_v58 = vpop.f32.mrf.mxu0  ;;  %v2962_v46 = vpop.f32.mrf.mxu1 }
 0x6c1   :  { %v2949_v47 = vadd.f32 %v2948_v58, %v2884_v11  ;;  %v2963_v38 = vadd.f32 %v2962_v46, %v2898_v10 }
 0x6c3   :  { %v2995_v13 = vadd.f32 %v2949_v47, %v4586_v22  ;;  %v2996_v50 = vadd.f32 %v2963_v38, %v4588_v4 }
 0x6c5   :  { %v3003_v18 = vadd.f32 %v2995_v13, %v2816_v1  ;;  %v3004_v54 = vadd.f32 %v2996_v50, %v2830_v35 }
 0x6c7   :  { %v3628_v32 = vmul.f32 -1.442695, %v3003_v18  ;;  %v3630_v31 = vmul.f32 -1.442695, %v3004_v54  ;;  %v2990_v49 = vpop.f32.mrf.mxu3  ;;  %v2976_v57 = vpop.f32.mrf.mxu2 }
 0x6c8   :  { %v2991_v28 = vadd.f32 %v2990_v49, %v2926_v2  ;;  %v2950_v48 = vpop.f32.mrf.mxu0  ;;  %v2964_v12 = vpop.f32.mrf.mxu1  ;;  %v2977_v45 = vadd.f32 %v2976_v57, %v2912_v59 }
 0x6c9   :  { %3944 = vpow2.f32 %v3628_v32  ;;  %v2951_v56 = vadd.f32 %v2950_v48, %v2886_v15  ;;  %v2965_v63 = vadd.f32 %v2964_v12, %v2900_v19 }
 0x6ca   :  { %3946 = vpow2.f32 %v3630_v31  ;;  %v2998_v20 = vadd.f32 %v2991_v28, %v4592_v27  ;;  %v2997_v14 = vadd.f32 %v2977_v45, %v4596_v52 }
 0x6cb   :  { %v2999_v6 = vadd.f32 %v2951_v56, %v4586_v22  ;;  %v3000_v5 = vadd.f32 %v2965_v63, %v4588_v4 }
 0x6cc   :  { %v3006_v62 = vadd.f32 %v2998_v20, %v2858_v41  ;;  %v3005_v26 = vadd.f32 %v2997_v14, %v2844_v40 }
 0x6cd   :  { %v3007_v9 = vadd.f32 %v2999_v6, %v2818_v61  ;;  %v3008_v0 = vadd.f32 %v3000_v5, %v2832_v30 }
 0x6ce   :  { %v3632_v36 = vmul.f32 -1.442695, %v3006_v62 }
 0x6cf   :  { %v3945_v8 = vpop.eup %3944  ;;  %v3629_v43 = vmul.f32 -1.442695, %v3007_v9  ;;  %v3631_v60 = vmul.f32 -1.442695, %v3008_v0  ;;  %v2992_v25 = vpop.f32.mrf.mxu3 }
 0x6d0   :  { %v3947_v16 = vpop.eup %3946  ;;  %v3017_v17 = vadd.f32 1.0, %v3945_v8  ;;  %3948 = vpow2.f32 %v3632_v36  ;;  %v2978_v22 = vpop.f32.mrf.mxu2  ;;  %v2993_v4 = vadd.f32 %v2992_v25, %v2928_v37 }
 0x6d1   :  { %v3055_v29 = vadd.f32 1.0, %v3947_v16  ;;  %3950 = vpow2.f32 %v3629_v43  ;;  %v2979_v42 = vadd.f32 %v2978_v22, %v2914_v53 }
 0x6d2   :  { %3952 = vrcp.f32 %v3017_v17  ;;  %v3002_v3 = vadd.f32 %v2993_v4, %v4592_v27  ;;  %v3028_v59 = vand.u32 2147483647, %v3017_v17  ;;  %v3030_v2 = vand.u32 2147483648, %v3017_v17 }
 0x6d3   :  { %3954 = vrcp.f32 %v3055_v29  ;;  %v3001_v61 = vadd.f32 %v2979_v42, %v4596_v52  ;;  %v3068_v10 = vand.u32 2147483648, %v3055_v29  ;;  %v3066_v19 = vand.u32 2147483647, %v3055_v29 }
 0x6d4   :  { %3956 = vpow2.f32 %v3631_v60  ;;  %v3010_v11 = vadd.f32 %v3002_v3, %v5568_v24  ;;  %vm3024_vm14 = vweird.f32 %v3017_v17  ;;  %vm3062_vm15 = vweird.f32 %v3055_v29 }
 0x6d5   :  { %v3009_v58 = vadd.f32 %v3001_v61, %v5566_v39  ;;  %vm3029_vm2 = vcmp.eq.f32.partialorder %v3028_v59, 8.507059e+37  ;;  %v3031_v47 = vor.u32 1.1754944e-38, %v3030_v2  ;;  %v3069_v18 = vor.u32 1.1754944e-38, %v3068_v10 }
 0x6d6   :  { %v3949_v33 = vpop.eup %3948  ;;  %v3633_v46 = vmul.f32 -1.442695, %v3010_v11  ;;  %vm3067_vm4 = vcmp.eq.f32.partialorder %v3066_v19, 8.507059e+37 }
 0x6d7   :  { %v3951_v21 = vpop.eup %3950  ;;  %v5576_v34 = vadd.f32 1.0, %v3949_v33 }
 0x6d8   :  { %v3953_v7 = vpop.eup %3952  ;;  %v5579_v23 = vadd.f32 1.0, %v3951_v21 }
 0x6d9   :  { %v3955_v55 = vpop.eup %3954  ;;  %v3020_v1 = vmul.f32 %v3953_v7, %v3017_v17  ;;  %3958 = vrcp.f32 %v5576_v34  ;;  %vm3025_vm0 = vweird.f32 %v3953_v7  ;;  %v3108_v6 = vand.u32 2147483648, %v5576_v34 }
 0x6da   :  { %v3957_v35 = vpop.eup %3956  ;;  %v3058_v41 = vmul.f32 %v3955_v55, %v3055_v29  ;;  %3960 = vtanh.f32 %v3005_v26  ;;  %vm3063_vm13 = vweird.f32 %v3955_v55  ;;  %vm3026_vm1 = vmor %vm3024_vm14, %vm3025_vm0  ;;  %vm3039_vm5 = vweird.f32 %v5579_v23 }
 0x6db   :  { %v3021_v30 = vsub.f32 1.0, %v3020_v1  ;;  %3962 = vrcp.f32 %v5579_v23  ;;  %v5584_v40 = vadd.f32 1.0, %v3957_v35  ;;  %vm3064_vm3 = vmor %vm3062_vm15, %vm3063_vm13  ;;  %v3043_v5 = vand.u32 2147483647, %v5579_v23 }
 0x6dc   :  { %v3059_v27 = vsub.f32 1.0, %v3058_v41  ;;  %v3045_v62 = vand.u32 2147483648, %v5579_v23  ;;  %vm3102_vm11 = vweird.f32 %v5576_v34  ;;  %v3106_v25 = vand.u32 2147483647, %v5576_v34 }
 0x6dd   :  { %v3022_v15 = vmul.f32 %v3953_v7, %v3021_v30  ;;  %3964 = vrcp.f32 %v5584_v40  ;;  %v3083_v8 = vand.u32 2147483648, %v5584_v40  ;;  %v3081_v43 = vand.u32 2147483647, %v5584_v40 }
 0x6de   :  { %v3060_v53 = vmul.f32 %v3955_v55, %v3059_v27  ;;  %3966 = vpow2.f32 %v3633_v46  ;;  %v3046_v29 = vor.u32 1.1754944e-38, %v3045_v62  ;;  %vm3077_vm13 = vweird.f32 %v5584_v40 }
 0x6df   :  { %v5588_v52 = vpop.eup %3958  ;;  %v3023_v37 = vadd.f32 %v3953_v7, %v3022_v15  ;;  %3968 = vtanh.f32 %v3009_v58  ;;  %vm3044_vm14 = vcmp.eq.f32.partialorder %v3043_v5, 8.507059e+37  ;;  %v3084_v42 = vor.u32 1.1754944e-38, %v3083_v8 }
 0x6e0   :  { %v3961_v24 = vpop.eup %3960  ;;  %v3061_v38 = vadd.f32 %v3955_v55, %v3060_v53  ;;  %v3098_v13 = vmul.f32 %v5588_v52, %v5576_v34  ;;  %vm3103_vm9 = vweird.f32 %v5588_v52  ;;  %v3109_v34 = vor.u32 1.1754944e-38, %v3108_v6 }
 0x6e1   :  { %v3963_v50 = vpop.eup %3962  ;;  %v3027_v54 = vsel %vm3026_vm1, %v3953_v7, %v3023_v37  ;;  %vm5609_vm0 = vmor %vm3102_vm11, %vm3103_vm9  ;;  %vm3082_vm1 = vcmp.eq.f32.partialorder %v3081_v43, 8.507059e+37 }
 0x6e2   :  { %v3032_v32 = vsel %vm3029_vm2, %v3031_v47, %v3027_v54  ;;  %v3065_v31 = vsel %vm3064_vm3, %v3955_v55, %v3061_v38  ;;  %v3099_v49 = vsub.f32 1.0, %v3098_v13  ;;  %v3035_v39 = vmul.f32 %v3963_v50, %v5579_v23 }
 0x6e3   :  { %v3965_v28 = vpop.eup %3964  ;;  %v3070_v48 = vsel %vm3067_vm4, %v3069_v18, %v3065_v31  ;;  %v3129_v12 = vmul.f32 %v3961_v24, %v3032_v32  ;;  %vm3040_vm8 = vweird.f32 %v3963_v50  ;;  %vm3107_vm2 = vcmp.eq.f32.partialorder %v3106_v25, 8.507059e+37 }
 0x6e4   :  { %v3127_v57 = vmul.f32 %v3070_v48, %v5502_v44  ;;  %v3100_v56 = vmul.f32 %v5588_v52, %v3099_v49  ;;  %v3036_v63 = vsub.f32 1.0, %v3035_v39  ;;  %v3073_v20 = vmul.f32 %v3965_v28, %v5584_v40  ;;  %v3967_v36 = vpop.eup %3966  ;;  %vm3041_vm12 = vmor %vm3039_vm5, %vm3040_vm8 }
 0x6e5   :  { %vm3078_vm10 = vweird.f32 %v3965_v28  ;;  %v3969_v60 = vpop.eup %3968  ;;  %v3096_v14 = vadd.f32 1.0, %v3967_v36 }
 0x6e6   :  { %v3131_v9 = vadd.f32 %v3129_v12, %v3127_v57  ;;  %v3074_v0 = vsub.f32 1.0, %v3073_v20  ;;  %v3037_v45 = vmul.f32 %v3963_v50, %v3036_v63  ;;  %v3101_v44 = vadd.f32 %v5588_v52, %v3100_v56  ;;  %vm3079_vm15 = vmor %vm3077_vm13, %vm3078_vm10 }
 0x6e7   :  { %v3123_v10 = vand.u32 2147483648, %v3096_v14  ;;  %vm3117_vm4 = vweird.f32 %v3096_v14 }
 0x6e8   :  { %3970 = vtanh.f32 %v3131_v9  ;;  %v3075_v16 = vmul.f32 %v3965_v28, %v3074_v0  ;;  %v3038_v17 = vadd.f32 %v3963_v50, %v3037_v45  ;;  %v3105_v26 = vsel %vm5609_vm0, %v5588_v52, %v3101_v44 }
 0x6e9   :  { %3972 = vrcp.f32 %v3096_v14  ;;  %v3110_v1 = vsel %vm3107_vm2, %v3109_v34, %v3105_v26  ;;  %v3124_v19 = vor.u32 1.1754944e-38, %v3123_v10 }
 0x6ea   :  { %v3042_v4 = vsel %vm3041_vm12, %v3963_v50, %v3038_v17  ;;  %v3076_v33 = vadd.f32 %v3965_v28, %v3075_v16 }
 0x6eb   :  { %v3047_v21 = vsel %vm3044_vm14, %v3046_v29, %v3042_v4 }
 0x6ec   :  { %v3080_v3 = vsel %vm3079_vm15, %v3965_v28, %v3076_v33  ;;  %v3130_v7 = vmul.f32 %v3969_v60, %v3047_v21 }
 0x6ed   :  { %v3085_v23 = vsel %vm3082_vm1, %v3084_v42, %v3080_v3 }
 0x6ee   :  { %v3971_v55 = vpop.eup %3970  ;;  %v3128_v35 = vmul.f32 %v3085_v23, %v5517_v51  ;;  %v3121_v51 = vand.u32 2147483647, %v3096_v14 }
 0x6ef   :  { %v3135_v41 = vmul.f32 %v3971_v55, %v3110_v1  ;;  %v3973_v30 = vpop.eup %3972 }
 0x6f0   :  { %v3132_v61 = vadd.f32 %v3130_v7, %v3128_v35  ;;  %v3113_v11 = vmul.f32 %v3973_v30, %v3096_v14  ;;  %vm3118_vm3 = vweird.f32 %v3973_v30  ;;  %vm3122_vm8 = vcmp.eq.f32.partialorder %v3121_v51, 8.507059e+37 }
 0x6f1   :  { %v3137_v40 = vpack.c.bf16 %v3135_v41, %v3135_v41  ;;  %vm3119_vm5 = vmor %vm3117_vm4, %vm3118_vm3 }
 0x6f2   :  { %3974 = vtanh.f32 %v3132_v61  ;;  %v3114_v27 = vsub.f32 1.0, %v3113_v11 }
 0x6f3   :  { %3634 = vst.msk [vmem:[%s5639_s5 + $0x38] sm:$0xf] %vm765_vm6, %v3137_v40 }
 0x6f4   :  { %3141 = vst.msk [vmem:[%s5639_s5] sm:$0xf] %vm769_vm7, %v3137_v40  ;;  %v3115_v59 = vmul.f32 %v3973_v30, %v3114_v27 }
 0x6f6   :  { %v3116_v2 = vadd.f32 %v3973_v30, %v3115_v59 }
 0x6f8   :  { %v3975_v15 = vpop.eup %3974  ;;  %v3120_v53 = vsel %vm3119_vm5, %v3973_v30, %v3116_v2 }
 0x6f9   :  { %v3125_v52 = vsel %vm3122_vm8, %v3124_v19, %v3120_v53 }
 0x6fa   :  { %v3136_v37 = vmul.f32 %v3975_v15, %v3125_v52 }
 0x6fc   :  { %v3138_v58 = vpack.c.bf16 %v3136_v37, %v3136_v37 }
 0x6fe   :  { %3635 = vst.msk [vmem:[%s5639_s5 + $0x3c] sm:$0xf] %vm765_vm6, %v3138_v58 }
 0x6ff   :  { %3142 = vst.msk [vmem:[%s5639_s5 + $0x4] sm:$0xf] %vm769_vm7, %v3138_v58 }
 0x700   :  { %3147 = vsyncpa [#allocation3], 1 }

// kernel: model_forward.3
= control target key start
LH: loop header
LB: loop body
LE: loop exit
PB: predicated region body
PF: predicated region fallthrough
CT: control target
= control target key end

     0   :  { %10 = vsyncpa [#allocation3], 0  ;;  %s6097_s0 = inlined_call_operand.vmem [shape: bf16[8,16,128], index: 0, kind: input, shape index: {}]   ;;  %s6098_s1 = inlined_call_operand.vmem [shape: bf16[128,512], index: 1, kind: input, shape index: {}]   ;;  %s6099_s2 = inlined_call_operand.hbm [shape: bf16[128,512], index: 2, kind: input, shape index: {}]   ;;  %s6100_s3 = inlined_call_operand.vmem [shape: f32[1,512], index: 3, kind: input, shape index: {}]   ;;  %s6101_s4 = inlined_call_operand.hbm [shape: bf16[128,512], index: 4, kind: input, shape index: {}]   ;;  %s6102_s5 = inlined_call_operand.vmem [shape: bf16[8,16,128], index: 5, kind: output, shape index: {}]  }
   0x1   :  { %s20_s20 = sshll.u32 %s6099_s2, 4  ;;  %s21_s20 = int_to_ptr.hbm [resolvable:$true] %s20_s20 }
   0x2   :  { %11 = vsyncpa [#allocation5], 0  ;;  %s4301_s21 = smov [#allocation2]   ;;  %s35_s25 = sshll.u32 %s6101_s4, 4  ;;  %s36_s25 = int_to_ptr.hbm [resolvable:$true] %s35_s25 }
   0x3   :  { %s22_s22 = sshll.u32 %s4301_s21, 4  ;;  %s4302_s26 = smov 256   ;;  %s23_s22 = int_to_ptr.vmem [resolvable:$true] %s22_s22 }
   0x4   :  { %s4303_s27 = smov 16   ;;  %s4304_s28 = smov [#allocation4]  }
   0x5   :  { %28 = dma.hbm_to_vmem [thread:$0]  %s21_s20, 4096, %s23_s22, [#allocation3], %s4302_s26, %s4302_s26, %s4303_s27  }
   0x6   :  { %s37_s29 = sshll.u32 %s4304_s28, 4  ;;  %s38_s29 = int_to_ptr.vmem [resolvable:$true] %s37_s29 }
   0x7   :  { %43 = dma.hbm_to_vmem [thread:$0]  %s36_s25, 4096, %s38_s29, [#allocation5], %s4302_s26, %s4302_s26, %s4303_s27  }
   0x8   :  { %4297 = dma.done.wait [#allocation3], 4096  }
   0x9   :  { %4298 = vsyncadd [#allocation3], 4294963200 }
   0xa   :  { %4299 = dma.done.wait [#allocation5], 4096  }
   0xb   :  { %4300 = vsyncadd [#allocation5], 4294963200  ;;  %v3438_v0 = vld [vmem:[#allocation4 + $0xe0] sm:$0xf]  ;;  %v3970_v1 = vld [vmem:[#allocation4 + $0xec] sm:$0xf0] }
   0xc   :  { %v3968_v2 = vld [vmem:[#allocation4 + $0xe4] sm:$0xf]  ;;  %v4342_v3 = vor.u32 %v3970_v1, %v3438_v0  ;;  %v3440_v4 = vld [vmem:[#allocation4 + $0xf0] sm:$0xf0]  ;;  %v3446_v5 = vld [vmem:[#allocation4 + $0xe8] sm:$0xf] }
   0xd   :  { %v3971_v6 = vld [vmem:[#allocation4 + $0xf4] sm:$0xf0]  ;;  %v4344_v7 = vor.u32 %v3968_v2, %v3440_v4  ;;  %v3969_v9 = vld [vmem:[#allocation4 + $0xec] sm:$0xf]  ;;  %v3448_v10 = vld [vmem:[#allocation4 + $0xf8] sm:$0xf0] }
   0xe   :  { %6291 = vst [vmem:[#allocation8_spill] sm:$0xff] %v4342_v3  ;;  %v4346_v8 = vor.u32 %v3971_v6, %v3446_v5  ;;  %v3422_v11 = vld [vmem:[#allocation4 + $0xc0] sm:$0xf]  ;;  %319 = vmatpush.bf16.msra.mxu0 %v4342_v3  ;;  %v4349_v12 = vor.u32 %v3969_v9, %v3448_v10  ;;  %v3966_v13 = vld [vmem:[#allocation4 + $0xcc] sm:$0xf0] }
   0xf   :  { %6292 = vst [vmem:[#allocation9_spill] sm:$0xff] %v4344_v7  ;;  %v3964_v14 = vld [vmem:[#allocation4 + $0xc4] sm:$0xf]  ;;  %v3424_v15 = vld [vmem:[#allocation4 + $0xd0] sm:$0xf0]  ;;  %333 = vmatpush.bf16.msra.mxu1 %v4344_v7  ;;  %v4353_v16 = vor.u32 %v3966_v13, %v3422_v11 }
  0x10   :  { %6293 = vst [vmem:[#allocation10_spill] sm:$0xff] %v4346_v8  ;;  %347 = vmatpush.bf16.msra.mxu2 %v4346_v8  ;;  %v4355_v17 = vor.u32 %v3964_v14, %v3424_v15  ;;  %v3430_v18 = vld [vmem:[#allocation4 + $0xc8] sm:$0xf]  ;;  %v3967_v19 = vld [vmem:[#allocation4 + $0xd4] sm:$0xf0]  ;;  %361 = vmatpush.bf16.msra.mxu3 %v4349_v12 }
  0x11   :  { %6294 = vst [vmem:[#allocation11_spill] sm:$0xff] %v4349_v12  ;;  %v3965_v20 = vld [vmem:[#allocation4 + $0xcc] sm:$0xf]  ;;  %v4358_v21 = vor.u32 %v3967_v19, %v3430_v18  ;;  %v3432_v22 = vld [vmem:[#allocation4 + $0xd8] sm:$0xf0] }
  0x12   :  { %6295 = vst [vmem:[#allocation12_spill] sm:$0xff] %v4353_v16  ;;  %v3406_v23 = vld [vmem:[#allocation4 + $0xa0] sm:$0xf]  ;;  %v3962_v24 = vld [vmem:[#allocation4 + $0xac] sm:$0xf0]  ;;  %v4360_v25 = vor.u32 %v3965_v20, %v3432_v22  ;;  %320 = vmatpush.bf16.msra.mxu0 %v4353_v16 }
  0x13   :  { %6296 = vst [vmem:[#allocation13_spill] sm:$0xff] %v4355_v17  ;;  %v3960_v26 = vld [vmem:[#allocation4 + $0xa4] sm:$0xf]  ;;  %v3408_v27 = vld [vmem:[#allocation4 + $0xb0] sm:$0xf0]  ;;  %v4363_v29 = vor.u32 %v3962_v24, %v3406_v23  ;;  %334 = vmatpush.bf16.msra.mxu1 %v4355_v17 }
  0x14   :  { %6297 = vst [vmem:[#allocation14_spill] sm:$0xff] %v4358_v21  ;;  %v3414_v28 = vld [vmem:[#allocation4 + $0xa8] sm:$0xf]  ;;  %v3963_v30 = vld [vmem:[#allocation4 + $0xb4] sm:$0xf0]  ;;  %348 = vmatpush.bf16.msra.mxu2 %v4358_v21  ;;  %v4367_v33 = vor.u32 %v3960_v26, %v3408_v27  ;;  %362 = vmatpush.bf16.msra.mxu3 %v4360_v25 }
  0x15   :  { %6298 = vst [vmem:[#allocation15_spill] sm:$0xff] %v4360_v25  ;;  %v3961_v31 = vld [vmem:[#allocation4 + $0xac] sm:$0xf]  ;;  %v3416_v32 = vld [vmem:[#allocation4 + $0xb8] sm:$0xf0]  ;;  %v4369_v34 = vor.u32 %v3963_v30, %v3414_v28 }
  0x16   :  { %6299 = vst [vmem:[#allocation16_spill] sm:$0xff] %v4363_v29  ;;  %v3390_v35 = vld [vmem:[#allocation4 + $0x80] sm:$0xf]  ;;  %v3958_v36 = vld [vmem:[#allocation4 + $0x8c] sm:$0xf0]  ;;  %v4372_v38 = vor.u32 %v3961_v31, %v3416_v32  ;;  %321 = vmatpush.bf16.msra.mxu0 %v4363_v29 }
  0x17   :  { %6300 = vst [vmem:[#allocation17_spill] sm:$0xff] %v4367_v33  ;;  %v3956_v37 = vld [vmem:[#allocation4 + $0x84] sm:$0xf]  ;;  %v3392_v39 = vld [vmem:[#allocation4 + $0x90] sm:$0xf0]  ;;  %v4375_v44 = vor.u32 %v3958_v36, %v3390_v35  ;;  %335 = vmatpush.bf16.msra.mxu1 %v4367_v33 }
  0x18   :  { %6301 = vst [vmem:[#allocation18_spill] sm:$0xff] %v4369_v34  ;;  %v3398_v40 = vld [vmem:[#allocation4 + $0x88] sm:$0xf]  ;;  %v3959_v41 = vld [vmem:[#allocation4 + $0x94] sm:$0xf0]  ;;  %349 = vmatpush.bf16.msra.mxu2 %v4369_v34  ;;  %v4379_v45 = vor.u32 %v3956_v37, %v3392_v39  ;;  %363 = vmatpush.bf16.msra.mxu3 %v4372_v38 }
  0x19   :  { %6302 = vst [vmem:[#allocation19_spill] sm:$0xff] %v4372_v38  ;;  %v3957_v42 = vld [vmem:[#allocation4 + $0x8c] sm:$0xf]  ;;  %v3400_v43 = vld [vmem:[#allocation4 + $0x98] sm:$0xf0]  ;;  %v4381_v46 = vor.u32 %v3959_v41, %v3398_v40 }
  0x1a   :  { %6303 = vst [vmem:[#allocation20_spill] sm:$0xff] %v4375_v44  ;;  %v3374_v47 = vld [vmem:[#allocation4 + $0x60] sm:$0xf]  ;;  %v3954_v48 = vld [vmem:[#allocation4 + $0x6c] sm:$0xf0]  ;;  %v4384_v50 = vor.u32 %v3957_v42, %v3400_v43  ;;  %322 = vmatpush.bf16.msra.mxu0 %v4375_v44 }
  0x1b   :  { %6304 = vst [vmem:[#allocation21_spill] sm:$0xff] %v4379_v45  ;;  %v3952_v49 = vld [vmem:[#allocation4 + $0x64] sm:$0xf]  ;;  %v3376_v51 = vld [vmem:[#allocation4 + $0x70] sm:$0xf0]  ;;  %v4387_v56 = vor.u32 %v3954_v48, %v3374_v47  ;;  %336 = vmatpush.bf16.msra.mxu1 %v4379_v45 }
  0x1c   :  { %6305 = vst [vmem:[#allocation22_spill] sm:$0xff] %v4381_v46  ;;  %v3382_v52 = vld [vmem:[#allocation4 + $0x68] sm:$0xf]  ;;  %v3955_v53 = vld [vmem:[#allocation4 + $0x74] sm:$0xf0]  ;;  %350 = vmatpush.bf16.msra.mxu2 %v4381_v46  ;;  %v4391_v57 = vor.u32 %v3952_v49, %v3376_v51  ;;  %364 = vmatpush.bf16.msra.mxu3 %v4384_v50 }
  0x1d   :  { %6306 = vst [vmem:[#allocation23_spill] sm:$0xff] %v4384_v50  ;;  %v3953_v54 = vld [vmem:[#allocation4 + $0x6c] sm:$0xf]  ;;  %v3384_v55 = vld [vmem:[#allocation4 + $0x78] sm:$0xf0]  ;;  %v4393_v58 = vor.u32 %v3955_v53, %v3382_v52 }
  0x1e   :  { %6307 = vst [vmem:[#allocation24_spill] sm:$0xff] %v4387_v56  ;;  %v3358_v59 = vld [vmem:[#allocation4 + $0x40] sm:$0xf]  ;;  %v3950_v60 = vld [vmem:[#allocation4 + $0x4c] sm:$0xf0]  ;;  %v4396_v62 = vor.u32 %v3953_v54, %v3384_v55  ;;  %323 = vmatpush.bf16.msra.mxu0 %v4387_v56 }
  0x1f   :  { %6308 = vst [vmem:[#allocation25_spill] sm:$0xff] %v4391_v57  ;;  %v3948_v61 = vld [vmem:[#allocation4 + $0x44] sm:$0xf]  ;;  %v3360_v63 = vld [vmem:[#allocation4 + $0x50] sm:$0xf0]  ;;  %v4399_v5 = vor.u32 %v3950_v60, %v3358_v59  ;;  %337 = vmatpush.bf16.msra.mxu1 %v4391_v57 }
  0x20   :  { %6309 = vst [vmem:[#allocation26_spill] sm:$0xff] %v4393_v58  ;;  %v3366_v0 = vld [vmem:[#allocation4 + $0x48] sm:$0xf]  ;;  %v3951_v1 = vld [vmem:[#allocation4 + $0x54] sm:$0xf0]  ;;  %351 = vmatpush.bf16.msra.mxu2 %v4393_v58  ;;  %v4403_v6 = vor.u32 %v3948_v61, %v3360_v63  ;;  %365 = vmatpush.bf16.msra.mxu3 %v4396_v62 }
  0x21   :  { %6310 = vst [vmem:[#allocation27_spill] sm:$0xff] %v4396_v62  ;;  %v3949_v2 = vld [vmem:[#allocation4 + $0x4c] sm:$0xf]  ;;  %v3368_v4 = vld [vmem:[#allocation4 + $0x58] sm:$0xf0]  ;;  %v4405_v9 = vor.u32 %v3951_v1, %v3366_v0 }
  0x22   :  { %6311 = vst [vmem:[#allocation28_spill] sm:$0xff] %v4399_v5  ;;  %v3342_v10 = vld [vmem:[#allocation4 + $0x20] sm:$0xf]  ;;  %v3946_v11 = vld [vmem:[#allocation4 + $0x2c] sm:$0xf0]  ;;  %v4408_v14 = vor.u32 %v3949_v2, %v3368_v4  ;;  %324 = vmatpush.bf16.msra.mxu0 %v4399_v5 }
  0x23   :  { %6312 = vst [vmem:[#allocation29_spill] sm:$0xff] %v4403_v6  ;;  %v3944_v13 = vld [vmem:[#allocation4 + $0x24] sm:$0xf]  ;;  %v3344_v15 = vld [vmem:[#allocation4 + $0x30] sm:$0xf0]  ;;  %v4411_v23 = vor.u32 %v3946_v11, %v3342_v10  ;;  %338 = vmatpush.bf16.msra.mxu1 %v4403_v6 }
  0x24   :  { %6313 = vst [vmem:[#allocation30_spill] sm:$0xff] %v4405_v9  ;;  %v3350_v18 = vld [vmem:[#allocation4 + $0x28] sm:$0xf]  ;;  %v3947_v19 = vld [vmem:[#allocation4 + $0x34] sm:$0xf0]  ;;  %352 = vmatpush.bf16.msra.mxu2 %v4405_v9  ;;  %v4415_v27 = vor.u32 %v3944_v13, %v3344_v15  ;;  %366 = vmatpush.bf16.msra.mxu3 %v4408_v14 }
  0x25   :  { %6314 = vst [vmem:[#allocation31_spill] sm:$0xff] %v4408_v14  ;;  %v3945_v20 = vld [vmem:[#allocation4 + $0x2c] sm:$0xf]  ;;  %v3352_v22 = vld [vmem:[#allocation4 + $0x38] sm:$0xf0]  ;;  %v4417_v28 = vor.u32 %v3947_v19, %v3350_v18 }
  0x26   :  { %6315 = vst [vmem:[#allocation32_spill] sm:$0xff] %v4411_v23  ;;  %v3326_v24 = vld [vmem:[#allocation4] sm:$0xf]  ;;  %v3942_v26 = vld [vmem:[#allocation4 + $0xc] sm:$0xf0]  ;;  %v4420_v35 = vor.u32 %v3945_v20, %v3352_v22  ;;  %325 = vmatpush.bf16.msra.mxu0 %v4411_v23 }
  0x27   :  { %6316 = vst [vmem:[#allocation33_spill] sm:$0xff] %v4415_v27  ;;  %v3940_v30 = vld [vmem:[#allocation4 + $0x4] sm:$0xf]  ;;  %v3328_v31 = vld [vmem:[#allocation4 + $0x10] sm:$0xf0]  ;;  %v4423_v43 = vor.u32 %v3942_v26, %v3326_v24  ;;  %339 = vmatpush.bf16.msra.mxu1 %v4415_v27 }
  0x28   :  { %6317 = vst [vmem:[#allocation34_spill] sm:$0xff] %v4417_v28  ;;  %v3334_v32 = vld [vmem:[#allocation4 + $0x8] sm:$0xf]  ;;  %v3943_v36 = vld [vmem:[#allocation4 + $0x14] sm:$0xf0]  ;;  %353 = vmatpush.bf16.msra.mxu2 %v4417_v28  ;;  %v4427_v51 = vor.u32 %v3940_v30, %v3328_v31  ;;  %367 = vmatpush.bf16.msra.mxu3 %v4420_v35 }
  0x29   :  { %6318 = vst [vmem:[#allocation35_spill] sm:$0xff] %v4420_v35  ;;  %v3941_v37 = vld [vmem:[#allocation4 + $0xc] sm:$0xf]  ;;  %v3336_v39 = vld [vmem:[#allocation4 + $0x18] sm:$0xf0]  ;;  %v4429_v52 = vor.u32 %v3943_v36, %v3334_v32 }
  0x2a   :  { %v3572_v40 = vld [vmem:[#allocation2 + $0xe0] sm:$0xf]  ;;  %v3938_v41 = vld [vmem:[#allocation2 + $0xec] sm:$0xf0]  ;;  %v3936_v42 = vld [vmem:[#allocation2 + $0xe4] sm:$0xf]  ;;  %v4432_v55 = vor.u32 %v3941_v37, %v3336_v39  ;;  %326 = vmatpush.bf16.msra.mxu0 %v4423_v43 }
  0x2b   :  { %6319 = vst [vmem:[#allocation36_spill] sm:$0xff] %v4423_v43  ;;  %v3574_v47 = vld [vmem:[#allocation2 + $0xf0] sm:$0xf0]  ;;  %v3580_v48 = vld [vmem:[#allocation2 + $0xe8] sm:$0xf]  ;;  %v4434_v59 = vor.u32 %v3938_v41, %v3572_v40  ;;  %340 = vmatpush.bf16.msra.mxu1 %v4427_v51  ;;  %v4305_v37 = vmov 0  }
  0x2c   :  { %v3939_v49 = vld [vmem:[#allocation2 + $0xf4] sm:$0xf0]  ;;  %6320 = vst [vmem:[#allocation37_spill] sm:$0xff] %v4427_v51  ;;  %v3937_v53 = vld [vmem:[#allocation2 + $0xec] sm:$0xf]  ;;  %v4436_v60 = vor.u32 %v3936_v42, %v3574_v47  ;;  %354 = vmatpush.bf16.msra.mxu2 %v4429_v52  ;;  %368 = vmatpush.bf16.msra.mxu3 %v4432_v55 }
  0x2d   :  { %6321 = vst [vmem:[#allocation38_spill] sm:$0xff] %v4429_v52  ;;  %v3582_v54 = vld [vmem:[#allocation2 + $0xf8] sm:$0xf0]  ;;  %v4438_v61 = vor.u32 %v3939_v49, %v3580_v48  ;;  %v3556_v63 = vld [vmem:[#allocation2 + $0xc0] sm:$0xf]  ;;  %327 = vmatmul.bf16.vlgmr.msra.gmra.mxu0 %v4305_v37 }
  0x2e   :  { %6322 = vst [vmem:[#allocation39_spill] sm:$0xff] %v4432_v55  ;;  %v3934_v0 = vld [vmem:[#allocation2 + $0xcc] sm:$0xf0]  ;;  %v3932_v1 = vld [vmem:[#allocation2 + $0xc4] sm:$0xf]  ;;  %v4441_v2 = vor.u32 %v3937_v53, %v3582_v54  ;;  %546 = vmatpush.bf16.msrb.mxu0 %v4434_v59  ;;  %341 = vmatmul.bf16.vlgmr.msra.gmra.mxu1 %v4305_v37 }
  0x2f   :  { %6323 = vst [vmem:[#allocation40_spill] sm:$0xff] %v4434_v59  ;;  %v3558_v4 = vld [vmem:[#allocation2 + $0xd0] sm:$0xf0]  ;;  %v3564_v10 = vld [vmem:[#allocation2 + $0xc8] sm:$0xf]  ;;  %v4447_v18 = vor.u32 %v3934_v0, %v3556_v63  ;;  %560 = vmatpush.bf16.msrb.mxu1 %v4436_v60  ;;  %369 = vmatmul.bf16.vlgmr.msra.gmra.mxu3 %v4305_v37 }
  0x30   :  { %6324 = vst [vmem:[#allocation41_spill] sm:$0xff] %v4436_v60  ;;  %v3935_v11 = vld [vmem:[#allocation2 + $0xd4] sm:$0xf0]  ;;  %v3933_v13 = vld [vmem:[#allocation2 + $0xcc] sm:$0xf]  ;;  %574 = vmatpush.bf16.msrb.mxu2 %v4438_v61  ;;  %v4451_v20 = vor.u32 %v3932_v1, %v3558_v4  ;;  %588 = vmatpush.bf16.msrb.mxu3 %v4441_v2 }
  0x31   :  { %6325 = vst [vmem:[#allocation42_spill] sm:$0xff] %v4438_v61  ;;  %v3566_v15 = vld [vmem:[#allocation2 + $0xd8] sm:$0xf0]  ;;  %v3540_v19 = vld [vmem:[#allocation2 + $0xa0] sm:$0xf]  ;;  %v4453_v22 = vor.u32 %v3935_v11, %v3564_v10  ;;  %355 = vmatmul.bf16.vlgmr.msra.gmra.mxu2 %v4305_v37 }
  0x32   :  { %6326 = vst [vmem:[#allocation43_spill] sm:$0xff] %v4441_v2  ;;  %v3930_v24 = vld [vmem:[#allocation2 + $0xac] sm:$0xf0]  ;;  %v3928_v26 = vld [vmem:[#allocation2 + $0xa4] sm:$0xf]  ;;  %v4456_v30 = vor.u32 %v3933_v13, %v3566_v15  ;;  %547 = vmatpush.bf16.msrb.mxu0 %v4447_v18 }
  0x33   :  { %6327 = vst [vmem:[#allocation44_spill] sm:$0xff] %v4447_v18  ;;  %v3542_v31 = vld [vmem:[#allocation2 + $0xb0] sm:$0xf0]  ;;  %v3548_v32 = vld [vmem:[#allocation2 + $0xa8] sm:$0xf]  ;;  %v4459_v41 = vor.u32 %v3930_v24, %v3540_v19  ;;  %561 = vmatpush.bf16.msrb.mxu1 %v4451_v20 }
  0x34   :  { %6328 = vst [vmem:[#allocation45_spill] sm:$0xff] %v4451_v20  ;;  %v3931_v36 = vld [vmem:[#allocation2 + $0xb4] sm:$0xf0]  ;;  %v3929_v39 = vld [vmem:[#allocation2 + $0xac] sm:$0xf]  ;;  %575 = vmatpush.bf16.msrb.mxu2 %v4453_v22  ;;  %v4463_v42 = vor.u32 %v3928_v26, %v3542_v31  ;;  %589 = vmatpush.bf16.msrb.mxu3 %v4456_v30 }
  0x35   :  { %6329 = vst [vmem:[#allocation46_spill] sm:$0xff] %v4453_v22  ;;  %v3550_v40 = vld [vmem:[#allocation2 + $0xb8] sm:$0xf0]  ;;  %v4465_v47 = vor.u32 %v3931_v36, %v3548_v32  ;;  %v3524_v48 = vld [vmem:[#allocation2 + $0x80] sm:$0xf] }
  0x36   :  { %6330 = vst [vmem:[#allocation47_spill] sm:$0xff] %v4456_v30  ;;  %v3926_v49 = vld [vmem:[#allocation2 + $0x8c] sm:$0xf0]  ;;  %v3924_v53 = vld [vmem:[#allocation2 + $0x84] sm:$0xf]  ;;  %v4468_v54 = vor.u32 %v3929_v39, %v3550_v40  ;;  %548 = vmatpush.bf16.msrb.mxu0 %v4459_v41 }
  0x37   :  { %6331 = vst [vmem:[#allocation48_spill] sm:$0xff] %v4459_v41  ;;  %v3526_v63 = vld [vmem:[#allocation2 + $0x90] sm:$0xf0]  ;;  %v3532_v0 = vld [vmem:[#allocation2 + $0x88] sm:$0xf]  ;;  %v4471_v11 = vor.u32 %v3926_v49, %v3524_v48  ;;  %562 = vmatpush.bf16.msrb.mxu1 %v4463_v42 }
  0x38   :  { %6332 = vst [vmem:[#allocation49_spill] sm:$0xff] %v4463_v42  ;;  %v3927_v1 = vld [vmem:[#allocation2 + $0x94] sm:$0xf0]  ;;  %v3925_v4 = vld [vmem:[#allocation2 + $0x8c] sm:$0xf]  ;;  %576 = vmatpush.bf16.msrb.mxu2 %v4465_v47  ;;  %v4475_v13 = vor.u32 %v3924_v53, %v3526_v63  ;;  %590 = vmatpush.bf16.msrb.mxu3 %v4468_v54 }
  0x39   :  { %6333 = vst [vmem:[#allocation50_spill] sm:$0xff] %v4465_v47  ;;  %v3534_v10 = vld [vmem:[#allocation2 + $0x98] sm:$0xf0]  ;;  %v4477_v15 = vor.u32 %v3927_v1, %v3532_v0  ;;  %v3508_v19 = vld [vmem:[#allocation2 + $0x60] sm:$0xf] }
  0x3a   :  { %6334 = vst [vmem:[#allocation51_spill] sm:$0xff] %v4468_v54  ;;  %v3922_v24 = vld [vmem:[#allocation2 + $0x6c] sm:$0xf0]  ;;  %v3920_v26 = vld [vmem:[#allocation2 + $0x64] sm:$0xf]  ;;  %v4480_v31 = vor.u32 %v3925_v4, %v3534_v10  ;;  %549 = vmatpush.bf16.msrb.mxu0 %v4471_v11 }
  0x3b   :  { %6335 = vst [vmem:[#allocation52_spill] sm:$0xff] %v4471_v11  ;;  %v3510_v32 = vld [vmem:[#allocation2 + $0x70] sm:$0xf0]  ;;  %v3516_v36 = vld [vmem:[#allocation2 + $0x68] sm:$0xf]  ;;  %v4483_v48 = vor.u32 %v3922_v24, %v3508_v19  ;;  %563 = vmatpush.bf16.msrb.mxu1 %v4475_v13 }
  0x3c   :  { %6336 = vst [vmem:[#allocation53_spill] sm:$0xff] %v4475_v13  ;;  %v3923_v37 = vld [vmem:[#allocation2 + $0x74] sm:$0xf0]  ;;  %v3921_v39 = vld [vmem:[#allocation2 + $0x6c] sm:$0xf]  ;;  %577 = vmatpush.bf16.msrb.mxu2 %v4477_v15  ;;  %v4487_v49 = vor.u32 %v3920_v26, %v3510_v32  ;;  %591 = vmatpush.bf16.msrb.mxu3 %v4480_v31 }
  0x3d   :  { %6337 = vst [vmem:[#allocation54_spill] sm:$0xff] %v4477_v15  ;;  %v3518_v40 = vld [vmem:[#allocation2 + $0x78] sm:$0xf0]  ;;  %v4489_v53 = vor.u32 %v3923_v37, %v3516_v36  ;;  %v3492_v63 = vld [vmem:[#allocation2 + $0x40] sm:$0xf] }
  0x3e   :  { %6338 = vst [vmem:[#allocation55_spill] sm:$0xff] %v4480_v31  ;;  %v3918_v0 = vld [vmem:[#allocation2 + $0x4c] sm:$0xf0]  ;;  %v3916_v1 = vld [vmem:[#allocation2 + $0x44] sm:$0xf]  ;;  %v4492_v4 = vor.u32 %v3921_v39, %v3518_v40  ;;  %550 = vmatpush.bf16.msrb.mxu0 %v4483_v48 }
  0x3f   :  { %6339 = vst [vmem:[#allocation56_spill] sm:$0xff] %v4483_v48  ;;  %v3494_v10 = vld [vmem:[#allocation2 + $0x50] sm:$0xf0]  ;;  %v3500_v54 = vld [vmem:[#allocation2 + $0x48] sm:$0xf]  ;;  %v4495_v13 = vor.u32 %v3918_v0, %v3492_v63  ;;  %564 = vmatpush.bf16.msrb.mxu1 %v4487_v49 }
  0x40   :  { %6340 = vst [vmem:[#allocation57_spill] sm:$0xff] %v4487_v49  ;;  %v3919_v11 = vld [vmem:[#allocation2 + $0x54] sm:$0xf0]  ;;  %v3917_v19 = vld [vmem:[#allocation2 + $0x4c] sm:$0xf]  ;;  %578 = vmatpush.bf16.msrb.mxu2 %v4489_v53  ;;  %v4499_v26 = vor.u32 %v3916_v1, %v3494_v10  ;;  %592 = vmatpush.bf16.msrb.mxu3 %v4492_v4 }
  0x41   :  { %6341 = vst [vmem:[#allocation58_spill] sm:$0xff] %v4489_v53  ;;  %v3502_v24 = vld [vmem:[#allocation2 + $0x58] sm:$0xf0]  ;;  %v4501_v32 = vor.u32 %v3919_v11, %v3500_v54  ;;  %v3476_v36 = vld [vmem:[#allocation2 + $0x20] sm:$0xf] }
  0x42   :  { %6342 = vst [vmem:[#allocation59_spill] sm:$0xff] %v4492_v4  ;;  %v3914_v37 = vld [vmem:[#allocation2 + $0x2c] sm:$0xf0]  ;;  %v3912_v39 = vld [vmem:[#allocation2 + $0x24] sm:$0xf]  ;;  %v4504_v40 = vor.u32 %v3917_v19, %v3502_v24  ;;  %551 = vmatpush.bf16.msrb.mxu0 %v4495_v13 }
  0x43   :  { %6343 = vst [vmem:[#allocation60_spill] sm:$0xff] %v4495_v13  ;;  %v3478_v31 = vld [vmem:[#allocation2 + $0x30] sm:$0xf0]  ;;  %v3484_v15 = vld [vmem:[#allocation2 + $0x28] sm:$0xf]  ;;  %v4507_v49 = vor.u32 %v3914_v37, %v3476_v36  ;;  %565 = vmatpush.bf16.msrb.mxu1 %v4499_v26 }
  0x44   :  { %6344 = vst [vmem:[#allocation61_spill] sm:$0xff] %v4499_v26  ;;  %v3915_v48 = vld [vmem:[#allocation2 + $0x34] sm:$0xf0]  ;;  %v3913_v63 = vld [vmem:[#allocation2 + $0x2c] sm:$0xf]  ;;  %579 = vmatpush.bf16.msrb.mxu2 %v4501_v32  ;;  %v4511_v54 = vor.u32 %v3912_v39, %v3478_v31  ;;  %593 = vmatpush.bf16.msrb.mxu3 %v4504_v40 }
  0x45   :  { %6345 = vst [vmem:[#allocation62_spill] sm:$0xff] %v4501_v32  ;;  %v3486_v0 = vld [vmem:[#allocation2 + $0x38] sm:$0xf0]  ;;  %v3460_v1 = vld [vmem:[#allocation2] sm:$0xf]  ;;  %v4513_v11 = vor.u32 %v3915_v48, %v3484_v15 }
  0x46   :  { %6346 = vst [vmem:[#allocation63_spill] sm:$0xff] %v4504_v40  ;;  %v3910_v10 = vld [vmem:[#allocation2 + $0xc] sm:$0xf0]  ;;  %v3908_v19 = vld [vmem:[#allocation2 + $0x4] sm:$0xf]  ;;  %v4516_v53 = vor.u32 %v3913_v63, %v3486_v0  ;;  %552 = vmatpush.bf16.msrb.mxu0 %v4507_v49 }
  0x47   :  { %6347 = vst [vmem:[#allocation64_spill] sm:$0xff] %v4507_v49  ;;  %v3462_v24 = vld [vmem:[#allocation2 + $0x10] sm:$0xf0]  ;;  %v3468_v4 = vld [vmem:[#allocation2 + $0x8] sm:$0xf]  ;;  %v4528_v48 = vor.u32 %v3910_v10, %v3460_v1  ;;  %566 = vmatpush.bf16.msrb.mxu1 %v4511_v54 }
  0x48   :  { %6348 = vst [vmem:[#allocation65_spill] sm:$0xff] %v4511_v54  ;;  %v3911_v13 = vld [vmem:[#allocation2 + $0x14] sm:$0xf0]  ;;  %v3909_v36 = vld [vmem:[#allocation2 + $0xc] sm:$0xf]  ;;  %580 = vmatpush.bf16.msrb.mxu2 %v4513_v11  ;;  %v4541_v40 = vor.u32 %v3908_v19, %v3462_v24  ;;  %594 = vmatpush.bf16.msrb.mxu3 %v4516_v53 }
  0x49   :  { %6349 = vst [vmem:[#allocation66_spill] sm:$0xff] %v4513_v11  ;;  %v3470_v37 = vld [vmem:[#allocation2 + $0x18] sm:$0xf0]  ;;  %v3704_v26 = vld [vmem:[%s6098_s1 + $0xe0] sm:$0xf]  ;;  %v4543_v1 = vor.u32 %v3911_v13, %v3468_v4 }
  0x4a   :  { %6350 = vst [vmem:[#allocation67_spill] sm:$0xff] %v4516_v53  ;;  %v3906_v31 = vld [vmem:[%s6098_s1 + $0xec] sm:$0xf0]  ;;  %v3904_v15 = vld [vmem:[%s6098_s1 + $0xe4] sm:$0xf]  ;;  %v4552_v32 = vor.u32 %v3909_v36, %v3470_v37  ;;  %553 = vmatpush.bf16.msrb.mxu0 %v4528_v48 }
  0x4b   :  { %6351 = vst [vmem:[#allocation68_spill] sm:$0xff] %v4528_v48  ;;  %v3706_v39 = vld [vmem:[%s6098_s1 + $0xf0] sm:$0xf0]  ;;  %v3712_v63 = vld [vmem:[%s6098_s1 + $0xe8] sm:$0xf]  ;;  %v4554_v47 = vor.u32 %v3906_v31, %v3704_v26  ;;  %567 = vmatpush.bf16.msrb.mxu1 %v4541_v40 }
  0x4c   :  { %v3907_v0 = vld [vmem:[%s6098_s1 + $0xf4] sm:$0xf0]  ;;  %6352 = vst [vmem:[#allocation69_spill] sm:$0xff] %v4541_v40  ;;  %v3905_v10 = vld [vmem:[%s6098_s1 + $0xec] sm:$0xf]  ;;  %v4559_v13 = vor.u32 %v3904_v15, %v3706_v39  ;;  %581 = vmatpush.bf16.msrb.mxu2 %v4543_v1  ;;  %595 = vmatpush.bf16.msrb.mxu3 %v4552_v32 }
  0x4d   :  { %6353 = vst [vmem:[#allocation70_spill] sm:$0xff] %v4543_v1  ;;  %v3714_v49 = vld [vmem:[%s6098_s1 + $0xf8] sm:$0xf0]  ;;  %v3688_v19 = vld [vmem:[%s6098_s1 + $0xc0] sm:$0xf]  ;;  %v4561_v4 = vor.u32 %v3907_v0, %v3712_v63 }
  0x4e   :  { %6354 = vst [vmem:[#allocation71_spill] sm:$0xff] %v4552_v32  ;;  %v3902_v24 = vld [vmem:[%s6098_s1 + $0xcc] sm:$0xf0]  ;;  %v3900_v53 = vld [vmem:[%s6098_s1 + $0xc4] sm:$0xf]  ;;  %v4573_v36 = vor.u32 %v3905_v10, %v3714_v49  ;;  %v3973_v15 = vld [vmem:[%s6097_s0 + $0x38] sm:$0xff]  ;;  %768 = vmatpush.bf16.msra.mxu0 %v4554_v47 }
  0x4f   :  { %6355 = vst [vmem:[#allocation72_spill] sm:$0xff] %v4554_v47  ;;  %v3690_v26 = vld [vmem:[%s6098_s1 + $0xd0] sm:$0xf0]  ;;  %v3696_v37 = vld [vmem:[%s6098_s1 + $0xc8] sm:$0xf]  ;;  %v4594_v63 = vor.u32 %v3902_v24, %v3688_v19  ;;  %782 = vmatpush.bf16.msra.mxu1 %v4559_v13  ;;  %554 = vmatmul.bf16.vlgmr.msrb.gmra.mxu0 %v3973_v15 }
  0x50   :  { %6356 = vst [vmem:[#allocation73_spill] sm:$0xff] %v4559_v13  ;;  %v3903_v31 = vld [vmem:[%s6098_s1 + $0xd4] sm:$0xf0]  ;;  %v3901_v49 = vld [vmem:[%s6098_s1 + $0xcc] sm:$0xf]  ;;  %796 = vmatpush.bf16.msra.mxu2 %v4561_v4  ;;  %v4598_v0 = vor.u32 %v3900_v53, %v3690_v26  ;;  %810 = vmatpush.bf16.msra.mxu3 %v4573_v36 }
  0x51   :  { %6357 = vst [vmem:[#allocation74_spill] sm:$0xff] %v4561_v4  ;;  %v3698_v39 = vld [vmem:[%s6098_s1 + $0xd8] sm:$0xf0]  ;;  %v4600_v10 = vor.u32 %v3903_v31, %v3696_v37  ;;  %v3672_v1 = vld [vmem:[%s6098_s1 + $0xa0] sm:$0xf]  ;;  %568 = vmatmul.bf16.vlgmr.msrb.gmra.mxu1 %v3973_v15  ;;  %596 = vmatmul.bf16.vlgmr.msrb.gmra.mxu3 %v3973_v15 }
  0x52   :  { %6358 = vst [vmem:[#allocation75_spill] sm:$0xff] %v4573_v36  ;;  %v3898_v32 = vld [vmem:[%s6098_s1 + $0xac] sm:$0xf0]  ;;  %v3896_v19 = vld [vmem:[%s6098_s1 + $0xa4] sm:$0xf]  ;;  %v4612_v24 = vor.u32 %v3901_v49, %v3698_v39  ;;  %769 = vmatpush.bf16.msra.mxu0 %v4594_v63  ;;  %582 = vmatmul.bf16.vlgmr.msrb.gmra.mxu2 %v3973_v15 }
  0x53   :  { %6359 = vst [vmem:[#allocation76_spill] sm:$0xff] %v4598_v0  ;;  %v3674_v53 = vld [vmem:[%s6098_s1 + $0xb0] sm:$0xf0]  ;;  %v3680_v26 = vld [vmem:[%s6098_s1 + $0xa8] sm:$0xf]  ;;  %v4630_v39 = vor.u32 %v3898_v32, %v3672_v1  ;;  %783 = vmatpush.bf16.msra.mxu1 %v4598_v0 }
  0x54   :  { %6360 = vst [vmem:[#allocation77_spill] sm:$0xff] %v4600_v10  ;;  %v3899_v37 = vld [vmem:[%s6098_s1 + $0xb4] sm:$0xf0]  ;;  %v3897_v31 = vld [vmem:[%s6098_s1 + $0xac] sm:$0xf]  ;;  %797 = vmatpush.bf16.msra.mxu2 %v4600_v10  ;;  %v4634_v36 = vor.u32 %v3896_v19, %v3674_v53  ;;  %811 = vmatpush.bf16.msra.mxu3 %v4612_v24 }
  0x55   :  { %6361 = vst [vmem:[#allocation78_spill] sm:$0xff] %v4612_v24  ;;  %v3682_v49 = vld [vmem:[%s6098_s1 + $0xb8] sm:$0xf0]  ;;  %v4636_v4 = vor.u32 %v3899_v37, %v3680_v26  ;;  %v3656_v13 = vld [vmem:[%s6098_s1 + $0x80] sm:$0xf] }
  0x56   :  { %6362 = vst [vmem:[#allocation79_spill] sm:$0xff] %v4630_v39  ;;  %v3894_v47 = vld [vmem:[%s6098_s1 + $0x8c] sm:$0xf0]  ;;  %v3892_v32 = vld [vmem:[%s6098_s1 + $0x84] sm:$0xf]  ;;  %v4648_v1 = vor.u32 %v3897_v31, %v3682_v49  ;;  %770 = vmatpush.bf16.msra.mxu0 %v4630_v39 }
  0x57   :  { %6363 = vst [vmem:[#allocation80_spill] sm:$0xff] %v4634_v36  ;;  %v3658_v15 = vld [vmem:[%s6098_s1 + $0x90] sm:$0xf0]  ;;  %v3664_v19 = vld [vmem:[%s6098_s1 + $0x88] sm:$0xf]  ;;  %v4666_v31 = vor.u32 %v3894_v47, %v3656_v13  ;;  %784 = vmatpush.bf16.msra.mxu1 %v4634_v36 }
  0x58   :  { %6364 = vst [vmem:[#allocation81_spill] sm:$0xff] %v4636_v4  ;;  %v3895_v53 = vld [vmem:[%s6098_s1 + $0x94] sm:$0xf0]  ;;  %v3893_v26 = vld [vmem:[%s6098_s1 + $0x8c] sm:$0xf]  ;;  %798 = vmatpush.bf16.msra.mxu2 %v4636_v4  ;;  %v4670_v49 = vor.u32 %v3892_v32, %v3658_v15  ;;  %812 = vmatpush.bf16.msra.mxu3 %v4648_v1 }
  0x59   :  { %6365 = vst [vmem:[#allocation82_spill] sm:$0xff] %v4648_v1  ;;  %v3666_v37 = vld [vmem:[%s6098_s1 + $0x98] sm:$0xf0]  ;;  %v4672_v24 = vor.u32 %v3895_v53, %v3664_v19  ;;  %v3640_v10 = vld [vmem:[%s6098_s1 + $0x60] sm:$0xf] }
  0x5a   :  { %6366 = vst [vmem:[#allocation83_spill] sm:$0xff] %v4666_v31  ;;  %v3890_v0 = vld [vmem:[%s6098_s1 + $0x6c] sm:$0xf0]  ;;  %v3888_v47 = vld [vmem:[%s6098_s1 + $0x64] sm:$0xf]  ;;  %v4684_v13 = vor.u32 %v3893_v26, %v3666_v37  ;;  %771 = vmatpush.bf16.msra.mxu0 %v4666_v31 }
  0x5b   :  { %6367 = vst [vmem:[#allocation84_spill] sm:$0xff] %v4670_v49  ;;  %v3642_v32 = vld [vmem:[%s6098_s1 + $0x70] sm:$0xf0]  ;;  %v3648_v15 = vld [vmem:[%s6098_s1 + $0x68] sm:$0xf]  ;;  %v4702_v37 = vor.u32 %v3890_v0, %v3640_v10  ;;  %785 = vmatpush.bf16.msra.mxu1 %v4670_v49 }
  0x5c   :  { %6368 = vst [vmem:[#allocation85_spill] sm:$0xff] %v4672_v24  ;;  %v3891_v19 = vld [vmem:[%s6098_s1 + $0x74] sm:$0xf0]  ;;  %v3889_v53 = vld [vmem:[%s6098_s1 + $0x6c] sm:$0xf]  ;;  %799 = vmatpush.bf16.msra.mxu2 %v4672_v24  ;;  %v4706_v1 = vor.u32 %v3888_v47, %v3642_v32  ;;  %813 = vmatpush.bf16.msra.mxu3 %v4684_v13 }
  0x5d   :  { %6369 = vst [vmem:[#allocation86_spill] sm:$0xff] %v4684_v13  ;;  %v3650_v26 = vld [vmem:[%s6098_s1 + $0x78] sm:$0xf0]  ;;  %v4708_v4 = vor.u32 %v3891_v19, %v3648_v15  ;;  %v3624_v36 = vld [vmem:[%s6098_s1 + $0x40] sm:$0xf] }
  0x5e   :  { %6370 = vst [vmem:[#allocation87_spill] sm:$0xff] %v4702_v37  ;;  %v3886_v39 = vld [vmem:[%s6098_s1 + $0x4c] sm:$0xf0]  ;;  %v3884_v0 = vld [vmem:[%s6098_s1 + $0x44] sm:$0xf]  ;;  %v4720_v10 = vor.u32 %v3889_v53, %v3650_v26  ;;  %772 = vmatpush.bf16.msra.mxu0 %v4702_v37 }
  0x5f   :  { %6371 = vst [vmem:[#allocation88_spill] sm:$0xff] %v4706_v1  ;;  %v3626_v47 = vld [vmem:[%s6098_s1 + $0x50] sm:$0xf0]  ;;  %v3632_v32 = vld [vmem:[%s6098_s1 + $0x48] sm:$0xf]  ;;  %v4738_v26 = vor.u32 %v3886_v39, %v3624_v36  ;;  %786 = vmatpush.bf16.msra.mxu1 %v4706_v1 }
  0x60   :  { %6372 = vst [vmem:[#allocation89_spill] sm:$0xff] %v4708_v4  ;;  %v3887_v15 = vld [vmem:[%s6098_s1 + $0x54] sm:$0xf0]  ;;  %v3885_v19 = vld [vmem:[%s6098_s1 + $0x4c] sm:$0xf]  ;;  %800 = vmatpush.bf16.msra.mxu2 %v4708_v4  ;;  %v4742_v13 = vor.u32 %v3884_v0, %v3626_v47  ;;  %814 = vmatpush.bf16.msra.mxu3 %v4720_v10 }
  0x61   :  { %6373 = vst [vmem:[#allocation90_spill] sm:$0xff] %v4720_v10  ;;  %v3634_v53 = vld [vmem:[%s6098_s1 + $0x58] sm:$0xf0]  ;;  %v4744_v24 = vor.u32 %v3887_v15, %v3632_v32  ;;  %v3608_v49 = vld [vmem:[%s6098_s1 + $0x20] sm:$0xf] }
  0x62   :  { %6374 = vst [vmem:[#allocation91_spill] sm:$0xff] %v4738_v26  ;;  %v3882_v31 = vld [vmem:[%s6098_s1 + $0x2c] sm:$0xf0]  ;;  %v3880_v36 = vld [vmem:[%s6098_s1 + $0x24] sm:$0xf]  ;;  %v4756_v39 = vor.u32 %v3885_v19, %v3634_v53  ;;  %773 = vmatpush.bf16.msra.mxu0 %v4738_v26 }
  0x63   :  { %6375 = vst [vmem:[#allocation92_spill] sm:$0xff] %v4742_v13  ;;  %v3610_v0 = vld [vmem:[%s6098_s1 + $0x30] sm:$0xf0]  ;;  %v3616_v47 = vld [vmem:[%s6098_s1 + $0x28] sm:$0xf]  ;;  %v4774_v53 = vor.u32 %v3882_v31, %v3608_v49  ;;  %787 = vmatpush.bf16.msra.mxu1 %v4742_v13  ;;  %v3972_v26 = vld [vmem:[%s6097_s0] sm:$0xff] }
  0x64   :  { %6376 = vst [vmem:[#allocation93_spill] sm:$0xff] %v4744_v24  ;;  %v3883_v32 = vld [vmem:[%s6098_s1 + $0x34] sm:$0xf0]  ;;  %v3881_v15 = vld [vmem:[%s6098_s1 + $0x2c] sm:$0xf]  ;;  %801 = vmatpush.bf16.msra.mxu2 %v4744_v24  ;;  %v4778_v10 = vor.u32 %v3880_v36, %v3610_v0  ;;  %815 = vmatpush.bf16.msra.mxu3 %v4756_v39 }
  0x65   :  { %6377 = vst [vmem:[#allocation94_spill] sm:$0xff] %v4756_v39  ;;  %v3618_v19 = vld [vmem:[%s6098_s1 + $0x38] sm:$0xf0]  ;;  %v4780_v4 = vor.u32 %v3883_v32, %v3616_v47  ;;  %v3592_v1 = vld [vmem:[%s6098_s1] sm:$0xf] }
  0x66   :  { %6378 = vst [vmem:[#allocation95_spill] sm:$0xff] %v4778_v10  ;;  %v3878_v37 = vld [vmem:[%s6098_s1 + $0xc] sm:$0xf0]  ;;  %v3876_v31 = vld [vmem:[%s6098_s1 + $0x4] sm:$0xf]  ;;  %v4792_v49 = vor.u32 %v3881_v15, %v3618_v19  ;;  %774 = vmatpush.bf16.msra.mxu0 %v4774_v53 }
  0x67   :  { %6379 = vst [vmem:[#allocation96_spill] sm:$0xff] %v4780_v4  ;;  %v3594_v36 = vld [vmem:[%s6098_s1 + $0x10] sm:$0xf0]  ;;  %v3600_v0 = vld [vmem:[%s6098_s1 + $0x8] sm:$0xf]  ;;  %v4810_v19 = vor.u32 %v3878_v37, %v3592_v1  ;;  %788 = vmatpush.bf16.msra.mxu1 %v4778_v10  ;;  %v6386_v37 = vld [vmem:[#allocation51_spill] sm:$0xff] }
  0x68   :  { %6380 = vst [vmem:[#allocation97_spill] sm:$0xff] %v4792_v49  ;;  %v3879_v47 = vld [vmem:[%s6098_s1 + $0x14] sm:$0xf0]  ;;  %v3877_v32 = vld [vmem:[%s6098_s1 + $0xc] sm:$0xf]  ;;  %802 = vmatpush.bf16.msra.mxu2 %v4780_v4  ;;  %v4814_v39 = vor.u32 %v3876_v31, %v3594_v36  ;;  %816 = vmatpush.bf16.msra.mxu3 %v4792_v49  ;;  %v6385_v1 = vld [vmem:[#allocation50_spill] sm:$0xff] }
  0x69   :  { %v3602_v15 = vld [vmem:[%s6098_s1 + $0x18] sm:$0xf0]  ;;  %6381 = vst [vmem:[#allocation98_spill] sm:$0xff] %v4810_v19  ;;  %v4816_v24 = vor.u32 %v3879_v47, %v3600_v0  ;;  %v6388_v31 = vld [vmem:[#allocation53_spill] sm:$0xff]  ;;  %v6389_v36 = vld [vmem:[#allocation54_spill] sm:$0xff] }
  0x6a   :  { %6382 = vst [vmem:[#allocation99_spill] sm:$0xff] %v4814_v39  ;;  %v4819_v13 = vor.u32 %v3877_v32, %v3602_v15  ;;  %775 = vmatpush.bf16.msra.mxu0 %v4810_v19  ;;  %v6390_v0 = vld [vmem:[#allocation55_spill] sm:$0xff]  ;;  %v6391_v47 = vld [vmem:[#allocation56_spill] sm:$0xff]  ;;  %v6392_v32 = vld [vmem:[#allocation57_spill] sm:$0xff] }
  0x6b   :  { %6383 = vst [vmem:[#allocation100_spill] sm:$0xff] %v4816_v24  ;;  %789 = vmatpush.bf16.msra.mxu1 %v4814_v39  ;;  %v6393_v15 = vld [vmem:[#allocation58_spill] sm:$0xff] }
  0x6c   :  { %6384 = vst [vmem:[#allocation101_spill] sm:$0xff] %v4819_v13  ;;  %803 = vmatpush.bf16.msra.mxu2 %v4816_v24  ;;  %817 = vmatpush.bf16.msra.mxu3 %v4819_v13 }
  0x6d   :  { %776 = vmatmul.bf16.vlgmr.msra.gmra.mxu0 %v3972_v26 }
  0x6e   :  { %976 = vmatpush.bf16.msrb.mxu0 %v4342_v3  ;;  %790 = vmatmul.bf16.vlgmr.msra.gmra.mxu1 %v3972_v26 }
  0x6f   :  { %990 = vmatpush.bf16.msrb.mxu1 %v4344_v7  ;;  %804 = vmatmul.bf16.vlgmr.msra.gmra.mxu2 %v3972_v26 }
  0x70   :  { %818 = vmatmul.bf16.vlgmr.msra.gmra.mxu3 %v3972_v26  ;;  %1004 = vmatpush.bf16.msrb.mxu2 %v4346_v8  ;;  %v6387_v26 = vld [vmem:[#allocation52_spill] sm:$0xff] }
  0x71   :  { %1018 = vmatpush.bf16.msrb.mxu3 %v4349_v12 }
  0x72   :  { %977 = vmatpush.bf16.msrb.mxu0 %v4353_v16 }
  0x73   :  { %991 = vmatpush.bf16.msrb.mxu1 %v4355_v17 }
  0x74   :  { %1005 = vmatpush.bf16.msrb.mxu2 %v4358_v21 }
  0x75   :  { %1019 = vmatpush.bf16.msrb.mxu3 %v4360_v25 }
  0x76   :  { %978 = vmatpush.bf16.msrb.mxu0 %v4363_v29 }
  0x77   :  { %992 = vmatpush.bf16.msrb.mxu1 %v4367_v33 }
  0x78   :  { %1006 = vmatpush.bf16.msrb.mxu2 %v4369_v34 }
  0x79   :  { %1020 = vmatpush.bf16.msrb.mxu3 %v4372_v38 }
  0x7a   :  { %979 = vmatpush.bf16.msrb.mxu0 %v4375_v44 }
  0x7b   :  { %993 = vmatpush.bf16.msrb.mxu1 %v4379_v45 }
  0x7c   :  { %1007 = vmatpush.bf16.msrb.mxu2 %v4381_v46 }
  0x7d   :  { %1021 = vmatpush.bf16.msrb.mxu3 %v4384_v50 }
  0x7e   :  { %980 = vmatpush.bf16.msrb.mxu0 %v4387_v56 }
  0x7f   :  { %994 = vmatpush.bf16.msrb.mxu1 %v4391_v57 }
  0x80   :  { %1008 = vmatpush.bf16.msrb.mxu2 %v4393_v58 }
  0x81   :  { %1022 = vmatpush.bf16.msrb.mxu3 %v4396_v62 }
  0x82   :  { %981 = vmatpush.bf16.msrb.mxu0 %v4399_v5 }
  0x83   :  { %995 = vmatpush.bf16.msrb.mxu1 %v4403_v6 }
  0x84   :  { %1009 = vmatpush.bf16.msrb.mxu2 %v4405_v9 }
  0x85   :  { %1023 = vmatpush.bf16.msrb.mxu3 %v4408_v14 }
  0x86   :  { %982 = vmatpush.bf16.msrb.mxu0 %v4411_v23 }
  0x87   :  { %996 = vmatpush.bf16.msrb.mxu1 %v4415_v27 }
  0x88   :  { %1010 = vmatpush.bf16.msrb.mxu2 %v4417_v28 }
  0x89   :  { %1024 = vmatpush.bf16.msrb.mxu3 %v4420_v35 }
  0x8a   :  { %983 = vmatpush.bf16.msrb.mxu0 %v4423_v43 }
  0x8b   :  { %997 = vmatpush.bf16.msrb.mxu1 %v4427_v51 }
  0x8c   :  { %1011 = vmatpush.bf16.msrb.mxu2 %v4429_v52 }
  0x8d   :  { %1025 = vmatpush.bf16.msrb.mxu3 %v4432_v55 }
  0x8e   :  { %1044 = vmatpush.bf16.msra.mxu0 %v4434_v59 }
  0x8f   :  { %1058 = vmatpush.bf16.msra.mxu1 %v4436_v60 }
  0x90   :  { %1072 = vmatpush.bf16.msra.mxu2 %v4438_v61 }
  0x91   :  { %1086 = vmatpush.bf16.msra.mxu3 %v4441_v2 }
  0x92   :  { %1045 = vmatpush.bf16.msra.mxu0 %v4447_v18 }
  0x93   :  { %1059 = vmatpush.bf16.msra.mxu1 %v4451_v20 }
  0x94   :  { %1073 = vmatpush.bf16.msra.mxu2 %v4453_v22 }
  0x95   :  { %1087 = vmatpush.bf16.msra.mxu3 %v4456_v30 }
  0x96   :  { %1046 = vmatpush.bf16.msra.mxu0 %v4459_v41  ;;  %v6394_v41 = vld [vmem:[#allocation59_spill] sm:$0xff] }
  0x97   :  { %1060 = vmatpush.bf16.msra.mxu1 %v4463_v42  ;;  %v6395_v42 = vld [vmem:[#allocation60_spill] sm:$0xff] }
  0x98   :  { %1074 = vmatpush.bf16.msra.mxu2 %v6385_v1  ;;  %v6396_v1 = vld [vmem:[#allocation61_spill] sm:$0xff] }
  0x99   :  { %1088 = vmatpush.bf16.msra.mxu3 %v6386_v37  ;;  %v6397_v37 = vld [vmem:[#allocation62_spill] sm:$0xff] }
  0x9a   :  { %1047 = vmatpush.bf16.msra.mxu0 %v6387_v26  ;;  %v6398_v26 = vld [vmem:[#allocation63_spill] sm:$0xff] }
  0x9b   :  { %1061 = vmatpush.bf16.msra.mxu1 %v6388_v31  ;;  %v6399_v31 = vld [vmem:[#allocation64_spill] sm:$0xff] }
  0x9c   :  { %1075 = vmatpush.bf16.msra.mxu2 %v6389_v36 }
  0x9d   :  { %1089 = vmatpush.bf16.msra.mxu3 %v6390_v0 }
  0x9e   :  { %1048 = vmatpush.bf16.msra.mxu0 %v6391_v47  ;;  %v6400_v47 = vld [vmem:[#allocation67_spill] sm:$0xff] }
  0x9f   :  { %1062 = vmatpush.bf16.msra.mxu1 %v6392_v32 }
  0xa0   :  { %1076 = vmatpush.bf16.msra.mxu2 %v6393_v15 }
  0xa1   :  { %1090 = vmatpush.bf16.msra.mxu3 %v6394_v41  ;;  %v6401_v41 = vld [vmem:[#allocation70_spill] sm:$0xff] }
  0xa2   :  { %1049 = vmatpush.bf16.msra.mxu0 %v6395_v42  ;;  %v6402_v42 = vld [vmem:[#allocation71_spill] sm:$0xff] }
  0xa3   :  { %1063 = vmatpush.bf16.msra.mxu1 %v6396_v1 }
  0xa4   :  { %1077 = vmatpush.bf16.msra.mxu2 %v6397_v37 }
  0xa5   :  { %1091 = vmatpush.bf16.msra.mxu3 %v6398_v26 }
  0xa6   :  { %1050 = vmatpush.bf16.msra.mxu0 %v6399_v31 }
  0xa7   :  { %1064 = vmatpush.bf16.msra.mxu1 %v4511_v54 }
  0xa8   :  { %1078 = vmatpush.bf16.msra.mxu2 %v4513_v11 }
  0xa9   :  { %1092 = vmatpush.bf16.msra.mxu3 %v6400_v47 }
  0xaa   :  { %1051 = vmatpush.bf16.msra.mxu0 %v4528_v48  ;;  %v328_v1 = vpop.f32.mrf.mxu0 }
  0xab   :  { %1065 = vmatpush.bf16.msra.mxu1 %v4541_v40  ;;  %v342_v37 = vpop.f32.mrf.mxu1 }
  0xac   :  { %1079 = vmatpush.bf16.msra.mxu2 %v6401_v41  ;;  %v149_v41 = vld [vmem:[%s6100_s3] sm:$0xf] }
  0xad   :  { %1093 = vmatpush.bf16.msra.mxu3 %v6402_v42  ;;  %v4897_v40 = vperm.slane %v149_v41, 0  ;;  %v4899_v2 = vperm.slane %v149_v41, 1  ;;  %v4903_v28 = vperm.slane %v149_v41, 3 }
  0xb2   :  { %v370_v26 = vpop.f32.mrf.mxu3  ;;  %v330_v32 = vpop.f32.mrf.mxu0 }
  0xb3   :  { %v344_v31 = vpop.f32.mrf.mxu1 }
  0xb4   :  { %v356_v15 = vpop.f32.mrf.mxu2 }
  0xba   :  { %v372_v54 = vpop.f32.mrf.mxu3 }
  0xbc   :  { %v4892_v0 = vpop.f32.mrf.mxu2 }
  0xcc   :  { %v555_v11 = vpop.f32.mrf.mxu0 }
  0xce   :  { %v569_v36 = vpop.f32.mrf.mxu1 }
  0xd4   :  { %v597_v30 = vpop.f32.mrf.mxu3  ;;  %v557_v48 = vpop.f32.mrf.mxu0 }
  0xd5   :  { %v583_v47 = vpop.f32.mrf.mxu2 }
  0xd6   :  { %v571_v22 = vpop.f32.mrf.mxu1 }
  0xdc   :  { %v599_v20 = vpop.f32.mrf.mxu3 }
  0xdd   :  { %v585_v42 = vpop.f32.mrf.mxu2 }
  0xea   :  { %v777_v18 = vpop.f32.mrf.mxu0 }
  0xeb   :  { %v778_v61 = vadd.f32 %v777_v18, %v555_v11  ;;  %v791_v55 = vpop.f32.mrf.mxu1 }
  0xec   :  { %v792_v52 = vadd.f32 %v791_v55, %v569_v36 }
  0xed   :  { %v824_v60 = vadd.f32 %v778_v61, %v4897_v40 }
  0xee   :  { %v825_v59 = vadd.f32 %v792_v52, %v4899_v2  ;;  %v4907_v52 = vperm.slane %v149_v41, 2 }
  0xef   :  { %v832_v51 = vadd.f32 %v824_v60, %v328_v1 }
  0xf0   :  { %v833_v43 = vadd.f32 %v825_v59, %v342_v37 }
  0xf1   :  { %v3718_v35 = vmul.f32 -1.442695, %v832_v51 }
  0xf2   :  { %v3720_v27 = vmul.f32 -1.442695, %v833_v43  ;;  %v779_v14 = vpop.f32.mrf.mxu0  ;;  %v805_v9 = vpop.f32.mrf.mxu2 }
  0xf3   :  { %v819_v23 = vpop.f32.mrf.mxu3  ;;  %3993 = vpow2.f32 %v3718_v35  ;;  %v780_v5 = vadd.f32 %v779_v14, %v557_v48  ;;  %v793_v62 = vpop.f32.mrf.mxu1  ;;  %v806_v59 = vadd.f32 %v805_v9, %v583_v47 }
  0xf4   :  { %v820_v6 = vadd.f32 %v819_v23, %v597_v30  ;;  %3995 = vpow2.f32 %v3720_v27  ;;  %v794_v18 = vadd.f32 %v793_v62, %v571_v22 }
  0xf5   :  { %v828_v61 = vadd.f32 %v780_v5, %v4897_v40  ;;  %v826_v14 = vadd.f32 %v806_v59, %v4907_v52 }
  0xf6   :  { %v827_v55 = vadd.f32 %v820_v6, %v4903_v28  ;;  %v829_v51 = vadd.f32 %v794_v18, %v4899_v2 }
  0xf7   :  { %v836_v43 = vadd.f32 %v828_v61, %v330_v32  ;;  %v834_v9 = vadd.f32 %v826_v14, %v356_v15 }
  0xf8   :  { %v835_v60 = vadd.f32 %v827_v55, %v370_v26  ;;  %v837_v11 = vadd.f32 %v829_v51, %v344_v31 }
  0xf9   :  { %v3994_v1 = vpop.eup %3993  ;;  %v3719_v27 = vmul.f32 -1.442695, %v836_v43 }
  0xfa   :  { %v3722_v35 = vmul.f32 -1.442695, %v835_v60  ;;  %v3996_v37 = vpop.eup %3995  ;;  %v846_v23 = vadd.f32 1.0, %v3994_v1  ;;  %v3721_v6 = vmul.f32 -1.442695, %v837_v11  ;;  %v807_v41 = vpop.f32.mrf.mxu2 }
  0xfb   :  { %v821_v62 = vpop.f32.mrf.mxu3  ;;  %v884_v22 = vadd.f32 1.0, %v3996_v37  ;;  %v808_v18 = vadd.f32 %v807_v41, %v585_v42 }
  0xfc   :  { %3997 = vpow2.f32 %v3722_v35  ;;  %v822_v5 = vadd.f32 %v821_v62, %v599_v20  ;;  %v857_v51 = vand.u32 2147483647, %v846_v23  ;;  %v859_v11 = vand.u32 2147483648, %v846_v23 }
  0xfd   :  { %3999 = vrcp.f32 %v846_v23  ;;  %v830_v42 = vadd.f32 %v808_v18, %v4907_v52  ;;  %v895_v14 = vand.u32 2147483647, %v884_v22  ;;  %vm853_vm2 = vweird.f32 %v846_v23 }
  0xfe   :  { %4001 = vrcp.f32 %v884_v22  ;;  %v831_v30 = vadd.f32 %v822_v5, %v4903_v28  ;;  %vm891_vm3 = vweird.f32 %v884_v22  ;;  %vm858_vm5 = vcmp.eq.f32.partialorder %v857_v51, 8.507059e+37 }
  0xff   :  { %4003 = vpow2.f32 %v3719_v27  ;;  %v860_v5 = vor.u32 1.1754944e-38, %v859_v11  ;;  %vm896_vm7 = vcmp.eq.f32.partialorder %v895_v14, 8.507059e+37 }
 0x100   :  { %4005 = vpow2.f32 %v3721_v6  ;;  %v839_v26 = vadd.f32 %v831_v30, %v372_v54  ;;  %v897_v54 = vand.u32 2147483648, %v884_v22 }
 0x101   :  { %4007 = vtanh.f32 %v834_v9 }
 0x102   :  { %v3998_v48 = vpop.eup %3997  ;;  %v3723_v55 = vmul.f32 -1.442695, %v839_v26  ;;  %v898_v41 = vor.u32 1.1754944e-38, %v897_v54 }
 0x103   :  { %v4000_v31 = vpop.eup %3999  ;;  %v4912_v36 = vadd.f32 1.0, %v3998_v48 }
 0x104   :  { %v4002_v47 = vpop.eup %4001  ;;  %v849_v32 = vmul.f32 %v4000_v31, %v846_v23  ;;  %vm854_vm0 = vweird.f32 %v4000_v31 }
 0x105   :  { %v4004_v61 = vpop.eup %4003  ;;  %v887_v20 = vmul.f32 %v4002_v47, %v884_v22  ;;  %4009 = vrcp.f32 %v4912_v36  ;;  %vm892_vm1 = vweird.f32 %v4002_v47  ;;  %vm855_vm4 = vmor %vm853_vm2, %vm854_vm0  ;;  %vm931_vm11 = vweird.f32 %v4912_v36 }
 0x106   :  { %v4006_v59 = vpop.eup %4005  ;;  %v850_v15 = vsub.f32 1.0, %v849_v32  ;;  %v4915_v60 = vadd.f32 1.0, %v4004_v61  ;;  %4011 = vpow2.f32 %v3723_v55  ;;  %vm893_vm6 = vmor %vm891_vm3, %vm892_vm1  ;;  %v838_v32 = vadd.f32 %v830_v42, %v4892_v0 }
 0x107   :  { %v888_v43 = vsub.f32 1.0, %v887_v20  ;;  %v4917_v1 = vadd.f32 1.0, %v4006_v59  ;;  %v4008_v27 = vpop.eup %4007  ;;  %v937_v42 = vand.u32 2147483648, %v4912_v36 }
 0x108   :  { %v851_v35 = vmul.f32 %v4000_v31, %v850_v15  ;;  %4013 = vrcp.f32 %v4915_v60  ;;  %v874_v14 = vand.u32 2147483648, %v4915_v60  ;;  %vm868_vm13 = vweird.f32 %v4915_v60 }
 0x109   :  { %v889_v37 = vmul.f32 %v4002_v47, %v888_v43  ;;  %4015 = vrcp.f32 %v4917_v1  ;;  %vm906_vm12 = vweird.f32 %v4917_v1 }
 0x10a   :  { %v852_v62 = vadd.f32 %v4000_v31, %v851_v35  ;;  %v872_v35 = vand.u32 2147483647, %v4915_v60 }
 0x10b   :  { %v4922_v6 = vpop.eup %4009  ;;  %v890_v9 = vadd.f32 %v4002_v47, %v889_v37 }
 0x10c   :  { %v4012_v30 = vpop.eup %4011  ;;  %v856_v48 = vsel %vm855_vm4, %v4000_v31, %v852_v62  ;;  %v927_v26 = vmul.f32 %v4922_v6, %v4912_v36  ;;  %vm932_vm8 = vweird.f32 %v4922_v6  ;;  %v912_v62 = vand.u32 2147483648, %v4917_v1 }
 0x10d   :  { %v861_v18 = vsel %vm858_vm5, %v860_v5, %v856_v48  ;;  %v894_v55 = vsel %vm893_vm6, %v4002_v47, %v890_v9  ;;  %v4928_v23 = vadd.f32 1.0, %v4012_v30  ;;  %v935_v47 = vand.u32 2147483647, %v4912_v36  ;;  %vm4948_vm15 = vmor %vm931_vm11, %vm932_vm8 }
 0x10e   :  { %v4014_v22 = vpop.eup %4013  ;;  %v899_v61 = vsel %vm896_vm7, %v898_v41, %v894_v55  ;;  %v958_v20 = vmul.f32 %v4008_v27, %v861_v18  ;;  %v928_v59 = vsub.f32 1.0, %v927_v26  ;;  %v910_v30 = vand.u32 2147483647, %v4917_v1 }
 0x10f   :  { %v4016_v15 = vpop.eup %4015  ;;  %v956_v51 = vmul.f32 0.0, %v899_v61  ;;  %v864_v31 = vmul.f32 %v4014_v22, %v4915_v60  ;;  %4017 = vrcp.f32 %v4928_v23  ;;  %vm869_vm9 = vweird.f32 %v4014_v22 }
 0x110   :  { %v902_v43 = vmul.f32 %v4016_v15, %v4917_v1  ;;  %4019 = vtanh.f32 %v838_v32  ;;  %v929_v0 = vmul.f32 %v4922_v6, %v928_v59  ;;  %vm907_vm10 = vweird.f32 %v4016_v15  ;;  %vm870_vm0 = vmor %vm868_vm13, %vm869_vm9 }
 0x111   :  { %v4935_v54 = vadd.f32 %v958_v20, %v956_v51  ;;  %v865_v11 = vsub.f32 1.0, %v864_v31  ;;  %vm873_vm14 = vcmp.eq.f32.partialorder %v872_v35, 8.507059e+37  ;;  %v875_v18 = vor.u32 1.1754944e-38, %v874_v14  ;;  %vm908_vm1 = vmor %vm906_vm12, %vm907_vm10 }
 0x112   :  { %v903_v37 = vsub.f32 1.0, %v902_v43  ;;  %v930_v27 = vadd.f32 %v4922_v6, %v929_v0  ;;  %v913_v20 = vor.u32 1.1754944e-38, %v912_v62  ;;  %vm936_vm2 = vcmp.eq.f32.partialorder %v935_v47, 8.507059e+37 }
 0x113   :  { %4021 = vtanh.f32 %v4935_v54  ;;  %v866_v5 = vmul.f32 %v4014_v22, %v865_v11  ;;  %v938_v60 = vor.u32 1.1754944e-38, %v937_v42  ;;  %vm911_vm3 = vcmp.eq.f32.partialorder %v910_v30, 8.507059e+37 }
 0x114   :  { %v904_v9 = vmul.f32 %v4016_v15, %v903_v37  ;;  %v934_v36 = vsel %vm4948_vm15, %v4922_v6, %v930_v27  ;;  %vm968_vm4 = vcmask 519168   ;;  %vm972_vm5 = vcmask 1043968  }
 0x115   :  { %v4018_v41 = vpop.eup %4017  ;;  %v867_v48 = vadd.f32 %v4014_v22, %v866_v5  ;;  %v939_v35 = vsel %vm936_vm2, %v938_v60, %v934_v36  ;;  %v952_v47 = vand.u32 2147483648, %v4928_v23  ;;  %vm946_vm7 = vweird.f32 %v4928_v23  ;;  %v6410_v36 = vld [vmem:[#allocation77_spill] sm:$0xff]  ;;  %v6413_v60 = vld [vmem:[#allocation80_spill] sm:$0xff] }
 0x116   :  { %v4020_v32 = vpop.eup %4019  ;;  %v905_v55 = vadd.f32 %v4016_v15, %v904_v9  ;;  %v942_v61 = vmul.f32 %v4018_v41, %v4928_v23  ;;  %vm947_vm6 = vweird.f32 %v4018_v41 }
 0x117   :  { %v871_v1 = vsel %vm870_vm0, %v4014_v22, %v867_v48  ;;  %vm948_vm8 = vmor %vm946_vm7, %vm947_vm6  ;;  %v953_v27 = vor.u32 1.1754944e-38, %v952_v47  ;;  %v6425_v47 = vld [vmem:[#allocation92_spill] sm:$0xff] }
 0x118   :  { %v876_v59 = vsel %vm873_vm14, %v875_v18, %v871_v1  ;;  %v909_v51 = vsel %vm908_vm1, %v4016_v15, %v905_v55  ;;  %v943_v31 = vsub.f32 1.0, %v942_v61  ;;  %v950_v15 = vand.u32 2147483647, %v4928_v23  ;;  %v6405_v23 = vld [vmem:[#allocation72_spill] sm:$0xff]  ;;  %v6407_v18 = vld [vmem:[#allocation74_spill] sm:$0xff]  ;;  %v6408_v55 = vld [vmem:[#allocation75_spill] sm:$0xff] }
 0x119   :  { %v4022_v43 = vpop.eup %4021  ;;  %v914_v0 = vsel %vm911_vm3, %v913_v20, %v909_v51  ;;  %v959_v11 = vmul.f32 %v4020_v32, %v876_v59  ;;  %v6409_v61 = vld [vmem:[#allocation76_spill] sm:$0xff]  ;;  %v6411_v20 = vld [vmem:[#allocation78_spill] sm:$0xff]  ;;  %v6412_v1 = vld [vmem:[#allocation79_spill] sm:$0xff] }
 0x11a   :  { %v957_v37 = vmul.f32 0.0, %v914_v0  ;;  %v944_v14 = vmul.f32 %v4018_v41, %v943_v31  ;;  %v964_v5 = vmul.f32 %v4022_v43, %v939_v35  ;;  %vm951_vm9 = vcmp.eq.f32.partialorder %v950_v15, 8.507059e+37  ;;  %v6414_v59 = vld [vmem:[#allocation81_spill] sm:$0xff]  ;;  %v6415_v51 = vld [vmem:[#allocation82_spill] sm:$0xff]  ;;  %v6416_v43 = vld [vmem:[#allocation83_spill] sm:$0xff] }
 0x11b   :  { %v3975_v31 = vld [vmem:[%s6097_s0 + $0x30] sm:$0xff]  ;;  %v6417_v0 = vld [vmem:[#allocation84_spill] sm:$0xff]  ;;  %v6426_v15 = vld [vmem:[#allocation93_spill] sm:$0xff] }
 0x11c   :  { %v4957_v9 = vadd.f32 %v959_v11, %v957_v37  ;;  %v966_v6 = vpack.c.bf16 %v964_v5, %v964_v5  ;;  %v945_v22 = vadd.f32 %v4018_v41, %v944_v14  ;;  %v6418_v11 = vld [vmem:[#allocation85_spill] sm:$0xff]  ;;  %v6419_v35 = vld [vmem:[#allocation86_spill] sm:$0xff]  ;;  %v6420_v37 = vld [vmem:[#allocation87_spill] sm:$0xff] }
 0x11d   :  { %v6421_v14 = vld [vmem:[#allocation88_spill] sm:$0xff] }
 0x11e   :  { %4023 = vtanh.f32 %v4957_v9  ;;  %969 = vst.msk [vmem:[%s6102_s5] sm:$0xf] %vm968_vm4, %v966_v6  ;;  %v949_v42 = vsel %vm948_vm8, %v4018_v41, %v945_v22  ;;  %v6406_v41 = vld [vmem:[#allocation73_spill] sm:$0xff]  ;;  %v6424_v22 = vld [vmem:[#allocation91_spill] sm:$0xff] }
 0x11f   :  { %3724 = vst.msk [vmem:[%s6102_s5 + $0x38] sm:$0xf] %vm972_vm5, %v966_v6  ;;  %v954_v30 = vsel %vm951_vm9, %v953_v27, %v949_v42  ;;  %v6423_v6 = vld [vmem:[#allocation90_spill] sm:$0xff]  ;;  %v3974_v27 = vld [vmem:[%s6097_s0 + $0x8] sm:$0xff] }
 0x120   :  { %v6427_v42 = vld [vmem:[#allocation94_spill] sm:$0xff] }
 0x124   :  { %v4024_v62 = vpop.eup %4023 }
 0x125   :  { %v965_v48 = vmul.f32 %v4024_v62, %v954_v30  ;;  %v6428_v62 = vld [vmem:[#allocation27_spill] sm:$0xff]  ;;  %v6429_v30 = vld [vmem:[#allocation28_spill] sm:$0xff] }
 0x127   :  { %v967_v26 = vpack.c.bf16 %v965_v48, %v965_v48  ;;  %v975_v32 = vpack.c.bf16 %v965_v48, %v964_v5  ;;  %v6422_v5 = vld [vmem:[#allocation89_spill] sm:$0xff] }
 0x128   :  { %v6430_v48 = vld [vmem:[#allocation29_spill] sm:$0xff] }
 0x129   :  { %970 = vst.msk [vmem:[%s6102_s5 + $0x4] sm:$0xf] %vm968_vm4, %v967_v26  ;;  %984 = vmatmul.bf16.vlgmr.msrb.gmra.mxu0 %v975_v32  ;;  %998 = vmatmul.bf16.vlgmr.msrb.gmra.mxu1 %v975_v32 }
 0x12a   :  { %3725 = vst.msk [vmem:[%s6102_s5 + $0x3c] sm:$0xf] %vm972_vm5, %v967_v26  ;;  %1012 = vmatmul.bf16.vlgmr.msrb.gmra.mxu2 %v975_v32  ;;  %1026 = vmatmul.bf16.vlgmr.msrb.gmra.mxu3 %v975_v32  ;;  %v6431_v26 = vld [vmem:[#allocation30_spill] sm:$0xff]  ;;  %v6432_v32 = vld [vmem:[#allocation31_spill] sm:$0xff] }
 0x12b   :  { %1106 = vmatpush.bf16.msrb.mxu0 %v6405_v23  ;;  %1120 = vmatpush.bf16.msrb.mxu1 %v6406_v41 }
 0x12c   :  { %1134 = vmatpush.bf16.msrb.mxu2 %v6407_v18  ;;  %1148 = vmatpush.bf16.msrb.mxu3 %v6408_v55 }
 0x12f   :  { %1107 = vmatpush.bf16.msrb.mxu0 %v4594_v63  ;;  %1121 = vmatpush.bf16.msrb.mxu1 %v6409_v61 }
 0x130   :  { %1135 = vmatpush.bf16.msrb.mxu2 %v6410_v36  ;;  %1149 = vmatpush.bf16.msrb.mxu3 %v6411_v20 }
 0x133   :  { %1108 = vmatpush.bf16.msrb.mxu0 %v6412_v1  ;;  %1122 = vmatpush.bf16.msrb.mxu1 %v6413_v60 }
 0x134   :  { %1136 = vmatpush.bf16.msrb.mxu2 %v6414_v59  ;;  %1150 = vmatpush.bf16.msrb.mxu3 %v6415_v51 }
 0x137   :  { %1109 = vmatpush.bf16.msrb.mxu0 %v6416_v43  ;;  %1123 = vmatpush.bf16.msrb.mxu1 %v6417_v0 }
 0x138   :  { %1137 = vmatpush.bf16.msrb.mxu2 %v6418_v11  ;;  %1151 = vmatpush.bf16.msrb.mxu3 %v6419_v35 }
 0x139   :  { %1052 = vmatmul.bf16.vlgmr.msra.gmra.mxu0 %v3975_v31  ;;  %1066 = vmatmul.bf16.vlgmr.msra.gmra.mxu1 %v3975_v31 }
 0x13a   :  { %1080 = vmatmul.bf16.vlgmr.msra.gmra.mxu2 %v3975_v31  ;;  %1094 = vmatmul.bf16.vlgmr.msra.gmra.mxu3 %v3975_v31  ;;  %v6433_v31 = vld [vmem:[#allocation32_spill] sm:$0xff] }
 0x13b   :  { %1110 = vmatpush.bf16.msrb.mxu0 %v6420_v37  ;;  %1124 = vmatpush.bf16.msrb.mxu1 %v6421_v14 }
 0x13c   :  { %1138 = vmatpush.bf16.msrb.mxu2 %v6422_v5  ;;  %1152 = vmatpush.bf16.msrb.mxu3 %v6423_v6 }
 0x13f   :  { %1111 = vmatpush.bf16.msrb.mxu0 %v6424_v22  ;;  %1125 = vmatpush.bf16.msrb.mxu1 %v6425_v47 }
 0x140   :  { %1139 = vmatpush.bf16.msrb.mxu2 %v6426_v15  ;;  %1153 = vmatpush.bf16.msrb.mxu3 %v6427_v42 }
 0x143   :  { %1112 = vmatpush.bf16.msrb.mxu0 %v4774_v53  ;;  %1126 = vmatpush.bf16.msrb.mxu1 %v4778_v10 }
 0x144   :  { %1140 = vmatpush.bf16.msrb.mxu2 %v4780_v4  ;;  %1154 = vmatpush.bf16.msrb.mxu3 %v4792_v49 }
 0x147   :  { %1113 = vmatpush.bf16.msrb.mxu0 %v4810_v19  ;;  %1127 = vmatpush.bf16.msrb.mxu1 %v4814_v39 }
 0x148   :  { %1141 = vmatpush.bf16.msrb.mxu2 %v4816_v24  ;;  %1155 = vmatpush.bf16.msrb.mxu3 %v4819_v13 }
 0x14a   :  { %1114 = vmatmul.bf16.vlgmr.msrb.gmra.mxu0 %v3974_v27  ;;  %1128 = vmatmul.bf16.vlgmr.msrb.gmra.mxu1 %v3974_v27 }
 0x14b   :  { %1313 = vmatpush.bf16.msra.mxu0 %v4342_v3  ;;  %1327 = vmatpush.bf16.msra.mxu1 %v4344_v7 }
 0x14c   :  { %1142 = vmatmul.bf16.vlgmr.msrb.gmra.mxu2 %v3974_v27  ;;  %1156 = vmatmul.bf16.vlgmr.msrb.gmra.mxu3 %v3974_v27  ;;  %v6434_v27 = vld [vmem:[#allocation33_spill] sm:$0xff] }
 0x14d   :  { %1341 = vmatpush.bf16.msra.mxu2 %v4346_v8  ;;  %1355 = vmatpush.bf16.msra.mxu3 %v4349_v12 }
 0x14f   :  { %1314 = vmatpush.bf16.msra.mxu0 %v4353_v16  ;;  %1328 = vmatpush.bf16.msra.mxu1 %v4355_v17 }
 0x151   :  { %1342 = vmatpush.bf16.msra.mxu2 %v4358_v21  ;;  %1356 = vmatpush.bf16.msra.mxu3 %v4360_v25 }
 0x153   :  { %1315 = vmatpush.bf16.msra.mxu0 %v4363_v29  ;;  %1329 = vmatpush.bf16.msra.mxu1 %v4367_v33 }
 0x155   :  { %1343 = vmatpush.bf16.msra.mxu2 %v4369_v34  ;;  %1357 = vmatpush.bf16.msra.mxu3 %v4372_v38 }
 0x157   :  { %1316 = vmatpush.bf16.msra.mxu0 %v4375_v44  ;;  %1330 = vmatpush.bf16.msra.mxu1 %v4379_v45 }
 0x159   :  { %1344 = vmatpush.bf16.msra.mxu2 %v4381_v46  ;;  %1358 = vmatpush.bf16.msra.mxu3 %v4384_v50  ;;  %v6435_v50 = vld [vmem:[#allocation34_spill] sm:$0xff] }
 0x15b   :  { %1317 = vmatpush.bf16.msra.mxu0 %v4387_v56  ;;  %1331 = vmatpush.bf16.msra.mxu1 %v4391_v57  ;;  %v6436_v56 = vld [vmem:[#allocation35_spill] sm:$0xff]  ;;  %v6437_v57 = vld [vmem:[#allocation36_spill] sm:$0xff] }
 0x15d   :  { %1345 = vmatpush.bf16.msra.mxu2 %v4393_v58  ;;  %1359 = vmatpush.bf16.msra.mxu3 %v6428_v62  ;;  %v6438_v58 = vld [vmem:[#allocation37_spill] sm:$0xff]  ;;  %v6439_v62 = vld [vmem:[#allocation40_spill] sm:$0xff] }
 0x15f   :  { %1318 = vmatpush.bf16.msra.mxu0 %v6429_v30  ;;  %1332 = vmatpush.bf16.msra.mxu1 %v6430_v48  ;;  %v6440_v30 = vld [vmem:[#allocation41_spill] sm:$0xff]  ;;  %v6441_v48 = vld [vmem:[#allocation38_spill] sm:$0xff] }
 0x161   :  { %1346 = vmatpush.bf16.msra.mxu2 %v6431_v26  ;;  %1360 = vmatpush.bf16.msra.mxu3 %v6432_v32  ;;  %v6442_v26 = vld [vmem:[#allocation39_spill] sm:$0xff]  ;;  %v6443_v32 = vld [vmem:[#allocation42_spill] sm:$0xff] }
 0x163   :  { %1319 = vmatpush.bf16.msra.mxu0 %v6433_v31  ;;  %1333 = vmatpush.bf16.msra.mxu1 %v6434_v27  ;;  %v6444_v31 = vld [vmem:[#allocation43_spill] sm:$0xff]  ;;  %v6445_v27 = vld [vmem:[#allocation44_spill] sm:$0xff] }
 0x165   :  { %1347 = vmatpush.bf16.msra.mxu2 %v6435_v50  ;;  %1361 = vmatpush.bf16.msra.mxu3 %v6436_v56  ;;  %v6446_v50 = vld [vmem:[#allocation45_spill] sm:$0xff]  ;;  %v6447_v56 = vld [vmem:[#allocation46_spill] sm:$0xff] }
 0x167   :  { %1320 = vmatpush.bf16.msra.mxu0 %v6437_v57  ;;  %1334 = vmatpush.bf16.msra.mxu1 %v6438_v58  ;;  %v6448_v57 = vld [vmem:[#allocation47_spill] sm:$0xff]  ;;  %v6449_v58 = vld [vmem:[#allocation48_spill] sm:$0xff] }
 0x169   :  { %1348 = vmatpush.bf16.msra.mxu2 %v6441_v48  ;;  %1362 = vmatpush.bf16.msra.mxu3 %v6442_v26  ;;  %v6452_v48 = vld [vmem:[#allocation51_spill] sm:$0xff]  ;;  %v6453_v26 = vld [vmem:[#allocation52_spill] sm:$0xff] }
 0x16b   :  { %1381 = vmatpush.bf16.msrb.mxu0 %v6439_v62  ;;  %1395 = vmatpush.bf16.msrb.mxu1 %v6440_v30  ;;  %v6450_v62 = vld [vmem:[#allocation49_spill] sm:$0xff]  ;;  %v6451_v30 = vld [vmem:[#allocation50_spill] sm:$0xff] }
 0x16d   :  { %1409 = vmatpush.bf16.msrb.mxu2 %v6443_v32  ;;  %1423 = vmatpush.bf16.msrb.mxu3 %v6444_v31  ;;  %v6454_v32 = vld [vmem:[#allocation53_spill] sm:$0xff]  ;;  %v6455_v31 = vld [vmem:[#allocation54_spill] sm:$0xff] }
 0x16f   :  { %1382 = vmatpush.bf16.msrb.mxu0 %v6445_v27  ;;  %1396 = vmatpush.bf16.msrb.mxu1 %v6446_v50  ;;  %v6456_v27 = vld [vmem:[#allocation55_spill] sm:$0xff]  ;;  %v6457_v50 = vld [vmem:[#allocation56_spill] sm:$0xff] }
 0x171   :  { %1410 = vmatpush.bf16.msrb.mxu2 %v6447_v56  ;;  %1424 = vmatpush.bf16.msrb.mxu3 %v6448_v57  ;;  %v6458_v56 = vld [vmem:[#allocation57_spill] sm:$0xff]  ;;  %v6459_v57 = vld [vmem:[#allocation58_spill] sm:$0xff] }
 0x173   :  { %1383 = vmatpush.bf16.msrb.mxu0 %v6449_v58  ;;  %1397 = vmatpush.bf16.msrb.mxu1 %v6450_v62  ;;  %v6460_v58 = vld [vmem:[#allocation59_spill] sm:$0xff]  ;;  %v6461_v62 = vld [vmem:[#allocation60_spill] sm:$0xff] }
 0x175   :  { %1411 = vmatpush.bf16.msrb.mxu2 %v6451_v30  ;;  %1425 = vmatpush.bf16.msrb.mxu3 %v6452_v48  ;;  %v6462_v30 = vld [vmem:[#allocation61_spill] sm:$0xff]  ;;  %v6463_v48 = vld [vmem:[#allocation62_spill] sm:$0xff] }
 0x177   :  { %1384 = vmatpush.bf16.msrb.mxu0 %v6453_v26  ;;  %1398 = vmatpush.bf16.msrb.mxu1 %v6454_v32  ;;  %v6464_v26 = vld [vmem:[#allocation63_spill] sm:$0xff]  ;;  %v6465_v32 = vld [vmem:[#allocation64_spill] sm:$0xff] }
 0x179   :  { %1412 = vmatpush.bf16.msrb.mxu2 %v6455_v31  ;;  %1426 = vmatpush.bf16.msrb.mxu3 %v6456_v27  ;;  %v6466_v31 = vld [vmem:[#allocation65_spill] sm:$0xff]  ;;  %v6467_v27 = vld [vmem:[#allocation66_spill] sm:$0xff] }
 0x17b   :  { %1385 = vmatpush.bf16.msrb.mxu0 %v6457_v50  ;;  %1399 = vmatpush.bf16.msrb.mxu1 %v6458_v56  ;;  %v6468_v50 = vld [vmem:[#allocation67_spill] sm:$0xff]  ;;  %v6469_v56 = vld [vmem:[#allocation68_spill] sm:$0xff] }
 0x17d   :  { %1413 = vmatpush.bf16.msrb.mxu2 %v6459_v57  ;;  %1427 = vmatpush.bf16.msrb.mxu3 %v6460_v58  ;;  %v6470_v57 = vld [vmem:[#allocation69_spill] sm:$0xff]  ;;  %v6471_v58 = vld [vmem:[#allocation70_spill] sm:$0xff] }
 0x17f   :  { %1386 = vmatpush.bf16.msrb.mxu0 %v6461_v62  ;;  %1400 = vmatpush.bf16.msrb.mxu1 %v6462_v30  ;;  %v6472_v62 = vld [vmem:[#allocation71_spill] sm:$0xff] }
 0x181   :  { %1414 = vmatpush.bf16.msrb.mxu2 %v6463_v48  ;;  %1428 = vmatpush.bf16.msrb.mxu3 %v6464_v26 }
 0x183   :  { %1387 = vmatpush.bf16.msrb.mxu0 %v6465_v32  ;;  %1401 = vmatpush.bf16.msrb.mxu1 %v6466_v31 }
 0x185   :  { %1415 = vmatpush.bf16.msrb.mxu2 %v6467_v27  ;;  %1429 = vmatpush.bf16.msrb.mxu3 %v6468_v50 }
 0x187   :  { %1388 = vmatpush.bf16.msrb.mxu0 %v6469_v56  ;;  %1402 = vmatpush.bf16.msrb.mxu1 %v6470_v57 }
 0x189   :  { %1416 = vmatpush.bf16.msrb.mxu2 %v6471_v58  ;;  %1430 = vmatpush.bf16.msrb.mxu3 %v6472_v62 }
 0x1a6   :  { %v985_v30 = vpop.f32.mrf.mxu0  ;;  %v999_v48 = vpop.f32.mrf.mxu1 }
 0x1ad   :  { %v1013_v46 = vpop.f32.mrf.mxu2  ;;  %v1027_v26 = vpop.f32.mrf.mxu3 }
 0x1ae   :  { %v987_v45 = vpop.f32.mrf.mxu0  ;;  %v1001_v32 = vpop.f32.mrf.mxu1 }
 0x1b5   :  { %v5081_v44 = vpop.f32.mrf.mxu2  ;;  %v1029_v31 = vpop.f32.mrf.mxu3 }
 0x1b6   :  { %v1053_v27 = vpop.f32.mrf.mxu0  ;;  %v1067_v38 = vpop.f32.mrf.mxu1 }
 0x1bd   :  { %v1081_v50 = vpop.f32.mrf.mxu2  ;;  %v1095_v34 = vpop.f32.mrf.mxu3 }
 0x1be   :  { %v1055_v56 = vpop.f32.mrf.mxu0  ;;  %v1069_v33 = vpop.f32.mrf.mxu1 }
 0x1c5   :  { %v1083_v57 = vpop.f32.mrf.mxu2  ;;  %v1097_v29 = vpop.f32.mrf.mxu3 }
 0x1c7   :  { %v1115_v58 = vpop.f32.mrf.mxu0  ;;  %v1129_v25 = vpop.f32.mrf.mxu1 }
 0x1c8   :  { %v1116_v62 = vadd.f32 %v1115_v58, %v1053_v27  ;;  %v1130_v21 = vadd.f32 %v1129_v25, %v1067_v38 }
 0x1ca   :  { %v1162_v17 = vadd.f32 %v1116_v62, %v4897_v40  ;;  %v1163_v16 = vadd.f32 %v1130_v21, %v4899_v2 }
 0x1cc   :  { %v1170_v12 = vadd.f32 %v1162_v17, %v985_v30  ;;  %v1171_v8 = vadd.f32 %v1163_v16, %v999_v48 }
 0x1ce   :  { %v3738_v7 = vmul.f32 -1.442695, %v1170_v12  ;;  %v3740_v3 = vmul.f32 -1.442695, %v1171_v8 }
 0x1cf   :  { %v1143_v13 = vpop.f32.mrf.mxu2  ;;  %v1157_v24 = vpop.f32.mrf.mxu3 }
 0x1d0   :  { %v1158_v39 = vadd.f32 %v1157_v24, %v1095_v34  ;;  %v1117_v19 = vpop.f32.mrf.mxu0  ;;  %v1131_v49 = vpop.f32.mrf.mxu1  ;;  %4025 = vpow2.f32 %v3738_v7  ;;  %v1144_v21 = vadd.f32 %v1143_v13, %v1081_v50 }
 0x1d1   :  { %v1118_v4 = vadd.f32 %v1117_v19, %v1055_v56  ;;  %v1132_v10 = vadd.f32 %v1131_v49, %v1069_v33  ;;  %4027 = vpow2.f32 %v3740_v3 }
 0x1d2   :  { %v1165_v58 = vadd.f32 %v1158_v39, %v4903_v28  ;;  %v1164_v7 = vadd.f32 %v1144_v21, %v4907_v52 }
 0x1d3   :  { %v1166_v25 = vadd.f32 %v1118_v4, %v4897_v40  ;;  %v1167_v38 = vadd.f32 %v1132_v10, %v4899_v2 }
 0x1d4   :  { %v1173_v17 = vadd.f32 %v1165_v58, %v1027_v26  ;;  %v1172_v50 = vadd.f32 %v1164_v7, %v1013_v46 }
 0x1d5   :  { %v1174_v16 = vadd.f32 %v1166_v25, %v987_v45  ;;  %v1175_v12 = vadd.f32 %v1167_v38, %v1001_v32 }
 0x1d6   :  { %v3742_v8 = vmul.f32 -1.442695, %v1173_v17  ;;  %v4026_v62 = vpop.eup %4025 }
 0x1d7   :  { %v3739_v30 = vmul.f32 -1.442695, %v1174_v16  ;;  %v1159_v34 = vpop.f32.mrf.mxu3  ;;  %v4028_v24 = vpop.eup %4027  ;;  %v1184_v48 = vadd.f32 1.0, %v4026_v62  ;;  %v3741_v3 = vmul.f32 -1.442695, %v1175_v12 }
 0x1d8   :  { %4029 = vpow2.f32 %v3742_v8  ;;  %v1222_v33 = vadd.f32 1.0, %v4028_v24  ;;  %v1160_v56 = vadd.f32 %v1159_v34, %v1097_v29  ;;  %v1145_v4 = vpop.f32.mrf.mxu2 }
 0x1d9   :  { %4031 = vpow2.f32 %v3739_v30  ;;  %v1146_v45 = vadd.f32 %v1145_v4, %v1083_v57  ;;  %v1195_v21 = vand.u32 2147483647, %v1184_v48  ;;  %v1197_v17 = vand.u32 2147483648, %v1184_v48 }
 0x1da   :  { %4033 = vrcp.f32 %v1184_v48  ;;  %v1169_v13 = vadd.f32 %v1160_v56, %v4903_v28  ;;  %v1235_v12 = vand.u32 2147483648, %v1222_v33  ;;  %v1233_v8 = vand.u32 2147483647, %v1222_v33 }
 0x1db   :  { %4035 = vrcp.f32 %v1222_v33  ;;  %v1168_v29 = vadd.f32 %v1146_v45, %v4907_v52  ;;  %vm1229_vm12 = vweird.f32 %v1222_v33  ;;  %vm1191_vm13 = vweird.f32 %v1184_v48 }
 0x1dc   :  { %4037 = vpow2.f32 %v3741_v3  ;;  %v1177_v19 = vadd.f32 %v1169_v13, %v1029_v31  ;;  %vm1196_vm14 = vcmp.eq.f32.partialorder %v1195_v21, 8.507059e+37  ;;  %v1236_v4 = vor.u32 1.1754944e-38, %v1235_v12 }
 0x1dd   :  { %4039 = vtanh.f32 %v1172_v50  ;;  %v1176_v30 = vadd.f32 %v1168_v29, %v5081_v44  ;;  %v1198_v50 = vor.u32 1.1754944e-38, %v1197_v17  ;;  %vm1234_vm1 = vcmp.eq.f32.partialorder %v1233_v8, 8.507059e+37 }
 0x1de   :  { %v4030_v10 = vpop.eup %4029  ;;  %v3743_v46 = vmul.f32 -1.442695, %v1177_v19 }
 0x1df   :  { %v4032_v39 = vpop.eup %4031  ;;  %v5090_v49 = vadd.f32 1.0, %v4030_v10 }
 0x1e0   :  { %v4034_v26 = vpop.eup %4033  ;;  %v5092_v32 = vadd.f32 1.0, %v4032_v39 }
 0x1e1   :  { %v4036_v27 = vpop.eup %4035  ;;  %v1187_v58 = vmul.f32 %v4034_v26, %v1184_v48  ;;  %4041 = vrcp.f32 %v5090_v49  ;;  %vm1192_vm10 = vweird.f32 %v4034_v26 }
 0x1e2   :  { %v4038_v25 = vpop.eup %4037  ;;  %v1225_v57 = vmul.f32 %v4036_v27, %v1222_v33  ;;  %4043 = vrcp.f32 %v5092_v32  ;;  %vm1230_vm11 = vweird.f32 %v4036_v27  ;;  %vm1193_vm15 = vmor %vm1191_vm13, %vm1192_vm10  ;;  %v1212_v48 = vand.u32 2147483648, %v5092_v32 }
 0x1e3   :  { %v1188_v38 = vsub.f32 1.0, %v1187_v58  ;;  %v5097_v16 = vadd.f32 1.0, %v4038_v25  ;;  %4045 = vpow2.f32 %v3743_v46  ;;  %v4040_v34 = vpop.eup %4039  ;;  %vm1231_vm0 = vmor %vm1229_vm12, %vm1230_vm11  ;;  %vm1206_vm2 = vweird.f32 %v5092_v32 }
 0x1e4   :  { %v1226_v31 = vsub.f32 1.0, %v1225_v57  ;;  %vm1269_vm10 = vweird.f32 %v5090_v49 }
 0x1e5   :  { %v1189_v62 = vmul.f32 %v4034_v26, %v1188_v38  ;;  %4047 = vrcp.f32 %v5097_v16  ;;  %vm1244_vm11 = vweird.f32 %v5097_v16 }
 0x1e6   :  { %v1227_v24 = vmul.f32 %v4036_v27, %v1226_v31  ;;  %4049 = vtanh.f32 %v1176_v30  ;;  %v1213_v30 = vor.u32 1.1754944e-38, %v1212_v48 }
 0x1e7   :  { %v5101_v7 = vpop.eup %4041  ;;  %v1190_v3 = vadd.f32 %v4034_v26, %v1189_v62  ;;  %v1250_v62 = vand.u32 2147483648, %v5097_v16 }
 0x1e8   :  { %v4044_v56 = vpop.eup %4043  ;;  %v1228_v45 = vadd.f32 %v4036_v27, %v1227_v24  ;;  %v1265_v13 = vmul.f32 %v5101_v7, %v5090_v49  ;;  %vm1270_vm6 = vweird.f32 %v5101_v7 }
 0x1e9   :  { %v1194_v10 = vsel %vm1193_vm15, %v4034_v26, %v1190_v3  ;;  %v1202_v44 = vmul.f32 %v4044_v56, %v5092_v32  ;;  %v4046_v39 = vpop.eup %4045  ;;  %vm1207_vm3 = vweird.f32 %v4044_v56  ;;  %vm1271_vm12 = vmor %vm1269_vm10, %vm1270_vm6 }
 0x1ea   :  { %v1199_v19 = vsel %vm1196_vm14, %v1198_v50, %v1194_v10  ;;  %v1232_v33 = vsel %vm1231_vm0, %v4036_v27, %v1228_v45  ;;  %v1266_v58 = vsub.f32 1.0, %v1265_v13  ;;  %v1263_v38 = vadd.f32 1.0, %v4046_v39  ;;  %vm1208_vm8 = vmor %vm1206_vm2, %vm1207_vm3 }
 0x1eb   :  { %v4048_v29 = vpop.eup %4047  ;;  %v1237_v46 = vsel %vm1234_vm1, %v1236_v4, %v1232_v33  ;;  %v1296_v25 = vmul.f32 %v4040_v34, %v1199_v19  ;;  %v1203_v57 = vsub.f32 1.0, %v1202_v44  ;;  %v1210_v27 = vand.u32 2147483647, %v5092_v32 }
 0x1ec   :  { %v1294_v21 = vmul.f32 %v1237_v46, %v4935_v54  ;;  %v1240_v17 = vmul.f32 %v4048_v29, %v5097_v16  ;;  %v1267_v26 = vmul.f32 %v5101_v7, %v1266_v58  ;;  %4051 = vrcp.f32 %v1263_v38  ;;  %v4050_v34 = vpop.eup %4049 }
 0x1ed   :  { %v1204_v31 = vmul.f32 %v4044_v56, %v1203_v57  ;;  %v1248_v54 = vand.u32 2147483647, %v5097_v16  ;;  %vm1245_vm7 = vweird.f32 %v4048_v29  ;;  %v1275_v50 = vand.u32 2147483648, %v5090_v49 }
 0x1ee   :  { %v5112_v12 = vadd.f32 %v1296_v25, %v1294_v21  ;;  %v1241_v8 = vsub.f32 1.0, %v1240_v17  ;;  %v1268_v3 = vadd.f32 %v5101_v7, %v1267_v26  ;;  %vm1211_vm9 = vcmp.eq.f32.partialorder %v1210_v27, 8.507059e+37  ;;  %vm1246_vm13 = vmor %vm1244_vm11, %vm1245_vm7 }
 0x1ef   :  { %v1205_v24 = vadd.f32 %v4044_v56, %v1204_v31  ;;  %v1273_v13 = vand.u32 2147483647, %v5090_v49  ;;  %v1251_v19 = vor.u32 1.1754944e-38, %v1250_v62  ;;  %vm1249_vm14 = vcmp.eq.f32.partialorder %v1248_v54, 8.507059e+37 }
 0x1f0   :  { %4053 = vtanh.f32 %v5112_v12  ;;  %v1242_v4 = vmul.f32 %v4048_v29, %v1241_v8  ;;  %v1272_v32 = vsel %vm1271_vm12, %v5101_v7, %v1268_v3  ;;  %v1290_v8 = vand.u32 2147483648, %v1263_v38  ;;  %v6473_v3 = vld [vmem:[#allocation95_spill] sm:$0xff] }
 0x1f1   :  { %v1209_v45 = vsel %vm1208_vm8, %v4044_v56, %v1205_v24  ;;  %v1276_v56 = vor.u32 1.1754944e-38, %v1275_v50  ;;  %vm1274_vm15 = vcmp.eq.f32.partialorder %v1273_v13, 8.507059e+37  ;;  %vm1284_vm1 = vweird.f32 %v1263_v38  ;;  %v6475_v50 = vld [vmem:[#allocation97_spill] sm:$0xff]  ;;  %v6476_v13 = vld [vmem:[#allocation98_spill] sm:$0xff] }
 0x1f2   :  { %v1214_v10 = vsel %vm1211_vm9, %v1213_v30, %v1209_v45  ;;  %v1243_v44 = vadd.f32 %v4048_v29, %v1242_v4  ;;  %v4052_v39 = vpop.eup %4051  ;;  %v1288_v7 = vand.u32 2147483647, %v1263_v38  ;;  %v6474_v4 = vld [vmem:[#allocation96_spill] sm:$0xff]  ;;  %v3976_v45 = vld [vmem:[%s6097_s0 + $0x10] sm:$0xff] }
 0x1f3   :  { %v1297_v58 = vmul.f32 %v4050_v34, %v1214_v10  ;;  %v1280_v48 = vmul.f32 %v4052_v39, %v1263_v38  ;;  %v1277_v57 = vsel %vm1274_vm15, %v1276_v56, %v1272_v32  ;;  %vm1285_vm0 = vweird.f32 %v4052_v39  ;;  %v3977_v38 = vld [vmem:[%s6097_s0 + $0x28] sm:$0xff]  ;;  %v6477_v10 = vld [vmem:[#allocation99_spill] sm:$0xff] }
 0x1f4   :  { %v1247_v33 = vsel %vm1246_vm13, %v4048_v29, %v1243_v44  ;;  %vm1286_vm2 = vmor %vm1284_vm1, %vm1285_vm0  ;;  %v1291_v29 = vor.u32 1.1754944e-38, %v1290_v8  ;;  %vm1289_vm3 = vcmp.eq.f32.partialorder %v1288_v7, 8.507059e+37  ;;  %v6478_v44 = vld [vmem:[#allocation100_spill] sm:$0xff]  ;;  %v6481_v32 = vld [vmem:[#allocation9_spill] sm:$0xff] }
 0x1f5   :  { %v1252_v46 = vsel %vm1249_vm14, %v1251_v19, %v1247_v33  ;;  %v1281_v16 = vsub.f32 1.0, %v1280_v48  ;;  %v6480_v19 = vld [vmem:[#allocation8_spill] sm:$0xff]  ;;  %v6482_v33 = vld [vmem:[#allocation10_spill] sm:$0xff]  ;;  %v6485_v56 = vld [vmem:[#allocation13_spill] sm:$0xff] }
 0x1f6   :  { %v4054_v25 = vpop.eup %4053  ;;  %v1295_v49 = vmul.f32 %v1252_v46, %v4957_v9  ;;  %v6484_v48 = vld [vmem:[#allocation12_spill] sm:$0xff]  ;;  %v6486_v46 = vld [vmem:[#allocation14_spill] sm:$0xff]  ;;  %v6495_v8 = vld [vmem:[#allocation23_spill] sm:$0xff] }
 0x1f7   :  { %v1302_v21 = vmul.f32 %v4054_v25, %v1277_v57  ;;  %v1282_v26 = vmul.f32 %v4052_v39, %v1281_v16  ;;  %v6487_v25 = vld [vmem:[#allocation15_spill] sm:$0xff]  ;;  %v6489_v57 = vld [vmem:[#allocation17_spill] sm:$0xff]  ;;  %v6490_v16 = vld [vmem:[#allocation18_spill] sm:$0xff] }
 0x1f8   :  { %v5128_v17 = vadd.f32 %v1297_v58, %v1295_v49  ;;  %v6483_v58 = vld [vmem:[#allocation11_spill] sm:$0xff]  ;;  %v6488_v49 = vld [vmem:[#allocation16_spill] sm:$0xff] }
 0x1f9   :  { %v1304_v31 = vpack.c.bf16 %v1302_v21, %v1302_v21  ;;  %v1283_v27 = vadd.f32 %v4052_v39, %v1282_v26  ;;  %v6492_v26 = vld [vmem:[#allocation20_spill] sm:$0xff] }
 0x1fa   :  { %4055 = vtanh.f32 %v5128_v17  ;;  %v6496_v7 = vld [vmem:[#allocation24_spill] sm:$0xff] }
 0x1fb   :  { %3744 = vst.msk [vmem:[%s6102_s5 + $0x8] sm:$0xf] %vm968_vm4, %v1304_v31  ;;  %v1287_v9 = vsel %vm1286_vm2, %v4052_v39, %v1283_v27  ;;  %v6479_v39 = vld [vmem:[#allocation101_spill] sm:$0xff]  ;;  %v6494_v27 = vld [vmem:[#allocation22_spill] sm:$0xff] }
 0x1fc   :  { %3746 = vst.msk [vmem:[%s6102_s5 + $0x30] sm:$0xf] %vm972_vm5, %v1304_v31  ;;  %v1292_v30 = vsel %vm1289_vm3, %v1291_v29, %v1287_v9  ;;  %v6493_v31 = vld [vmem:[#allocation21_spill] sm:$0xff]  ;;  %v6498_v29 = vld [vmem:[#allocation26_spill] sm:$0xff] }
 0x1fd   :  { %v6497_v9 = vld [vmem:[#allocation25_spill] sm:$0xff] }
 0x200   :  { %v4056_v62 = vpop.eup %4055 }
 0x201   :  { %v1303_v34 = vmul.f32 %v4056_v62, %v1292_v30  ;;  %v6499_v62 = vld [vmem:[#allocation27_spill] sm:$0xff]  ;;  %v6500_v30 = vld [vmem:[#allocation28_spill] sm:$0xff] }
 0x203   :  { %v1305_v24 = vpack.c.bf16 %v1303_v34, %v1303_v34  ;;  %v1312_v54 = vpack.c.bf16 %v1303_v34, %v1302_v21  ;;  %v6491_v21 = vld [vmem:[#allocation19_spill] sm:$0xff]  ;;  %v6501_v34 = vld [vmem:[#allocation29_spill] sm:$0xff] }
 0x205   :  { %3745 = vst.msk [vmem:[%s6102_s5 + $0xc] sm:$0xf] %vm968_vm4, %v1305_v24  ;;  %1321 = vmatmul.bf16.vlgmr.msra.gmra.mxu0 %v1312_v54  ;;  %1335 = vmatmul.bf16.vlgmr.msra.gmra.mxu1 %v1312_v54 }
 0x206   :  { %3747 = vst.msk [vmem:[%s6102_s5 + $0x34] sm:$0xf] %vm972_vm5, %v1305_v24  ;;  %1349 = vmatmul.bf16.vlgmr.msra.gmra.mxu2 %v1312_v54  ;;  %1363 = vmatmul.bf16.vlgmr.msra.gmra.mxu3 %v1312_v54  ;;  %v6502_v24 = vld [vmem:[#allocation30_spill] sm:$0xff]  ;;  %v6503_v54 = vld [vmem:[#allocation31_spill] sm:$0xff] }
 0x207   :  { %1443 = vmatpush.bf16.msra.mxu0 %v6405_v23  ;;  %1457 = vmatpush.bf16.msra.mxu1 %v6406_v41 }
 0x208   :  { %1471 = vmatpush.bf16.msra.mxu2 %v6407_v18  ;;  %1485 = vmatpush.bf16.msra.mxu3 %v6408_v55 }
 0x20b   :  { %1444 = vmatpush.bf16.msra.mxu0 %v4594_v63  ;;  %1458 = vmatpush.bf16.msra.mxu1 %v6409_v61 }
 0x20c   :  { %1472 = vmatpush.bf16.msra.mxu2 %v6410_v36  ;;  %1486 = vmatpush.bf16.msra.mxu3 %v6411_v20 }
 0x20f   :  { %1445 = vmatpush.bf16.msra.mxu0 %v6412_v1  ;;  %1459 = vmatpush.bf16.msra.mxu1 %v6413_v60 }
 0x210   :  { %1473 = vmatpush.bf16.msra.mxu2 %v6414_v59  ;;  %1487 = vmatpush.bf16.msra.mxu3 %v6415_v51 }
 0x213   :  { %1446 = vmatpush.bf16.msra.mxu0 %v6416_v43  ;;  %1460 = vmatpush.bf16.msra.mxu1 %v6417_v0 }
 0x214   :  { %1474 = vmatpush.bf16.msra.mxu2 %v6418_v11  ;;  %1488 = vmatpush.bf16.msra.mxu3 %v6419_v35 }
 0x215   :  { %1389 = vmatmul.bf16.vlgmr.msrb.gmra.mxu0 %v3977_v38  ;;  %1403 = vmatmul.bf16.vlgmr.msrb.gmra.mxu1 %v3977_v38 }
 0x216   :  { %1417 = vmatmul.bf16.vlgmr.msrb.gmra.mxu2 %v3977_v38  ;;  %1431 = vmatmul.bf16.vlgmr.msrb.gmra.mxu3 %v3977_v38  ;;  %v6504_v38 = vld [vmem:[#allocation32_spill] sm:$0xff] }
 0x217   :  { %1447 = vmatpush.bf16.msra.mxu0 %v6420_v37  ;;  %1461 = vmatpush.bf16.msra.mxu1 %v6421_v14 }
 0x218   :  { %1475 = vmatpush.bf16.msra.mxu2 %v6422_v5  ;;  %1489 = vmatpush.bf16.msra.mxu3 %v6423_v6 }
 0x21b   :  { %1448 = vmatpush.bf16.msra.mxu0 %v6424_v22  ;;  %1462 = vmatpush.bf16.msra.mxu1 %v6425_v47 }
 0x21c   :  { %1476 = vmatpush.bf16.msra.mxu2 %v6426_v15  ;;  %1490 = vmatpush.bf16.msra.mxu3 %v6427_v42 }
 0x21f   :  { %1449 = vmatpush.bf16.msra.mxu0 %v4774_v53  ;;  %1463 = vmatpush.bf16.msra.mxu1 %v6473_v3 }
 0x220   :  { %1477 = vmatpush.bf16.msra.mxu2 %v6474_v4  ;;  %1491 = vmatpush.bf16.msra.mxu3 %v6475_v50 }
 0x223   :  { %1450 = vmatpush.bf16.msra.mxu0 %v6476_v13  ;;  %1464 = vmatpush.bf16.msra.mxu1 %v6477_v10 }
 0x224   :  { %1478 = vmatpush.bf16.msra.mxu2 %v6478_v44  ;;  %1492 = vmatpush.bf16.msra.mxu3 %v6479_v39 }
 0x226   :  { %1451 = vmatmul.bf16.vlgmr.msra.gmra.mxu0 %v3976_v45  ;;  %1465 = vmatmul.bf16.vlgmr.msra.gmra.mxu1 %v3976_v45 }
 0x227   :  { %1650 = vmatpush.bf16.msrb.mxu0 %v6480_v19  ;;  %1664 = vmatpush.bf16.msrb.mxu1 %v6481_v32 }
 0x228   :  { %1479 = vmatmul.bf16.vlgmr.msra.gmra.mxu2 %v3976_v45  ;;  %1493 = vmatmul.bf16.vlgmr.msra.gmra.mxu3 %v3976_v45  ;;  %v6505_v45 = vld [vmem:[#allocation33_spill] sm:$0xff] }
 0x229   :  { %1678 = vmatpush.bf16.msrb.mxu2 %v6482_v33  ;;  %1692 = vmatpush.bf16.msrb.mxu3 %v6483_v58 }
 0x22b   :  { %1651 = vmatpush.bf16.msrb.mxu0 %v6484_v48  ;;  %1665 = vmatpush.bf16.msrb.mxu1 %v6485_v56 }
 0x22d   :  { %1679 = vmatpush.bf16.msrb.mxu2 %v6486_v46  ;;  %1693 = vmatpush.bf16.msrb.mxu3 %v6487_v25 }
 0x22f   :  { %1652 = vmatpush.bf16.msrb.mxu0 %v6488_v49  ;;  %1666 = vmatpush.bf16.msrb.mxu1 %v6489_v57 }
 0x231   :  { %1680 = vmatpush.bf16.msrb.mxu2 %v6490_v16  ;;  %1694 = vmatpush.bf16.msrb.mxu3 %v6491_v21 }
 0x233   :  { %1653 = vmatpush.bf16.msrb.mxu0 %v6492_v26  ;;  %1667 = vmatpush.bf16.msrb.mxu1 %v6493_v31 }
 0x235   :  { %1681 = vmatpush.bf16.msrb.mxu2 %v6494_v27  ;;  %1695 = vmatpush.bf16.msrb.mxu3 %v6495_v8  ;;  %v6506_v8 = vld [vmem:[#allocation34_spill] sm:$0xff] }
 0x237   :  { %1654 = vmatpush.bf16.msrb.mxu0 %v6496_v7  ;;  %1668 = vmatpush.bf16.msrb.mxu1 %v6497_v9  ;;  %v6507_v7 = vld [vmem:[#allocation35_spill] sm:$0xff]  ;;  %v6508_v9 = vld [vmem:[#allocation36_spill] sm:$0xff] }
 0x239   :  { %1682 = vmatpush.bf16.msrb.mxu2 %v6498_v29  ;;  %1696 = vmatpush.bf16.msrb.mxu3 %v6499_v62  ;;  %v6509_v29 = vld [vmem:[#allocation37_spill] sm:$0xff]  ;;  %v6510_v62 = vld [vmem:[#allocation40_spill] sm:$0xff] }
 0x23b   :  { %1655 = vmatpush.bf16.msrb.mxu0 %v6500_v30  ;;  %1669 = vmatpush.bf16.msrb.mxu1 %v6501_v34  ;;  %v6511_v30 = vld [vmem:[#allocation41_spill] sm:$0xff]  ;;  %v6512_v34 = vld [vmem:[#allocation38_spill] sm:$0xff] }
 0x23d   :  { %1683 = vmatpush.bf16.msrb.mxu2 %v6502_v24  ;;  %1697 = vmatpush.bf16.msrb.mxu3 %v6503_v54  ;;  %v6513_v24 = vld [vmem:[#allocation39_spill] sm:$0xff]  ;;  %v6514_v54 = vld [vmem:[#allocation42_spill] sm:$0xff] }
 0x23f   :  { %1656 = vmatpush.bf16.msrb.mxu0 %v6504_v38  ;;  %1670 = vmatpush.bf16.msrb.mxu1 %v6505_v45  ;;  %v6515_v38 = vld [vmem:[#allocation43_spill] sm:$0xff]  ;;  %v6516_v45 = vld [vmem:[#allocation44_spill] sm:$0xff] }
 0x241   :  { %1684 = vmatpush.bf16.msrb.mxu2 %v6506_v8  ;;  %1698 = vmatpush.bf16.msrb.mxu3 %v6507_v7  ;;  %v6517_v8 = vld [vmem:[#allocation45_spill] sm:$0xff]  ;;  %v6518_v7 = vld [vmem:[#allocation46_spill] sm:$0xff] }
 0x243   :  { %1657 = vmatpush.bf16.msrb.mxu0 %v6508_v9  ;;  %1671 = vmatpush.bf16.msrb.mxu1 %v6509_v29  ;;  %v6519_v9 = vld [vmem:[#allocation47_spill] sm:$0xff]  ;;  %v6520_v29 = vld [vmem:[#allocation48_spill] sm:$0xff] }
 0x245   :  { %1685 = vmatpush.bf16.msrb.mxu2 %v6512_v34  ;;  %1699 = vmatpush.bf16.msrb.mxu3 %v6513_v24  ;;  %v6523_v34 = vld [vmem:[#allocation51_spill] sm:$0xff]  ;;  %v6524_v24 = vld [vmem:[#allocation52_spill] sm:$0xff] }
 0x247   :  { %1718 = vmatpush.bf16.msra.mxu0 %v6510_v62  ;;  %1732 = vmatpush.bf16.msra.mxu1 %v6511_v30  ;;  %v6521_v62 = vld [vmem:[#allocation49_spill] sm:$0xff]  ;;  %v6522_v30 = vld [vmem:[#allocation50_spill] sm:$0xff] }
 0x249   :  { %1746 = vmatpush.bf16.msra.mxu2 %v6514_v54  ;;  %1760 = vmatpush.bf16.msra.mxu3 %v6515_v38  ;;  %v6525_v54 = vld [vmem:[#allocation53_spill] sm:$0xff]  ;;  %v6526_v38 = vld [vmem:[#allocation54_spill] sm:$0xff] }
 0x24b   :  { %1719 = vmatpush.bf16.msra.mxu0 %v6516_v45  ;;  %1733 = vmatpush.bf16.msra.mxu1 %v6517_v8  ;;  %v6527_v45 = vld [vmem:[#allocation55_spill] sm:$0xff]  ;;  %v6528_v8 = vld [vmem:[#allocation56_spill] sm:$0xff] }
 0x24d   :  { %1747 = vmatpush.bf16.msra.mxu2 %v6518_v7  ;;  %1761 = vmatpush.bf16.msra.mxu3 %v6519_v9  ;;  %v6529_v7 = vld [vmem:[#allocation57_spill] sm:$0xff]  ;;  %v6530_v9 = vld [vmem:[#allocation58_spill] sm:$0xff] }
 0x24f   :  { %1720 = vmatpush.bf16.msra.mxu0 %v6520_v29  ;;  %1734 = vmatpush.bf16.msra.mxu1 %v6521_v62  ;;  %v6531_v29 = vld [vmem:[#allocation59_spill] sm:$0xff]  ;;  %v6532_v62 = vld [vmem:[#allocation60_spill] sm:$0xff] }
 0x251   :  { %1748 = vmatpush.bf16.msra.mxu2 %v6522_v30  ;;  %1762 = vmatpush.bf16.msra.mxu3 %v6523_v34  ;;  %v6533_v30 = vld [vmem:[#allocation61_spill] sm:$0xff]  ;;  %v6534_v34 = vld [vmem:[#allocation62_spill] sm:$0xff] }
 0x253   :  { %1721 = vmatpush.bf16.msra.mxu0 %v6524_v24  ;;  %1735 = vmatpush.bf16.msra.mxu1 %v6525_v54  ;;  %v6535_v24 = vld [vmem:[#allocation63_spill] sm:$0xff]  ;;  %v6536_v54 = vld [vmem:[#allocation64_spill] sm:$0xff] }
 0x255   :  { %1749 = vmatpush.bf16.msra.mxu2 %v6526_v38  ;;  %1763 = vmatpush.bf16.msra.mxu3 %v6527_v45  ;;  %v6537_v38 = vld [vmem:[#allocation65_spill] sm:$0xff]  ;;  %v6538_v45 = vld [vmem:[#allocation66_spill] sm:$0xff] }
 0x257   :  { %1722 = vmatpush.bf16.msra.mxu0 %v6528_v8  ;;  %1736 = vmatpush.bf16.msra.mxu1 %v6529_v7  ;;  %v6539_v8 = vld [vmem:[#allocation67_spill] sm:$0xff]  ;;  %v6540_v7 = vld [vmem:[#allocation68_spill] sm:$0xff] }
 0x259   :  { %1750 = vmatpush.bf16.msra.mxu2 %v6530_v9  ;;  %1764 = vmatpush.bf16.msra.mxu3 %v6531_v29  ;;  %v6541_v9 = vld [vmem:[#allocation69_spill] sm:$0xff]  ;;  %v6542_v29 = vld [vmem:[#allocation70_spill] sm:$0xff] }
 0x25b   :  { %1723 = vmatpush.bf16.msra.mxu0 %v6532_v62  ;;  %1737 = vmatpush.bf16.msra.mxu1 %v6533_v30  ;;  %v6543_v62 = vld [vmem:[#allocation71_spill] sm:$0xff] }
 0x25d   :  { %1751 = vmatpush.bf16.msra.mxu2 %v6534_v34  ;;  %1765 = vmatpush.bf16.msra.mxu3 %v6535_v24 }
 0x25f   :  { %1724 = vmatpush.bf16.msra.mxu0 %v6536_v54  ;;  %1738 = vmatpush.bf16.msra.mxu1 %v6537_v38 }
 0x261   :  { %1752 = vmatpush.bf16.msra.mxu2 %v6538_v45  ;;  %1766 = vmatpush.bf16.msra.mxu3 %v6539_v8 }
 0x263   :  { %1725 = vmatpush.bf16.msra.mxu0 %v6540_v7  ;;  %1739 = vmatpush.bf16.msra.mxu1 %v6541_v9 }
 0x265   :  { %1753 = vmatpush.bf16.msra.mxu2 %v6542_v29  ;;  %1767 = vmatpush.bf16.msra.mxu3 %v6543_v62 }
 0x282   :  { %v1322_v30 = vpop.f32.mrf.mxu0  ;;  %v1336_v34 = vpop.f32.mrf.mxu1 }
 0x289   :  { %v1350_v27 = vpop.f32.mrf.mxu2  ;;  %v1364_v24 = vpop.f32.mrf.mxu3 }
 0x28a   :  { %v1324_v31 = vpop.f32.mrf.mxu0  ;;  %v1338_v54 = vpop.f32.mrf.mxu1 }
 0x291   :  { %v5249_v26 = vpop.f32.mrf.mxu2  ;;  %v1366_v38 = vpop.f32.mrf.mxu3 }
 0x292   :  { %v1390_v45 = vpop.f32.mrf.mxu0  ;;  %v1404_v21 = vpop.f32.mrf.mxu1 }
 0x299   :  { %v1418_v8 = vpop.f32.mrf.mxu2  ;;  %v1432_v16 = vpop.f32.mrf.mxu3 }
 0x29a   :  { %v1392_v7 = vpop.f32.mrf.mxu0  ;;  %v1406_v57 = vpop.f32.mrf.mxu1 }
 0x2a1   :  { %v1420_v9 = vpop.f32.mrf.mxu2  ;;  %v1434_v49 = vpop.f32.mrf.mxu3 }
 0x2a3   :  { %v1452_v29 = vpop.f32.mrf.mxu0  ;;  %v1466_v25 = vpop.f32.mrf.mxu1 }
 0x2a4   :  { %v1453_v62 = vadd.f32 %v1452_v29, %v1390_v45  ;;  %v1467_v46 = vadd.f32 %v1466_v25, %v1404_v21 }
 0x2a6   :  { %v1499_v56 = vadd.f32 %v1453_v62, %v4897_v40  ;;  %v1500_v48 = vadd.f32 %v1467_v46, %v4899_v2 }
 0x2a8   :  { %v1507_v58 = vadd.f32 %v1499_v56, %v1322_v30  ;;  %v1508_v33 = vadd.f32 %v1500_v48, %v1336_v34 }
 0x2aa   :  { %v3760_v32 = vmul.f32 -1.442695, %v1507_v58  ;;  %v3762_v19 = vmul.f32 -1.442695, %v1508_v33 }
 0x2ab   :  { %v1480_v39 = vpop.f32.mrf.mxu2  ;;  %v1494_v44 = vpop.f32.mrf.mxu3 }
 0x2ac   :  { %v1495_v10 = vadd.f32 %v1494_v44, %v1432_v16  ;;  %v1454_v13 = vpop.f32.mrf.mxu0  ;;  %v1468_v50 = vpop.f32.mrf.mxu1  ;;  %4057 = vpow2.f32 %v3760_v32  ;;  %v1481_v46 = vadd.f32 %v1480_v39, %v1418_v8 }
 0x2ad   :  { %v1455_v4 = vadd.f32 %v1454_v13, %v1392_v7  ;;  %v1469_v3 = vadd.f32 %v1468_v50, %v1406_v57  ;;  %4059 = vpow2.f32 %v3762_v19 }
 0x2ae   :  { %v1502_v29 = vadd.f32 %v1495_v10, %v4903_v28  ;;  %v1501_v13 = vadd.f32 %v1481_v46, %v4907_v52 }
 0x2af   :  { %v1503_v25 = vadd.f32 %v1455_v4, %v4897_v40  ;;  %v1504_v21 = vadd.f32 %v1469_v3, %v4899_v2 }
 0x2b0   :  { %v1510_v56 = vadd.f32 %v1502_v29, %v1364_v24  ;;  %v1509_v3 = vadd.f32 %v1501_v13, %v1350_v27 }
 0x2b1   :  { %v1511_v48 = vadd.f32 %v1503_v25, %v1324_v31  ;;  %v1512_v58 = vadd.f32 %v1504_v21, %v1338_v54 }
 0x2b2   :  { %v3764_v33 = vmul.f32 -1.442695, %v1510_v56  ;;  %v4058_v62 = vpop.eup %4057 }
 0x2b3   :  { %v3761_v30 = vmul.f32 -1.442695, %v1511_v48  ;;  %v1496_v44 = vpop.f32.mrf.mxu3  ;;  %v4060_v16 = vpop.eup %4059  ;;  %v1521_v34 = vadd.f32 1.0, %v4058_v62  ;;  %v3763_v50 = vmul.f32 -1.442695, %v1512_v58 }
 0x2b4   :  { %4061 = vpow2.f32 %v3764_v33  ;;  %v1559_v19 = vadd.f32 1.0, %v4060_v16  ;;  %v1497_v10 = vadd.f32 %v1496_v44, %v1434_v49  ;;  %v1482_v4 = vpop.f32.mrf.mxu2 }
 0x2b5   :  { %4063 = vpow2.f32 %v3761_v30  ;;  %v1483_v39 = vadd.f32 %v1482_v4, %v1420_v9  ;;  %v1532_v46 = vand.u32 2147483647, %v1521_v34  ;;  %v1534_v56 = vand.u32 2147483648, %v1521_v34 }
 0x2b6   :  { %4065 = vrcp.f32 %v1521_v34  ;;  %v1506_v32 = vadd.f32 %v1497_v10, %v4903_v28  ;;  %v1572_v58 = vand.u32 2147483648, %v1559_v19  ;;  %v1570_v33 = vand.u32 2147483647, %v1559_v19 }
 0x2b7   :  { %4067 = vrcp.f32 %v1559_v19  ;;  %v1505_v49 = vadd.f32 %v1483_v39, %v4907_v52  ;;  %vm1566_vm8 = vweird.f32 %v1559_v19  ;;  %vm1528_vm9 = vweird.f32 %v1521_v34 }
 0x2b8   :  { %4069 = vpow2.f32 %v3763_v50  ;;  %v1514_v7 = vadd.f32 %v1506_v32, %v1366_v38  ;;  %vm1533_vm10 = vcmp.eq.f32.partialorder %v1532_v46, 8.507059e+37  ;;  %v1573_v4 = vor.u32 1.1754944e-38, %v1572_v58 }
 0x2b9   :  { %4071 = vtanh.f32 %v1509_v3  ;;  %v1513_v30 = vadd.f32 %v1505_v49, %v5249_v26  ;;  %v1535_v3 = vor.u32 1.1754944e-38, %v1534_v56  ;;  %vm1571_vm13 = vcmp.eq.f32.partialorder %v1570_v33, 8.507059e+37 }
 0x2ba   :  { %v4062_v57 = vpop.eup %4061  ;;  %v3765_v27 = vmul.f32 -1.442695, %v1514_v7 }
 0x2bb   :  { %v4064_v31 = vpop.eup %4063  ;;  %v5258_v8 = vadd.f32 1.0, %v4062_v57 }
 0x2bc   :  { %v4066_v24 = vpop.eup %4065  ;;  %v5260_v54 = vadd.f32 1.0, %v4064_v31 }
 0x2bd   :  { %v4068_v45 = vpop.eup %4067  ;;  %v1524_v29 = vmul.f32 %v4066_v24, %v1521_v34  ;;  %4073 = vrcp.f32 %v5258_v8  ;;  %vm1529_vm6 = vweird.f32 %v4066_v24 }
 0x2be   :  { %v4070_v25 = vpop.eup %4069  ;;  %v1562_v9 = vmul.f32 %v4068_v45, %v1559_v19  ;;  %4075 = vrcp.f32 %v5260_v54  ;;  %vm1567_vm7 = vweird.f32 %v4068_v45  ;;  %vm1530_vm11 = vmor %vm1528_vm9, %vm1529_vm6  ;;  %v1549_v34 = vand.u32 2147483648, %v5260_v54 }
 0x2bf   :  { %v1525_v21 = vsub.f32 1.0, %v1524_v29  ;;  %v5265_v48 = vadd.f32 1.0, %v4070_v25  ;;  %4077 = vpow2.f32 %v3765_v27  ;;  %v4072_v44 = vpop.eup %4071  ;;  %vm1568_vm12 = vmor %vm1566_vm8, %vm1567_vm7  ;;  %vm1543_vm14 = vweird.f32 %v5260_v54 }
 0x2c0   :  { %v1563_v38 = vsub.f32 1.0, %v1562_v9  ;;  %vm1606_vm6 = vweird.f32 %v5258_v8 }
 0x2c1   :  { %v1526_v62 = vmul.f32 %v4066_v24, %v1525_v21  ;;  %4079 = vrcp.f32 %v5265_v48  ;;  %vm1581_vm7 = vweird.f32 %v5265_v48 }
 0x2c2   :  { %v1564_v16 = vmul.f32 %v4068_v45, %v1563_v38  ;;  %4081 = vtanh.f32 %v1513_v30  ;;  %v1550_v30 = vor.u32 1.1754944e-38, %v1549_v34 }
 0x2c3   :  { %v5269_v13 = vpop.eup %4073  ;;  %v1527_v50 = vadd.f32 %v4066_v24, %v1526_v62  ;;  %v1587_v62 = vand.u32 2147483648, %v5265_v48 }
 0x2c4   :  { %v4076_v10 = vpop.eup %4075  ;;  %v1565_v39 = vadd.f32 %v4068_v45, %v1564_v16  ;;  %v1602_v32 = vmul.f32 %v5269_v13, %v5258_v8  ;;  %vm1607_vm0 = vweird.f32 %v5269_v13 }
 0x2c5   :  { %v1531_v57 = vsel %vm1530_vm11, %v4066_v24, %v1527_v50  ;;  %v1539_v26 = vmul.f32 %v4076_v10, %v5260_v54  ;;  %v4078_v31 = vpop.eup %4077  ;;  %vm1544_vm15 = vweird.f32 %v4076_v10  ;;  %vm1608_vm8 = vmor %vm1606_vm6, %vm1607_vm0 }
 0x2c6   :  { %v1536_v7 = vsel %vm1533_vm10, %v1535_v3, %v1531_v57  ;;  %v1569_v19 = vsel %vm1568_vm12, %v4068_v45, %v1565_v39  ;;  %v1603_v29 = vsub.f32 1.0, %v1602_v32  ;;  %v1600_v21 = vadd.f32 1.0, %v4078_v31  ;;  %vm1545_vm2 = vmor %vm1543_vm14, %vm1544_vm15 }
 0x2c7   :  { %v4080_v49 = vpop.eup %4079  ;;  %v1574_v27 = vsel %vm1571_vm13, %v1573_v4, %v1569_v19  ;;  %v1633_v25 = vmul.f32 %v4072_v44, %v1536_v7  ;;  %v1540_v9 = vsub.f32 1.0, %v1539_v26  ;;  %v1547_v45 = vand.u32 2147483647, %v5260_v54 }
 0x2c8   :  { %v1631_v46 = vmul.f32 %v1574_v27, %v5112_v12  ;;  %v1577_v56 = vmul.f32 %v4080_v49, %v5265_v48  ;;  %v1604_v24 = vmul.f32 %v5269_v13, %v1603_v29  ;;  %4083 = vrcp.f32 %v1600_v21  ;;  %v4082_v44 = vpop.eup %4081 }
 0x2c9   :  { %v1541_v38 = vmul.f32 %v4076_v10, %v1540_v9  ;;  %v1585_v12 = vand.u32 2147483647, %v5265_v48  ;;  %vm1582_vm1 = vweird.f32 %v4080_v49  ;;  %v1612_v3 = vand.u32 2147483648, %v5258_v8 }
 0x2ca   :  { %v5280_v58 = vadd.f32 %v1633_v25, %v1631_v46  ;;  %v1578_v33 = vsub.f32 1.0, %v1577_v56  ;;  %v1605_v50 = vadd.f32 %v5269_v13, %v1604_v24  ;;  %vm1548_vm3 = vcmp.eq.f32.partialorder %v1547_v45, 8.507059e+37  ;;  %vm1583_vm9 = vmor %vm1581_vm7, %vm1582_vm1 }
 0x2cb   :  { %v1542_v16 = vadd.f32 %v4076_v10, %v1541_v38  ;;  %v1610_v32 = vand.u32 2147483647, %v5258_v8  ;;  %v1588_v7 = vor.u32 1.1754944e-38, %v1587_v62  ;;  %vm1586_vm10 = vcmp.eq.f32.partialorder %v1585_v12, 8.507059e+37 }
 0x2cc   :  { %4085 = vtanh.f32 %v5280_v58  ;;  %v1579_v4 = vmul.f32 %v4080_v49, %v1578_v33  ;;  %v1609_v54 = vsel %vm1608_vm8, %v5269_v13, %v1605_v50  ;;  %v1627_v33 = vand.u32 2147483648, %v1600_v21  ;;  %v6544_v50 = vld [vmem:[#allocation95_spill] sm:$0xff] }
 0x2cd   :  { %v1546_v39 = vsel %vm1545_vm2, %v4076_v10, %v1542_v16  ;;  %v1613_v10 = vor.u32 1.1754944e-38, %v1612_v3  ;;  %vm1611_vm11 = vcmp.eq.f32.partialorder %v1610_v32, 8.507059e+37  ;;  %vm1621_vm13 = vweird.f32 %v1600_v21  ;;  %v6546_v3 = vld [vmem:[#allocation97_spill] sm:$0xff]  ;;  %v6547_v32 = vld [vmem:[#allocation98_spill] sm:$0xff] }
 0x2ce   :  { %v1551_v57 = vsel %vm1548_vm3, %v1550_v30, %v1546_v39  ;;  %v1580_v26 = vadd.f32 %v4080_v49, %v1579_v4  ;;  %v4084_v31 = vpop.eup %4083  ;;  %v1625_v13 = vand.u32 2147483647, %v1600_v21  ;;  %v6545_v4 = vld [vmem:[#allocation96_spill] sm:$0xff]  ;;  %v3978_v39 = vld [vmem:[%s6097_s0 + $0x18] sm:$0xff] }
 0x2cf   :  { %v1634_v29 = vmul.f32 %v4082_v44, %v1551_v57  ;;  %v1617_v34 = vmul.f32 %v4084_v31, %v1600_v21  ;;  %v1614_v9 = vsel %vm1611_vm11, %v1613_v10, %v1609_v54  ;;  %vm1622_vm12 = vweird.f32 %v4084_v31  ;;  %v3979_v21 = vld [vmem:[%s6097_s0 + $0x20] sm:$0xff]  ;;  %v6548_v57 = vld [vmem:[#allocation99_spill] sm:$0xff]  ;;  %v6552_v54 = vld [vmem:[#allocation9_spill] sm:$0xff] }
 0x2d0   :  { %v1584_v19 = vsel %vm1583_vm9, %v4080_v49, %v1580_v26  ;;  %vm1623_vm14 = vmor %vm1621_vm13, %vm1622_vm12  ;;  %v1628_v49 = vor.u32 1.1754944e-38, %v1627_v33  ;;  %vm1626_vm15 = vcmp.eq.f32.partialorder %v1625_v13, 8.507059e+37  ;;  %v6549_v26 = vld [vmem:[#allocation100_spill] sm:$0xff]  ;;  %v6556_v10 = vld [vmem:[#allocation13_spill] sm:$0xff] }
 0x2d1   :  { %v1589_v27 = vsel %vm1586_vm10, %v1588_v7, %v1584_v19  ;;  %v1618_v48 = vsub.f32 1.0, %v1617_v34  ;;  %v6551_v7 = vld [vmem:[#allocation8_spill] sm:$0xff]  ;;  %v6553_v19 = vld [vmem:[#allocation10_spill] sm:$0xff]  ;;  %v6566_v33 = vld [vmem:[#allocation23_spill] sm:$0xff] }
 0x2d2   :  { %v4086_v25 = vpop.eup %4085  ;;  %v1632_v8 = vmul.f32 %v1589_v27, %v5128_v17  ;;  %v6555_v34 = vld [vmem:[#allocation12_spill] sm:$0xff]  ;;  %v6557_v27 = vld [vmem:[#allocation14_spill] sm:$0xff] }
 0x2d3   :  { %v1639_v46 = vmul.f32 %v4086_v25, %v1614_v9  ;;  %v1619_v24 = vmul.f32 %v4084_v31, %v1618_v48  ;;  %v6558_v25 = vld [vmem:[#allocation15_spill] sm:$0xff]  ;;  %v6560_v9 = vld [vmem:[#allocation17_spill] sm:$0xff]  ;;  %v6561_v48 = vld [vmem:[#allocation18_spill] sm:$0xff] }
 0x2d4   :  { %v5296_v56 = vadd.f32 %v1634_v29, %v1632_v8  ;;  %v6554_v29 = vld [vmem:[#allocation11_spill] sm:$0xff]  ;;  %v6559_v8 = vld [vmem:[#allocation16_spill] sm:$0xff] }
 0x2d5   :  { %v1641_v38 = vpack.c.bf16 %v1639_v46, %v1639_v46  ;;  %v1620_v45 = vadd.f32 %v4084_v31, %v1619_v24  ;;  %v6563_v24 = vld [vmem:[#allocation20_spill] sm:$0xff] }
 0x2d6   :  { %4087 = vtanh.f32 %v5296_v56  ;;  %v6567_v13 = vld [vmem:[#allocation24_spill] sm:$0xff] }
 0x2d7   :  { %3766 = vst.msk [vmem:[%s6102_s5 + $0x10] sm:$0xf] %vm968_vm4, %v1641_v38  ;;  %v1624_v17 = vsel %vm1623_vm14, %v4084_v31, %v1620_v45  ;;  %v6550_v31 = vld [vmem:[#allocation101_spill] sm:$0xff]  ;;  %v6565_v45 = vld [vmem:[#allocation22_spill] sm:$0xff] }
 0x2d8   :  { %3768 = vst.msk [vmem:[%s6102_s5 + $0x28] sm:$0xf] %vm972_vm5, %v1641_v38  ;;  %v1629_v30 = vsel %vm1626_vm15, %v1628_v49, %v1624_v17  ;;  %v6564_v38 = vld [vmem:[#allocation21_spill] sm:$0xff]  ;;  %v6569_v49 = vld [vmem:[#allocation26_spill] sm:$0xff] }
 0x2d9   :  { %v6568_v17 = vld [vmem:[#allocation25_spill] sm:$0xff] }
 0x2dc   :  { %v4088_v62 = vpop.eup %4087 }
 0x2dd   :  { %v1640_v44 = vmul.f32 %v4088_v62, %v1629_v30  ;;  %v6570_v62 = vld [vmem:[#allocation27_spill] sm:$0xff]  ;;  %v6571_v30 = vld [vmem:[#allocation28_spill] sm:$0xff] }
 0x2df   :  { %v1642_v16 = vpack.c.bf16 %v1640_v44, %v1640_v44  ;;  %v1649_v12 = vpack.c.bf16 %v1640_v44, %v1639_v46  ;;  %v6562_v46 = vld [vmem:[#allocation19_spill] sm:$0xff]  ;;  %v6572_v44 = vld [vmem:[#allocation29_spill] sm:$0xff] }
 0x2e1   :  { %3767 = vst.msk [vmem:[%s6102_s5 + $0x14] sm:$0xf] %vm968_vm4, %v1642_v16  ;;  %1658 = vmatmul.bf16.vlgmr.msrb.gmra.mxu0 %v1649_v12  ;;  %1672 = vmatmul.bf16.vlgmr.msrb.gmra.mxu1 %v1649_v12 }
 0x2e2   :  { %3769 = vst.msk [vmem:[%s6102_s5 + $0x2c] sm:$0xf] %vm972_vm5, %v1642_v16  ;;  %1686 = vmatmul.bf16.vlgmr.msrb.gmra.mxu2 %v1649_v12  ;;  %1700 = vmatmul.bf16.vlgmr.msrb.gmra.mxu3 %v1649_v12  ;;  %v6573_v16 = vld [vmem:[#allocation30_spill] sm:$0xff]  ;;  %v6574_v12 = vld [vmem:[#allocation31_spill] sm:$0xff] }
 0x2e3   :  { %1780 = vmatpush.bf16.msrb.mxu0 %v6405_v23  ;;  %1794 = vmatpush.bf16.msrb.mxu1 %v6406_v41 }
 0x2e4   :  { %1808 = vmatpush.bf16.msrb.mxu2 %v6407_v18  ;;  %1822 = vmatpush.bf16.msrb.mxu3 %v6408_v55 }
 0x2e7   :  { %1781 = vmatpush.bf16.msrb.mxu0 %v4594_v63  ;;  %1795 = vmatpush.bf16.msrb.mxu1 %v6409_v61 }
 0x2e8   :  { %1809 = vmatpush.bf16.msrb.mxu2 %v6410_v36  ;;  %1823 = vmatpush.bf16.msrb.mxu3 %v6411_v20 }
 0x2eb   :  { %1782 = vmatpush.bf16.msrb.mxu0 %v6412_v1  ;;  %1796 = vmatpush.bf16.msrb.mxu1 %v6413_v60 }
 0x2ec   :  { %1810 = vmatpush.bf16.msrb.mxu2 %v6414_v59  ;;  %1824 = vmatpush.bf16.msrb.mxu3 %v6415_v51 }
 0x2ef   :  { %1783 = vmatpush.bf16.msrb.mxu0 %v6416_v43  ;;  %1797 = vmatpush.bf16.msrb.mxu1 %v6417_v0 }
 0x2f0   :  { %1811 = vmatpush.bf16.msrb.mxu2 %v6418_v11  ;;  %1825 = vmatpush.bf16.msrb.mxu3 %v6419_v35 }
 0x2f1   :  { %1726 = vmatmul.bf16.vlgmr.msra.gmra.mxu0 %v3979_v21  ;;  %1740 = vmatmul.bf16.vlgmr.msra.gmra.mxu1 %v3979_v21 }
 0x2f2   :  { %1754 = vmatmul.bf16.vlgmr.msra.gmra.mxu2 %v3979_v21  ;;  %1768 = vmatmul.bf16.vlgmr.msra.gmra.mxu3 %v3979_v21  ;;  %v6575_v21 = vld [vmem:[#allocation32_spill] sm:$0xff] }
 0x2f3   :  { %1784 = vmatpush.bf16.msrb.mxu0 %v6420_v37  ;;  %1798 = vmatpush.bf16.msrb.mxu1 %v6421_v14 }
 0x2f4   :  { %1812 = vmatpush.bf16.msrb.mxu2 %v6422_v5  ;;  %1826 = vmatpush.bf16.msrb.mxu3 %v6423_v6 }
 0x2f7   :  { %1785 = vmatpush.bf16.msrb.mxu0 %v6424_v22  ;;  %1799 = vmatpush.bf16.msrb.mxu1 %v6425_v47 }
 0x2f8   :  { %1813 = vmatpush.bf16.msrb.mxu2 %v6426_v15  ;;  %1827 = vmatpush.bf16.msrb.mxu3 %v6427_v42 }
 0x2fb   :  { %1786 = vmatpush.bf16.msrb.mxu0 %v4774_v53  ;;  %1800 = vmatpush.bf16.msrb.mxu1 %v6544_v50 }
 0x2fc   :  { %1814 = vmatpush.bf16.msrb.mxu2 %v6545_v4  ;;  %1828 = vmatpush.bf16.msrb.mxu3 %v6546_v3 }
 0x2ff   :  { %1787 = vmatpush.bf16.msrb.mxu0 %v6547_v32  ;;  %1801 = vmatpush.bf16.msrb.mxu1 %v6548_v57 }
 0x300   :  { %1815 = vmatpush.bf16.msrb.mxu2 %v6549_v26  ;;  %1829 = vmatpush.bf16.msrb.mxu3 %v6550_v31 }
 0x302   :  { %1788 = vmatmul.bf16.vlgmr.msrb.gmra.mxu0 %v3978_v39  ;;  %1802 = vmatmul.bf16.vlgmr.msrb.gmra.mxu1 %v3978_v39 }
 0x303   :  { %1987 = vmatpush.bf16.msra.mxu0 %v6551_v7  ;;  %2001 = vmatpush.bf16.msra.mxu1 %v6552_v54 }
 0x304   :  { %1816 = vmatmul.bf16.vlgmr.msrb.gmra.mxu2 %v3978_v39  ;;  %1830 = vmatmul.bf16.vlgmr.msrb.gmra.mxu3 %v3978_v39  ;;  %v6576_v39 = vld [vmem:[#allocation33_spill] sm:$0xff] }
 0x305   :  { %2015 = vmatpush.bf16.msra.mxu2 %v6553_v19  ;;  %2029 = vmatpush.bf16.msra.mxu3 %v6554_v29 }
 0x307   :  { %1988 = vmatpush.bf16.msra.mxu0 %v6555_v34  ;;  %2002 = vmatpush.bf16.msra.mxu1 %v6556_v10 }
 0x309   :  { %2016 = vmatpush.bf16.msra.mxu2 %v6557_v27  ;;  %2030 = vmatpush.bf16.msra.mxu3 %v6558_v25 }
 0x30b   :  { %1989 = vmatpush.bf16.msra.mxu0 %v6559_v8  ;;  %2003 = vmatpush.bf16.msra.mxu1 %v6560_v9 }
 0x30d   :  { %2017 = vmatpush.bf16.msra.mxu2 %v6561_v48  ;;  %2031 = vmatpush.bf16.msra.mxu3 %v6562_v46 }
 0x30f   :  { %1990 = vmatpush.bf16.msra.mxu0 %v6563_v24  ;;  %2004 = vmatpush.bf16.msra.mxu1 %v6564_v38 }
 0x311   :  { %2018 = vmatpush.bf16.msra.mxu2 %v6565_v45  ;;  %2032 = vmatpush.bf16.msra.mxu3 %v6566_v33  ;;  %v6577_v33 = vld [vmem:[#allocation34_spill] sm:$0xff] }
 0x313   :  { %1991 = vmatpush.bf16.msra.mxu0 %v6567_v13  ;;  %2005 = vmatpush.bf16.msra.mxu1 %v6568_v17  ;;  %v6578_v13 = vld [vmem:[#allocation35_spill] sm:$0xff]  ;;  %v6579_v17 = vld [vmem:[#allocation36_spill] sm:$0xff] }
 0x315   :  { %2019 = vmatpush.bf16.msra.mxu2 %v6569_v49  ;;  %2033 = vmatpush.bf16.msra.mxu3 %v6570_v62  ;;  %v6580_v49 = vld [vmem:[#allocation37_spill] sm:$0xff]  ;;  %v6581_v62 = vld [vmem:[#allocation40_spill] sm:$0xff] }
 0x317   :  { %1992 = vmatpush.bf16.msra.mxu0 %v6571_v30  ;;  %2006 = vmatpush.bf16.msra.mxu1 %v6572_v44  ;;  %v6582_v30 = vld [vmem:[#allocation41_spill] sm:$0xff]  ;;  %v6583_v44 = vld [vmem:[#allocation38_spill] sm:$0xff] }
 0x319   :  { %2020 = vmatpush.bf16.msra.mxu2 %v6573_v16  ;;  %2034 = vmatpush.bf16.msra.mxu3 %v6574_v12  ;;  %v6584_v16 = vld [vmem:[#allocation39_spill] sm:$0xff]  ;;  %v6585_v12 = vld [vmem:[#allocation42_spill] sm:$0xff] }
 0x31b   :  { %1993 = vmatpush.bf16.msra.mxu0 %v6575_v21  ;;  %2007 = vmatpush.bf16.msra.mxu1 %v6576_v39  ;;  %v6586_v21 = vld [vmem:[#allocation43_spill] sm:$0xff]  ;;  %v6587_v39 = vld [vmem:[#allocation44_spill] sm:$0xff] }
 0x31d   :  { %2021 = vmatpush.bf16.msra.mxu2 %v6577_v33  ;;  %2035 = vmatpush.bf16.msra.mxu3 %v6578_v13  ;;  %v6588_v33 = vld [vmem:[#allocation45_spill] sm:$0xff]  ;;  %v6589_v13 = vld [vmem:[#allocation46_spill] sm:$0xff] }
 0x31f   :  { %1994 = vmatpush.bf16.msra.mxu0 %v6579_v17  ;;  %2008 = vmatpush.bf16.msra.mxu1 %v6580_v49  ;;  %v6590_v17 = vld [vmem:[#allocation47_spill] sm:$0xff]  ;;  %v6591_v49 = vld [vmem:[#allocation48_spill] sm:$0xff] }
 0x321   :  { %2022 = vmatpush.bf16.msra.mxu2 %v6583_v44  ;;  %2036 = vmatpush.bf16.msra.mxu3 %v6584_v16  ;;  %v6594_v44 = vld [vmem:[#allocation51_spill] sm:$0xff]  ;;  %v6595_v16 = vld [vmem:[#allocation52_spill] sm:$0xff] }
 0x323   :  { %2053 = vmatpush.bf16.msrb.mxu0 %v6581_v62  ;;  %2067 = vmatpush.bf16.msrb.mxu1 %v6582_v30  ;;  %v6592_v62 = vld [vmem:[#allocation49_spill] sm:$0xff]  ;;  %v6593_v30 = vld [vmem:[#allocation50_spill] sm:$0xff] }
 0x325   :  { %2081 = vmatpush.bf16.msrb.mxu2 %v6585_v12  ;;  %2095 = vmatpush.bf16.msrb.mxu3 %v6586_v21  ;;  %v6596_v12 = vld [vmem:[#allocation53_spill] sm:$0xff]  ;;  %v6597_v21 = vld [vmem:[#allocation54_spill] sm:$0xff] }
 0x327   :  { %2054 = vmatpush.bf16.msrb.mxu0 %v6587_v39  ;;  %2068 = vmatpush.bf16.msrb.mxu1 %v6588_v33  ;;  %v6598_v39 = vld [vmem:[#allocation55_spill] sm:$0xff]  ;;  %v6599_v33 = vld [vmem:[#allocation56_spill] sm:$0xff] }
 0x329   :  { %2082 = vmatpush.bf16.msrb.mxu2 %v6589_v13  ;;  %2096 = vmatpush.bf16.msrb.mxu3 %v6590_v17  ;;  %v6600_v13 = vld [vmem:[#allocation57_spill] sm:$0xff]  ;;  %v6601_v17 = vld [vmem:[#allocation58_spill] sm:$0xff] }
 0x32b   :  { %2055 = vmatpush.bf16.msrb.mxu0 %v6591_v49  ;;  %2069 = vmatpush.bf16.msrb.mxu1 %v6592_v62  ;;  %v6602_v49 = vld [vmem:[#allocation59_spill] sm:$0xff]  ;;  %v6603_v62 = vld [vmem:[#allocation60_spill] sm:$0xff] }
 0x32d   :  { %2083 = vmatpush.bf16.msrb.mxu2 %v6593_v30  ;;  %2097 = vmatpush.bf16.msrb.mxu3 %v6594_v44  ;;  %v6604_v30 = vld [vmem:[#allocation61_spill] sm:$0xff]  ;;  %v6605_v44 = vld [vmem:[#allocation62_spill] sm:$0xff] }
 0x32f   :  { %2056 = vmatpush.bf16.msrb.mxu0 %v6595_v16  ;;  %2070 = vmatpush.bf16.msrb.mxu1 %v6596_v12  ;;  %v6606_v16 = vld [vmem:[#allocation63_spill] sm:$0xff]  ;;  %v6607_v12 = vld [vmem:[#allocation64_spill] sm:$0xff] }
 0x331   :  { %2084 = vmatpush.bf16.msrb.mxu2 %v6597_v21  ;;  %2098 = vmatpush.bf16.msrb.mxu3 %v6598_v39  ;;  %v6608_v21 = vld [vmem:[#allocation65_spill] sm:$0xff]  ;;  %v6609_v39 = vld [vmem:[#allocation66_spill] sm:$0xff] }
 0x333   :  { %2057 = vmatpush.bf16.msrb.mxu0 %v6599_v33  ;;  %2071 = vmatpush.bf16.msrb.mxu1 %v6600_v13  ;;  %v6610_v33 = vld [vmem:[#allocation67_spill] sm:$0xff]  ;;  %v6611_v13 = vld [vmem:[#allocation68_spill] sm:$0xff] }
 0x335   :  { %2085 = vmatpush.bf16.msrb.mxu2 %v6601_v17  ;;  %2099 = vmatpush.bf16.msrb.mxu3 %v6602_v49  ;;  %v6612_v17 = vld [vmem:[#allocation69_spill] sm:$0xff]  ;;  %v6613_v49 = vld [vmem:[#allocation70_spill] sm:$0xff] }
 0x337   :  { %2058 = vmatpush.bf16.msrb.mxu0 %v6603_v62  ;;  %2072 = vmatpush.bf16.msrb.mxu1 %v6604_v30  ;;  %v6614_v62 = vld [vmem:[#allocation71_spill] sm:$0xff] }
 0x339   :  { %2086 = vmatpush.bf16.msrb.mxu2 %v6605_v44  ;;  %2100 = vmatpush.bf16.msrb.mxu3 %v6606_v16 }
 0x33b   :  { %2059 = vmatpush.bf16.msrb.mxu0 %v6607_v12  ;;  %2073 = vmatpush.bf16.msrb.mxu1 %v6608_v21 }
 0x33d   :  { %2087 = vmatpush.bf16.msrb.mxu2 %v6609_v39  ;;  %2101 = vmatpush.bf16.msrb.mxu3 %v6610_v33 }
 0x33f   :  { %2060 = vmatpush.bf16.msrb.mxu0 %v6611_v13  ;;  %2074 = vmatpush.bf16.msrb.mxu1 %v6612_v17 }
 0x341   :  { %2088 = vmatpush.bf16.msrb.mxu2 %v6613_v49  ;;  %2102 = vmatpush.bf16.msrb.mxu3 %v6614_v62 }
 0x35e   :  { %v1659_v30 = vpop.f32.mrf.mxu0  ;;  %v1673_v44 = vpop.f32.mrf.mxu1 }
 0x365   :  { %v1687_v45 = vpop.f32.mrf.mxu2  ;;  %v1701_v16 = vpop.f32.mrf.mxu3 }
 0x366   :  { %v1661_v38 = vpop.f32.mrf.mxu0  ;;  %v1675_v12 = vpop.f32.mrf.mxu1 }
 0x36d   :  { %v5417_v24 = vpop.f32.mrf.mxu2  ;;  %v1703_v21 = vpop.f32.mrf.mxu3 }
 0x36e   :  { %v1727_v39 = vpop.f32.mrf.mxu0  ;;  %v1741_v46 = vpop.f32.mrf.mxu1 }
 0x375   :  { %v1755_v33 = vpop.f32.mrf.mxu2  ;;  %v1769_v48 = vpop.f32.mrf.mxu3 }
 0x376   :  { %v1729_v13 = vpop.f32.mrf.mxu0  ;;  %v1743_v9 = vpop.f32.mrf.mxu1 }
 0x37d   :  { %v1757_v17 = vpop.f32.mrf.mxu2  ;;  %v1771_v8 = vpop.f32.mrf.mxu3 }
 0x37f   :  { %v1789_v49 = vpop.f32.mrf.mxu0  ;;  %v1803_v25 = vpop.f32.mrf.mxu1 }
 0x380   :  { %v1790_v62 = vadd.f32 %v1789_v49, %v1727_v39  ;;  %v1804_v27 = vadd.f32 %v1803_v25, %v1741_v46 }
 0x382   :  { %v1836_v10 = vadd.f32 %v1790_v62, %v4897_v40  ;;  %v1837_v34 = vadd.f32 %v1804_v27, %v4899_v2 }
 0x384   :  { %v1844_v29 = vadd.f32 %v1836_v10, %v1659_v30  ;;  %v1845_v19 = vadd.f32 %v1837_v34, %v1673_v44 }
 0x386   :  { %v3782_v54 = vmul.f32 -1.442695, %v1844_v29  ;;  %v3784_v7 = vmul.f32 -1.442695, %v1845_v19 }
 0x387   :  { %v1817_v31 = vpop.f32.mrf.mxu2  ;;  %v1831_v26 = vpop.f32.mrf.mxu3 }
 0x388   :  { %v1832_v57 = vadd.f32 %v1831_v26, %v1769_v48  ;;  %v1791_v32 = vpop.f32.mrf.mxu0  ;;  %v1805_v3 = vpop.f32.mrf.mxu1  ;;  %4089 = vpow2.f32 %v3782_v54  ;;  %v1818_v27 = vadd.f32 %v1817_v31, %v1755_v33 }
 0x389   :  { %v1792_v4 = vadd.f32 %v1791_v32, %v1729_v13  ;;  %v1806_v50 = vadd.f32 %v1805_v3, %v1743_v9  ;;  %4091 = vpow2.f32 %v3784_v7 }
 0x38a   :  { %v1839_v49 = vadd.f32 %v1832_v57, %v4903_v28  ;;  %v1838_v32 = vadd.f32 %v1818_v27, %v4907_v52 }
 0x38b   :  { %v1840_v25 = vadd.f32 %v1792_v4, %v4897_v40  ;;  %v1841_v46 = vadd.f32 %v1806_v50, %v4899_v2 }
 0x38c   :  { %v1847_v10 = vadd.f32 %v1839_v49, %v1701_v16  ;;  %v1846_v50 = vadd.f32 %v1838_v32, %v1687_v45 }
 0x38d   :  { %v1848_v34 = vadd.f32 %v1840_v25, %v1661_v38  ;;  %v1849_v29 = vadd.f32 %v1841_v46, %v1675_v12 }
 0x38e   :  { %v3786_v19 = vmul.f32 -1.442695, %v1847_v10  ;;  %v4090_v62 = vpop.eup %4089 }
 0x38f   :  { %v3783_v30 = vmul.f32 -1.442695, %v1848_v34  ;;  %v1833_v26 = vpop.f32.mrf.mxu3  ;;  %v4092_v48 = vpop.eup %4091  ;;  %v1858_v44 = vadd.f32 1.0, %v4090_v62  ;;  %v3785_v3 = vmul.f32 -1.442695, %v1849_v29 }
 0x390   :  { %4093 = vpow2.f32 %v3786_v19  ;;  %v1896_v7 = vadd.f32 1.0, %v4092_v48  ;;  %v1834_v57 = vadd.f32 %v1833_v26, %v1771_v8  ;;  %v1819_v4 = vpop.f32.mrf.mxu2 }
 0x391   :  { %4095 = vpow2.f32 %v3783_v30  ;;  %v1820_v31 = vadd.f32 %v1819_v4, %v1757_v17  ;;  %v1869_v46 = vand.u32 2147483647, %v1858_v44  ;;  %v1871_v27 = vand.u32 2147483648, %v1858_v44 }
 0x392   :  { %4097 = vrcp.f32 %v1858_v44  ;;  %v1843_v54 = vadd.f32 %v1834_v57, %v4903_v28  ;;  %v1909_v29 = vand.u32 2147483648, %v1896_v7  ;;  %v1907_v19 = vand.u32 2147483647, %v1896_v7 }
 0x393   :  { %4099 = vrcp.f32 %v1896_v7  ;;  %v1842_v8 = vadd.f32 %v1820_v31, %v4907_v52  ;;  %vm1865_vm2 = vweird.f32 %v1858_v44  ;;  %vm1903_vm3 = vweird.f32 %v1896_v7 }
 0x394   :  { %4101 = vpow2.f32 %v3785_v3  ;;  %v1851_v12 = vadd.f32 %v1843_v54, %v1703_v21  ;;  %vm1870_vm6 = vcmp.eq.f32.partialorder %v1869_v46, 8.507059e+37  ;;  %v1910_v4 = vor.u32 1.1754944e-38, %v1909_v29 }
 0x395   :  { %4103 = vtanh.f32 %v1846_v50  ;;  %v1850_v30 = vadd.f32 %v1842_v8, %v5417_v24  ;;  %v1872_v50 = vor.u32 1.1754944e-38, %v1871_v27  ;;  %vm1908_vm9 = vcmp.eq.f32.partialorder %v1907_v19, 8.507059e+37 }
 0x396   :  { %v4094_v9 = vpop.eup %4093  ;;  %v3787_v62 = vmul.f32 -1.442695, %v1851_v12 }
 0x397   :  { %v4096_v38 = vpop.eup %4095  ;;  %v5426_v33 = vadd.f32 1.0, %v4094_v9 }
 0x398   :  { %v4098_v13 = vpop.eup %4097  ;;  %v5428_v16 = vadd.f32 1.0, %v4096_v38 }
 0x399   :  { %v4100_v39 = vpop.eup %4099  ;;  %v1861_v49 = vmul.f32 %v4098_v13, %v1858_v44  ;;  %4105 = vrcp.f32 %v5426_v33  ;;  %vm1866_vm0 = vweird.f32 %v4098_v13  ;;  %vm1943_vm10 = vweird.f32 %v5426_v33 }
 0x39a   :  { %v4102_v45 = vpop.eup %4101  ;;  %v1899_v25 = vmul.f32 %v4100_v39, %v1896_v7  ;;  %4107 = vrcp.f32 %v5428_v16  ;;  %vm1904_vm1 = vweird.f32 %v4100_v39  ;;  %vm1867_vm7 = vmor %vm1865_vm2, %vm1866_vm0  ;;  %vm1880_vm11 = vweird.f32 %v5428_v16 }
 0x39b   :  { %v1862_v17 = vsub.f32 1.0, %v1861_v49  ;;  %v5433_v10 = vadd.f32 1.0, %v4102_v45  ;;  %v4104_v26 = vpop.eup %4103  ;;  %vm1905_vm8 = vmor %vm1903_vm3, %vm1904_vm1 }
 0x39c   :  { %v1900_v34 = vsub.f32 1.0, %v1899_v25  ;;  %v1886_v25 = vand.u32 2147483648, %v5428_v16 }
 0x39d   :  { %v1863_v21 = vmul.f32 %v4098_v13, %v1862_v17  ;;  %4109 = vrcp.f32 %v5433_v10  ;;  %vm1918_vm1 = vweird.f32 %v5433_v10 }
 0x39e   :  { %v1901_v48 = vmul.f32 %v4100_v39, %v1900_v34  ;;  %4111 = vpow2.f32 %v3787_v62 }
 0x39f   :  { %v5437_v32 = vpop.eup %4105  ;;  %v1864_v3 = vadd.f32 %v4098_v13, %v1863_v21  ;;  %4113 = vtanh.f32 %v1850_v30  ;;  %v1924_v21 = vand.u32 2147483648, %v5433_v10 }
 0x3a0   :  { %v4108_v57 = vpop.eup %4107  ;;  %v1902_v31 = vadd.f32 %v4100_v39, %v1901_v48  ;;  %v1939_v54 = vmul.f32 %v5437_v32, %v5426_v33  ;;  %v1887_v48 = vor.u32 1.1754944e-38, %v1886_v25  ;;  %vm1944_vm13 = vweird.f32 %v5437_v32 }
 0x3a1   :  { %v1868_v24 = vsel %vm1867_vm7, %v4098_v13, %v1864_v3  ;;  %v1876_v9 = vmul.f32 %v4108_v57, %v5428_v16  ;;  %v1949_v13 = vand.u32 2147483648, %v5426_v33  ;;  %vm1881_vm12 = vweird.f32 %v4108_v57  ;;  %vm1945_vm2 = vmor %vm1943_vm10, %vm1944_vm13 }
 0x3a2   :  { %v1873_v44 = vsel %vm1870_vm6, %v1872_v50, %v1868_v24  ;;  %v1906_v38 = vsel %vm1905_vm8, %v4100_v39, %v1902_v31  ;;  %v1940_v7 = vsub.f32 1.0, %v1939_v54  ;;  %v1884_v39 = vand.u32 2147483647, %v5428_v16  ;;  %vm1882_vm15 = vmor %vm1880_vm11, %vm1881_vm12 }
 0x3a3   :  { %v4110_v12 = vpop.eup %4109  ;;  %v1911_v49 = vsel %vm1908_vm9, %v1910_v4, %v1906_v38  ;;  %v1970_v8 = vmul.f32 %v4104_v26, %v1873_v44  ;;  %v1877_v45 = vsub.f32 1.0, %v1876_v9  ;;  %v1922_v50 = vand.u32 2147483647, %v5433_v10 }
 0x3a4   :  { %v1968_v17 = vmul.f32 %v1911_v49, %v5280_v58  ;;  %v1941_v46 = vmul.f32 %v5437_v32, %v1940_v7  ;;  %v1914_v27 = vmul.f32 %v4110_v12, %v5433_v10  ;;  %v4112_v34 = vpop.eup %4111  ;;  %vm1919_vm14 = vweird.f32 %v4110_v12 }
 0x3a5   :  { %v1878_v29 = vmul.f32 %v4108_v57, %v1877_v45  ;;  %v1937_v30 = vadd.f32 1.0, %v4112_v34  ;;  %v4114_v58 = vpop.eup %4113  ;;  %vm1885_vm0 = vcmp.eq.f32.partialorder %v1884_v39, 8.507059e+37  ;;  %v1947_v54 = vand.u32 2147483647, %v5426_v33  ;;  %vm1920_vm3 = vmor %vm1918_vm1, %vm1919_vm14 }
 0x3a6   :  { %v5450_v19 = vadd.f32 %v1970_v8, %v1968_v17  ;;  %v1915_v62 = vsub.f32 1.0, %v1914_v27  ;;  %v1942_v3 = vadd.f32 %v5437_v32, %v1941_v46  ;;  %v1925_v44 = vor.u32 1.1754944e-38, %v1924_v21 }
 0x3a7   :  { %v1879_v26 = vadd.f32 %v4108_v57, %v1878_v29  ;;  %vm1923_vm6 = vcmp.eq.f32.partialorder %v1922_v50, 8.507059e+37  ;;  %v1950_v49 = vor.u32 1.1754944e-38, %v1949_v13  ;;  %vm1948_vm7 = vcmp.eq.f32.partialorder %v1947_v54, 8.507059e+37  ;;  %v6617_v50 = vld [vmem:[#allocation97_spill] sm:$0xff]  ;;  %v6618_v54 = vld [vmem:[#allocation98_spill] sm:$0xff] }
 0x3a8   :  { %4115 = vtanh.f32 %v5450_v19  ;;  %v1916_v4 = vmul.f32 %v4110_v12, %v1915_v62  ;;  %v1946_v38 = vsel %vm1945_vm2, %v5437_v32, %v1942_v3  ;;  %v1964_v32 = vand.u32 2147483648, %v1937_v30  ;;  %v6615_v3 = vld [vmem:[#allocation95_spill] sm:$0xff] }
 0x3a9   :  { %v1883_v31 = vsel %vm1882_vm15, %v4108_v57, %v1879_v26  ;;  %4117 = vrcp.f32 %v1937_v30  ;;  %v1951_v25 = vsel %vm1948_vm7, %v1950_v49, %v1946_v38  ;;  %v1962_v13 = vand.u32 2147483647, %v1937_v30  ;;  %v6622_v38 = vld [vmem:[#allocation8_spill] sm:$0xff]  ;;  %v6625_v49 = vld [vmem:[#allocation11_spill] sm:$0xff] }
 0x3aa   :  { %v1888_v24 = vsel %vm1885_vm0, %v1887_v48, %v1883_v31  ;;  %v1917_v9 = vadd.f32 %v4110_v12, %v1916_v4  ;;  %vm1958_vm9 = vweird.f32 %v1937_v30  ;;  %v1965_v29 = vor.u32 1.1754944e-38, %v1964_v32  ;;  %v6616_v4 = vld [vmem:[#allocation96_spill] sm:$0xff]  ;;  %v6635_v32 = vld [vmem:[#allocation21_spill] sm:$0xff] }
 0x3ab   :  { %v1971_v7 = vmul.f32 %v4114_v58, %v1888_v24  ;;  %vm1963_vm11 = vcmp.eq.f32.partialorder %v1962_v13, 8.507059e+37  ;;  %v3980_v31 = vld [vmem:[%s6097_s0 + $0x20] sm:$0xff]  ;;  %v6619_v24 = vld [vmem:[#allocation99_spill] sm:$0xff] }
 0x3ac   :  { %v1921_v16 = vsel %vm1920_vm3, %v4110_v12, %v1917_v9  ;;  %v6620_v9 = vld [vmem:[#allocation100_spill] sm:$0xff]  ;;  %v6637_v13 = vld [vmem:[#allocation23_spill] sm:$0xff] }
 0x3ad   :  { %v1926_v57 = vsel %vm1923_vm6, %v1925_v44, %v1921_v16  ;;  %v6621_v44 = vld [vmem:[#allocation101_spill] sm:$0xff] }
 0x3ae   :  { %v4116_v8 = vpop.eup %4115  ;;  %v1969_v45 = vmul.f32 %v1926_v57, %v5296_v56  ;;  %v6623_v16 = vld [vmem:[#allocation9_spill] sm:$0xff]  ;;  %v6626_v57 = vld [vmem:[#allocation12_spill] sm:$0xff] }
 0x3af   :  { %v4118_v10 = vpop.eup %4117  ;;  %v1976_v17 = vmul.f32 %v4116_v8, %v1951_v25  ;;  %v6627_v8 = vld [vmem:[#allocation13_spill] sm:$0xff]  ;;  %v6629_v25 = vld [vmem:[#allocation15_spill] sm:$0xff] }
 0x3b0   :  { %v5465_v46 = vadd.f32 %v1971_v7, %v1969_v45  ;;  %v1954_v33 = vmul.f32 %v4118_v10, %v1937_v30  ;;  %vm1959_vm8 = vweird.f32 %v4118_v10  ;;  %v3981_v30 = vld [vmem:[%s6097_s0 + $0x18] sm:$0xff]  ;;  %v6624_v7 = vld [vmem:[#allocation10_spill] sm:$0xff] }
 0x3b1   :  { %v1978_v27 = vpack.c.bf16 %v1976_v17, %v1976_v17  ;;  %vm1960_vm10 = vmor %vm1958_vm9, %vm1959_vm8  ;;  %v6628_v45 = vld [vmem:[#allocation14_spill] sm:$0xff] }
 0x3b2   :  { %4119 = vtanh.f32 %v5465_v46  ;;  %v1955_v34 = vsub.f32 1.0, %v1954_v33  ;;  %v6632_v33 = vld [vmem:[#allocation18_spill] sm:$0xff] }
 0x3b3   :  { %3788 = vst.msk [vmem:[%s6102_s5 + $0x18] sm:$0xf] %vm968_vm4, %v1978_v27 }
 0x3b4   :  { %v1956_v12 = vmul.f32 %v4118_v10, %v1955_v34  ;;  %3790 = vst.msk [vmem:[%s6102_s5 + $0x20] sm:$0xf] %vm972_vm5, %v1978_v27  ;;  %v6633_v27 = vld [vmem:[#allocation19_spill] sm:$0xff]  ;;  %v6634_v34 = vld [vmem:[#allocation20_spill] sm:$0xff] }
 0x3b6   :  { %v1957_v56 = vadd.f32 %v4118_v10, %v1956_v12  ;;  %v6636_v12 = vld [vmem:[#allocation22_spill] sm:$0xff] }
 0x3b8   :  { %v4120_v39 = vpop.eup %4119  ;;  %v1961_v62 = vsel %vm1960_vm10, %v4118_v10, %v1957_v56  ;;  %v6630_v10 = vld [vmem:[#allocation16_spill] sm:$0xff] }
 0x3b9   :  { %v1966_v21 = vsel %vm1963_vm11, %v1965_v29, %v1961_v62  ;;  %v6638_v56 = vld [vmem:[#allocation24_spill] sm:$0xff]  ;;  %v6639_v29 = vld [vmem:[#allocation25_spill] sm:$0xff]  ;;  %v6641_v62 = vld [vmem:[#allocation27_spill] sm:$0xff] }
 0x3ba   :  { %v1977_v58 = vmul.f32 %v4120_v39, %v1966_v21  ;;  %v6640_v39 = vld [vmem:[#allocation26_spill] sm:$0xff]  ;;  %v6642_v21 = vld [vmem:[#allocation28_spill] sm:$0xff] }
 0x3bc   :  { %v1979_v26 = vpack.c.bf16 %v1977_v58, %v1977_v58  ;;  %v1986_v48 = vpack.c.bf16 %v1977_v58, %v1976_v17  ;;  %v6631_v17 = vld [vmem:[#allocation17_spill] sm:$0xff] }
 0x3bd   :  { %v6643_v58 = vld [vmem:[#allocation29_spill] sm:$0xff] }
 0x3be   :  { %3789 = vst.msk [vmem:[%s6102_s5 + $0x1c] sm:$0xf] %vm968_vm4, %v1979_v26  ;;  %1995 = vmatmul.bf16.vlgmr.msra.gmra.mxu0 %v1986_v48  ;;  %2009 = vmatmul.bf16.vlgmr.msra.gmra.mxu1 %v1986_v48 }
 0x3bf   :  { %3791 = vst.msk [vmem:[%s6102_s5 + $0x24] sm:$0xf] %vm972_vm5, %v1979_v26  ;;  %2023 = vmatmul.bf16.vlgmr.msra.gmra.mxu2 %v1986_v48  ;;  %2037 = vmatmul.bf16.vlgmr.msra.gmra.mxu3 %v1986_v48  ;;  %v6644_v26 = vld [vmem:[#allocation30_spill] sm:$0xff]  ;;  %v6645_v48 = vld [vmem:[#allocation31_spill] sm:$0xff] }
 0x3c0   :  { %2115 = vmatpush.bf16.msra.mxu0 %v6405_v23  ;;  %2129 = vmatpush.bf16.msra.mxu1 %v6406_v41 }
 0x3c1   :  { %2143 = vmatpush.bf16.msra.mxu2 %v6407_v18  ;;  %2157 = vmatpush.bf16.msra.mxu3 %v6408_v55 }
 0x3c4   :  { %2116 = vmatpush.bf16.msra.mxu0 %v4594_v63  ;;  %2130 = vmatpush.bf16.msra.mxu1 %v6409_v61 }
 0x3c5   :  { %2144 = vmatpush.bf16.msra.mxu2 %v6410_v36  ;;  %2158 = vmatpush.bf16.msra.mxu3 %v6411_v20 }
 0x3c8   :  { %2117 = vmatpush.bf16.msra.mxu0 %v6412_v1  ;;  %2131 = vmatpush.bf16.msra.mxu1 %v6413_v60 }
 0x3c9   :  { %2145 = vmatpush.bf16.msra.mxu2 %v6414_v59  ;;  %2159 = vmatpush.bf16.msra.mxu3 %v6415_v51 }
 0x3cc   :  { %2118 = vmatpush.bf16.msra.mxu0 %v6416_v43  ;;  %2132 = vmatpush.bf16.msra.mxu1 %v6417_v0 }
 0x3cd   :  { %2146 = vmatpush.bf16.msra.mxu2 %v6418_v11  ;;  %2160 = vmatpush.bf16.msra.mxu3 %v6419_v35 }
 0x3ce   :  { %2061 = vmatmul.bf16.vlgmr.msrb.gmra.mxu0 %v3981_v30  ;;  %2075 = vmatmul.bf16.vlgmr.msrb.gmra.mxu1 %v3981_v30 }
 0x3cf   :  { %2089 = vmatmul.bf16.vlgmr.msrb.gmra.mxu2 %v3981_v30  ;;  %2103 = vmatmul.bf16.vlgmr.msrb.gmra.mxu3 %v3981_v30  ;;  %v6646_v30 = vld [vmem:[#allocation32_spill] sm:$0xff] }
 0x3d0   :  { %2119 = vmatpush.bf16.msra.mxu0 %v6420_v37  ;;  %2133 = vmatpush.bf16.msra.mxu1 %v6421_v14 }
 0x3d1   :  { %2147 = vmatpush.bf16.msra.mxu2 %v6422_v5  ;;  %2161 = vmatpush.bf16.msra.mxu3 %v6423_v6 }
 0x3d4   :  { %2120 = vmatpush.bf16.msra.mxu0 %v6424_v22  ;;  %2134 = vmatpush.bf16.msra.mxu1 %v6425_v47 }
 0x3d5   :  { %2148 = vmatpush.bf16.msra.mxu2 %v6426_v15  ;;  %2162 = vmatpush.bf16.msra.mxu3 %v6427_v42 }
 0x3d8   :  { %2121 = vmatpush.bf16.msra.mxu0 %v4774_v53  ;;  %2135 = vmatpush.bf16.msra.mxu1 %v6615_v3 }
 0x3d9   :  { %2149 = vmatpush.bf16.msra.mxu2 %v6616_v4  ;;  %2163 = vmatpush.bf16.msra.mxu3 %v6617_v50 }
 0x3dc   :  { %2122 = vmatpush.bf16.msra.mxu0 %v6618_v54  ;;  %2136 = vmatpush.bf16.msra.mxu1 %v6619_v24 }
 0x3dd   :  { %2150 = vmatpush.bf16.msra.mxu2 %v6620_v9  ;;  %2164 = vmatpush.bf16.msra.mxu3 %v6621_v44 }
 0x3df   :  { %2123 = vmatmul.bf16.vlgmr.msra.gmra.mxu0 %v3980_v31  ;;  %2137 = vmatmul.bf16.vlgmr.msra.gmra.mxu1 %v3980_v31 }
 0x3e0   :  { %2320 = vmatpush.bf16.msrb.mxu0 %v6622_v38  ;;  %2334 = vmatpush.bf16.msrb.mxu1 %v6623_v16 }
 0x3e1   :  { %2151 = vmatmul.bf16.vlgmr.msra.gmra.mxu2 %v3980_v31  ;;  %2165 = vmatmul.bf16.vlgmr.msra.gmra.mxu3 %v3980_v31  ;;  %v6647_v31 = vld [vmem:[#allocation33_spill] sm:$0xff] }
 0x3e2   :  { %2348 = vmatpush.bf16.msrb.mxu2 %v6624_v7  ;;  %2362 = vmatpush.bf16.msrb.mxu3 %v6625_v49 }
 0x3e4   :  { %2321 = vmatpush.bf16.msrb.mxu0 %v6626_v57  ;;  %2335 = vmatpush.bf16.msrb.mxu1 %v6627_v8 }
 0x3e6   :  { %2349 = vmatpush.bf16.msrb.mxu2 %v6628_v45  ;;  %2363 = vmatpush.bf16.msrb.mxu3 %v6629_v25 }
 0x3e8   :  { %2322 = vmatpush.bf16.msrb.mxu0 %v6630_v10  ;;  %2336 = vmatpush.bf16.msrb.mxu1 %v6631_v17 }
 0x3ea   :  { %2350 = vmatpush.bf16.msrb.mxu2 %v6632_v33  ;;  %2364 = vmatpush.bf16.msrb.mxu3 %v6633_v27 }
 0x3ec   :  { %2323 = vmatpush.bf16.msrb.mxu0 %v6634_v34  ;;  %2337 = vmatpush.bf16.msrb.mxu1 %v6635_v32 }
 0x3ee   :  { %2351 = vmatpush.bf16.msrb.mxu2 %v6636_v12  ;;  %2365 = vmatpush.bf16.msrb.mxu3 %v6637_v13  ;;  %v6648_v13 = vld [vmem:[#allocation34_spill] sm:$0xff] }
 0x3f0   :  { %2324 = vmatpush.bf16.msrb.mxu0 %v6638_v56  ;;  %2338 = vmatpush.bf16.msrb.mxu1 %v6639_v29  ;;  %v6649_v56 = vld [vmem:[#allocation35_spill] sm:$0xff]  ;;  %v6650_v29 = vld [vmem:[#allocation36_spill] sm:$0xff] }
 0x3f2   :  { %2352 = vmatpush.bf16.msrb.mxu2 %v6640_v39  ;;  %2366 = vmatpush.bf16.msrb.mxu3 %v6641_v62  ;;  %v6651_v39 = vld [vmem:[#allocation37_spill] sm:$0xff]  ;;  %v6652_v62 = vld [vmem:[#allocation40_spill] sm:$0xff] }
 0x3f4   :  { %2325 = vmatpush.bf16.msrb.mxu0 %v6642_v21  ;;  %2339 = vmatpush.bf16.msrb.mxu1 %v6643_v58  ;;  %v6653_v21 = vld [vmem:[#allocation41_spill] sm:$0xff]  ;;  %v6654_v58 = vld [vmem:[#allocation38_spill] sm:$0xff] }
 0x3f6   :  { %2353 = vmatpush.bf16.msrb.mxu2 %v6644_v26  ;;  %2367 = vmatpush.bf16.msrb.mxu3 %v6645_v48  ;;  %v6655_v26 = vld [vmem:[#allocation39_spill] sm:$0xff]  ;;  %v6656_v48 = vld [vmem:[#allocation42_spill] sm:$0xff] }
 0x3f8   :  { %2326 = vmatpush.bf16.msrb.mxu0 %v6646_v30  ;;  %2340 = vmatpush.bf16.msrb.mxu1 %v6647_v31  ;;  %v6657_v30 = vld [vmem:[#allocation43_spill] sm:$0xff]  ;;  %v6658_v31 = vld [vmem:[#allocation44_spill] sm:$0xff] }
 0x3fa   :  { %2354 = vmatpush.bf16.msrb.mxu2 %v6648_v13  ;;  %2368 = vmatpush.bf16.msrb.mxu3 %v6649_v56  ;;  %v6659_v13 = vld [vmem:[#allocation45_spill] sm:$0xff]  ;;  %v6660_v56 = vld [vmem:[#allocation46_spill] sm:$0xff] }
 0x3fc   :  { %2327 = vmatpush.bf16.msrb.mxu0 %v6650_v29  ;;  %2341 = vmatpush.bf16.msrb.mxu1 %v6651_v39  ;;  %v6661_v29 = vld [vmem:[#allocation47_spill] sm:$0xff]  ;;  %v6662_v39 = vld [vmem:[#allocation48_spill] sm:$0xff] }
 0x3fe   :  { %2355 = vmatpush.bf16.msrb.mxu2 %v6654_v58  ;;  %2369 = vmatpush.bf16.msrb.mxu3 %v6655_v26  ;;  %v6665_v58 = vld [vmem:[#allocation51_spill] sm:$0xff]  ;;  %v6666_v26 = vld [vmem:[#allocation52_spill] sm:$0xff] }
 0x400   :  { %2386 = vmatpush.bf16.msra.mxu0 %v6652_v62  ;;  %2400 = vmatpush.bf16.msra.mxu1 %v6653_v21  ;;  %v6663_v62 = vld [vmem:[#allocation49_spill] sm:$0xff]  ;;  %v6664_v21 = vld [vmem:[#allocation50_spill] sm:$0xff] }
 0x402   :  { %2414 = vmatpush.bf16.msra.mxu2 %v6656_v48  ;;  %2428 = vmatpush.bf16.msra.mxu3 %v6657_v30  ;;  %v6667_v48 = vld [vmem:[#allocation53_spill] sm:$0xff]  ;;  %v6668_v30 = vld [vmem:[#allocation54_spill] sm:$0xff] }
 0x404   :  { %2387 = vmatpush.bf16.msra.mxu0 %v6658_v31  ;;  %2401 = vmatpush.bf16.msra.mxu1 %v6659_v13  ;;  %v6669_v31 = vld [vmem:[#allocation55_spill] sm:$0xff]  ;;  %v6670_v13 = vld [vmem:[#allocation56_spill] sm:$0xff] }
 0x406   :  { %2415 = vmatpush.bf16.msra.mxu2 %v6660_v56  ;;  %2429 = vmatpush.bf16.msra.mxu3 %v6661_v29  ;;  %v6671_v56 = vld [vmem:[#allocation57_spill] sm:$0xff]  ;;  %v6672_v29 = vld [vmem:[#allocation58_spill] sm:$0xff] }
 0x408   :  { %2388 = vmatpush.bf16.msra.mxu0 %v6662_v39  ;;  %2402 = vmatpush.bf16.msra.mxu1 %v6663_v62  ;;  %v6673_v39 = vld [vmem:[#allocation59_spill] sm:$0xff]  ;;  %v6674_v62 = vld [vmem:[#allocation60_spill] sm:$0xff] }
 0x40a   :  { %2416 = vmatpush.bf16.msra.mxu2 %v6664_v21  ;;  %2430 = vmatpush.bf16.msra.mxu3 %v6665_v58  ;;  %v6675_v21 = vld [vmem:[#allocation61_spill] sm:$0xff]  ;;  %v6676_v58 = vld [vmem:[#allocation62_spill] sm:$0xff] }
 0x40c   :  { %2389 = vmatpush.bf16.msra.mxu0 %v6666_v26  ;;  %2403 = vmatpush.bf16.msra.mxu1 %v6667_v48  ;;  %v6677_v26 = vld [vmem:[#allocation63_spill] sm:$0xff]  ;;  %v6678_v48 = vld [vmem:[#allocation64_spill] sm:$0xff] }
 0x40e   :  { %2417 = vmatpush.bf16.msra.mxu2 %v6668_v30  ;;  %2431 = vmatpush.bf16.msra.mxu3 %v6669_v31  ;;  %v6679_v30 = vld [vmem:[#allocation65_spill] sm:$0xff]  ;;  %v6680_v31 = vld [vmem:[#allocation66_spill] sm:$0xff] }
 0x410   :  { %2390 = vmatpush.bf16.msra.mxu0 %v6670_v13  ;;  %2404 = vmatpush.bf16.msra.mxu1 %v6671_v56  ;;  %v6681_v13 = vld [vmem:[#allocation67_spill] sm:$0xff]  ;;  %v6682_v56 = vld [vmem:[#allocation68_spill] sm:$0xff] }
 0x412   :  { %2418 = vmatpush.bf16.msra.mxu2 %v6672_v29  ;;  %2432 = vmatpush.bf16.msra.mxu3 %v6673_v39  ;;  %v6683_v29 = vld [vmem:[#allocation69_spill] sm:$0xff]  ;;  %v6684_v39 = vld [vmem:[#allocation70_spill] sm:$0xff] }
 0x414   :  { %2391 = vmatpush.bf16.msra.mxu0 %v6674_v62  ;;  %2405 = vmatpush.bf16.msra.mxu1 %v6675_v21  ;;  %v6685_v62 = vld [vmem:[#allocation71_spill] sm:$0xff] }
 0x416   :  { %2419 = vmatpush.bf16.msra.mxu2 %v6676_v58  ;;  %2433 = vmatpush.bf16.msra.mxu3 %v6677_v26 }
 0x418   :  { %2392 = vmatpush.bf16.msra.mxu0 %v6678_v48  ;;  %2406 = vmatpush.bf16.msra.mxu1 %v6679_v30 }
 0x41a   :  { %2420 = vmatpush.bf16.msra.mxu2 %v6680_v31  ;;  %2434 = vmatpush.bf16.msra.mxu3 %v6681_v13 }
 0x41c   :  { %2393 = vmatpush.bf16.msra.mxu0 %v6682_v56  ;;  %2407 = vmatpush.bf16.msra.mxu1 %v6683_v29 }
 0x41e   :  { %2421 = vmatpush.bf16.msra.mxu2 %v6684_v39  ;;  %2435 = vmatpush.bf16.msra.mxu3 %v6685_v62 }
 0x43b   :  { %v1996_v21 = vpop.f32.mrf.mxu0  ;;  %v2010_v58 = vpop.f32.mrf.mxu1 }
 0x442   :  { %v2024_v12 = vpop.f32.mrf.mxu2  ;;  %v2038_v26 = vpop.f32.mrf.mxu3 }
 0x443   :  { %v1998_v32 = vpop.f32.mrf.mxu0  ;;  %v2012_v48 = vpop.f32.mrf.mxu1 }
 0x44a   :  { %v5586_v34 = vpop.f32.mrf.mxu2  ;;  %v2040_v30 = vpop.f32.mrf.mxu3 }
 0x44b   :  { %v2062_v31 = vpop.f32.mrf.mxu0  ;;  %v2076_v27 = vpop.f32.mrf.mxu1 }
 0x452   :  { %v2090_v13 = vpop.f32.mrf.mxu2  ;;  %v2104_v33 = vpop.f32.mrf.mxu3 }
 0x453   :  { %v2064_v56 = vpop.f32.mrf.mxu0  ;;  %v2078_v17 = vpop.f32.mrf.mxu1 }
 0x45a   :  { %v2092_v29 = vpop.f32.mrf.mxu2  ;;  %v2106_v10 = vpop.f32.mrf.mxu3 }
 0x45c   :  { %v2124_v39 = vpop.f32.mrf.mxu0  ;;  %v2138_v25 = vpop.f32.mrf.mxu1 }
 0x45d   :  { %v2125_v62 = vadd.f32 %v2124_v39, %v2062_v31  ;;  %v2139_v45 = vadd.f32 %v2138_v25, %v2076_v27 }
 0x45f   :  { %v2171_v8 = vadd.f32 %v2125_v62, %v4897_v40  ;;  %v2172_v57 = vadd.f32 %v2139_v45, %v4899_v2 }
 0x461   :  { %v2179_v49 = vadd.f32 %v2171_v8, %v1996_v21  ;;  %v2180_v7 = vadd.f32 %v2172_v57, %v2010_v58 }
 0x463   :  { %v3804_v16 = vmul.f32 -1.442695, %v2179_v49  ;;  %v3806_v38 = vmul.f32 -1.442695, %v2180_v7 }
 0x464   :  { %v2152_v44 = vpop.f32.mrf.mxu2  ;;  %v2166_v9 = vpop.f32.mrf.mxu3 }
 0x465   :  { %v2167_v24 = vadd.f32 %v2166_v9, %v2104_v33  ;;  %v2126_v54 = vpop.f32.mrf.mxu0  ;;  %v2140_v50 = vpop.f32.mrf.mxu1  ;;  %4121 = vpow2.f32 %v3804_v16  ;;  %v2153_v45 = vadd.f32 %v2152_v44, %v2090_v13 }
 0x466   :  { %v2127_v4 = vadd.f32 %v2126_v54, %v2064_v56  ;;  %v2141_v3 = vadd.f32 %v2140_v50, %v2078_v17  ;;  %4123 = vpow2.f32 %v3806_v38 }
 0x467   :  { %v2174_v39 = vadd.f32 %v2167_v24, %v4903_v28  ;;  %v2173_v54 = vadd.f32 %v2153_v45, %v4907_v52 }
 0x468   :  { %v2175_v25 = vadd.f32 %v2127_v4, %v4897_v40  ;;  %v2176_v27 = vadd.f32 %v2141_v3, %v4899_v2 }
 0x469   :  { %v2182_v8 = vadd.f32 %v2174_v39, %v2038_v26  ;;  %v2181_v3 = vadd.f32 %v2173_v54, %v2024_v12 }
 0x46a   :  { %v2183_v57 = vadd.f32 %v2175_v25, %v1998_v32  ;;  %v2184_v49 = vadd.f32 %v2176_v27, %v2012_v48 }
 0x46b   :  { %v3808_v7 = vmul.f32 -1.442695, %v2182_v8  ;;  %v4122_v62 = vpop.eup %4121 }
 0x46c   :  { %v3805_v21 = vmul.f32 -1.442695, %v2183_v57  ;;  %v2168_v9 = vpop.f32.mrf.mxu3  ;;  %v4124_v33 = vpop.eup %4123  ;;  %v2193_v58 = vadd.f32 1.0, %v4122_v62  ;;  %v3807_v50 = vmul.f32 -1.442695, %v2184_v49 }
 0x46d   :  { %4125 = vpow2.f32 %v3808_v7  ;;  %v2231_v38 = vadd.f32 1.0, %v4124_v33  ;;  %v2169_v24 = vadd.f32 %v2168_v9, %v2106_v10  ;;  %v2154_v4 = vpop.f32.mrf.mxu2 }
 0x46e   :  { %4127 = vpow2.f32 %v3805_v21  ;;  %v2155_v44 = vadd.f32 %v2154_v4, %v2092_v29  ;;  %v2204_v27 = vand.u32 2147483647, %v2193_v58  ;;  %v2206_v45 = vand.u32 2147483648, %v2193_v58 }
 0x46f   :  { %4129 = vrcp.f32 %v2193_v58  ;;  %v2178_v16 = vadd.f32 %v2169_v24, %v4903_v28  ;;  %v2244_v49 = vand.u32 2147483648, %v2231_v38  ;;  %v2242_v7 = vand.u32 2147483647, %v2231_v38 }
 0x470   :  { %4131 = vrcp.f32 %v2231_v38  ;;  %v2177_v10 = vadd.f32 %v2155_v44, %v4907_v52  ;;  %vm2200_vm14 = vweird.f32 %v2193_v58  ;;  %vm2238_vm15 = vweird.f32 %v2231_v38 }
 0x471   :  { %4133 = vpow2.f32 %v3807_v50  ;;  %v2186_v48 = vadd.f32 %v2178_v16, %v2040_v30  ;;  %vm2205_vm0 = vcmp.eq.f32.partialorder %v2204_v27, 8.507059e+37  ;;  %v2245_v4 = vor.u32 1.1754944e-38, %v2244_v49 }
 0x472   :  { %4135 = vtanh.f32 %v2181_v3  ;;  %v2185_v21 = vadd.f32 %v2177_v10, %v5586_v34  ;;  %v2207_v3 = vor.u32 1.1754944e-38, %v2206_v45  ;;  %vm2243_vm3 = vcmp.eq.f32.partialorder %v2242_v7, 8.507059e+37 }
 0x473   :  { %v4126_v17 = vpop.eup %4125  ;;  %v3809_v62 = vmul.f32 -1.442695, %v2186_v48 }
 0x474   :  { %v4128_v32 = vpop.eup %4127  ;;  %v5595_v13 = vadd.f32 1.0, %v4126_v17 }
 0x475   :  { %v4130_v56 = vpop.eup %4129  ;;  %v5597_v26 = vadd.f32 1.0, %v4128_v32 }
 0x476   :  { %v4132_v31 = vpop.eup %4131  ;;  %v2196_v39 = vmul.f32 %v4130_v56, %v2193_v58  ;;  %4137 = vrcp.f32 %v5595_v13  ;;  %vm2201_vm12 = vweird.f32 %v4130_v56  ;;  %vm2278_vm6 = vweird.f32 %v5595_v13 }
 0x477   :  { %v4134_v12 = vpop.eup %4133  ;;  %v2234_v25 = vmul.f32 %v4132_v31, %v2231_v38  ;;  %4139 = vrcp.f32 %v5597_v26  ;;  %vm2239_vm13 = vweird.f32 %v4132_v31  ;;  %vm2202_vm1 = vmor %vm2200_vm14, %vm2201_vm12  ;;  %vm2215_vm7 = vweird.f32 %v5597_v26 }
 0x478   :  { %v2197_v29 = vsub.f32 1.0, %v2196_v39  ;;  %v5602_v8 = vadd.f32 1.0, %v4134_v12  ;;  %v4136_v9 = vpop.eup %4135  ;;  %vm2240_vm2 = vmor %vm2238_vm15, %vm2239_vm13 }
 0x479   :  { %v2235_v57 = vsub.f32 1.0, %v2234_v25  ;;  %v2221_v25 = vand.u32 2147483648, %v5597_v26 }
 0x47a   :  { %v2198_v30 = vmul.f32 %v4130_v56, %v2197_v29  ;;  %4141 = vrcp.f32 %v5602_v8  ;;  %vm2253_vm13 = vweird.f32 %v5602_v8 }
 0x47b   :  { %v2236_v33 = vmul.f32 %v4132_v31, %v2235_v57  ;;  %4143 = vpow2.f32 %v3809_v62 }
 0x47c   :  { %v5606_v54 = vpop.eup %4137  ;;  %v2199_v50 = vadd.f32 %v4130_v56, %v2198_v30  ;;  %4145 = vtanh.f32 %v2185_v21  ;;  %v2259_v30 = vand.u32 2147483648, %v5602_v8 }
 0x47d   :  { %v4140_v24 = vpop.eup %4139  ;;  %v2237_v44 = vadd.f32 %v4132_v31, %v2236_v33  ;;  %v2274_v16 = vmul.f32 %v5606_v54, %v5595_v13  ;;  %v2222_v33 = vor.u32 1.1754944e-38, %v2221_v25  ;;  %vm2279_vm9 = vweird.f32 %v5606_v54 }
 0x47e   :  { %v2203_v34 = vsel %vm2202_vm1, %v4130_v56, %v2199_v50  ;;  %v2211_v17 = vmul.f32 %v4140_v24, %v5597_v26  ;;  %v2284_v56 = vand.u32 2147483648, %v5595_v13  ;;  %vm2216_vm8 = vweird.f32 %v4140_v24  ;;  %vm2280_vm14 = vmor %vm2278_vm6, %vm2279_vm9 }
 0x47f   :  { %v2208_v58 = vsel %vm2205_vm0, %v2207_v3, %v2203_v34  ;;  %v2241_v32 = vsel %vm2240_vm2, %v4132_v31, %v2237_v44  ;;  %v2275_v38 = vsub.f32 1.0, %v2274_v16  ;;  %v2219_v31 = vand.u32 2147483647, %v5597_v26  ;;  %vm2217_vm11 = vmor %vm2215_vm7, %vm2216_vm8 }
 0x480   :  { %v4142_v48 = vpop.eup %4141  ;;  %v2246_v39 = vsel %vm2243_vm3, %v2245_v4, %v2241_v32  ;;  %v2305_v10 = vmul.f32 %v4136_v9, %v2208_v58  ;;  %v2212_v12 = vsub.f32 1.0, %v2211_v17  ;;  %v2257_v3 = vand.u32 2147483647, %v5602_v8 }
 0x481   :  { %v2303_v29 = vmul.f32 %v2246_v39, %v5450_v19  ;;  %v2276_v27 = vmul.f32 %v5606_v54, %v2275_v38  ;;  %v2249_v45 = vmul.f32 %v4142_v48, %v5602_v8  ;;  %v4144_v57 = vpop.eup %4143  ;;  %vm2254_vm10 = vweird.f32 %v4142_v48 }
 0x482   :  { %v2213_v49 = vmul.f32 %v4140_v24, %v2212_v12  ;;  %v2272_v21 = vadd.f32 1.0, %v4144_v57  ;;  %v4146_v19 = vpop.eup %4145  ;;  %vm2220_vm12 = vcmp.eq.f32.partialorder %v2219_v31, 8.507059e+37  ;;  %v2282_v16 = vand.u32 2147483647, %v5595_v13  ;;  %vm2255_vm15 = vmor %vm2253_vm13, %vm2254_vm10 }
 0x483   :  { %v5619_v7 = vadd.f32 %v2305_v10, %v2303_v29  ;;  %v2250_v62 = vsub.f32 1.0, %v2249_v45  ;;  %v2277_v50 = vadd.f32 %v5606_v54, %v2276_v27  ;;  %v2260_v58 = vor.u32 1.1754944e-38, %v2259_v30 }
 0x484   :  { %v2214_v9 = vadd.f32 %v4140_v24, %v2213_v49  ;;  %vm2258_vm0 = vcmp.eq.f32.partialorder %v2257_v3, 8.507059e+37  ;;  %v2285_v39 = vor.u32 1.1754944e-38, %v2284_v56  ;;  %vm2283_vm1 = vcmp.eq.f32.partialorder %v2282_v16, 8.507059e+37  ;;  %v6688_v3 = vld [vmem:[#allocation97_spill] sm:$0xff]  ;;  %v6689_v16 = vld [vmem:[#allocation98_spill] sm:$0xff] }
 0x485   :  { %4147 = vtanh.f32 %v5619_v7  ;;  %v2251_v4 = vmul.f32 %v4142_v48, %v2250_v62  ;;  %v2281_v32 = vsel %vm2280_vm14, %v5606_v54, %v2277_v50  ;;  %v2299_v54 = vand.u32 2147483648, %v2272_v21  ;;  %v6686_v50 = vld [vmem:[#allocation95_spill] sm:$0xff] }
 0x486   :  { %v2218_v44 = vsel %vm2217_vm11, %v4140_v24, %v2214_v9  ;;  %4149 = vrcp.f32 %v2272_v21  ;;  %v2286_v25 = vsel %vm2283_vm1, %v2285_v39, %v2281_v32  ;;  %v2297_v56 = vand.u32 2147483647, %v2272_v21  ;;  %v6693_v32 = vld [vmem:[#allocation8_spill] sm:$0xff]  ;;  %v6696_v39 = vld [vmem:[#allocation11_spill] sm:$0xff] }
 0x487   :  { %v2223_v34 = vsel %vm2220_vm12, %v2222_v33, %v2218_v44  ;;  %v2252_v17 = vadd.f32 %v4142_v48, %v2251_v4  ;;  %vm2293_vm3 = vweird.f32 %v2272_v21  ;;  %v2300_v49 = vor.u32 1.1754944e-38, %v2299_v54  ;;  %v6687_v4 = vld [vmem:[#allocation96_spill] sm:$0xff]  ;;  %v3982_v44 = vld [vmem:[%s6097_s0 + $0x28] sm:$0xff] }
 0x488   :  { %v2306_v38 = vmul.f32 %v4146_v19, %v2223_v34  ;;  %vm2298_vm7 = vcmp.eq.f32.partialorder %v2297_v56, 8.507059e+37  ;;  %v6690_v34 = vld [vmem:[#allocation99_spill] sm:$0xff]  ;;  %v6706_v54 = vld [vmem:[#allocation21_spill] sm:$0xff] }
 0x489   :  { %v2256_v26 = vsel %vm2255_vm15, %v4142_v48, %v2252_v17  ;;  %v6691_v17 = vld [vmem:[#allocation100_spill] sm:$0xff]  ;;  %v6708_v56 = vld [vmem:[#allocation23_spill] sm:$0xff] }
 0x48a   :  { %v2261_v24 = vsel %vm2258_vm0, %v2260_v58, %v2256_v26  ;;  %v6692_v58 = vld [vmem:[#allocation101_spill] sm:$0xff] }
 0x48b   :  { %v4148_v10 = vpop.eup %4147  ;;  %v2304_v12 = vmul.f32 %v2261_v24, %v5465_v46  ;;  %v6694_v26 = vld [vmem:[#allocation9_spill] sm:$0xff]  ;;  %v6697_v24 = vld [vmem:[#allocation12_spill] sm:$0xff] }
 0x48c   :  { %v4150_v8 = vpop.eup %4149  ;;  %v2311_v29 = vmul.f32 %v4148_v10, %v2286_v25  ;;  %v6698_v10 = vld [vmem:[#allocation13_spill] sm:$0xff]  ;;  %v6700_v25 = vld [vmem:[#allocation15_spill] sm:$0xff] }
 0x48d   :  { %v5634_v27 = vadd.f32 %v2306_v38, %v2304_v12  ;;  %v2289_v13 = vmul.f32 %v4150_v8, %v2272_v21  ;;  %vm2294_vm2 = vweird.f32 %v4150_v8  ;;  %v3983_v21 = vld [vmem:[%s6097_s0 + $0x10] sm:$0xff] }
 0x48e   :  { %v2313_v45 = vpack.c.bf16 %v2311_v29, %v2311_v29  ;;  %vm2295_vm6 = vmor %vm2293_vm3, %vm2294_vm2  ;;  %v6695_v38 = vld [vmem:[#allocation10_spill] sm:$0xff] }
 0x48f   :  { %4151 = vtanh.f32 %v5634_v27  ;;  %v2290_v57 = vsub.f32 1.0, %v2289_v13  ;;  %v6699_v12 = vld [vmem:[#allocation14_spill] sm:$0xff] }
 0x490   :  { %3810 = vst.msk [vmem:[%s6102_s5 + $0x20] sm:$0xf] %vm968_vm4, %v2313_v45  ;;  %v6703_v13 = vld [vmem:[#allocation18_spill] sm:$0xff] }
 0x491   :  { %v2291_v48 = vmul.f32 %v4150_v8, %v2290_v57  ;;  %3812 = vst.msk [vmem:[%s6102_s5 + $0x18] sm:$0xf] %vm972_vm5, %v2313_v45  ;;  %v6704_v45 = vld [vmem:[#allocation19_spill] sm:$0xff]  ;;  %v6705_v57 = vld [vmem:[#allocation20_spill] sm:$0xff] }
 0x493   :  { %v2292_v46 = vadd.f32 %v4150_v8, %v2291_v48  ;;  %v6707_v48 = vld [vmem:[#allocation22_spill] sm:$0xff] }
 0x495   :  { %v4152_v31 = vpop.eup %4151  ;;  %v2296_v62 = vsel %vm2295_vm6, %v4150_v8, %v2292_v46  ;;  %v6701_v8 = vld [vmem:[#allocation16_spill] sm:$0xff] }
 0x496   :  { %v2301_v30 = vsel %vm2298_vm7, %v2300_v49, %v2296_v62  ;;  %v6709_v46 = vld [vmem:[#allocation24_spill] sm:$0xff]  ;;  %v6710_v49 = vld [vmem:[#allocation25_spill] sm:$0xff]  ;;  %v6712_v62 = vld [vmem:[#allocation27_spill] sm:$0xff] }
 0x497   :  { %v2312_v19 = vmul.f32 %v4152_v31, %v2301_v30  ;;  %v6711_v31 = vld [vmem:[#allocation26_spill] sm:$0xff]  ;;  %v6713_v30 = vld [vmem:[#allocation28_spill] sm:$0xff] }
 0x499   :  { %v2314_v9 = vpack.c.bf16 %v2312_v19, %v2312_v19  ;;  %v2319_v33 = vpack.c.bf16 %v2312_v19, %v2311_v29  ;;  %v6702_v29 = vld [vmem:[#allocation17_spill] sm:$0xff] }
 0x49a   :  { %v6714_v19 = vld [vmem:[#allocation29_spill] sm:$0xff] }
 0x49b   :  { %3811 = vst.msk [vmem:[%s6102_s5 + $0x24] sm:$0xf] %vm968_vm4, %v2314_v9  ;;  %2328 = vmatmul.bf16.vlgmr.msrb.gmra.mxu0 %v2319_v33  ;;  %2342 = vmatmul.bf16.vlgmr.msrb.gmra.mxu1 %v2319_v33 }
 0x49c   :  { %3813 = vst.msk [vmem:[%s6102_s5 + $0x1c] sm:$0xf] %vm972_vm5, %v2314_v9  ;;  %2356 = vmatmul.bf16.vlgmr.msrb.gmra.mxu2 %v2319_v33  ;;  %2370 = vmatmul.bf16.vlgmr.msrb.gmra.mxu3 %v2319_v33  ;;  %v6715_v9 = vld [vmem:[#allocation30_spill] sm:$0xff]  ;;  %v6716_v33 = vld [vmem:[#allocation31_spill] sm:$0xff] }
 0x49d   :  { %2448 = vmatpush.bf16.msrb.mxu0 %v6405_v23  ;;  %2462 = vmatpush.bf16.msrb.mxu1 %v6406_v41 }
 0x49e   :  { %2476 = vmatpush.bf16.msrb.mxu2 %v6407_v18  ;;  %2490 = vmatpush.bf16.msrb.mxu3 %v6408_v55 }
 0x4a1   :  { %2449 = vmatpush.bf16.msrb.mxu0 %v4594_v63  ;;  %2463 = vmatpush.bf16.msrb.mxu1 %v6409_v61 }
 0x4a2   :  { %2477 = vmatpush.bf16.msrb.mxu2 %v6410_v36  ;;  %2491 = vmatpush.bf16.msrb.mxu3 %v6411_v20 }
 0x4a5   :  { %2450 = vmatpush.bf16.msrb.mxu0 %v6412_v1  ;;  %2464 = vmatpush.bf16.msrb.mxu1 %v6413_v60 }
 0x4a6   :  { %2478 = vmatpush.bf16.msrb.mxu2 %v6414_v59  ;;  %2492 = vmatpush.bf16.msrb.mxu3 %v6415_v51 }
 0x4a9   :  { %2451 = vmatpush.bf16.msrb.mxu0 %v6416_v43  ;;  %2465 = vmatpush.bf16.msrb.mxu1 %v6417_v0 }
 0x4aa   :  { %2479 = vmatpush.bf16.msrb.mxu2 %v6418_v11  ;;  %2493 = vmatpush.bf16.msrb.mxu3 %v6419_v35 }
 0x4ab   :  { %2394 = vmatmul.bf16.vlgmr.msra.gmra.mxu0 %v3983_v21  ;;  %2408 = vmatmul.bf16.vlgmr.msra.gmra.mxu1 %v3983_v21 }
 0x4ac   :  { %2422 = vmatmul.bf16.vlgmr.msra.gmra.mxu2 %v3983_v21  ;;  %2436 = vmatmul.bf16.vlgmr.msra.gmra.mxu3 %v3983_v21  ;;  %v6717_v21 = vld [vmem:[#allocation32_spill] sm:$0xff] }
 0x4ad   :  { %2452 = vmatpush.bf16.msrb.mxu0 %v6420_v37  ;;  %2466 = vmatpush.bf16.msrb.mxu1 %v6421_v14 }
 0x4ae   :  { %2480 = vmatpush.bf16.msrb.mxu2 %v6422_v5  ;;  %2494 = vmatpush.bf16.msrb.mxu3 %v6423_v6 }
 0x4b1   :  { %2453 = vmatpush.bf16.msrb.mxu0 %v6424_v22  ;;  %2467 = vmatpush.bf16.msrb.mxu1 %v6425_v47 }
 0x4b2   :  { %2481 = vmatpush.bf16.msrb.mxu2 %v6426_v15  ;;  %2495 = vmatpush.bf16.msrb.mxu3 %v6427_v42 }
 0x4b5   :  { %2454 = vmatpush.bf16.msrb.mxu0 %v4774_v53  ;;  %2468 = vmatpush.bf16.msrb.mxu1 %v6686_v50 }
 0x4b6   :  { %2482 = vmatpush.bf16.msrb.mxu2 %v6687_v4  ;;  %2496 = vmatpush.bf16.msrb.mxu3 %v6688_v3 }
 0x4b9   :  { %2455 = vmatpush.bf16.msrb.mxu0 %v6689_v16  ;;  %2469 = vmatpush.bf16.msrb.mxu1 %v6690_v34 }
 0x4ba   :  { %2483 = vmatpush.bf16.msrb.mxu2 %v6691_v17  ;;  %2497 = vmatpush.bf16.msrb.mxu3 %v6692_v58 }
 0x4bc   :  { %2456 = vmatmul.bf16.vlgmr.msrb.gmra.mxu0 %v3982_v44  ;;  %2470 = vmatmul.bf16.vlgmr.msrb.gmra.mxu1 %v3982_v44 }
 0x4bd   :  { %2653 = vmatpush.bf16.msra.mxu0 %v6693_v32  ;;  %2667 = vmatpush.bf16.msra.mxu1 %v6694_v26 }
 0x4be   :  { %2484 = vmatmul.bf16.vlgmr.msrb.gmra.mxu2 %v3982_v44  ;;  %2498 = vmatmul.bf16.vlgmr.msrb.gmra.mxu3 %v3982_v44  ;;  %v6718_v44 = vld [vmem:[#allocation33_spill] sm:$0xff] }
 0x4bf   :  { %2681 = vmatpush.bf16.msra.mxu2 %v6695_v38  ;;  %2695 = vmatpush.bf16.msra.mxu3 %v6696_v39 }
 0x4c1   :  { %2654 = vmatpush.bf16.msra.mxu0 %v6697_v24  ;;  %2668 = vmatpush.bf16.msra.mxu1 %v6698_v10 }
 0x4c3   :  { %2682 = vmatpush.bf16.msra.mxu2 %v6699_v12  ;;  %2696 = vmatpush.bf16.msra.mxu3 %v6700_v25 }
 0x4c5   :  { %2655 = vmatpush.bf16.msra.mxu0 %v6701_v8  ;;  %2669 = vmatpush.bf16.msra.mxu1 %v6702_v29 }
 0x4c7   :  { %2683 = vmatpush.bf16.msra.mxu2 %v6703_v13  ;;  %2697 = vmatpush.bf16.msra.mxu3 %v6704_v45 }
 0x4c9   :  { %2656 = vmatpush.bf16.msra.mxu0 %v6705_v57  ;;  %2670 = vmatpush.bf16.msra.mxu1 %v6706_v54 }
 0x4cb   :  { %2684 = vmatpush.bf16.msra.mxu2 %v6707_v48  ;;  %2698 = vmatpush.bf16.msra.mxu3 %v6708_v56  ;;  %v6719_v56 = vld [vmem:[#allocation34_spill] sm:$0xff] }
 0x4cd   :  { %2657 = vmatpush.bf16.msra.mxu0 %v6709_v46  ;;  %2671 = vmatpush.bf16.msra.mxu1 %v6710_v49  ;;  %v6720_v46 = vld [vmem:[#allocation35_spill] sm:$0xff]  ;;  %v6721_v49 = vld [vmem:[#allocation36_spill] sm:$0xff] }
 0x4cf   :  { %2685 = vmatpush.bf16.msra.mxu2 %v6711_v31  ;;  %2699 = vmatpush.bf16.msra.mxu3 %v6712_v62  ;;  %v6722_v31 = vld [vmem:[#allocation37_spill] sm:$0xff]  ;;  %v6723_v62 = vld [vmem:[#allocation40_spill] sm:$0xff] }
 0x4d1   :  { %2658 = vmatpush.bf16.msra.mxu0 %v6713_v30  ;;  %2672 = vmatpush.bf16.msra.mxu1 %v6714_v19  ;;  %v6724_v30 = vld [vmem:[#allocation41_spill] sm:$0xff]  ;;  %v6725_v19 = vld [vmem:[#allocation38_spill] sm:$0xff] }
 0x4d3   :  { %2686 = vmatpush.bf16.msra.mxu2 %v6715_v9  ;;  %2700 = vmatpush.bf16.msra.mxu3 %v6716_v33  ;;  %v6726_v9 = vld [vmem:[#allocation39_spill] sm:$0xff]  ;;  %v6727_v33 = vld [vmem:[#allocation42_spill] sm:$0xff] }
 0x4d5   :  { %2659 = vmatpush.bf16.msra.mxu0 %v6717_v21  ;;  %2673 = vmatpush.bf16.msra.mxu1 %v6718_v44  ;;  %v6728_v21 = vld [vmem:[#allocation43_spill] sm:$0xff]  ;;  %v6729_v44 = vld [vmem:[#allocation44_spill] sm:$0xff] }
 0x4d7   :  { %2687 = vmatpush.bf16.msra.mxu2 %v6719_v56  ;;  %2701 = vmatpush.bf16.msra.mxu3 %v6720_v46  ;;  %v6730_v56 = vld [vmem:[#allocation45_spill] sm:$0xff]  ;;  %v6731_v46 = vld [vmem:[#allocation46_spill] sm:$0xff] }
 0x4d9   :  { %2660 = vmatpush.bf16.msra.mxu0 %v6721_v49  ;;  %2674 = vmatpush.bf16.msra.mxu1 %v6722_v31  ;;  %v6732_v49 = vld [vmem:[#allocation47_spill] sm:$0xff]  ;;  %v6733_v31 = vld [vmem:[#allocation48_spill] sm:$0xff] }
 0x4db   :  { %2688 = vmatpush.bf16.msra.mxu2 %v6725_v19  ;;  %2702 = vmatpush.bf16.msra.mxu3 %v6726_v9  ;;  %v6736_v19 = vld [vmem:[#allocation51_spill] sm:$0xff]  ;;  %v6737_v9 = vld [vmem:[#allocation52_spill] sm:$0xff] }
 0x4dd   :  { %2719 = vmatpush.bf16.msrb.mxu0 %v6723_v62  ;;  %2733 = vmatpush.bf16.msrb.mxu1 %v6724_v30  ;;  %v6734_v62 = vld [vmem:[#allocation49_spill] sm:$0xff]  ;;  %v6735_v30 = vld [vmem:[#allocation50_spill] sm:$0xff] }
 0x4df   :  { %2747 = vmatpush.bf16.msrb.mxu2 %v6727_v33  ;;  %2761 = vmatpush.bf16.msrb.mxu3 %v6728_v21  ;;  %v6738_v33 = vld [vmem:[#allocation53_spill] sm:$0xff]  ;;  %v6739_v21 = vld [vmem:[#allocation54_spill] sm:$0xff] }
 0x4e1   :  { %2720 = vmatpush.bf16.msrb.mxu0 %v6729_v44  ;;  %2734 = vmatpush.bf16.msrb.mxu1 %v6730_v56  ;;  %v6740_v44 = vld [vmem:[#allocation55_spill] sm:$0xff]  ;;  %v6741_v56 = vld [vmem:[#allocation56_spill] sm:$0xff] }
 0x4e3   :  { %2748 = vmatpush.bf16.msrb.mxu2 %v6731_v46  ;;  %2762 = vmatpush.bf16.msrb.mxu3 %v6732_v49  ;;  %v6742_v46 = vld [vmem:[#allocation57_spill] sm:$0xff]  ;;  %v6743_v49 = vld [vmem:[#allocation58_spill] sm:$0xff] }
 0x4e5   :  { %2721 = vmatpush.bf16.msrb.mxu0 %v6733_v31  ;;  %2735 = vmatpush.bf16.msrb.mxu1 %v6734_v62  ;;  %v6744_v31 = vld [vmem:[#allocation59_spill] sm:$0xff]  ;;  %v6745_v62 = vld [vmem:[#allocation60_spill] sm:$0xff] }
 0x4e7   :  { %2749 = vmatpush.bf16.msrb.mxu2 %v6735_v30  ;;  %2763 = vmatpush.bf16.msrb.mxu3 %v6736_v19  ;;  %v6746_v30 = vld [vmem:[#allocation61_spill] sm:$0xff]  ;;  %v6747_v19 = vld [vmem:[#allocation62_spill] sm:$0xff] }
 0x4e9   :  { %2722 = vmatpush.bf16.msrb.mxu0 %v6737_v9  ;;  %2736 = vmatpush.bf16.msrb.mxu1 %v6738_v33  ;;  %v6748_v9 = vld [vmem:[#allocation63_spill] sm:$0xff]  ;;  %v6749_v33 = vld [vmem:[#allocation64_spill] sm:$0xff] }
 0x4eb   :  { %2750 = vmatpush.bf16.msrb.mxu2 %v6739_v21  ;;  %2764 = vmatpush.bf16.msrb.mxu3 %v6740_v44  ;;  %v6750_v21 = vld [vmem:[#allocation65_spill] sm:$0xff]  ;;  %v6751_v44 = vld [vmem:[#allocation66_spill] sm:$0xff] }
 0x4ed   :  { %2723 = vmatpush.bf16.msrb.mxu0 %v6741_v56  ;;  %2737 = vmatpush.bf16.msrb.mxu1 %v6742_v46  ;;  %v6752_v56 = vld [vmem:[#allocation67_spill] sm:$0xff]  ;;  %v6753_v46 = vld [vmem:[#allocation68_spill] sm:$0xff] }
 0x4ef   :  { %2751 = vmatpush.bf16.msrb.mxu2 %v6743_v49  ;;  %2765 = vmatpush.bf16.msrb.mxu3 %v6744_v31  ;;  %v6754_v49 = vld [vmem:[#allocation69_spill] sm:$0xff]  ;;  %v6755_v31 = vld [vmem:[#allocation70_spill] sm:$0xff] }
 0x4f1   :  { %2724 = vmatpush.bf16.msrb.mxu0 %v6745_v62  ;;  %2738 = vmatpush.bf16.msrb.mxu1 %v6746_v30  ;;  %v6756_v62 = vld [vmem:[#allocation71_spill] sm:$0xff] }
 0x4f3   :  { %2752 = vmatpush.bf16.msrb.mxu2 %v6747_v19  ;;  %2766 = vmatpush.bf16.msrb.mxu3 %v6748_v9 }
 0x4f5   :  { %2725 = vmatpush.bf16.msrb.mxu0 %v6749_v33  ;;  %2739 = vmatpush.bf16.msrb.mxu1 %v6750_v21 }
 0x4f7   :  { %2753 = vmatpush.bf16.msrb.mxu2 %v6751_v44  ;;  %2767 = vmatpush.bf16.msrb.mxu3 %v6752_v56 }
 0x4f9   :  { %2726 = vmatpush.bf16.msrb.mxu0 %v6753_v46  ;;  %2740 = vmatpush.bf16.msrb.mxu1 %v6754_v49 }
 0x4fb   :  { %2754 = vmatpush.bf16.msrb.mxu2 %v6755_v31  ;;  %2768 = vmatpush.bf16.msrb.mxu3 %v6756_v62 }
 0x518   :  { %v2329_v30 = vpop.f32.mrf.mxu0  ;;  %v2343_v19 = vpop.f32.mrf.mxu1 }
 0x51f   :  { %v2357_v48 = vpop.f32.mrf.mxu2  ;;  %v2371_v9 = vpop.f32.mrf.mxu3 }
 0x520   :  { %v2331_v54 = vpop.f32.mrf.mxu0  ;;  %v2345_v33 = vpop.f32.mrf.mxu1 }
 0x527   :  { %v5755_v57 = vpop.f32.mrf.mxu2  ;;  %v2373_v21 = vpop.f32.mrf.mxu3 }
 0x528   :  { %v2395_v44 = vpop.f32.mrf.mxu0  ;;  %v2409_v45 = vpop.f32.mrf.mxu1 }
 0x52f   :  { %v2423_v56 = vpop.f32.mrf.mxu2  ;;  %v2437_v13 = vpop.f32.mrf.mxu3 }
 0x530   :  { %v2397_v46 = vpop.f32.mrf.mxu0  ;;  %v2411_v29 = vpop.f32.mrf.mxu1 }
 0x537   :  { %v2425_v49 = vpop.f32.mrf.mxu2  ;;  %v2439_v8 = vpop.f32.mrf.mxu3 }
 0x539   :  { %v2457_v31 = vpop.f32.mrf.mxu0  ;;  %v2471_v25 = vpop.f32.mrf.mxu1 }
 0x53a   :  { %v2458_v62 = vadd.f32 %v2457_v31, %v2395_v44  ;;  %v2472_v12 = vadd.f32 %v2471_v25, %v2409_v45 }
 0x53c   :  { %v2504_v10 = vadd.f32 %v2458_v62, %v4897_v40  ;;  %v2505_v24 = vadd.f32 %v2472_v12, %v4899_v2 }
 0x53e   :  { %v2512_v39 = vadd.f32 %v2504_v10, %v2329_v30  ;;  %v2513_v38 = vadd.f32 %v2505_v24, %v2343_v19 }
 0x540   :  { %v3826_v26 = vmul.f32 -1.442695, %v2512_v39  ;;  %v3828_v32 = vmul.f32 -1.442695, %v2513_v38 }
 0x541   :  { %v2485_v58 = vpop.f32.mrf.mxu2  ;;  %v2499_v17 = vpop.f32.mrf.mxu3 }
 0x542   :  { %v2500_v34 = vadd.f32 %v2499_v17, %v2437_v13  ;;  %v2459_v16 = vpop.f32.mrf.mxu0  ;;  %v2473_v3 = vpop.f32.mrf.mxu1  ;;  %4153 = vpow2.f32 %v3826_v26  ;;  %v2486_v12 = vadd.f32 %v2485_v58, %v2423_v56 }
 0x543   :  { %v2460_v4 = vadd.f32 %v2459_v16, %v2397_v46  ;;  %v2474_v50 = vadd.f32 %v2473_v3, %v2411_v29  ;;  %4155 = vpow2.f32 %v3828_v32 }
 0x544   :  { %v2507_v31 = vadd.f32 %v2500_v34, %v4903_v28  ;;  %v2506_v16 = vadd.f32 %v2486_v12, %v4907_v52 }
 0x545   :  { %v2508_v25 = vadd.f32 %v2460_v4, %v4897_v40  ;;  %v2509_v45 = vadd.f32 %v2474_v50, %v4899_v2 }
 0x546   :  { %v2515_v10 = vadd.f32 %v2507_v31, %v2371_v9  ;;  %v2514_v50 = vadd.f32 %v2506_v16, %v2357_v48 }
 0x547   :  { %v2516_v24 = vadd.f32 %v2508_v25, %v2331_v54  ;;  %v2517_v39 = vadd.f32 %v2509_v45, %v2345_v33 }
 0x548   :  { %v3830_v38 = vmul.f32 -1.442695, %v2515_v10  ;;  %v4154_v62 = vpop.eup %4153 }
 0x549   :  { %v3827_v30 = vmul.f32 -1.442695, %v2516_v24  ;;  %v2501_v17 = vpop.f32.mrf.mxu3  ;;  %v4156_v13 = vpop.eup %4155  ;;  %v2526_v19 = vadd.f32 1.0, %v4154_v62  ;;  %v3829_v3 = vmul.f32 -1.442695, %v2517_v39 }
 0x54a   :  { %4157 = vpow2.f32 %v3830_v38  ;;  %v2564_v32 = vadd.f32 1.0, %v4156_v13  ;;  %v2502_v34 = vadd.f32 %v2501_v17, %v2439_v8  ;;  %v2487_v4 = vpop.f32.mrf.mxu2 }
 0x54b   :  { %4159 = vpow2.f32 %v3827_v30  ;;  %v2488_v58 = vadd.f32 %v2487_v4, %v2425_v49  ;;  %v2537_v45 = vand.u32 2147483647, %v2526_v19  ;;  %v2539_v12 = vand.u32 2147483648, %v2526_v19 }
 0x54c   :  { %4161 = vrcp.f32 %v2526_v19  ;;  %v2511_v26 = vadd.f32 %v2502_v34, %v4903_v28  ;;  %v2577_v39 = vand.u32 2147483648, %v2564_v32  ;;  %v2575_v38 = vand.u32 2147483647, %v2564_v32 }
 0x54d   :  { %4163 = vrcp.f32 %v2564_v32  ;;  %v2510_v8 = vadd.f32 %v2488_v58, %v4907_v52  ;;  %vm2533_vm10 = vweird.f32 %v2526_v19  ;;  %vm2571_vm11 = vweird.f32 %v2564_v32 }
 0x54e   :  { %4165 = vpow2.f32 %v3829_v3  ;;  %v2519_v33 = vadd.f32 %v2511_v26, %v2373_v21  ;;  %vm2538_vm12 = vcmp.eq.f32.partialorder %v2537_v45, 8.507059e+37  ;;  %v2578_v4 = vor.u32 1.1754944e-38, %v2577_v39 }
 0x54f   :  { %4167 = vtanh.f32 %v2514_v50  ;;  %v2518_v30 = vadd.f32 %v2510_v8, %v5755_v57  ;;  %v2540_v50 = vor.u32 1.1754944e-38, %v2539_v12  ;;  %vm2576_vm15 = vcmp.eq.f32.partialorder %v2575_v38, 8.507059e+37 }
 0x550   :  { %v4158_v29 = vpop.eup %4157  ;;  %v3831_v62 = vmul.f32 -1.442695, %v2519_v33 }
 0x551   :  { %v4160_v54 = vpop.eup %4159  ;;  %v5764_v56 = vadd.f32 1.0, %v4158_v29 }
 0x552   :  { %v4162_v46 = vpop.eup %4161  ;;  %v5766_v9 = vadd.f32 1.0, %v4160_v54 }
 0x553   :  { %v4164_v44 = vpop.eup %4163  ;;  %v2529_v31 = vmul.f32 %v4162_v46, %v2526_v19  ;;  %4169 = vrcp.f32 %v5764_v56  ;;  %vm2534_vm8 = vweird.f32 %v4162_v46  ;;  %vm2611_vm0 = vweird.f32 %v5764_v56 }
 0x554   :  { %v4166_v48 = vpop.eup %4165  ;;  %v2567_v25 = vmul.f32 %v4164_v44, %v2564_v32  ;;  %4171 = vrcp.f32 %v5766_v9  ;;  %vm2572_vm9 = vweird.f32 %v4164_v44  ;;  %vm2535_vm13 = vmor %vm2533_vm10, %vm2534_vm8  ;;  %vm2548_vm1 = vweird.f32 %v5766_v9 }
 0x555   :  { %v2530_v49 = vsub.f32 1.0, %v2529_v31  ;;  %v5771_v10 = vadd.f32 1.0, %v4166_v48  ;;  %v4168_v17 = vpop.eup %4167  ;;  %vm2573_vm14 = vmor %vm2571_vm11, %vm2572_vm9 }
 0x556   :  { %v2568_v24 = vsub.f32 1.0, %v2567_v25  ;;  %v2554_v25 = vand.u32 2147483648, %v5766_v9 }
 0x557   :  { %v2531_v21 = vmul.f32 %v4162_v46, %v2530_v49  ;;  %4173 = vrcp.f32 %v5771_v10  ;;  %vm2586_vm9 = vweird.f32 %v5771_v10 }
 0x558   :  { %v2569_v13 = vmul.f32 %v4164_v44, %v2568_v24  ;;  %4175 = vpow2.f32 %v3831_v62 }
 0x559   :  { %v5775_v16 = vpop.eup %4169  ;;  %v2532_v3 = vadd.f32 %v4162_v46, %v2531_v21  ;;  %4177 = vtanh.f32 %v2518_v30  ;;  %v2592_v21 = vand.u32 2147483648, %v5771_v10 }
 0x55a   :  { %v4172_v34 = vpop.eup %4171  ;;  %v2570_v58 = vadd.f32 %v4164_v44, %v2569_v13  ;;  %v2607_v26 = vmul.f32 %v5775_v16, %v5764_v56  ;;  %v2555_v13 = vor.u32 1.1754944e-38, %v2554_v25  ;;  %vm2612_vm3 = vweird.f32 %v5775_v16 }
 0x55b   :  { %v2536_v57 = vsel %vm2535_vm13, %v4162_v46, %v2532_v3  ;;  %v2544_v29 = vmul.f32 %v4172_v34, %v5766_v9  ;;  %v2617_v46 = vand.u32 2147483648, %v5764_v56  ;;  %vm2549_vm2 = vweird.f32 %v4172_v34  ;;  %vm2613_vm10 = vmor %vm2611_vm0, %vm2612_vm3 }
 0x55c   :  { %v2541_v19 = vsel %vm2538_vm12, %v2540_v50, %v2536_v57  ;;  %v2574_v54 = vsel %vm2573_vm14, %v4164_v44, %v2570_v58  ;;  %v2608_v32 = vsub.f32 1.0, %v2607_v26  ;;  %v2552_v44 = vand.u32 2147483647, %v5766_v9  ;;  %vm2550_vm7 = vmor %vm2548_vm1, %vm2549_vm2 }
 0x55d   :  { %v4174_v33 = vpop.eup %4173  ;;  %v2579_v31 = vsel %vm2576_vm15, %v2578_v4, %v2574_v54  ;;  %v2638_v8 = vmul.f32 %v4168_v17, %v2541_v19  ;;  %v2545_v48 = vsub.f32 1.0, %v2544_v29  ;;  %v2590_v50 = vand.u32 2147483647, %v5771_v10 }
 0x55e   :  { %v2636_v49 = vmul.f32 %v2579_v31, %v5619_v7  ;;  %v2609_v45 = vmul.f32 %v5775_v16, %v2608_v32  ;;  %v2582_v12 = vmul.f32 %v4174_v33, %v5771_v10  ;;  %v4176_v24 = vpop.eup %4175  ;;  %vm2587_vm6 = vweird.f32 %v4174_v33 }
 0x55f   :  { %v2546_v39 = vmul.f32 %v4172_v34, %v2545_v48  ;;  %v2605_v30 = vadd.f32 1.0, %v4176_v24  ;;  %v4178_v7 = vpop.eup %4177  ;;  %vm2553_vm8 = vcmp.eq.f32.partialorder %v2552_v44, 8.507059e+37  ;;  %v2615_v26 = vand.u32 2147483647, %v5764_v56  ;;  %vm2588_vm11 = vmor %vm2586_vm9, %vm2587_vm6 }
 0x560   :  { %v5788_v38 = vadd.f32 %v2638_v8, %v2636_v49  ;;  %v2583_v62 = vsub.f32 1.0, %v2582_v12  ;;  %v2610_v3 = vadd.f32 %v5775_v16, %v2609_v45  ;;  %v2593_v19 = vor.u32 1.1754944e-38, %v2592_v21 }
 0x561   :  { %v2547_v17 = vadd.f32 %v4172_v34, %v2546_v39  ;;  %vm2591_vm12 = vcmp.eq.f32.partialorder %v2590_v50, 8.507059e+37  ;;  %v2618_v31 = vor.u32 1.1754944e-38, %v2617_v46  ;;  %vm2616_vm13 = vcmp.eq.f32.partialorder %v2615_v26, 8.507059e+37  ;;  %v6759_v50 = vld [vmem:[#allocation97_spill] sm:$0xff]  ;;  %v6760_v26 = vld [vmem:[#allocation98_spill] sm:$0xff] }
 0x562   :  { %4179 = vtanh.f32 %v5788_v38  ;;  %v2584_v4 = vmul.f32 %v4174_v33, %v2583_v62  ;;  %v2614_v54 = vsel %vm2613_vm10, %v5775_v16, %v2610_v3  ;;  %v2632_v16 = vand.u32 2147483648, %v2605_v30  ;;  %v6757_v3 = vld [vmem:[#allocation95_spill] sm:$0xff] }
 0x563   :  { %v2551_v58 = vsel %vm2550_vm7, %v4172_v34, %v2547_v17  ;;  %4181 = vrcp.f32 %v2605_v30  ;;  %v2619_v25 = vsel %vm2616_vm13, %v2618_v31, %v2614_v54  ;;  %v2630_v46 = vand.u32 2147483647, %v2605_v30  ;;  %v6764_v54 = vld [vmem:[#allocation8_spill] sm:$0xff]  ;;  %v6767_v31 = vld [vmem:[#allocation11_spill] sm:$0xff] }
 0x564   :  { %v2556_v57 = vsel %vm2553_vm8, %v2555_v13, %v2551_v58  ;;  %v2585_v29 = vadd.f32 %v4174_v33, %v2584_v4  ;;  %vm2626_vm15 = vweird.f32 %v2605_v30  ;;  %v2633_v39 = vor.u32 1.1754944e-38, %v2632_v16  ;;  %v6758_v4 = vld [vmem:[#allocation96_spill] sm:$0xff]  ;;  %v3984_v58 = vld [vmem:[%s6097_s0 + $0x30] sm:$0xff]  ;;  %v6777_v16 = vld [vmem:[#allocation21_spill] sm:$0xff] }
 0x565   :  { %v2639_v32 = vmul.f32 %v4178_v7, %v2556_v57  ;;  %vm2631_vm1 = vcmp.eq.f32.partialorder %v2630_v46, 8.507059e+37  ;;  %v6761_v57 = vld [vmem:[#allocation99_spill] sm:$0xff] }
 0x566   :  { %v2589_v9 = vsel %vm2588_vm11, %v4174_v33, %v2585_v29  ;;  %v6762_v29 = vld [vmem:[#allocation100_spill] sm:$0xff]  ;;  %v6779_v46 = vld [vmem:[#allocation23_spill] sm:$0xff] }
 0x567   :  { %v2594_v34 = vsel %vm2591_vm12, %v2593_v19, %v2589_v9  ;;  %v6763_v19 = vld [vmem:[#allocation101_spill] sm:$0xff] }
 0x568   :  { %v4180_v8 = vpop.eup %4179  ;;  %v2637_v48 = vmul.f32 %v2594_v34, %v5634_v27  ;;  %v6765_v9 = vld [vmem:[#allocation9_spill] sm:$0xff]  ;;  %v6768_v34 = vld [vmem:[#allocation12_spill] sm:$0xff] }
 0x569   :  { %v4182_v10 = vpop.eup %4181  ;;  %v2644_v49 = vmul.f32 %v4180_v8, %v2619_v25  ;;  %v6769_v8 = vld [vmem:[#allocation13_spill] sm:$0xff]  ;;  %v6771_v25 = vld [vmem:[#allocation15_spill] sm:$0xff] }
 0x56a   :  { %v5803_v45 = vadd.f32 %v2639_v32, %v2637_v48  ;;  %v2622_v56 = vmul.f32 %v4182_v10, %v2605_v30  ;;  %vm2627_vm14 = vweird.f32 %v4182_v10  ;;  %v3985_v30 = vld [vmem:[%s6097_s0 + $0x8] sm:$0xff]  ;;  %v6766_v32 = vld [vmem:[#allocation10_spill] sm:$0xff] }
 0x56b   :  { %v2646_v12 = vpack.c.bf16 %v2644_v49, %v2644_v49  ;;  %vm2628_vm0 = vmor %vm2626_vm15, %vm2627_vm14  ;;  %v6770_v48 = vld [vmem:[#allocation14_spill] sm:$0xff] }
 0x56c   :  { %4183 = vtanh.f32 %v5803_v45  ;;  %v2623_v24 = vsub.f32 1.0, %v2622_v56  ;;  %v6774_v56 = vld [vmem:[#allocation18_spill] sm:$0xff] }
 0x56d   :  { %3832 = vst.msk [vmem:[%s6102_s5 + $0x28] sm:$0xf] %vm968_vm4, %v2646_v12 }
 0x56e   :  { %v2624_v33 = vmul.f32 %v4182_v10, %v2623_v24  ;;  %3834 = vst.msk [vmem:[%s6102_s5 + $0x10] sm:$0xf] %vm972_vm5, %v2646_v12  ;;  %v6775_v12 = vld [vmem:[#allocation19_spill] sm:$0xff]  ;;  %v6776_v24 = vld [vmem:[#allocation20_spill] sm:$0xff] }
 0x570   :  { %v2625_v27 = vadd.f32 %v4182_v10, %v2624_v33  ;;  %v6778_v33 = vld [vmem:[#allocation22_spill] sm:$0xff] }
 0x572   :  { %v4184_v44 = vpop.eup %4183  ;;  %v2629_v62 = vsel %vm2628_vm0, %v4182_v10, %v2625_v27  ;;  %v6772_v10 = vld [vmem:[#allocation16_spill] sm:$0xff] }
 0x573   :  { %v2634_v21 = vsel %vm2631_vm1, %v2633_v39, %v2629_v62  ;;  %v6780_v27 = vld [vmem:[#allocation24_spill] sm:$0xff]  ;;  %v6781_v39 = vld [vmem:[#allocation25_spill] sm:$0xff]  ;;  %v6783_v62 = vld [vmem:[#allocation27_spill] sm:$0xff] }
 0x574   :  { %v2645_v7 = vmul.f32 %v4184_v44, %v2634_v21  ;;  %v6782_v44 = vld [vmem:[#allocation26_spill] sm:$0xff]  ;;  %v6784_v21 = vld [vmem:[#allocation28_spill] sm:$0xff] }
 0x576   :  { %v2647_v17 = vpack.c.bf16 %v2645_v7, %v2645_v7  ;;  %v2652_v13 = vpack.c.bf16 %v2645_v7, %v2644_v49  ;;  %v6773_v49 = vld [vmem:[#allocation17_spill] sm:$0xff] }
 0x577   :  { %v6785_v7 = vld [vmem:[#allocation29_spill] sm:$0xff] }
 0x578   :  { %3833 = vst.msk [vmem:[%s6102_s5 + $0x2c] sm:$0xf] %vm968_vm4, %v2647_v17  ;;  %2661 = vmatmul.bf16.vlgmr.msra.gmra.mxu0 %v2652_v13  ;;  %2675 = vmatmul.bf16.vlgmr.msra.gmra.mxu1 %v2652_v13 }
 0x579   :  { %3835 = vst.msk [vmem:[%s6102_s5 + $0x14] sm:$0xf] %vm972_vm5, %v2647_v17  ;;  %2689 = vmatmul.bf16.vlgmr.msra.gmra.mxu2 %v2652_v13  ;;  %2703 = vmatmul.bf16.vlgmr.msra.gmra.mxu3 %v2652_v13  ;;  %v6786_v17 = vld [vmem:[#allocation30_spill] sm:$0xff]  ;;  %v6787_v13 = vld [vmem:[#allocation31_spill] sm:$0xff] }
 0x57a   :  { %2781 = vmatpush.bf16.msra.mxu0 %v6405_v23  ;;  %2795 = vmatpush.bf16.msra.mxu1 %v6406_v41 }
 0x57b   :  { %2809 = vmatpush.bf16.msra.mxu2 %v6407_v18  ;;  %2823 = vmatpush.bf16.msra.mxu3 %v6408_v55 }
 0x57e   :  { %2782 = vmatpush.bf16.msra.mxu0 %v4594_v63  ;;  %2796 = vmatpush.bf16.msra.mxu1 %v6409_v61 }
 0x57f   :  { %2810 = vmatpush.bf16.msra.mxu2 %v6410_v36  ;;  %2824 = vmatpush.bf16.msra.mxu3 %v6411_v20 }
 0x582   :  { %2783 = vmatpush.bf16.msra.mxu0 %v6412_v1  ;;  %2797 = vmatpush.bf16.msra.mxu1 %v6413_v60 }
 0x583   :  { %2811 = vmatpush.bf16.msra.mxu2 %v6414_v59  ;;  %2825 = vmatpush.bf16.msra.mxu3 %v6415_v51 }
 0x586   :  { %2784 = vmatpush.bf16.msra.mxu0 %v6416_v43  ;;  %2798 = vmatpush.bf16.msra.mxu1 %v6417_v0 }
 0x587   :  { %2812 = vmatpush.bf16.msra.mxu2 %v6418_v11  ;;  %2826 = vmatpush.bf16.msra.mxu3 %v6419_v35 }
 0x588   :  { %2727 = vmatmul.bf16.vlgmr.msrb.gmra.mxu0 %v3985_v30  ;;  %2741 = vmatmul.bf16.vlgmr.msrb.gmra.mxu1 %v3985_v30 }
 0x589   :  { %2755 = vmatmul.bf16.vlgmr.msrb.gmra.mxu2 %v3985_v30  ;;  %2769 = vmatmul.bf16.vlgmr.msrb.gmra.mxu3 %v3985_v30  ;;  %v6788_v30 = vld [vmem:[#allocation32_spill] sm:$0xff] }
 0x58a   :  { %2785 = vmatpush.bf16.msra.mxu0 %v6420_v37  ;;  %2799 = vmatpush.bf16.msra.mxu1 %v6421_v14 }
 0x58b   :  { %2813 = vmatpush.bf16.msra.mxu2 %v6422_v5  ;;  %2827 = vmatpush.bf16.msra.mxu3 %v6423_v6 }
 0x58e   :  { %2786 = vmatpush.bf16.msra.mxu0 %v6424_v22  ;;  %2800 = vmatpush.bf16.msra.mxu1 %v6425_v47 }
 0x58f   :  { %2814 = vmatpush.bf16.msra.mxu2 %v6426_v15  ;;  %2828 = vmatpush.bf16.msra.mxu3 %v6427_v42 }
 0x592   :  { %2787 = vmatpush.bf16.msra.mxu0 %v4774_v53  ;;  %2801 = vmatpush.bf16.msra.mxu1 %v6757_v3 }
 0x593   :  { %2815 = vmatpush.bf16.msra.mxu2 %v6758_v4  ;;  %2829 = vmatpush.bf16.msra.mxu3 %v6759_v50 }
 0x596   :  { %2788 = vmatpush.bf16.msra.mxu0 %v6760_v26  ;;  %2802 = vmatpush.bf16.msra.mxu1 %v6761_v57 }
 0x597   :  { %2816 = vmatpush.bf16.msra.mxu2 %v6762_v29  ;;  %2830 = vmatpush.bf16.msra.mxu3 %v6763_v19 }
 0x599   :  { %2789 = vmatmul.bf16.vlgmr.msra.gmra.mxu0 %v3984_v58  ;;  %2803 = vmatmul.bf16.vlgmr.msra.gmra.mxu1 %v3984_v58 }
 0x59a   :  { %2986 = vmatpush.bf16.msrb.mxu0 %v6764_v54  ;;  %3000 = vmatpush.bf16.msrb.mxu1 %v6765_v9  ;;  %v6790_v54 = vld [vmem:[#allocation34_spill] sm:$0xff]  ;;  %v6791_v9 = vld [vmem:[#allocation35_spill] sm:$0xff] }
 0x59b   :  { %2817 = vmatmul.bf16.vlgmr.msra.gmra.mxu2 %v3984_v58  ;;  %2831 = vmatmul.bf16.vlgmr.msra.gmra.mxu3 %v3984_v58  ;;  %v6789_v58 = vld [vmem:[#allocation33_spill] sm:$0xff] }
 0x59c   :  { %3014 = vmatpush.bf16.msrb.mxu2 %v6766_v32  ;;  %3028 = vmatpush.bf16.msrb.mxu3 %v6767_v31  ;;  %v6792_v32 = vld [vmem:[#allocation36_spill] sm:$0xff]  ;;  %v6793_v31 = vld [vmem:[#allocation37_spill] sm:$0xff] }
 0x59e   :  { %2987 = vmatpush.bf16.msrb.mxu0 %v6768_v34  ;;  %3001 = vmatpush.bf16.msrb.mxu1 %v6769_v8  ;;  %v6794_v34 = vld [vmem:[#allocation40_spill] sm:$0xff]  ;;  %v6795_v8 = vld [vmem:[#allocation41_spill] sm:$0xff] }
 0x5a0   :  { %3015 = vmatpush.bf16.msrb.mxu2 %v6770_v48  ;;  %3029 = vmatpush.bf16.msrb.mxu3 %v6771_v25  ;;  %v6796_v48 = vld [vmem:[#allocation38_spill] sm:$0xff]  ;;  %v6797_v25 = vld [vmem:[#allocation39_spill] sm:$0xff] }
 0x5a2   :  { %2988 = vmatpush.bf16.msrb.mxu0 %v6772_v10  ;;  %3002 = vmatpush.bf16.msrb.mxu1 %v6773_v49  ;;  %v6798_v10 = vld [vmem:[#allocation42_spill] sm:$0xff]  ;;  %v6799_v49 = vld [vmem:[#allocation43_spill] sm:$0xff] }
 0x5a4   :  { %3016 = vmatpush.bf16.msrb.mxu2 %v6774_v56  ;;  %3030 = vmatpush.bf16.msrb.mxu3 %v6775_v12  ;;  %v6800_v56 = vld [vmem:[#allocation44_spill] sm:$0xff]  ;;  %v6801_v12 = vld [vmem:[#allocation45_spill] sm:$0xff] }
 0x5a6   :  { %2989 = vmatpush.bf16.msrb.mxu0 %v6776_v24  ;;  %3003 = vmatpush.bf16.msrb.mxu1 %v6777_v16  ;;  %v6802_v24 = vld [vmem:[#allocation46_spill] sm:$0xff]  ;;  %v6803_v16 = vld [vmem:[#allocation47_spill] sm:$0xff] }
 0x5a8   :  { %3017 = vmatpush.bf16.msrb.mxu2 %v6778_v33  ;;  %3031 = vmatpush.bf16.msrb.mxu3 %v6779_v46  ;;  %v6804_v33 = vld [vmem:[#allocation48_spill] sm:$0xff]  ;;  %v6805_v46 = vld [vmem:[#allocation49_spill] sm:$0xff] }
 0x5aa   :  { %2990 = vmatpush.bf16.msrb.mxu0 %v6780_v27  ;;  %3004 = vmatpush.bf16.msrb.mxu1 %v6781_v39  ;;  %v6806_v27 = vld [vmem:[#allocation50_spill] sm:$0xff]  ;;  %v6807_v39 = vld [vmem:[#allocation51_spill] sm:$0xff] }
 0x5ac   :  { %3018 = vmatpush.bf16.msrb.mxu2 %v6782_v44  ;;  %3032 = vmatpush.bf16.msrb.mxu3 %v6783_v62  ;;  %v6808_v44 = vld [vmem:[#allocation52_spill] sm:$0xff]  ;;  %v6809_v62 = vld [vmem:[#allocation53_spill] sm:$0xff] }
 0x5ae   :  { %2991 = vmatpush.bf16.msrb.mxu0 %v6784_v21  ;;  %3005 = vmatpush.bf16.msrb.mxu1 %v6785_v7  ;;  %v6810_v21 = vld [vmem:[#allocation54_spill] sm:$0xff]  ;;  %v6811_v7 = vld [vmem:[#allocation55_spill] sm:$0xff] }
 0x5b0   :  { %3019 = vmatpush.bf16.msrb.mxu2 %v6786_v17  ;;  %3033 = vmatpush.bf16.msrb.mxu3 %v6787_v13  ;;  %v6812_v17 = vld [vmem:[#allocation56_spill] sm:$0xff]  ;;  %v6813_v13 = vld [vmem:[#allocation57_spill] sm:$0xff] }
 0x5b2   :  { %2992 = vmatpush.bf16.msrb.mxu0 %v6788_v30  ;;  %3006 = vmatpush.bf16.msrb.mxu1 %v6789_v58  ;;  %v6814_v30 = vld [vmem:[#allocation58_spill] sm:$0xff]  ;;  %v6815_v58 = vld [vmem:[#allocation59_spill] sm:$0xff] }
 0x5b4   :  { %3020 = vmatpush.bf16.msrb.mxu2 %v6790_v54  ;;  %3034 = vmatpush.bf16.msrb.mxu3 %v6791_v9  ;;  %v6816_v54 = vld [vmem:[#allocation60_spill] sm:$0xff]  ;;  %v6817_v9 = vld [vmem:[#allocation61_spill] sm:$0xff] }
 0x5b6   :  { %2993 = vmatpush.bf16.msrb.mxu0 %v6792_v32  ;;  %3007 = vmatpush.bf16.msrb.mxu1 %v6793_v31  ;;  %v6818_v32 = vld [vmem:[#allocation62_spill] sm:$0xff]  ;;  %v6819_v31 = vld [vmem:[#allocation63_spill] sm:$0xff] }
 0x5b8   :  { %3021 = vmatpush.bf16.msrb.mxu2 %v6796_v48  ;;  %3035 = vmatpush.bf16.msrb.mxu3 %v6797_v25  ;;  %v6822_v48 = vld [vmem:[#allocation66_spill] sm:$0xff]  ;;  %v6823_v25 = vld [vmem:[#allocation67_spill] sm:$0xff] }
 0x5ba   :  { %3052 = vmatpush.bf16.msra.mxu0 %v6794_v34  ;;  %3066 = vmatpush.bf16.msra.mxu1 %v6795_v8  ;;  %v6820_v34 = vld [vmem:[#allocation64_spill] sm:$0xff]  ;;  %v6821_v8 = vld [vmem:[#allocation65_spill] sm:$0xff] }
 0x5bc   :  { %3080 = vmatpush.bf16.msra.mxu2 %v6798_v10  ;;  %3094 = vmatpush.bf16.msra.mxu3 %v6799_v49  ;;  %v6824_v10 = vld [vmem:[#allocation68_spill] sm:$0xff]  ;;  %v6825_v49 = vld [vmem:[#allocation69_spill] sm:$0xff] }
 0x5be   :  { %3053 = vmatpush.bf16.msra.mxu0 %v6800_v56  ;;  %3067 = vmatpush.bf16.msra.mxu1 %v6801_v12  ;;  %v6826_v56 = vld [vmem:[#allocation70_spill] sm:$0xff]  ;;  %v6827_v12 = vld [vmem:[#allocation71_spill] sm:$0xff] }
 0x5c0   :  { %3081 = vmatpush.bf16.msra.mxu2 %v6802_v24  ;;  %3095 = vmatpush.bf16.msra.mxu3 %v6803_v16 }
 0x5c2   :  { %3054 = vmatpush.bf16.msra.mxu0 %v6804_v33  ;;  %3068 = vmatpush.bf16.msra.mxu1 %v6805_v46 }
 0x5c4   :  { %3082 = vmatpush.bf16.msra.mxu2 %v6806_v27  ;;  %3096 = vmatpush.bf16.msra.mxu3 %v6807_v39 }
 0x5c6   :  { %3055 = vmatpush.bf16.msra.mxu0 %v6808_v44  ;;  %3069 = vmatpush.bf16.msra.mxu1 %v6809_v62 }
 0x5c8   :  { %3083 = vmatpush.bf16.msra.mxu2 %v6810_v21  ;;  %3097 = vmatpush.bf16.msra.mxu3 %v6811_v7 }
 0x5ca   :  { %3056 = vmatpush.bf16.msra.mxu0 %v6812_v17  ;;  %3070 = vmatpush.bf16.msra.mxu1 %v6813_v13 }
 0x5cc   :  { %3084 = vmatpush.bf16.msra.mxu2 %v6814_v30  ;;  %3098 = vmatpush.bf16.msra.mxu3 %v6815_v58 }
 0x5ce   :  { %3057 = vmatpush.bf16.msra.mxu0 %v6816_v54  ;;  %3071 = vmatpush.bf16.msra.mxu1 %v6817_v9 }
 0x5d0   :  { %3085 = vmatpush.bf16.msra.mxu2 %v6818_v32  ;;  %3099 = vmatpush.bf16.msra.mxu3 %v6819_v31 }
 0x5d2   :  { %3058 = vmatpush.bf16.msra.mxu0 %v6820_v34  ;;  %3072 = vmatpush.bf16.msra.mxu1 %v6821_v8 }
 0x5d4   :  { %3086 = vmatpush.bf16.msra.mxu2 %v6822_v48  ;;  %3100 = vmatpush.bf16.msra.mxu3 %v6823_v25 }
 0x5d6   :  { %3059 = vmatpush.bf16.msra.mxu0 %v6824_v10  ;;  %3073 = vmatpush.bf16.msra.mxu1 %v6825_v49 }
 0x5d8   :  { %3087 = vmatpush.bf16.msra.mxu2 %v6826_v56  ;;  %3101 = vmatpush.bf16.msra.mxu3 %v6827_v12 }
 0x5f5   :  { %v2662_v24 = vpop.f32.mrf.mxu0  ;;  %v2676_v16 = vpop.f32.mrf.mxu1 }
 0x5fc   :  { %v2690_v33 = vpop.f32.mrf.mxu2  ;;  %v2704_v46 = vpop.f32.mrf.mxu3 }
 0x5fd   :  { %v2664_v27 = vpop.f32.mrf.mxu0  ;;  %v2678_v39 = vpop.f32.mrf.mxu1 }
 0x604   :  { %v5924_v44 = vpop.f32.mrf.mxu2  ;;  %v2706_v62 = vpop.f32.mrf.mxu3 }
 0x605   :  { %v2728_v21 = vpop.f32.mrf.mxu0  ;;  %v2742_v7 = vpop.f32.mrf.mxu1 }
 0x60c   :  { %v2756_v17 = vpop.f32.mrf.mxu2  ;;  %v2770_v13 = vpop.f32.mrf.mxu3 }
 0x60d   :  { %v2730_v30 = vpop.f32.mrf.mxu0  ;;  %v2744_v58 = vpop.f32.mrf.mxu1 }
 0x614   :  { %v2758_v54 = vpop.f32.mrf.mxu2  ;;  %v2772_v9 = vpop.f32.mrf.mxu3 }
 0x616   :  { %v2790_v32 = vpop.f32.mrf.mxu0  ;;  %v2804_v31 = vpop.f32.mrf.mxu1 }
 0x617   :  { %v2791_v34 = vadd.f32 %v2790_v32, %v2728_v21  ;;  %v2805_v8 = vadd.f32 %v2804_v31, %v2742_v7 }
 0x619   :  { %v2837_v48 = vadd.f32 %v2791_v34, %v4897_v40  ;;  %v2838_v25 = vadd.f32 %v2805_v8, %v4899_v2 }
 0x61b   :  { %v2845_v10 = vadd.f32 %v2837_v48, %v2662_v24  ;;  %v2846_v49 = vadd.f32 %v2838_v25, %v2676_v16 }
 0x61d   :  { %v3848_v56 = vmul.f32 -1.442695, %v2845_v10  ;;  %v3850_v12 = vmul.f32 -1.442695, %v2846_v49 }
 0x61e   :  { %v2818_v19 = vpop.f32.mrf.mxu2  ;;  %v2832_v29 = vpop.f32.mrf.mxu3 }
 0x61f   :  { %v2833_v57 = vadd.f32 %v2832_v29, %v2770_v13  ;;  %v2792_v26 = vpop.f32.mrf.mxu0  ;;  %v2806_v50 = vpop.f32.mrf.mxu1  ;;  %4185 = vpow2.f32 %v3848_v56  ;;  %v2819_v31 = vadd.f32 %v2818_v19, %v2756_v17 }
 0x620   :  { %v2793_v4 = vadd.f32 %v2792_v26, %v2730_v30  ;;  %v2807_v3 = vadd.f32 %v2806_v50, %v2744_v58  ;;  %4187 = vpow2.f32 %v3850_v12 }
 0x621   :  { %v2840_v21 = vadd.f32 %v2833_v57, %v4903_v28  ;;  %v2839_v26 = vadd.f32 %v2819_v31, %v4907_v52 }
 0x622   :  { %v2841_v7 = vadd.f32 %v2793_v4, %v4897_v40  ;;  %v2842_v32 = vadd.f32 %v2807_v3, %v4899_v2 }
 0x623   :  { %v2848_v24 = vadd.f32 %v2840_v21, %v2704_v46  ;;  %v2847_v3 = vadd.f32 %v2839_v26, %v2690_v33 }
 0x624   :  { %v2849_v16 = vadd.f32 %v2841_v7, %v2664_v27  ;;  %v2850_v34 = vadd.f32 %v2842_v32, %v2678_v39 }
 0x625   :  { %v3852_v8 = vmul.f32 -1.442695, %v2848_v24  ;;  %v4186_v48 = vpop.eup %4185 }
 0x626   :  { %v3849_v25 = vmul.f32 -1.442695, %v2849_v16  ;;  %v2834_v29 = vpop.f32.mrf.mxu3  ;;  %v4188_v13 = vpop.eup %4187  ;;  %v2859_v10 = vadd.f32 1.0, %v4186_v48  ;;  %v3851_v50 = vmul.f32 -1.442695, %v2850_v34 }
 0x627   :  { %4189 = vpow2.f32 %v3852_v8  ;;  %v2897_v30 = vadd.f32 1.0, %v4188_v13  ;;  %v2835_v57 = vadd.f32 %v2834_v29, %v2772_v9  ;;  %v2820_v4 = vpop.f32.mrf.mxu2 }
 0x628   :  { %4191 = vpow2.f32 %v3849_v25  ;;  %v2821_v19 = vadd.f32 %v2820_v4, %v2758_v54  ;;  %v2870_v32 = vand.u32 2147483647, %v2859_v10  ;;  %v2872_v31 = vand.u32 2147483648, %v2859_v10 }
 0x629   :  { %4193 = vrcp.f32 %v2859_v10  ;;  %v2844_v46 = vadd.f32 %v2835_v57, %v4903_v28  ;;  %v2910_v34 = vand.u32 2147483648, %v2897_v30  ;;  %v2908_v8 = vand.u32 2147483647, %v2897_v30 }
 0x62a   :  { %4195 = vrcp.f32 %v2897_v30  ;;  %v2843_v9 = vadd.f32 %v2821_v19, %v4907_v52  ;;  %vm2866_vm6 = vweird.f32 %v2859_v10  ;;  %vm2904_vm7 = vweird.f32 %v2897_v30 }
 0x62b   :  { %4197 = vpow2.f32 %v3851_v50  ;;  %v2852_v56 = vadd.f32 %v2844_v46, %v2706_v62  ;;  %vm2871_vm8 = vcmp.eq.f32.partialorder %v2870_v32, 8.507059e+37  ;;  %v2911_v4 = vor.u32 1.1754944e-38, %v2910_v34 }
 0x62c   :  { %4199 = vtanh.f32 %v2847_v3  ;;  %v2851_v25 = vadd.f32 %v2843_v9, %v5924_v44  ;;  %v2873_v3 = vor.u32 1.1754944e-38, %v2872_v31  ;;  %vm2909_vm11 = vcmp.eq.f32.partialorder %v2908_v8, 8.507059e+37 }
 0x62d   :  { %v4190_v27 = vpop.eup %4189  ;;  %v3853_v48 = vmul.f32 -1.442695, %v2852_v56 }
 0x62e   :  { %v4192_v39 = vpop.eup %4191  ;;  %v5933_v17 = vadd.f32 1.0, %v4190_v27 }
 0x62f   :  { %v4194_v58 = vpop.eup %4193  ;;  %v5935_v49 = vadd.f32 1.0, %v4192_v39 }
 0x630   :  { %v4196_v12 = vpop.eup %4195  ;;  %v2862_v21 = vmul.f32 %v4194_v58, %v2859_v10  ;;  %4201 = vrcp.f32 %v5933_v17  ;;  %vm2867_vm2 = vweird.f32 %v4194_v58  ;;  %vm2944_vm12 = vweird.f32 %v5933_v17 }
 0x631   :  { %v4198_v33 = vpop.eup %4197  ;;  %v2900_v7 = vmul.f32 %v4196_v12, %v2897_v30  ;;  %4203 = vrcp.f32 %v5935_v49  ;;  %vm2905_vm3 = vweird.f32 %v4196_v12  ;;  %vm2868_vm9 = vmor %vm2866_vm6, %vm2867_vm2  ;;  %vm2881_vm13 = vweird.f32 %v5935_v49 }
 0x632   :  { %v2863_v54 = vsub.f32 1.0, %v2862_v21  ;;  %v5940_v24 = vadd.f32 1.0, %v4198_v33  ;;  %v4200_v29 = vpop.eup %4199  ;;  %vm2906_vm10 = vmor %vm2904_vm7, %vm2905_vm3 }
 0x633   :  { %v2901_v16 = vsub.f32 1.0, %v2900_v7  ;;  %v2887_v7 = vand.u32 2147483648, %v5935_v49 }
 0x634   :  { %v2864_v62 = vmul.f32 %v4194_v58, %v2863_v54  ;;  %4205 = vrcp.f32 %v5940_v24  ;;  %vm2919_vm3 = vweird.f32 %v5940_v24 }
 0x635   :  { %v2902_v13 = vmul.f32 %v4196_v12, %v2901_v16  ;;  %4207 = vpow2.f32 %v3853_v48 }
 0x636   :  { %v5944_v26 = vpop.eup %4201  ;;  %v2865_v50 = vadd.f32 %v4194_v58, %v2864_v62  ;;  %4209 = vtanh.f32 %v2851_v25  ;;  %v2925_v62 = vand.u32 2147483648, %v5940_v24 }
 0x637   :  { %v4204_v57 = vpop.eup %4203  ;;  %v2903_v19 = vadd.f32 %v4196_v12, %v2902_v13  ;;  %v2940_v46 = vmul.f32 %v5944_v26, %v5933_v17  ;;  %v2888_v13 = vor.u32 1.1754944e-38, %v2887_v7  ;;  %vm2945_vm15 = vweird.f32 %v5944_v26 }
 0x638   :  { %v2869_v44 = vsel %vm2868_vm9, %v4194_v58, %v2865_v50  ;;  %v2877_v27 = vmul.f32 %v4204_v57, %v5935_v49  ;;  %v2950_v58 = vand.u32 2147483648, %v5933_v17  ;;  %vm2882_vm14 = vweird.f32 %v4204_v57  ;;  %vm2946_vm6 = vmor %vm2944_vm12, %vm2945_vm15 }
 0x639   :  { %v2874_v10 = vsel %vm2871_vm8, %v2873_v3, %v2869_v44  ;;  %v2907_v39 = vsel %vm2906_vm10, %v4196_v12, %v2903_v19  ;;  %v2941_v30 = vsub.f32 1.0, %v2940_v46  ;;  %v2885_v12 = vand.u32 2147483647, %v5935_v49  ;;  %vm2883_vm1 = vmor %vm2881_vm13, %vm2882_vm14 }
 0x63a   :  { %v4206_v56 = vpop.eup %4205  ;;  %v2912_v21 = vsel %vm2909_vm11, %v2911_v4, %v2907_v39  ;;  %v2971_v9 = vmul.f32 %v4200_v29, %v2874_v10  ;;  %v2878_v33 = vsub.f32 1.0, %v2877_v27  ;;  %v2923_v3 = vand.u32 2147483647, %v5940_v24 }
 0x63b   :  { %v2969_v54 = vmul.f32 %v2912_v21, %v5788_v38  ;;  %v2942_v32 = vmul.f32 %v5944_v26, %v2941_v30  ;;  %v2915_v31 = vmul.f32 %v4206_v56, %v5940_v24  ;;  %v4208_v16 = vpop.eup %4207  ;;  %vm2920_vm0 = vweird.f32 %v4206_v56 }
 0x63c   :  { %v2879_v34 = vmul.f32 %v4204_v57, %v2878_v33  ;;  %v2938_v25 = vadd.f32 1.0, %v4208_v16  ;;  %v4210_v38 = vpop.eup %4209  ;;  %vm2886_vm2 = vcmp.eq.f32.partialorder %v2885_v12, 8.507059e+37  ;;  %v2948_v46 = vand.u32 2147483647, %v5933_v17  ;;  %vm2921_vm7 = vmor %vm2919_vm3, %vm2920_vm0 }
 0x63d   :  { %v5957_v8 = vadd.f32 %v2971_v9, %v2969_v54  ;;  %v2916_v48 = vsub.f32 1.0, %v2915_v31  ;;  %v2943_v50 = vadd.f32 %v5944_v26, %v2942_v32  ;;  %v2926_v10 = vor.u32 1.1754944e-38, %v2925_v62 }
 0x63e   :  { %v2880_v29 = vadd.f32 %v4204_v57, %v2879_v34  ;;  %vm2924_vm8 = vcmp.eq.f32.partialorder %v2923_v3, 8.507059e+37  ;;  %v2951_v21 = vor.u32 1.1754944e-38, %v2950_v58  ;;  %vm2949_vm9 = vcmp.eq.f32.partialorder %v2948_v46, 8.507059e+37 }
 0x63f   :  { %4211 = vtanh.f32 %v5957_v8  ;;  %v2917_v4 = vmul.f32 %v4206_v56, %v2916_v48  ;;  %v2947_v39 = vsel %vm2946_vm6, %v5944_v26, %v2943_v50  ;;  %v2965_v26 = vand.u32 2147483648, %v2938_v25 }
 0x640   :  { %v2884_v19 = vsel %vm2883_vm1, %v4204_v57, %v2880_v29  ;;  %4213 = vrcp.f32 %v2938_v25  ;;  %v2952_v7 = vsel %vm2949_vm9, %v2951_v21, %v2947_v39  ;;  %v2963_v58 = vand.u32 2147483647, %v2938_v25 }
 0x641   :  { %v2889_v44 = vsel %vm2886_vm2, %v2888_v13, %v2884_v19  ;;  %v2918_v27 = vadd.f32 %v4206_v56, %v2917_v4  ;;  %vm2959_vm11 = vweird.f32 %v2938_v25  ;;  %v2966_v34 = vor.u32 1.1754944e-38, %v2965_v26 }
 0x642   :  { %v2972_v30 = vmul.f32 %v4210_v38, %v2889_v44  ;;  %vm2964_vm13 = vcmp.eq.f32.partialorder %v2963_v58, 8.507059e+37 }
 0x643   :  { %v2922_v49 = vsel %vm2921_vm7, %v4206_v56, %v2918_v27 }
 0x644   :  { %v2927_v57 = vsel %vm2924_vm8, %v2926_v10, %v2922_v49 }
 0x645   :  { %v4212_v9 = vpop.eup %4211  ;;  %v2970_v33 = vmul.f32 %v2927_v57, %v5803_v45 }
 0x646   :  { %v4214_v24 = vpop.eup %4213  ;;  %v2977_v54 = vmul.f32 %v4212_v9, %v2952_v7 }
 0x647   :  { %v5972_v32 = vadd.f32 %v2972_v30, %v2970_v33  ;;  %v2955_v17 = vmul.f32 %v4214_v24, %v2938_v25  ;;  %vm2960_vm10 = vweird.f32 %v4214_v24 }
 0x648   :  { %v2979_v31 = vpack.c.bf16 %v2977_v54, %v2977_v54  ;;  %vm2961_vm12 = vmor %vm2959_vm11, %vm2960_vm10 }
 0x649   :  { %4215 = vtanh.f32 %v5972_v32  ;;  %v2956_v16 = vsub.f32 1.0, %v2955_v17 }
 0x64a   :  { %3854 = vst.msk [vmem:[%s6102_s5 + $0x30] sm:$0xf] %vm968_vm4, %v2979_v31 }
 0x64b   :  { %v2957_v56 = vmul.f32 %v4214_v24, %v2956_v16  ;;  %3856 = vst.msk [vmem:[%s6102_s5 + $0x8] sm:$0xf] %vm972_vm5, %v2979_v31 }
 0x64d   :  { %v2958_v45 = vadd.f32 %v4214_v24, %v2957_v56 }
 0x64f   :  { %v4216_v12 = vpop.eup %4215  ;;  %v2962_v48 = vsel %vm2961_vm12, %v4214_v24, %v2958_v45 }
 0x650   :  { %v2967_v62 = vsel %vm2964_vm13, %v2966_v34, %v2962_v48 }
 0x651   :  { %v2978_v38 = vmul.f32 %v4216_v12, %v2967_v62 }
 0x653   :  { %v2980_v29 = vpack.c.bf16 %v2978_v38, %v2978_v38  ;;  %v2985_v13 = vpack.c.bf16 %v2978_v38, %v2977_v54 }
 0x655   :  { %3855 = vst.msk [vmem:[%s6102_s5 + $0x34] sm:$0xf] %vm968_vm4, %v2980_v29  ;;  %2994 = vmatmul.bf16.vlgmr.msrb.gmra.mxu0 %v2985_v13  ;;  %3008 = vmatmul.bf16.vlgmr.msrb.gmra.mxu1 %v2985_v13 }
 0x656   :  { %3857 = vst.msk [vmem:[%s6102_s5 + $0xc] sm:$0xf] %vm972_vm5, %v2980_v29  ;;  %3022 = vmatmul.bf16.vlgmr.msrb.gmra.mxu2 %v2985_v13  ;;  %3036 = vmatmul.bf16.vlgmr.msrb.gmra.mxu3 %v2985_v13 }
 0x657   :  { %3114 = vmatpush.bf16.msrb.mxu0 %v6405_v23  ;;  %3128 = vmatpush.bf16.msrb.mxu1 %v6406_v41  ;;  %v3987_v23 = vld [vmem:[%s6097_s0] sm:$0xff] }
 0x658   :  { %3142 = vmatpush.bf16.msrb.mxu2 %v6407_v18  ;;  %3156 = vmatpush.bf16.msrb.mxu3 %v6408_v55  ;;  %v6829_v41 = vld [vmem:[#allocation96_spill] sm:$0xff]  ;;  %v6830_v18 = vld [vmem:[#allocation97_spill] sm:$0xff]  ;;  %v3986_v55 = vld [vmem:[%s6097_s0 + $0x38] sm:$0xff] }
 0x65b   :  { %3115 = vmatpush.bf16.msrb.mxu0 %v4594_v63  ;;  %3129 = vmatpush.bf16.msrb.mxu1 %v6409_v61  ;;  %v6828_v63 = vld [vmem:[#allocation95_spill] sm:$0xff]  ;;  %v6831_v61 = vld [vmem:[#allocation98_spill] sm:$0xff] }
 0x65c   :  { %3143 = vmatpush.bf16.msrb.mxu2 %v6410_v36  ;;  %3157 = vmatpush.bf16.msrb.mxu3 %v6411_v20  ;;  %v6832_v36 = vld [vmem:[#allocation99_spill] sm:$0xff]  ;;  %v6833_v20 = vld [vmem:[#allocation100_spill] sm:$0xff] }
 0x65f   :  { %3116 = vmatpush.bf16.msrb.mxu0 %v6412_v1  ;;  %3130 = vmatpush.bf16.msrb.mxu1 %v6413_v60  ;;  %v6834_v1 = vld [vmem:[#allocation101_spill] sm:$0xff] }
 0x660   :  { %3144 = vmatpush.bf16.msrb.mxu2 %v6414_v59  ;;  %3158 = vmatpush.bf16.msrb.mxu3 %v6415_v51 }
 0x663   :  { %3117 = vmatpush.bf16.msrb.mxu0 %v6416_v43  ;;  %3131 = vmatpush.bf16.msrb.mxu1 %v6417_v0 }
 0x664   :  { %3145 = vmatpush.bf16.msrb.mxu2 %v6418_v11  ;;  %3159 = vmatpush.bf16.msrb.mxu3 %v6419_v35 }
 0x665   :  { %3060 = vmatmul.bf16.vlgmr.msra.gmra.mxu0 %v3987_v23  ;;  %3074 = vmatmul.bf16.vlgmr.msra.gmra.mxu1 %v3987_v23 }
 0x666   :  { %3088 = vmatmul.bf16.vlgmr.msra.gmra.mxu2 %v3987_v23  ;;  %3102 = vmatmul.bf16.vlgmr.msra.gmra.mxu3 %v3987_v23 }
 0x667   :  { %3118 = vmatpush.bf16.msrb.mxu0 %v6420_v37  ;;  %3132 = vmatpush.bf16.msrb.mxu1 %v6421_v14 }
 0x668   :  { %3146 = vmatpush.bf16.msrb.mxu2 %v6422_v5  ;;  %3160 = vmatpush.bf16.msrb.mxu3 %v6423_v6 }
 0x66b   :  { %3119 = vmatpush.bf16.msrb.mxu0 %v6424_v22  ;;  %3133 = vmatpush.bf16.msrb.mxu1 %v6425_v47 }
 0x66c   :  { %3147 = vmatpush.bf16.msrb.mxu2 %v6426_v15  ;;  %3161 = vmatpush.bf16.msrb.mxu3 %v6427_v42 }
 0x66f   :  { %3120 = vmatpush.bf16.msrb.mxu0 %v4774_v53  ;;  %3134 = vmatpush.bf16.msrb.mxu1 %v6828_v63 }
 0x670   :  { %3148 = vmatpush.bf16.msrb.mxu2 %v6829_v41  ;;  %3162 = vmatpush.bf16.msrb.mxu3 %v6830_v18 }
 0x673   :  { %3121 = vmatpush.bf16.msrb.mxu0 %v6831_v61  ;;  %3135 = vmatpush.bf16.msrb.mxu1 %v6832_v36 }
 0x674   :  { %3149 = vmatpush.bf16.msrb.mxu2 %v6833_v20  ;;  %3163 = vmatpush.bf16.msrb.mxu3 %v6834_v1 }
 0x676   :  { %3122 = vmatmul.bf16.vlgmr.msrb.gmra.mxu0 %v3986_v55  ;;  %3136 = vmatmul.bf16.vlgmr.msrb.gmra.mxu1 %v3986_v55 }
 0x677   :  { %3150 = vmatmul.bf16.vlgmr.msrb.gmra.mxu2 %v3986_v55  ;;  %3164 = vmatmul.bf16.vlgmr.msrb.gmra.mxu3 %v3986_v55 }
 0x6d2   :  { %v2995_v53 = vpop.f32.mrf.mxu0  ;;  %v3009_v60 = vpop.f32.mrf.mxu1 }
 0x6d9   :  { %v3023_v59 = vpop.f32.mrf.mxu2  ;;  %v3037_v51 = vpop.f32.mrf.mxu3 }
 0x6da   :  { %v2997_v43 = vpop.f32.mrf.mxu0  ;;  %v3011_v0 = vpop.f32.mrf.mxu1 }
 0x6e1   :  { %v6029_v11 = vpop.f32.mrf.mxu2  ;;  %v6031_v35 = vpop.f32.mrf.mxu3 }
 0x6e2   :  { %v3061_v37 = vpop.f32.mrf.mxu0  ;;  %v3075_v14 = vpop.f32.mrf.mxu1 }
 0x6e9   :  { %v3089_v5 = vpop.f32.mrf.mxu2  ;;  %v3103_v6 = vpop.f32.mrf.mxu3 }
 0x6ea   :  { %v3063_v22 = vpop.f32.mrf.mxu0  ;;  %v3077_v47 = vpop.f32.mrf.mxu1 }
 0x6f1   :  { %v3105_v15 = vpop.f32.mrf.mxu3  ;;  %v3091_v42 = vpop.f32.mrf.mxu2 }
 0x6f3   :  { %v3123_v25 = vpop.f32.mrf.mxu0  ;;  %v3137_v50 = vpop.f32.mrf.mxu1 }
 0x6f4   :  { %v3124_v4 = vadd.f32 %v3123_v25, %v3061_v37  ;;  %v3138_v3 = vadd.f32 %v3137_v50, %v3075_v14 }
 0x6f6   :  { %v3170_v19 = vadd.f32 %v3124_v4, %v4897_v40  ;;  %v3171_v46 = vadd.f32 %v3138_v3, %v4899_v2 }
 0x6f8   :  { %v3178_v44 = vadd.f32 %v3170_v19, %v2995_v53  ;;  %v3179_v27 = vadd.f32 %v3171_v46, %v3009_v60 }
 0x6fa   :  { %v3868_v10 = vmul.f32 -1.442695, %v3178_v44  ;;  %v3870_v39 = vmul.f32 -1.442695, %v3179_v27  ;;  %v3165_v49 = vpop.f32.mrf.mxu3  ;;  %v3151_v9 = vpop.f32.mrf.mxu2 }
 0x6fb   :  { %v3166_v30 = vadd.f32 %v3165_v49, %v3103_v6  ;;  %v3125_v21 = vpop.f32.mrf.mxu0  ;;  %v3139_v57 = vpop.f32.mrf.mxu1  ;;  %v3152_v56 = vadd.f32 %v3151_v9, %v3089_v5 }
 0x6fc   :  { %4217 = vpow2.f32 %v3868_v10  ;;  %v3126_v33 = vadd.f32 %v3125_v21, %v3063_v22  ;;  %v3140_v7 = vadd.f32 %v3139_v57, %v3077_v47 }
 0x6fd   :  { %4219 = vpow2.f32 %v3870_v39  ;;  %v3173_v24 = vadd.f32 %v3166_v30, %v4903_v28  ;;  %v3172_v13 = vadd.f32 %v3152_v56, %v4907_v52 }
 0x6fe   :  { %v3174_v54 = vadd.f32 %v3126_v33, %v4897_v40  ;;  %v3175_v17 = vadd.f32 %v3140_v7, %v4899_v2 }
 0x6ff   :  { %v3181_v31 = vadd.f32 %v3173_v24, %v3037_v51  ;;  %v3180_v63 = vadd.f32 %v3172_v13, %v3023_v59 }
 0x700   :  { %v3182_v16 = vadd.f32 %v3174_v54, %v2997_v43  ;;  %v3183_v26 = vadd.f32 %v3175_v17, %v3011_v0 }
 0x701   :  { %v3872_v58 = vmul.f32 -1.442695, %v3181_v31 }
 0x702   :  { %v4218_v45 = vpop.eup %4217  ;;  %v3869_v34 = vmul.f32 -1.442695, %v3182_v16  ;;  %v3871_v62 = vmul.f32 -1.442695, %v3183_v26  ;;  %v3167_v38 = vpop.f32.mrf.mxu3 }
 0x703   :  { %v4220_v12 = vpop.eup %4219  ;;  %v3192_v48 = vadd.f32 1.0, %v4218_v45  ;;  %4221 = vpow2.f32 %v3872_v58  ;;  %v3153_v40 = vpop.f32.mrf.mxu2  ;;  %v3168_v2 = vadd.f32 %v3167_v38, %v3105_v15 }
 0x704   :  { %v3230_v29 = vadd.f32 1.0, %v4220_v12  ;;  %4223 = vpow2.f32 %v3869_v34  ;;  %v3154_v41 = vadd.f32 %v3153_v40, %v3091_v42 }
 0x705   :  { %4225 = vrcp.f32 %v3192_v48  ;;  %v3177_v61 = vadd.f32 %v3168_v2, %v4903_v28  ;;  %v3203_v5 = vand.u32 2147483647, %v3192_v48  ;;  %v3205_v6 = vand.u32 2147483648, %v3192_v48 }
 0x706   :  { %4227 = vrcp.f32 %v3230_v29  ;;  %v3176_v43 = vadd.f32 %v3154_v41, %v4907_v52  ;;  %v3243_v14 = vand.u32 2147483648, %v3230_v29  ;;  %v3241_v47 = vand.u32 2147483647, %v3230_v29 }
 0x707   :  { %4229 = vpow2.f32 %v3871_v62  ;;  %v3185_v37 = vadd.f32 %v3177_v61, %v6031_v35  ;;  %vm3199_vm0 = vweird.f32 %v3192_v48  ;;  %vm3237_vm1 = vweird.f32 %v3230_v29 }
 0x708   :  { %v3184_v25 = vadd.f32 %v3176_v43, %v6029_v11  ;;  %vm3204_vm3 = vcmp.eq.f32.partialorder %v3203_v5, 8.507059e+37  ;;  %v3206_v4 = vor.u32 1.1754944e-38, %v3205_v6  ;;  %v3244_v44 = vor.u32 1.1754944e-38, %v3243_v14 }
 0x709   :  { %v4222_v23 = vpop.eup %4221  ;;  %v3873_v50 = vmul.f32 -1.442695, %v3185_v37  ;;  %vm3242_vm7 = vcmp.eq.f32.partialorder %v3241_v47, 8.507059e+37 }
 0x70a   :  { %v4224_v18 = vpop.eup %4223  ;;  %v6039_v55 = vadd.f32 1.0, %v4222_v23 }
 0x70b   :  { %v4226_v36 = vpop.eup %4225  ;;  %v6042_v20 = vadd.f32 1.0, %v4224_v18 }
 0x70c   :  { %v4228_v1 = vpop.eup %4227  ;;  %v3195_v53 = vmul.f32 %v4226_v36, %v3192_v48  ;;  %4231 = vrcp.f32 %v6039_v55  ;;  %vm3200_vm14 = vweird.f32 %v4226_v36  ;;  %v3283_v54 = vand.u32 2147483648, %v6039_v55 }
 0x70d   :  { %v4230_v60 = vpop.eup %4229  ;;  %v3233_v51 = vmul.f32 %v4228_v1, %v3230_v29  ;;  %4233 = vtanh.f32 %v3180_v63  ;;  %vm3238_vm15 = vweird.f32 %v4228_v1  ;;  %vm3201_vm2 = vmor %vm3199_vm0, %vm3200_vm14  ;;  %vm3214_vm8 = vweird.f32 %v6042_v20 }
 0x70e   :  { %v3196_v0 = vsub.f32 1.0, %v3195_v53  ;;  %4235 = vrcp.f32 %v6042_v20  ;;  %v6047_v59 = vadd.f32 1.0, %v4230_v60  ;;  %vm3239_vm6 = vmor %vm3237_vm1, %vm3238_vm15  ;;  %v3218_v17 = vand.u32 2147483647, %v6042_v20 }
 0x70f   :  { %v3234_v28 = vsub.f32 1.0, %v3233_v51  ;;  %v3220_v31 = vand.u32 2147483648, %v6042_v20  ;;  %vm3277_vm12 = vweird.f32 %v6039_v55  ;;  %v3281_v38 = vand.u32 2147483647, %v6039_v55 }
 0x710   :  { %v3197_v22 = vmul.f32 %v4226_v36, %v3196_v0  ;;  %4237 = vrcp.f32 %v6047_v59  ;;  %v3258_v45 = vand.u32 2147483648, %v6047_v59  ;;  %v3256_v34 = vand.u32 2147483647, %v6047_v59 }
 0x711   :  { %v3235_v15 = vmul.f32 %v4228_v1, %v3234_v28  ;;  %4239 = vpow2.f32 %v3873_v50  ;;  %v3221_v29 = vor.u32 1.1754944e-38, %v3220_v31  ;;  %vm3252_vm15 = vweird.f32 %v6047_v59 }
 0x712   :  { %v6051_v52 = vpop.eup %4231  ;;  %v3198_v42 = vadd.f32 %v4226_v36, %v3197_v22  ;;  %4241 = vtanh.f32 %v3184_v25  ;;  %vm3219_vm0 = vcmp.eq.f32.partialorder %v3218_v17, 8.507059e+37  ;;  %v3259_v41 = vor.u32 1.1754944e-38, %v3258_v45 }
 0x713   :  { %v4234_v35 = vpop.eup %4233  ;;  %v3236_v3 = vadd.f32 %v4228_v1, %v3235_v15  ;;  %v3273_v19 = vmul.f32 %v6051_v52, %v6039_v55  ;;  %vm3278_vm10 = vweird.f32 %v6051_v52  ;;  %v3284_v55 = vor.u32 1.1754944e-38, %v3283_v54 }
 0x714   :  { %v4236_v46 = vpop.eup %4235  ;;  %v3202_v27 = vsel %vm3201_vm2, %v4226_v36, %v3198_v42  ;;  %vm6072_vm14 = vmor %vm3277_vm12, %vm3278_vm10  ;;  %vm3257_vm2 = vcmp.eq.f32.partialorder %v3256_v34, 8.507059e+37 }
 0x715   :  { %v3207_v10 = vsel %vm3204_vm3, %v3206_v4, %v3202_v27  ;;  %v3240_v39 = vsel %vm3239_vm6, %v4228_v1, %v3236_v3  ;;  %v3274_v49 = vsub.f32 1.0, %v3273_v19  ;;  %v3210_v11 = vmul.f32 %v4236_v46, %v6042_v20 }
 0x716   :  { %v4238_v30 = vpop.eup %4237  ;;  %v3245_v21 = vsel %vm3242_vm7, %v3244_v44, %v3240_v39  ;;  %v3304_v57 = vmul.f32 %v4234_v35, %v3207_v10  ;;  %vm3215_vm9 = vweird.f32 %v4236_v46  ;;  %vm3282_vm3 = vcmp.eq.f32.partialorder %v3281_v38, 8.507059e+37 }
 0x717   :  { %v3302_v9 = vmul.f32 %v3245_v21, %v5957_v8  ;;  %v3275_v33 = vmul.f32 %v6051_v52, %v3274_v49  ;;  %v3211_v7 = vsub.f32 1.0, %v3210_v11  ;;  %v3248_v24 = vmul.f32 %v4238_v30, %v6047_v59  ;;  %v4240_v58 = vpop.eup %4239  ;;  %vm3216_vm13 = vmor %vm3214_vm8, %vm3215_vm9 }
 0x718   :  { %vm3253_vm11 = vweird.f32 %v4238_v30  ;;  %v4242_v62 = vpop.eup %4241  ;;  %v3271_v13 = vadd.f32 1.0, %v4240_v58 }
 0x719   :  { %v3306_v16 = vadd.f32 %v3304_v57, %v3302_v9  ;;  %v3249_v26 = vsub.f32 1.0, %v3248_v24  ;;  %v3212_v56 = vmul.f32 %v4236_v46, %v3211_v7  ;;  %v3276_v8 = vadd.f32 %v6051_v52, %v3275_v33  ;;  %vm3254_vm1 = vmor %vm3252_vm15, %vm3253_vm11 }
 0x71a   :  { %v3298_v14 = vand.u32 2147483648, %v3271_v13  ;;  %vm3292_vm7 = vweird.f32 %v3271_v13 }
 0x71b   :  { %4243 = vtanh.f32 %v3306_v16  ;;  %v3250_v12 = vmul.f32 %v4238_v30, %v3249_v26  ;;  %v3213_v48 = vadd.f32 %v4236_v46, %v3212_v56  ;;  %v3280_v63 = vsel %vm6072_vm14, %v6051_v52, %v3276_v8 }
 0x71c   :  { %4245 = vrcp.f32 %v3271_v13  ;;  %v3285_v53 = vsel %vm3282_vm3, %v3284_v55, %v3280_v63  ;;  %v3299_v47 = vor.u32 1.1754944e-38, %v3298_v14 }
 0x71d   :  { %v3217_v2 = vsel %vm3216_vm13, %v4236_v46, %v3213_v48  ;;  %v3251_v23 = vadd.f32 %v4238_v30, %v3250_v12 }
 0x71e   :  { %v3222_v18 = vsel %vm3219_vm0, %v3221_v29, %v3217_v2 }
 0x71f   :  { %v3255_v61 = vsel %vm3254_vm1, %v4238_v30, %v3251_v23  ;;  %v3305_v36 = vmul.f32 %v4242_v62, %v3222_v18 }
 0x720   :  { %v3260_v20 = vsel %vm3257_vm2, %v3259_v41, %v3255_v61 }
 0x721   :  { %v4244_v1 = vpop.eup %4243  ;;  %v3303_v60 = vmul.f32 %v3260_v20, %v5972_v32  ;;  %v3296_v32 = vand.u32 2147483647, %v3271_v13 }
 0x722   :  { %v3310_v51 = vmul.f32 %v4244_v1, %v3285_v53  ;;  %v4246_v0 = vpop.eup %4245 }
 0x723   :  { %v3307_v43 = vadd.f32 %v3305_v36, %v3303_v60  ;;  %v3288_v37 = vmul.f32 %v4246_v0, %v3271_v13  ;;  %vm3293_vm6 = vweird.f32 %v4246_v0  ;;  %vm3297_vm9 = vcmp.eq.f32.partialorder %v3296_v32, 8.507059e+37 }
 0x724   :  { %v3312_v59 = vpack.c.bf16 %v3310_v51, %v3310_v51  ;;  %vm3294_vm8 = vmor %vm3292_vm7, %vm3293_vm6 }
 0x725   :  { %4247 = vtanh.f32 %v3307_v43  ;;  %v3289_v28 = vsub.f32 1.0, %v3288_v37 }
 0x726   :  { %3874 = vst.msk [vmem:[%s6102_s5 + $0x38] sm:$0xf] %vm968_vm4, %v3312_v59 }
 0x727   :  { %3316 = vst.msk [vmem:[%s6102_s5] sm:$0xf] %vm972_vm5, %v3312_v59  ;;  %v3290_v5 = vmul.f32 %v4246_v0, %v3289_v28 }
 0x729   :  { %v3291_v6 = vadd.f32 %v4246_v0, %v3290_v5 }
 0x72b   :  { %v4248_v22 = vpop.eup %4247  ;;  %v3295_v15 = vsel %vm3294_vm8, %v4246_v0, %v3291_v6 }
 0x72c   :  { %v3300_v52 = vsel %vm3297_vm9, %v3299_v47, %v3295_v15 }
 0x72d   :  { %v3311_v42 = vmul.f32 %v4248_v22, %v3300_v52 }
 0x72f   :  { %v3313_v25 = vpack.c.bf16 %v3311_v42, %v3311_v42 }
 0x731   :  { %3875 = vst.msk [vmem:[%s6102_s5 + $0x3c] sm:$0xf] %vm968_vm4, %v3313_v25 }
 0x732   :  { %3317 = vst.msk [vmem:[%s6102_s5 + $0x4] sm:$0xf] %vm972_vm5, %v3313_v25 }
 0x733   :  { %3322 = vsyncpa [#allocation3], 1 }
 0x734   :  { %3323 = vsyncpa [#allocation5], 1 }

</bundles_post_ra>
